<compile_context>
chip_gen: v5e
topology: v5e:2x2
jax: 0.10.0
libtpu: 0.0.40
codegen_flags: <defaults>
</compile_context>

<pallas_src>
import jax
import jax.numpy as jnp
from jax import lax
from jax.experimental import pallas as pl
from jax.experimental.pallas import tpu as pltpu

_F32 = jnp.float32


def _tiled_bytes(h, w, c):
    """VMEM footprint (bytes) of one (h, w, c) f32 slab in native (8,128) tiling."""
    return h * (-(-w // 8)) * (-(-c // 128)) * 8 * 128 * 4


def _largest_divisor_fitting(n, per_item_bytes, budget_bytes):
    best = 1
    for d in range(1, n + 1):
        if n % d == 0 and d * per_item_bytes <= budget_bytes:
            best = d
    return best


def sepconv_stage(xpad, dw, pw, scale, shift, *, K, stride, pad, cin, cout,
                  apply_mask):
    """Fused stage: (affine+ReLU) -> depthwise KxK -> pointwise 1x1 (MXU) + BN sums.

    xpad  : (N, Hp, Wp, cin)  zero-padded NHWC input.
    dw    : (K*K, cin)        depthwise taps, tap-major.
    pw    : (cin, cout)       pointwise weights for (HW, cin) @ (cin, cout).
    scale, shift : (1, cin)   per-channel affine before the ReLU (identity for
                              stage 1, folded BatchNorm1 for stage 2).
    apply_mask : re-zero the padded border after affine+ReLU.  Must be True
                 whenever `shift` may be nonzero (stage 2); stage 1 skips it
                 because relu(1*0 + 0) == 0 already.

    Returns:
      y     : (N, Ho, Wo, cout)
      stats : (grid_n, 2, cout)  per-grid-step (sum, sum_sq) over the block's
              pixels -- fused BatchNorm statistics (no extra HBM pass).
    """
    N, Hp, Wp, _ = xpad.shape
    Ho = (Hp - K) // stride + 1
    Wo = (Wp - K) // stride + 1
    HWo = Ho * Wo

    # Batch-block so each grid step is fat enough to amortize per-step overhead
    # while the (tiling-aware) footprint stays inside every generation's scoped
    # VMEM (v5e 16 MiB default, v7x 64 MiB physical).
    per_image = (4 * _tiled_bytes(Hp, Wp, cin)          # input block + pre + slack
                 + 4 * _tiled_bytes(Ho, Wo, max(cin, cout)))
    block_n = _largest_divisor_fitting(N, per_image, 6 * 2**20)
    grid_n = N // block_n
    vmem_limit = int(min(32 * 2**20, max(16 * 2**20, 3 * block_n * per_image)))

    if apply_mask:
        interior = jnp.pad(jnp.ones((Hp - 2 * pad, Wp - 2 * pad), _F32),
                           ((pad, pad), (pad, pad)))
        mask_arr = jnp.broadcast_to(interior[:, :, None], (Hp, Wp, cin))

    def kernel(*refs):
        if apply_mask:
            (x_ref, dw_ref, pw_ref, sc_ref, sh_ref, mask_ref,
             y_ref, stat_ref) = refs
        else:
            x_ref, dw_ref, pw_ref, sc_ref, sh_ref, y_ref, stat_ref = refs
            mask_ref = None

        x = x_ref[...]                                    # (block_n, Hp, Wp, cin)
        sc = sc_ref[...].reshape(1, 1, 1, cin)
        sh = sh_ref[...].reshape(1, 1, 1, cin)
        pre = jnp.maximum(x * sc + sh, 0.0)
        if mask_ref is not None:
            # Restore exact zeros on the padded border (the affine shift would
            # otherwise leak through the ReLU).
            pre = pre * mask_ref[...]

        # Depthwise KxK: K^2 shifted vector FMAs over all channels per vreg.
        if stride == 1:
            phases = {(0, 0): pre}
        else:
            # stride^2 phase extraction once; contiguous windows per tap after.
            phases = {(r, c): pre[:, r::stride, c::stride, :]
                      for r in range(stride) for c in range(stride)}
        acc = None
        for u in range(K):
            for v in range(K):
                ph = phases[(u % stride, v % stride)]
                qu, qv = u // stride, v // stride
                win = ph[:, qu:qu + Ho, qv:qv + Wo, :]
                t = u * K + v
                tap = dw_ref[t:t + 1, :].reshape(1, 1, 1, cin)
                term = tap * win
                acc = term if acc is None else acc + term

        # Pointwise 1x1 on the MXU: (block_n*Ho*Wo, cin) @ (cin, cout).
        # The reshape only merges leading dims (lane dim cin is untouched).
        acc2d = acc.reshape(block_n * HWo, cin)
        out2d = jnp.dot(acc2d, pw_ref[...], preferred_element_type=jnp.float32)
        y_ref[...] = out2d.reshape(block_n, Ho, Wo, cout)

        # Fused BatchNorm statistics for this block.
        stat_ref[0, 0:1, :] = jnp.sum(out2d, axis=0, keepdims=True)
        stat_ref[0, 1:2, :] = jnp.sum(out2d * out2d, axis=0, keepdims=True)

    in_specs = [
        pl.BlockSpec((block_n, Hp, Wp, cin), lambda i: (i, 0, 0, 0)),
        pl.BlockSpec((K * K, cin), lambda i: (0, 0)),
        pl.BlockSpec((cin, cout), lambda i: (0, 0)),
        pl.BlockSpec((1, cin), lambda i: (0, 0)),
        pl.BlockSpec((1, cin), lambda i: (0, 0)),
    ]
    operands = [xpad, dw, pw, scale, shift]
    if apply_mask:
        in_specs.append(pl.BlockSpec((Hp, Wp, cin), lambda i: (0, 0, 0)))
        operands.append(mask_arr)

    y, stats = pl.pallas_call(
        kernel,
        out_shape=(
            jax.ShapeDtypeStruct((N, Ho, Wo, cout), _F32),
            jax.ShapeDtypeStruct((grid_n, 2, cout), _F32),
        ),
        grid=(grid_n,),
        in_specs=in_specs,
        out_specs=(
            pl.BlockSpec((block_n, Ho, Wo, cout), lambda i: (i, 0, 0, 0)),
            pl.BlockSpec((1, 2, cout), lambda i: (i, 0, 0)),
        ),
        compiler_params=pltpu.CompilerParams(
            dimension_semantics=("parallel",),
            vmem_limit_bytes=vmem_limit,
        ),
    )(*operands)
    return y, stats


def bn_apply(y, scale, shift):
    """y[n,h,w,c]*scale[c] + shift[c] as a single lane-vector op (no channel loop)."""
    N, H, W, C = y.shape
    per_image = 3 * _tiled_bytes(H, W, C)
    block_n = _largest_divisor_fitting(N, per_image, 6 * 2**20)
    grid_n = N // block_n

    def kernel(y_ref, sc_ref, sh_ref, o_ref):
        o_ref[...] = (y_ref[...] * sc_ref[...].reshape(1, 1, 1, C)
                      + sh_ref[...].reshape(1, 1, 1, C))

    return pl.pallas_call(
        kernel,
        out_shape=jax.ShapeDtypeStruct((N, H, W, C), _F32),
        grid=(grid_n,),
        in_specs=[
            pl.BlockSpec((block_n, H, W, C), lambda i: (i, 0, 0, 0)),
            pl.BlockSpec((1, C), lambda i: (0, 0)),
            pl.BlockSpec((1, C), lambda i: (0, 0)),
        ],
        out_specs=pl.BlockSpec((block_n, H, W, C), lambda i: (i, 0, 0, 0)),
        compiler_params=pltpu.CompilerParams(dimension_semantics=("parallel",)),
    )(y, scale, shift)


def sepconv_forward(x, params, *, K, stride, pad):
    """Full SepConv forward (training-mode BatchNorm, like a fresh PyTorch module)."""
    dw1, pw1, g1, b1, dw2, pw2, g2, b2 = params
    N, C_in, H, W = x.shape
    C_out = pw2.shape[0]
    eps = 1e-5

    # Weight layout plumbing (glue): tap-major depthwise taps; pointwise
    # matrices transposed to (cin, cout) for the (HW, cin) @ (cin, cout) matmul.
    dw1_k = dw1.reshape(C_in, K * K).T.astype(_F32)        # (K*K, C_in)
    dw2_k = dw2.reshape(C_in, K * K).T.astype(_F32)
    pw1_k = pw1.reshape(C_in, C_in).T.astype(_F32)         # (C_in, C_in)
    pw2_k = pw2.reshape(C_out, C_in).T.astype(_F32)        # (C_in, C_out)

    ones = jnp.ones((1, C_in), _F32)
    zeros = jnp.zeros((1, C_in), _F32)

    # Channels-last so channels ride the lane dim inside the kernels.
    x_nhwc = jnp.transpose(x.astype(_F32), (0, 2, 3, 1))
    xpad = jnp.pad(x_nhwc, ((0, 0), (pad, pad), (pad, pad), (0, 0)))

    # Stage 1: ReLU -> depthwise(K, stride) -> pointwise 1x1 (C_in -> C_in).
    y1, st1 = sepconv_stage(xpad, dw1_k, pw1_k, ones, zeros,
                            K=K, stride=stride, pad=pad,
                            cin=C_in, cout=C_in, apply_mask=False)

    # BatchNorm1 (batch stats, biased variance) from the fused per-block sums.
    H1, W1 = y1.shape[1], y1.shape[2]
    cnt1 = float(N * H1 * W1)
    s1 = jnp.sum(st1[:, 0, :], axis=0)
    ss1 = jnp.sum(st1[:, 1, :], axis=0)
    m1 = s1 / cnt1
    v1 = ss1 / cnt1 - m1 * m1
    sc1 = g1 / jnp.sqrt(v1 + eps)
    sh1 = b1 - m1 * sc1

    # Stage 2: (BN1 + ReLU fused as pre-affine) -> depthwise(K, 1) -> pointwise (C_in -> C_out).
    y1pad = jnp.pad(y1, ((0, 0), (pad, pad), (pad, pad), (0, 0)))
    y2, st2 = sepconv_stage(y1pad, dw2_k, pw2_k,
                            sc1.reshape(1, C_in), sh1.reshape(1, C_in),
                            K=K, stride=1, pad=pad,
                            cin=C_in, cout=C_out, apply_mask=(pad > 0))

    # BatchNorm2 (batch stats) from fused sums, applied by the vectorized affine kernel.
    H2, W2 = y2.shape[1], y2.shape[2]
    cnt2 = float(N * H2 * W2)
    s2 = jnp.sum(st2[:, 0, :], axis=0)
    ss2 = jnp.sum(st2[:, 1, :], axis=0)
    m2 = s2 / cnt2
    v2 = ss2 / cnt2 - m2 * m2
    sc2 = g2 / jnp.sqrt(v2 + eps)
    sh2 = b2 - m2 * sc2
    out_nhwc = bn_apply(y2, sc2.reshape(1, C_out), sh2.reshape(1, C_out))

    return jnp.transpose(out_nhwc, (0, 3, 1, 2))            # back to NCHW


def sepconv_reference(x, params, *, K, stride, pad):
    """Pure-JAX reference matching PyTorch SepConv.forward (training-mode BN)."""
    dw1, pw1, g1, b1, dw2, pw2, g2, b2 = params
    C_in = x.shape[1]
    eps = 1e-5
    dn = ("NCHW", "OIHW", "NCHW")

    def dwconv(a, w, s):
        return lax.conv_general_dilated(a, w, (s, s), [(pad, pad), (pad, pad)],
                                        dimension_numbers=dn,
                                        feature_group_count=C_in)

    def pwconv(a, w):
        return lax.conv_general_dilated(a, w, (1, 1), [(0, 0), (0, 0)],
                                        dimension_numbers=dn)

    def bn(a, g, b):
        m = a.mean(axis=(0, 2, 3), keepdims=True)
        v = a.var(axis=(0, 2, 3), keepdims=True)
        return (a - m) / jnp.sqrt(v + eps) * g.reshape(1, -1, 1, 1) + b.reshape(1, -1, 1, 1)

    y = jax.nn.relu(x)
    y = pwconv(dwconv(y, dw1, stride), pw1)
    y = jax.nn.relu(bn(y, g1, b1))
    y = pwconv(dwconv(y, dw2, 1), pw2)
    return bn(y, g2, b2)


if __name__ == "__main__":
    # SepConv(C_in=4, C_out=8, kernel_size=3, stride=1, padding=1)
    N, C_in, H, W = 2, 4, 16, 16
    C_out, K, STRIDE, PAD = 8, 3, 1, 1

    key = jax.random.PRNGKey(0)
    kx, k1, k2, k3, k4, k5, k6, k7, k8 = jax.random.split(key, 9)

    x = jax.random.normal(kx, (N, C_in, H, W), jnp.float32)
    dw1 = jax.random.normal(k1, (C_in, 1, K, K), jnp.float32) * 0.3
    pw1 = jax.random.normal(k2, (C_in, C_in, 1, 1), jnp.float32) * 0.3
    g1 = 1.0 + 0.1 * jax.random.normal(k3, (C_in,), jnp.float32)
    b1 = 0.1 * jax.random.normal(k4, (C_in,), jnp.float32)
    dw2 = jax.random.normal(k5, (C_in, 1, K, K), jnp.float32) * 0.3
    pw2 = jax.random.normal(k6, (C_out, C_in, 1, 1), jnp.float32) * 0.3
    g2 = 1.0 + 0.1 * jax.random.normal(k7, (C_out,), jnp.float32)
    b2 = 0.1 * jax.random.normal(k8, (C_out,), jnp.float32)

    params = (dw1, pw1, g1, b1, dw2, pw2, g2, b2)

    fwd = jax.jit(lambda xx, pp: sepconv_forward(xx, pp, K=K, stride=STRIDE, pad=PAD))
    out = jax.block_until_ready(fwd(x, params))

    ref = jax.block_until_ready(sepconv_reference(x, params, K=K, stride=STRIDE, pad=PAD))

    err = float(jnp.max(jnp.abs(out - ref)))
    assert out.shape == (N, C_out, H, W), out.shape
    assert err < 1e-3, f"max abs error too large: {err}"

    print("KERNEL_OK")
</pallas_src>

<mosaic_0001>
module attributes {stable_mosaic.version = 11 : i64} {
  func.func @kernel(%arg0: i32, %arg1: memref<2x18x18x4xf32, #tpu.memory_space<vmem>>, %arg2: memref<9x4xf32, #tpu.memory_space<vmem>>, %arg3: memref<4x8xf32, #tpu.memory_space<vmem>>, %arg4: memref<1x4xf32, #tpu.memory_space<vmem>>, %arg5: memref<1x4xf32, #tpu.memory_space<vmem>>, %arg6: memref<18x18x4xf32, #tpu.memory_space<vmem>>, %arg7: memref<2x16x16x8xf32, #tpu.memory_space<vmem>>, %arg8: memref<1x2x8xf32, #tpu.memory_space<vmem>>) attributes {dimension_semantics = [#tpu.dimension_semantics<parallel>], iteration_bounds = array<i64: 1>, scalar_prefetch = 0 : i64, scratch_operands = 0 : i64, tpu.core_type = #tpu.core_type<tc>, window_params = [{transform_indices = @transform_0, window_bounds = array<i64: 2, 18, 18, 4>}, {pipeline_mode = #tpu.pipeline_mode<synchronous>, transform_indices = @transform_1, window_bounds = array<i64: 9, 4>}, {pipeline_mode = #tpu.pipeline_mode<synchronous>, transform_indices = @transform_2, window_bounds = array<i64: 4, 8>}, {pipeline_mode = #tpu.pipeline_mode<synchronous>, transform_indices = @transform_3, window_bounds = array<i64: 1, 4>}, {pipeline_mode = #tpu.pipeline_mode<synchronous>, transform_indices = @transform_4, window_bounds = array<i64: 1, 4>}, {pipeline_mode = #tpu.pipeline_mode<synchronous>, transform_indices = @transform_5, window_bounds = array<i64: 18, 18, 4>}, {transform_indices = @transform_6, window_bounds = array<i64: 2, 16, 16, 8>}, {transform_indices = @transform_7, window_bounds = array<i64: 1, 2, 8>}]} {
    %c0 = arith.constant 0 : index
    %c0_0 = arith.constant 0 : index
    %c0_1 = arith.constant 0 : index
    %c0_2 = arith.constant 0 : index
    %0 = vector.load %arg1[%c0, %c0_0, %c0_1, %c0_2] : memref<2x18x18x4xf32, #tpu.memory_space<vmem>>, vector<2x18x18x4xf32>
    %c0_3 = arith.constant 0 : index
    %c0_4 = arith.constant 0 : index
    %1 = vector.load %arg4[%c0_3, %c0_4] : memref<1x4xf32, #tpu.memory_space<vmem>>, vector<1x4xf32>
    %2 = vector.shape_cast %1 : vector<1x4xf32> to vector<1x1x1x4xf32>
    %c0_5 = arith.constant 0 : index
    %c0_6 = arith.constant 0 : index
    %3 = vector.load %arg5[%c0_5, %c0_6] : memref<1x4xf32, #tpu.memory_space<vmem>>, vector<1x4xf32>
    %4 = vector.shape_cast %3 : vector<1x4xf32> to vector<1x1x1x4xf32>
    %5 = vector.broadcast %2 : vector<1x1x1x4xf32> to vector<2x18x18x4xf32>
    %6 = arith.mulf %0, %5 : vector<2x18x18x4xf32>
    %7 = vector.broadcast %4 : vector<1x1x1x4xf32> to vector<2x18x18x4xf32>
    %8 = arith.addf %6, %7 : vector<2x18x18x4xf32>
    %cst = arith.constant 0.000000e+00 : f32
    %9 = vector.broadcast %cst : f32 to vector<2x18x18x4xf32>
    %10 = arith.maximumf %8, %9 : vector<2x18x18x4xf32>
    %c0_7 = arith.constant 0 : index
    %c0_8 = arith.constant 0 : index
    %c0_9 = arith.constant 0 : index
    %11 = vector.load %arg6[%c0_7, %c0_8, %c0_9] : memref<18x18x4xf32, #tpu.memory_space<vmem>>, vector<18x18x4xf32>
    %12 = vector.shape_cast %11 : vector<18x18x4xf32> to vector<1x18x18x4xf32>
    %13 = vector.broadcast %12 : vector<1x18x18x4xf32> to vector<2x18x18x4xf32>
    %14 = arith.mulf %10, %13 : vector<2x18x18x4xf32>
    %15 = vector.extract_strided_slice %14 {offsets = [0, 0, 0, 0], sizes = [2, 16, 16, 4], strides = [1, 1, 1, 1]} : vector<2x18x18x4xf32> to vector<2x16x16x4xf32>
    %c0_10 = arith.constant 0 : index
    %c0_11 = arith.constant 0 : index
    %16 = vector.load %arg2[%c0_10, %c0_11] : memref<9x4xf32, #tpu.memory_space<vmem>>, vector<1x4xf32>
    %17 = vector.shape_cast %16 : vector<1x4xf32> to vector<1x1x1x4xf32>
    %18 = vector.broadcast %17 : vector<1x1x1x4xf32> to vector<2x16x16x4xf32>
    %19 = arith.mulf %18, %15 : vector<2x16x16x4xf32>
    %20 = vector.extract_strided_slice %14 {offsets = [0, 0, 1, 0], sizes = [2, 16, 16, 4], strides = [1, 1, 1, 1]} : vector<2x18x18x4xf32> to vector<2x16x16x4xf32>
    %c1 = arith.constant 1 : index
    %c0_12 = arith.constant 0 : index
    %21 = vector.load %arg2[%c1, %c0_12] : memref<9x4xf32, #tpu.memory_space<vmem>>, vector<1x4xf32>
    %22 = vector.shape_cast %21 : vector<1x4xf32> to vector<1x1x1x4xf32>
    %23 = vector.broadcast %22 : vector<1x1x1x4xf32> to vector<2x16x16x4xf32>
    %24 = arith.mulf %23, %20 : vector<2x16x16x4xf32>
    %25 = arith.addf %19, %24 : vector<2x16x16x4xf32>
    %26 = vector.extract_strided_slice %14 {offsets = [0, 0, 2, 0], sizes = [2, 16, 16, 4], strides = [1, 1, 1, 1]} : vector<2x18x18x4xf32> to vector<2x16x16x4xf32>
    %c2 = arith.constant 2 : index
    %c0_13 = arith.constant 0 : index
    %27 = vector.load %arg2[%c2, %c0_13] : memref<9x4xf32, #tpu.memory_space<vmem>>, vector<1x4xf32>
    %28 = vector.shape_cast %27 : vector<1x4xf32> to vector<1x1x1x4xf32>
    %29 = vector.broadcast %28 : vector<1x1x1x4xf32> to vector<2x16x16x4xf32>
    %30 = arith.mulf %29, %26 : vector<2x16x16x4xf32>
    %31 = arith.addf %25, %30 : vector<2x16x16x4xf32>
    %32 = vector.extract_strided_slice %14 {offsets = [0, 1, 0, 0], sizes = [2, 16, 16, 4], strides = [1, 1, 1, 1]} : vector<2x18x18x4xf32> to vector<2x16x16x4xf32>
    %c3 = arith.constant 3 : index
    %c0_14 = arith.constant 0 : index
    %33 = vector.load %arg2[%c3, %c0_14] : memref<9x4xf32, #tpu.memory_space<vmem>>, vector<1x4xf32>
    %34 = vector.shape_cast %33 : vector<1x4xf32> to vector<1x1x1x4xf32>
    %35 = vector.broadcast %34 : vector<1x1x1x4xf32> to vector<2x16x16x4xf32>
    %36 = arith.mulf %35, %32 : vector<2x16x16x4xf32>
    %37 = arith.addf %31, %36 : vector<2x16x16x4xf32>
    %38 = vector.extract_strided_slice %14 {offsets = [0, 1, 1, 0], sizes = [2, 16, 16, 4], strides = [1, 1, 1, 1]} : vector<2x18x18x4xf32> to vector<2x16x16x4xf32>
    %c4 = arith.constant 4 : index
    %c0_15 = arith.constant 0 : index
    %39 = vector.load %arg2[%c4, %c0_15] : memref<9x4xf32, #tpu.memory_space<vmem>>, vector<1x4xf32>
    %40 = vector.shape_cast %39 : vector<1x4xf32> to vector<1x1x1x4xf32>
    %41 = vector.broadcast %40 : vector<1x1x1x4xf32> to vector<2x16x16x4xf32>
    %42 = arith.mulf %41, %38 : vector<2x16x16x4xf32>
    %43 = arith.addf %37, %42 : vector<2x16x16x4xf32>
    %44 = vector.extract_strided_slice %14 {offsets = [0, 1, 2, 0], sizes = [2, 16, 16, 4], strides = [1, 1, 1, 1]} : vector<2x18x18x4xf32> to vector<2x16x16x4xf32>
    %c5 = arith.constant 5 : index
    %c0_16 = arith.constant 0 : index
    %45 = vector.load %arg2[%c5, %c0_16] : memref<9x4xf32, #tpu.memory_space<vmem>>, vector<1x4xf32>
    %46 = vector.shape_cast %45 : vector<1x4xf32> to vector<1x1x1x4xf32>
    %47 = vector.broadcast %46 : vector<1x1x1x4xf32> to vector<2x16x16x4xf32>
    %48 = arith.mulf %47, %44 : vector<2x16x16x4xf32>
    %49 = arith.addf %43, %48 : vector<2x16x16x4xf32>
    %50 = vector.extract_strided_slice %14 {offsets = [0, 2, 0, 0], sizes = [2, 16, 16, 4], strides = [1, 1, 1, 1]} : vector<2x18x18x4xf32> to vector<2x16x16x4xf32>
    %c6 = arith.constant 6 : index
    %c0_17 = arith.constant 0 : index
    %51 = vector.load %arg2[%c6, %c0_17] : memref<9x4xf32, #tpu.memory_space<vmem>>, vector<1x4xf32>
    %52 = vector.shape_cast %51 : vector<1x4xf32> to vector<1x1x1x4xf32>
    %53 = vector.broadcast %52 : vector<1x1x1x4xf32> to vector<2x16x16x4xf32>
    %54 = arith.mulf %53, %50 : vector<2x16x16x4xf32>
    %55 = arith.addf %49, %54 : vector<2x16x16x4xf32>
    %56 = vector.extract_strided_slice %14 {offsets = [0, 2, 1, 0], sizes = [2, 16, 16, 4], strides = [1, 1, 1, 1]} : vector<2x18x18x4xf32> to vector<2x16x16x4xf32>
    %c7 = arith.constant 7 : index
    %c0_18 = arith.constant 0 : index
    %57 = vector.load %arg2[%c7, %c0_18] : memref<9x4xf32, #tpu.memory_space<vmem>>, vector<1x4xf32>
    %58 = vector.shape_cast %57 : vector<1x4xf32> to vector<1x1x1x4xf32>
    %59 = vector.broadcast %58 : vector<1x1x1x4xf32> to vector<2x16x16x4xf32>
    %60 = arith.mulf %59, %56 : vector<2x16x16x4xf32>
    %61 = arith.addf %55, %60 : vector<2x16x16x4xf32>
    %62 = vector.extract_strided_slice %14 {offsets = [0, 2, 2, 0], sizes = [2, 16, 16, 4], strides = [1, 1, 1, 1]} : vector<2x18x18x4xf32> to vector<2x16x16x4xf32>
    %c8 = arith.constant 8 : index
    %c0_19 = arith.constant 0 : index
    %63 = vector.load %arg2[%c8, %c0_19] : memref<9x4xf32, #tpu.memory_space<vmem>>, vector<1x4xf32>
    %64 = vector.shape_cast %63 : vector<1x4xf32> to vector<1x1x1x4xf32>
    %65 = vector.broadcast %64 : vector<1x1x1x4xf32> to vector<2x16x16x4xf32>
    %66 = arith.mulf %65, %62 : vector<2x16x16x4xf32>
    %67 = arith.addf %61, %66 : vector<2x16x16x4xf32>
    %68 = vector.shape_cast %67 : vector<2x16x16x4xf32> to vector<512x4xf32>
    %c0_20 = arith.constant 0 : index
    %c0_21 = arith.constant 0 : index
    %69 = vector.load %arg3[%c0_20, %c0_21] : memref<4x8xf32, #tpu.memory_space<vmem>>, vector<4x8xf32>
    %cst_22 = arith.constant dense<0.000000e+00> : vector<512x8xf32>
    %70 = tpu.matmul %68, %69, %cst_22 {dimension_numbers = #tpu.dot_dimension_numbers<[1], [0], [0], [1], [0, 0, 1, 1], [], []>} : vector<512x4xf32>, vector<4x8xf32>, vector<512x8xf32> -> vector<512x8xf32>
    %71 = vector.shape_cast %70 : vector<512x8xf32> to vector<2x16x16x8xf32>
    %c0_23 = arith.constant 0 : index
    %c0_24 = arith.constant 0 : index
    %c0_25 = arith.constant 0 : index
    %c0_26 = arith.constant 0 : index
    %72 = vector.load %arg7[%c0_23, %c0_24, %c0_25, %c0_26] : memref<2x16x16x8xf32, #tpu.memory_space<vmem>>, vector<2x16x16x8xf32>
    tpu.vector_store %arg7[%c0_23, %c0_24, %c0_25, %c0_26], %71 {strides = array<i32>} : memref<2x16x16x8xf32, #tpu.memory_space<vmem>>, vector<2x16x16x8xf32>,
    %cst_27 = arith.constant dense<0.000000e+00> : vector<8xf32>
    %73 = vector.multi_reduction <add>, %70, %cst_27 [0] : vector<512x8xf32> to vector<8xf32>
    %74 = vector.shape_cast %73 : vector<8xf32> to vector<1x8xf32>
    %c0_28 = arith.constant 0 : index
    %c0_29 = arith.constant 0 : index
    %c0_30 = arith.constant 0 : index
    %75 = vector.load %arg8[%c0_28, %c0_29, %c0_30] : memref<1x2x8xf32, #tpu.memory_space<vmem>>, vector<1x1x8xf32>
    %76 = vector.shape_cast %75 : vector<1x1x8xf32> to vector<1x8xf32>
    %77 = vector.shape_cast %74 : vector<1x8xf32> to vector<1x1x8xf32>
    tpu.vector_store %arg8[%c0_28, %c0_29, %c0_30], %77 {strides = array<i32>} : memref<1x2x8xf32, #tpu.memory_space<vmem>>, vector<1x1x8xf32>,
    %78 = arith.mulf %70, %70 : vector<512x8xf32>
    %cst_31 = arith.constant dense<0.000000e+00> : vector<8xf32>
    %79 = vector.multi_reduction <add>, %78, %cst_31 [0] : vector<512x8xf32> to vector<8xf32>
    %80 = vector.shape_cast %79 : vector<8xf32> to vector<1x8xf32>
    %c0_32 = arith.constant 0 : index
    %c1_33 = arith.constant 1 : index
    %c0_34 = arith.constant 0 : index
    %81 = vector.load %arg8[%c0_32, %c1_33, %c0_34] : memref<1x2x8xf32, #tpu.memory_space<vmem>>, vector<1x1x8xf32>
    %82 = vector.shape_cast %81 : vector<1x1x8xf32> to vector<1x8xf32>
    %83 = vector.shape_cast %80 : vector<1x8xf32> to vector<1x1x8xf32>
    tpu.vector_store %arg8[%c0_32, %c1_33, %c0_34], %83 {strides = array<i32>} : memref<1x2x8xf32, #tpu.memory_space<vmem>>, vector<1x1x8xf32>,
    return
  }
  func.func @transform_0(%arg0: i32) -> (i32, i32, i32, i32) {
    %c0_i32 = arith.constant 0 : i32
    %c0_i32_0 = arith.constant 0 : i32
    %c0_i32_1 = arith.constant 0 : i32
    %c0_i32_2 = arith.constant 0 : i32
    return %arg0, %c0_i32, %c0_i32_0, %c0_i32_1 : i32, i32, i32, i32
  }
  func.func @transform_1(%arg0: i32) -> (i32, i32) {
    %c0_i32 = arith.constant 0 : i32
    %c0_i32_0 = arith.constant 0 : i32
    %c0_i32_1 = arith.constant 0 : i32
    return %c0_i32, %c0_i32_0 : i32, i32
  }
  func.func @transform_2(%arg0: i32) -> (i32, i32) {
    %c0_i32 = arith.constant 0 : i32
    %c0_i32_0 = arith.constant 0 : i32
    %c0_i32_1 = arith.constant 0 : i32
    return %c0_i32, %c0_i32_0 : i32, i32
  }
  func.func @transform_3(%arg0: i32) -> (i32, i32) {
    %c0_i32 = arith.constant 0 : i32
    %c0_i32_0 = arith.constant 0 : i32
    %c0_i32_1 = arith.constant 0 : i32
    return %c0_i32, %c0_i32_0 : i32, i32
  }
  func.func @transform_4(%arg0: i32) -> (i32, i32) {
    %c0_i32 = arith.constant 0 : i32
    %c0_i32_0 = arith.constant 0 : i32
    %c0_i32_1 = arith.constant 0 : i32
    return %c0_i32, %c0_i32_0 : i32, i32
  }
  func.func @transform_5(%arg0: i32) -> (i32, i32, i32) {
    %c0_i32 = arith.constant 0 : i32
    %c0_i32_0 = arith.constant 0 : i32
    %c0_i32_1 = arith.constant 0 : i32
    %c0_i32_2 = arith.constant 0 : i32
    return %c0_i32, %c0_i32_0, %c0_i32_1 : i32, i32, i32
  }
  func.func @transform_6(%arg0: i32) -> (i32, i32, i32, i32) {
    %c0_i32 = arith.constant 0 : i32
    %c0_i32_0 = arith.constant 0 : i32
    %c0_i32_1 = arith.constant 0 : i32
    %c0_i32_2 = arith.constant 0 : i32
    return %arg0, %c0_i32, %c0_i32_0, %c0_i32_1 : i32, i32, i32, i32
  }
  func.func @transform_7(%arg0: i32) -> (i32, i32, i32) {
    %c0_i32 = arith.constant 0 : i32
    %c0_i32_0 = arith.constant 0 : i32
    %c0_i32_1 = arith.constant 0 : i32
    return %arg0, %c0_i32, %c0_i32_0 : i32, i32, i32
  }
}

module attributes {stable_mosaic.version = 11 : i64} {
  func.func @kernel(%arg0: i32, %arg1: memref<2x18x18x4xf32, #tpu.memory_space<vmem>>, %arg2: memref<9x4xf32, #tpu.memory_space<vmem>>, %arg3: memref<4x4xf32, #tpu.memory_space<vmem>>, %arg4: memref<1x4xf32, #tpu.memory_space<vmem>>, %arg5: memref<1x4xf32, #tpu.memory_space<vmem>>, %arg6: memref<2x16x16x4xf32, #tpu.memory_space<vmem>>, %arg7: memref<1x2x4xf32, #tpu.memory_space<vmem>>) attributes {dimension_semantics = [#tpu.dimension_semantics<parallel>], iteration_bounds = array<i64: 1>, scalar_prefetch = 0 : i64, scratch_operands = 0 : i64, tpu.core_type = #tpu.core_type<tc>, window_params = [{transform_indices = @transform_0, window_bounds = array<i64: 2, 18, 18, 4>}, {pipeline_mode = #tpu.pipeline_mode<synchronous>, transform_indices = @transform_1, window_bounds = array<i64: 9, 4>}, {pipeline_mode = #tpu.pipeline_mode<synchronous>, transform_indices = @transform_2, window_bounds = array<i64: 4, 4>}, {pipeline_mode = #tpu.pipeline_mode<synchronous>, transform_indices = @transform_3, window_bounds = array<i64: 1, 4>}, {pipeline_mode = #tpu.pipeline_mode<synchronous>, transform_indices = @transform_4, window_bounds = array<i64: 1, 4>}, {transform_indices = @transform_5, window_bounds = array<i64: 2, 16, 16, 4>}, {transform_indices = @transform_6, window_bounds = array<i64: 1, 2, 4>}]} {
    %c0 = arith.constant 0 : index
    %c0_0 = arith.constant 0 : index
    %c0_1 = arith.constant 0 : index
    %c0_2 = arith.constant 0 : index
    %0 = vector.load %arg1[%c0, %c0_0, %c0_1, %c0_2] : memref<2x18x18x4xf32, #tpu.memory_space<vmem>>, vector<2x18x18x4xf32>
    %c0_3 = arith.constant 0 : index
    %c0_4 = arith.constant 0 : index
    %1 = vector.load %arg4[%c0_3, %c0_4] : memref<1x4xf32, #tpu.memory_space<vmem>>, vector<1x4xf32>
    %2 = vector.shape_cast %1 : vector<1x4xf32> to vector<1x1x1x4xf32>
    %c0_5 = arith.constant 0 : index
    %c0_6 = arith.constant 0 : index
    %3 = vector.load %arg5[%c0_5, %c0_6] : memref<1x4xf32, #tpu.memory_space<vmem>>, vector<1x4xf32>
    %4 = vector.shape_cast %3 : vector<1x4xf32> to vector<1x1x1x4xf32>
    %5 = vector.broadcast %2 : vector<1x1x1x4xf32> to vector<2x18x18x4xf32>
    %6 = arith.mulf %0, %5 : vector<2x18x18x4xf32>
    %7 = vector.broadcast %4 : vector<1x1x1x4xf32> to vector<2x18x18x4xf32>
    %8 = arith.addf %6, %7 : vector<2x18x18x4xf32>
    %cst = arith.constant 0.000000e+00 : f32
    %9 = vector.broadcast %cst : f32 to vector<2x18x18x4xf32>
    %10 = arith.maximumf %8, %9 : vector<2x18x18x4xf32>
    %11 = vector.extract_strided_slice %10 {offsets = [0, 0, 0, 0], sizes = [2, 16, 16, 4], strides = [1, 1, 1, 1]} : vector<2x18x18x4xf32> to vector<2x16x16x4xf32>
    %c0_7 = arith.constant 0 : index
    %c0_8 = arith.constant 0 : index
    %12 = vector.load %arg2[%c0_7, %c0_8] : memref<9x4xf32, #tpu.memory_space<vmem>>, vector<1x4xf32>
    %13 = vector.shape_cast %12 : vector<1x4xf32> to vector<1x1x1x4xf32>
    %14 = vector.broadcast %13 : vector<1x1x1x4xf32> to vector<2x16x16x4xf32>
    %15 = arith.mulf %14, %11 : vector<2x16x16x4xf32>
    %16 = vector.extract_strided_slice %10 {offsets = [0, 0, 1, 0], sizes = [2, 16, 16, 4], strides = [1, 1, 1, 1]} : vector<2x18x18x4xf32> to vector<2x16x16x4xf32>
    %c1 = arith.constant 1 : index
    %c0_9 = arith.constant 0 : index
    %17 = vector.load %arg2[%c1, %c0_9] : memref<9x4xf32, #tpu.memory_space<vmem>>, vector<1x4xf32>
    %18 = vector.shape_cast %17 : vector<1x4xf32> to vector<1x1x1x4xf32>
    %19 = vector.broadcast %18 : vector<1x1x1x4xf32> to vector<2x16x16x4xf32>
    %20 = arith.mulf %19, %16 : vector<2x16x16x4xf32>
    %21 = arith.addf %15, %20 : vector<2x16x16x4xf32>
    %22 = vector.extract_strided_slice %10 {offsets = [0, 0, 2, 0], sizes = [2, 16, 16, 4], strides = [1, 1, 1, 1]} : vector<2x18x18x4xf32> to vector<2x16x16x4xf32>
    %c2 = arith.constant 2 : index
    %c0_10 = arith.constant 0 : index
    %23 = vector.load %arg2[%c2, %c0_10] : memref<9x4xf32, #tpu.memory_space<vmem>>, vector<1x4xf32>
    %24 = vector.shape_cast %23 : vector<1x4xf32> to vector<1x1x1x4xf32>
    %25 = vector.broadcast %24 : vector<1x1x1x4xf32> to vector<2x16x16x4xf32>
    %26 = arith.mulf %25, %22 : vector<2x16x16x4xf32>
    %27 = arith.addf %21, %26 : vector<2x16x16x4xf32>
    %28 = vector.extract_strided_slice %10 {offsets = [0, 1, 0, 0], sizes = [2, 16, 16, 4], strides = [1, 1, 1, 1]} : vector<2x18x18x4xf32> to vector<2x16x16x4xf32>
    %c3 = arith.constant 3 : index
    %c0_11 = arith.constant 0 : index
    %29 = vector.load %arg2[%c3, %c0_11] : memref<9x4xf32, #tpu.memory_space<vmem>>, vector<1x4xf32>
    %30 = vector.shape_cast %29 : vector<1x4xf32> to vector<1x1x1x4xf32>
    %31 = vector.broadcast %30 : vector<1x1x1x4xf32> to vector<2x16x16x4xf32>
    %32 = arith.mulf %31, %28 : vector<2x16x16x4xf32>
    %33 = arith.addf %27, %32 : vector<2x16x16x4xf32>
    %34 = vector.extract_strided_slice %10 {offsets = [0, 1, 1, 0], sizes = [2, 16, 16, 4], strides = [1, 1, 1, 1]} : vector<2x18x18x4xf32> to vector<2x16x16x4xf32>
    %c4 = arith.constant 4 : index
    %c0_12 = arith.constant 0 : index
    %35 = vector.load %arg2[%c4, %c0_12] : memref<9x4xf32, #tpu.memory_space<vmem>>, vector<1x4xf32>
    %36 = vector.shape_cast %35 : vector<1x4xf32> to vector<1x1x1x4xf32>
    %37 = vector.broadcast %36 : vector<1x1x1x4xf32> to vector<2x16x16x4xf32>
    %38 = arith.mulf %37, %34 : vector<2x16x16x4xf32>
    %39 = arith.addf %33, %38 : vector<2x16x16x4xf32>
    %40 = vector.extract_strided_slice %10 {offsets = [0, 1, 2, 0], sizes = [2, 16, 16, 4], strides = [1, 1, 1, 1]} : vector<2x18x18x4xf32> to vector<2x16x16x4xf32>
    %c5 = arith.constant 5 : index
    %c0_13 = arith.constant 0 : index
    %41 = vector.load %arg2[%c5, %c0_13] : memref<9x4xf32, #tpu.memory_space<vmem>>, vector<1x4xf32>
    %42 = vector.shape_cast %41 : vector<1x4xf32> to vector<1x1x1x4xf32>
    %43 = vector.broadcast %42 : vector<1x1x1x4xf32> to vector<2x16x16x4xf32>
    %44 = arith.mulf %43, %40 : vector<2x16x16x4xf32>
    %45 = arith.addf %39, %44 : vector<2x16x16x4xf32>
    %46 = vector.extract_strided_slice %10 {offsets = [0, 2, 0, 0], sizes = [2, 16, 16, 4], strides = [1, 1, 1, 1]} : vector<2x18x18x4xf32> to vector<2x16x16x4xf32>
    %c6 = arith.constant 6 : index
    %c0_14 = arith.constant 0 : index
    %47 = vector.load %arg2[%c6, %c0_14] : memref<9x4xf32, #tpu.memory_space<vmem>>, vector<1x4xf32>
    %48 = vector.shape_cast %47 : vector<1x4xf32> to vector<1x1x1x4xf32>
    %49 = vector.broadcast %48 : vector<1x1x1x4xf32> to vector<2x16x16x4xf32>
    %50 = arith.mulf %49, %46 : vector<2x16x16x4xf32>
    %51 = arith.addf %45, %50 : vector<2x16x16x4xf32>
    %52 = vector.extract_strided_slice %10 {offsets = [0, 2, 1, 0], sizes = [2, 16, 16, 4], strides = [1, 1, 1, 1]} : vector<2x18x18x4xf32> to vector<2x16x16x4xf32>
    %c7 = arith.constant 7 : index
    %c0_15 = arith.constant 0 : index
    %53 = vector.load %arg2[%c7, %c0_15] : memref<9x4xf32, #tpu.memory_space<vmem>>, vector<1x4xf32>
    %54 = vector.shape_cast %53 : vector<1x4xf32> to vector<1x1x1x4xf32>
    %55 = vector.broadcast %54 : vector<1x1x1x4xf32> to vector<2x16x16x4xf32>
    %56 = arith.mulf %55, %52 : vector<2x16x16x4xf32>
    %57 = arith.addf %51, %56 : vector<2x16x16x4xf32>
    %58 = vector.extract_strided_slice %10 {offsets = [0, 2, 2, 0], sizes = [2, 16, 16, 4], strides = [1, 1, 1, 1]} : vector<2x18x18x4xf32> to vector<2x16x16x4xf32>
    %c8 = arith.constant 8 : index
    %c0_16 = arith.constant 0 : index
    %59 = vector.load %arg2[%c8, %c0_16] : memref<9x4xf32, #tpu.memory_space<vmem>>, vector<1x4xf32>
    %60 = vector.shape_cast %59 : vector<1x4xf32> to vector<1x1x1x4xf32>
    %61 = vector.broadcast %60 : vector<1x1x1x4xf32> to vector<2x16x16x4xf32>
    %62 = arith.mulf %61, %58 : vector<2x16x16x4xf32>
    %63 = arith.addf %57, %62 : vector<2x16x16x4xf32>
    %64 = vector.shape_cast %63 : vector<2x16x16x4xf32> to vector<512x4xf32>
    %c0_17 = arith.constant 0 : index
    %c0_18 = arith.constant 0 : index
    %65 = vector.load %arg3[%c0_17, %c0_18] : memref<4x4xf32, #tpu.memory_space<vmem>>, vector<4x4xf32>
    %cst_19 = arith.constant dense<0.000000e+00> : vector<512x4xf32>
    %66 = tpu.matmul %64, %65, %cst_19 {dimension_numbers = #tpu.dot_dimension_numbers<[1], [0], [0], [1], [0, 0, 1, 1], [], []>} : vector<512x4xf32>, vector<4x4xf32>, vector<512x4xf32> -> vector<512x4xf32>
    %67 = vector.shape_cast %66 : vector<512x4xf32> to vector<2x16x16x4xf32>
    %c0_20 = arith.constant 0 : index
    %c0_21 = arith.constant 0 : index
    %c0_22 = arith.constant 0 : index
    %c0_23 = arith.constant 0 : index
    %68 = vector.load %arg6[%c0_20, %c0_21, %c0_22, %c0_23] : memref<2x16x16x4xf32, #tpu.memory_space<vmem>>, vector<2x16x16x4xf32>
    tpu.vector_store %arg6[%c0_20, %c0_21, %c0_22, %c0_23], %67 {strides = array<i32>} : memref<2x16x16x4xf32, #tpu.memory_space<vmem>>, vector<2x16x16x4xf32>,
    %cst_24 = arith.constant dense<0.000000e+00> : vector<4xf32>
    %69 = vector.multi_reduction <add>, %66, %cst_24 [0] : vector<512x4xf32> to vector<4xf32>
    %70 = vector.shape_cast %69 : vector<4xf32> to vector<1x4xf32>
    %c0_25 = arith.constant 0 : index
    %c0_26 = arith.constant 0 : index
    %c0_27 = arith.constant 0 : index
    %71 = vector.load %arg7[%c0_25, %c0_26, %c0_27] : memref<1x2x4xf32, #tpu.memory_space<vmem>>, vector<1x1x4xf32>
    %72 = vector.shape_cast %71 : vector<1x1x4xf32> to vector<1x4xf32>
    %73 = vector.shape_cast %70 : vector<1x4xf32> to vector<1x1x4xf32>
    tpu.vector_store %arg7[%c0_25, %c0_26, %c0_27], %73 {strides = array<i32>} : memref<1x2x4xf32, #tpu.memory_space<vmem>>, vector<1x1x4xf32>,
    %74 = arith.mulf %66, %66 : vector<512x4xf32>
    %cst_28 = arith.constant dense<0.000000e+00> : vector<4xf32>
    %75 = vector.multi_reduction <add>, %74, %cst_28 [0] : vector<512x4xf32> to vector<4xf32>
    %76 = vector.shape_cast %75 : vector<4xf32> to vector<1x4xf32>
    %c0_29 = arith.constant 0 : index
    %c1_30 = arith.constant 1 : index
    %c0_31 = arith.constant 0 : index
    %77 = vector.load %arg7[%c0_29, %c1_30, %c0_31] : memref<1x2x4xf32, #tpu.memory_space<vmem>>, vector<1x1x4xf32>
    %78 = vector.shape_cast %77 : vector<1x1x4xf32> to vector<1x4xf32>
    %79 = vector.shape_cast %76 : vector<1x4xf32> to vector<1x1x4xf32>
    tpu.vector_store %arg7[%c0_29, %c1_30, %c0_31], %79 {strides = array<i32>} : memref<1x2x4xf32, #tpu.memory_space<vmem>>, vector<1x1x4xf32>,
    return
  }
  func.func @transform_0(%arg0: i32) -> (i32, i32, i32, i32) {
    %c0_i32 = arith.constant 0 : i32
    %c0_i32_0 = arith.constant 0 : i32
    %c0_i32_1 = arith.constant 0 : i32
    %c0_i32_2 = arith.constant 0 : i32
    return %arg0, %c0_i32, %c0_i32_0, %c0_i32_1 : i32, i32, i32, i32
  }
  func.func @transform_1(%arg0: i32) -> (i32, i32) {
    %c0_i32 = arith.constant 0 : i32
    %c0_i32_0 = arith.constant 0 : i32
    %c0_i32_1 = arith.constant 0 : i32
    return %c0_i32, %c0_i32_0 : i32, i32
  }
  func.func @transform_2(%arg0: i32) -> (i32, i32) {
    %c0_i32 = arith.constant 0 : i32
    %c0_i32_0 = arith.constant 0 : i32
    %c0_i32_1 = arith.constant 0 : i32
    return %c0_i32, %c0_i32_0 : i32, i32
  }
  func.func @transform_3(%arg0: i32) -> (i32, i32) {
    %c0_i32 = arith.constant 0 : i32
    %c0_i32_0 = arith.constant 0 : i32
    %c0_i32_1 = arith.constant 0 : i32
    return %c0_i32, %c0_i32_0 : i32, i32
  }
  func.func @transform_4(%arg0: i32) -> (i32, i32) {
    %c0_i32 = arith.constant 0 : i32
    %c0_i32_0 = arith.constant 0 : i32
    %c0_i32_1 = arith.constant 0 : i32
    return %c0_i32, %c0_i32_0 : i32, i32
  }
  func.func @transform_5(%arg0: i32) -> (i32, i32, i32, i32) {
    %c0_i32 = arith.constant 0 : i32
    %c0_i32_0 = arith.constant 0 : i32
    %c0_i32_1 = arith.constant 0 : i32
    %c0_i32_2 = arith.constant 0 : i32
    return %arg0, %c0_i32, %c0_i32_0, %c0_i32_1 : i32, i32, i32, i32
  }
  func.func @transform_6(%arg0: i32) -> (i32, i32, i32) {
    %c0_i32 = arith.constant 0 : i32
    %c0_i32_0 = arith.constant 0 : i32
    %c0_i32_1 = arith.constant 0 : i32
    return %arg0, %c0_i32, %c0_i32_0 : i32, i32, i32
  }
}

module attributes {stable_mosaic.version = 11 : i64} {
  func.func @kernel(%arg0: i32, %arg1: memref<2x16x16x8xf32, #tpu.memory_space<vmem>>, %arg2: memref<1x8xf32, #tpu.memory_space<vmem>>, %arg3: memref<1x8xf32, #tpu.memory_space<vmem>>, %arg4: memref<2x16x16x8xf32, #tpu.memory_space<vmem>>) attributes {dimension_semantics = [#tpu.dimension_semantics<parallel>], iteration_bounds = array<i64: 1>, scalar_prefetch = 0 : i64, scratch_operands = 0 : i64, tpu.core_type = #tpu.core_type<tc>, window_params = [{transform_indices = @transform_0, window_bounds = array<i64: 2, 16, 16, 8>}, {pipeline_mode = #tpu.pipeline_mode<synchronous>, transform_indices = @transform_1, window_bounds = array<i64: 1, 8>}, {pipeline_mode = #tpu.pipeline_mode<synchronous>, transform_indices = @transform_2, window_bounds = array<i64: 1, 8>}, {transform_indices = @transform_3, window_bounds = array<i64: 2, 16, 16, 8>}]} {
    %c0 = arith.constant 0 : index
    %c0_0 = arith.constant 0 : index
    %c0_1 = arith.constant 0 : index
    %c0_2 = arith.constant 0 : index
    %0 = vector.load %arg1[%c0, %c0_0, %c0_1, %c0_2] : memref<2x16x16x8xf32, #tpu.memory_space<vmem>>, vector<2x16x16x8xf32>
    %c0_3 = arith.constant 0 : index
    %c0_4 = arith.constant 0 : index
    %1 = vector.load %arg2[%c0_3, %c0_4] : memref<1x8xf32, #tpu.memory_space<vmem>>, vector<1x8xf32>
    %2 = vector.shape_cast %1 : vector<1x8xf32> to vector<1x1x1x8xf32>
    %3 = vector.broadcast %2 : vector<1x1x1x8xf32> to vector<2x16x16x8xf32>
    %4 = arith.mulf %0, %3 : vector<2x16x16x8xf32>
    %c0_5 = arith.constant 0 : index
    %c0_6 = arith.constant 0 : index
    %5 = vector.load %arg3[%c0_5, %c0_6] : memref<1x8xf32, #tpu.memory_space<vmem>>, vector<1x8xf32>
    %6 = vector.shape_cast %5 : vector<1x8xf32> to vector<1x1x1x8xf32>
    %7 = vector.broadcast %6 : vector<1x1x1x8xf32> to vector<2x16x16x8xf32>
    %8 = arith.addf %4, %7 : vector<2x16x16x8xf32>
    %c0_7 = arith.constant 0 : index
    %c0_8 = arith.constant 0 : index
    %c0_9 = arith.constant 0 : index
    %c0_10 = arith.constant 0 : index
    %9 = vector.load %arg4[%c0_7, %c0_8, %c0_9, %c0_10] : memref<2x16x16x8xf32, #tpu.memory_space<vmem>>, vector<2x16x16x8xf32>
    tpu.vector_store %arg4[%c0_7, %c0_8, %c0_9, %c0_10], %8 {strides = array<i32>} : memref<2x16x16x8xf32, #tpu.memory_space<vmem>>, vector<2x16x16x8xf32>,
    return
  }
  func.func @transform_0(%arg0: i32) -> (i32, i32, i32, i32) {
    %c0_i32 = arith.constant 0 : i32
    %c0_i32_0 = arith.constant 0 : i32
    %c0_i32_1 = arith.constant 0 : i32
    %c0_i32_2 = arith.constant 0 : i32
    return %arg0, %c0_i32, %c0_i32_0, %c0_i32_1 : i32, i32, i32, i32
  }
  func.func @transform_1(%arg0: i32) -> (i32, i32) {
    %c0_i32 = arith.constant 0 : i32
    %c0_i32_0 = arith.constant 0 : i32
    %c0_i32_1 = arith.constant 0 : i32
    return %c0_i32, %c0_i32_0 : i32, i32
  }
  func.func @transform_2(%arg0: i32) -> (i32, i32) {
    %c0_i32 = arith.constant 0 : i32
    %c0_i32_0 = arith.constant 0 : i32
    %c0_i32_1 = arith.constant 0 : i32
    return %c0_i32, %c0_i32_0 : i32, i32
  }
  func.func @transform_3(%arg0: i32) -> (i32, i32, i32, i32) {
    %c0_i32 = arith.constant 0 : i32
    %c0_i32_0 = arith.constant 0 : i32
    %c0_i32_1 = arith.constant 0 : i32
    %c0_i32_2 = arith.constant 0 : i32
    return %arg0, %c0_i32, %c0_i32_0, %c0_i32_1 : i32, i32, i32, i32
  }
}

</mosaic_0001>

<bundles_post_ra>
// kernel: _lambda_.5
= control target key start
LH: loop header
LB: loop body
LE: loop exit
PB: predicated region body
PF: predicated region fallthrough
CT: control target
= control target key end

     0   :  { %vm214_vm0 = vcmask 64512   ;;  %s894_s0 = inlined_call_operand.vmem [shape: f32[2,16,16,8], index: 0, kind: input, shape index: {}]   ;;  %s895_s1 = inlined_call_operand.vmem [shape: f32[1,8], index: 1, kind: input, shape index: {}]   ;;  %s896_s2 = inlined_call_operand.vmem [shape: f32[1,8], index: 2, kind: input, shape index: {}]   ;;  %s897_s3 = inlined_call_operand.vmem [shape: f32[2,16,16,8], index: 3, kind: output, shape index: {}]  }
   0x1   :  { %v14_v0 = vld [vmem:[%s894_s0] sm:$0xff]  ;;  %v15_v3 = vld [vmem:[%s894_s0 + $0x8] sm:$0xff]  ;;  %v16_v6 = vld [vmem:[%s894_s0 + $0x10] sm:$0xff] }
   0x2   :  { %v311_v1 = vld [vmem:[%s895_s1] ss:$0 sm:$0xff]  ;;  %v17_v7 = vld [vmem:[%s894_s0 + $0x18] sm:$0xff]  ;;  %v19_v12 = vld [vmem:[%s894_s0 + $0x28] sm:$0xff] }
   0x3   :  { %v316_v2 = vld [vmem:[%s896_s2] ss:$0 sm:$0xff]  ;;  %v82_v4 = vmul.f32 %v311_v1, %v14_v0  ;;  %v83_v5 = vmul.f32 %v311_v1, %v15_v3  ;;  %v84_v9 = vmul.f32 %v311_v1, %v16_v6  ;;  %v85_v10 = vmul.f32 %v311_v1, %v17_v7  ;;  %v20_v13 = vld [vmem:[%s894_s0 + $0x30] sm:$0xff]  ;;  %v21_v14 = vld [vmem:[%s894_s0 + $0x38] sm:$0xff] }
   0x4   :  { %v18_v8 = vld [vmem:[%s894_s0 + $0x20] sm:$0xff]  ;;  %v87_v17 = vmul.f32 %v311_v1, %v19_v12  ;;  %v88_v18 = vmul.f32 %v311_v1, %v20_v13  ;;  %v23_v20 = vld [vmem:[%s894_s0 + $0x48] sm:$0xff]  ;;  %v89_v23 = vmul.f32 %v311_v1, %v21_v14  ;;  %v24_v24 = vld [vmem:[%s894_s0 + $0x50] sm:$0xff] }
   0x5   :  { %v86_v11 = vmul.f32 %v311_v1, %v18_v8  ;;  %v150_v15 = vadd.f32 %v316_v2, %v82_v4  ;;  %v151_v16 = vadd.f32 %v316_v2, %v83_v5  ;;  %v22_v19 = vld [vmem:[%s894_s0 + $0x40] sm:$0xff]  ;;  %v152_v21 = vadd.f32 %v316_v2, %v84_v9  ;;  %v25_v27 = vld [vmem:[%s894_s0 + $0x58] sm:$0xff]  ;;  %v27_v33 = vld [vmem:[%s894_s0 + $0x68] sm:$0xff] }
   0x6   :  { %v153_v22 = vadd.f32 %v316_v2, %v85_v10  ;;  %v90_v26 = vmul.f32 %v311_v1, %v22_v19  ;;  %v155_v28 = vadd.f32 %v316_v2, %v87_v17  ;;  %v91_v29 = vmul.f32 %v311_v1, %v23_v20  ;;  %v26_v30 = vld [vmem:[%s894_s0 + $0x60] sm:$0xff]  ;;  %v28_v36 = vld [vmem:[%s894_s0 + $0x70] sm:$0xff]  ;;  %v29_v39 = vld [vmem:[%s894_s0 + $0x78] sm:$0xff] }
   0x7   :  { %215 = vst.msk [vmem:[%s897_s3] sm:$0xff] %vm214_vm0, %v150_v15  ;;  %v154_v25 = vadd.f32 %v316_v2, %v86_v11  ;;  %v156_v31 = vadd.f32 %v316_v2, %v88_v18  ;;  %v92_v32 = vmul.f32 %v311_v1, %v24_v24  ;;  %v157_v34 = vadd.f32 %v316_v2, %v89_v23  ;;  %v30_v42 = vld [vmem:[%s894_s0 + $0x80] sm:$0xff]  ;;  %v31_v45 = vld [vmem:[%s894_s0 + $0x88] sm:$0xff]  ;;  %v32_v48 = vld [vmem:[%s894_s0 + $0x90] sm:$0xff] }
   0x8   :  { %216 = vst.msk [vmem:[%s897_s3 + $0x8] sm:$0xff] %vm214_vm0, %v151_v16  ;;  %v93_v35 = vmul.f32 %v311_v1, %v25_v27  ;;  %v158_v37 = vadd.f32 %v316_v2, %v90_v26  ;;  %v94_v38 = vmul.f32 %v311_v1, %v26_v30  ;;  %v159_v40 = vadd.f32 %v316_v2, %v91_v29  ;;  %v33_v51 = vld [vmem:[%s894_s0 + $0x98] sm:$0xff]  ;;  %v34_v54 = vld [vmem:[%s894_s0 + $0xa0] sm:$0xff]  ;;  %v35_v57 = vld [vmem:[%s894_s0 + $0xa8] sm:$0xff] }
   0x9   :  { %217 = vst.msk [vmem:[%s897_s3 + $0x10] sm:$0xff] %vm214_vm0, %v152_v21  ;;  %v95_v41 = vmul.f32 %v311_v1, %v27_v33  ;;  %v160_v43 = vadd.f32 %v316_v2, %v92_v32  ;;  %v96_v44 = vmul.f32 %v311_v1, %v28_v36  ;;  %v97_v47 = vmul.f32 %v311_v1, %v29_v39  ;;  %v36_v60 = vld [vmem:[%s894_s0 + $0xb0] sm:$0xff]  ;;  %v37_v63 = vld [vmem:[%s894_s0 + $0xb8] sm:$0xff]  ;;  %v38_v4 = vld [vmem:[%s894_s0 + $0xc0] sm:$0xff] }
   0xa   :  { %218 = vst.msk [vmem:[%s897_s3 + $0x18] sm:$0xff] %vm214_vm0, %v153_v22  ;;  %v161_v46 = vadd.f32 %v316_v2, %v93_v35  ;;  %v162_v49 = vadd.f32 %v316_v2, %v94_v38  ;;  %v98_v50 = vmul.f32 %v311_v1, %v30_v42  ;;  %v99_v53 = vmul.f32 %v311_v1, %v31_v45  ;;  %v39_v7 = vld [vmem:[%s894_s0 + $0xc8] sm:$0xff]  ;;  %v40_v10 = vld [vmem:[%s894_s0 + $0xd0] sm:$0xff]  ;;  %v41_v13 = vld [vmem:[%s894_s0 + $0xd8] sm:$0xff] }
   0xb   :  { %219 = vst.msk [vmem:[%s897_s3 + $0x20] sm:$0xff] %vm214_vm0, %v154_v25  ;;  %v163_v52 = vadd.f32 %v316_v2, %v95_v41  ;;  %v164_v55 = vadd.f32 %v316_v2, %v96_v44  ;;  %v100_v56 = vmul.f32 %v311_v1, %v32_v48  ;;  %v165_v58 = vadd.f32 %v316_v2, %v97_v47  ;;  %v42_v16 = vld [vmem:[%s894_s0 + $0xe0] sm:$0xff]  ;;  %v43_v19 = vld [vmem:[%s894_s0 + $0xe8] sm:$0xff]  ;;  %v44_v22 = vld [vmem:[%s894_s0 + $0xf0] sm:$0xff] }
   0xc   :  { %220 = vst.msk [vmem:[%s897_s3 + $0x28] sm:$0xff] %vm214_vm0, %v155_v28  ;;  %v101_v59 = vmul.f32 %v311_v1, %v33_v51  ;;  %v166_v61 = vadd.f32 %v316_v2, %v98_v50  ;;  %v102_v62 = vmul.f32 %v311_v1, %v34_v54  ;;  %v167_v0 = vadd.f32 %v316_v2, %v99_v53  ;;  %v45_v25 = vld [vmem:[%s894_s0 + $0xf8] sm:$0xff]  ;;  %v46_v28 = vld [vmem:[%s894_s0 + $0x100] sm:$0xff]  ;;  %v51_v44 = vld [vmem:[%s894_s0 + $0x128] sm:$0xff] }
   0xd   :  { %221 = vst.msk [vmem:[%s897_s3 + $0x30] sm:$0xff] %vm214_vm0, %v156_v31  ;;  %v103_v3 = vmul.f32 %v311_v1, %v35_v57  ;;  %v168_v5 = vadd.f32 %v316_v2, %v100_v56  ;;  %v104_v6 = vmul.f32 %v311_v1, %v36_v60  ;;  %v105_v9 = vmul.f32 %v311_v1, %v37_v63  ;;  %v47_v31 = vld [vmem:[%s894_s0 + $0x108] sm:$0xff]  ;;  %v77_v41 = vld [vmem:[%s894_s0 + $0x1f8] sm:$0xff]  ;;  %v52_v47 = vld [vmem:[%s894_s0 + $0x130] sm:$0xff] }
   0xe   :  { %222 = vst.msk [vmem:[%s897_s3 + $0x38] sm:$0xff] %vm214_vm0, %v157_v34  ;;  %v169_v8 = vadd.f32 %v316_v2, %v101_v59  ;;  %v170_v11 = vadd.f32 %v316_v2, %v102_v62  ;;  %v106_v12 = vmul.f32 %v311_v1, %v38_v4  ;;  %v107_v15 = vmul.f32 %v311_v1, %v39_v7  ;;  %v48_v34 = vld [vmem:[%s894_s0 + $0x110] sm:$0xff]  ;;  %v53_v51 = vld [vmem:[%s894_s0 + $0x138] sm:$0xff]  ;;  %v54_v54 = vld [vmem:[%s894_s0 + $0x140] sm:$0xff] }
   0xf   :  { %223 = vst.msk [vmem:[%s897_s3 + $0x40] sm:$0xff] %vm214_vm0, %v158_v37  ;;  %v171_v14 = vadd.f32 %v316_v2, %v103_v3  ;;  %v172_v17 = vadd.f32 %v316_v2, %v104_v6  ;;  %v108_v18 = vmul.f32 %v311_v1, %v40_v10  ;;  %v173_v20 = vadd.f32 %v316_v2, %v105_v9  ;;  %v49_v37 = vld [vmem:[%s894_s0 + $0x118] sm:$0xff] }
  0x10   :  { %224 = vst.msk [vmem:[%s897_s3 + $0x48] sm:$0xff] %vm214_vm0, %v159_v40  ;;  %v109_v21 = vmul.f32 %v311_v1, %v41_v13  ;;  %v174_v23 = vadd.f32 %v316_v2, %v106_v12  ;;  %v110_v24 = vmul.f32 %v311_v1, %v42_v16  ;;  %v175_v26 = vadd.f32 %v316_v2, %v107_v15  ;;  %v50_v40 = vld [vmem:[%s894_s0 + $0x120] sm:$0xff] }
  0x11   :  { %225 = vst.msk [vmem:[%s897_s3 + $0x50] sm:$0xff] %vm214_vm0, %v160_v43  ;;  %v111_v27 = vmul.f32 %v311_v1, %v43_v19  ;;  %v176_v29 = vadd.f32 %v316_v2, %v108_v18  ;;  %v112_v30 = vmul.f32 %v311_v1, %v44_v22  ;;  %v113_v33 = vmul.f32 %v311_v1, %v45_v25 }
  0x12   :  { %226 = vst.msk [vmem:[%s897_s3 + $0x58] sm:$0xff] %vm214_vm0, %v161_v46  ;;  %v177_v32 = vadd.f32 %v316_v2, %v109_v21  ;;  %v178_v35 = vadd.f32 %v316_v2, %v110_v24  ;;  %v114_v36 = vmul.f32 %v311_v1, %v46_v28  ;;  %v115_v39 = vmul.f32 %v311_v1, %v47_v31 }
  0x13   :  { %227 = vst.msk [vmem:[%s897_s3 + $0x60] sm:$0xff] %vm214_vm0, %v162_v49  ;;  %v179_v38 = vadd.f32 %v316_v2, %v111_v27  ;;  %v180_v42 = vadd.f32 %v316_v2, %v112_v30  ;;  %v116_v43 = vmul.f32 %v311_v1, %v48_v34  ;;  %v181_v45 = vadd.f32 %v316_v2, %v113_v33 }
  0x14   :  { %228 = vst.msk [vmem:[%s897_s3 + $0x68] sm:$0xff] %vm214_vm0, %v163_v52  ;;  %v117_v46 = vmul.f32 %v311_v1, %v49_v37  ;;  %v145_v48 = vmul.f32 %v311_v1, %v77_v41  ;;  %v182_v49 = vadd.f32 %v316_v2, %v114_v36  ;;  %v118_v50 = vmul.f32 %v311_v1, %v50_v40  ;;  %v70_v41 = vld [vmem:[%s894_s0 + $0x1c0] sm:$0xff] }
  0x15   :  { %229 = vst.msk [vmem:[%s897_s3 + $0x70] sm:$0xff] %vm214_vm0, %v164_v55  ;;  %v183_v52 = vadd.f32 %v316_v2, %v115_v39  ;;  %v119_v53 = vmul.f32 %v311_v1, %v51_v44  ;;  %v184_v56 = vadd.f32 %v316_v2, %v116_v43  ;;  %v120_v57 = vmul.f32 %v311_v1, %v52_v47  ;;  %v71_v44 = vld [vmem:[%s894_s0 + $0x1c8] sm:$0xff]  ;;  %v72_v47 = vld [vmem:[%s894_s0 + $0x1d0] sm:$0xff] }
  0x16   :  { %230 = vst.msk [vmem:[%s897_s3 + $0x78] sm:$0xff] %vm214_vm0, %v165_v58  ;;  %v635_v55 = vadd.f32 %v316_v2, %v145_v48  ;;  %v55_v58 = vld [vmem:[%s894_s0 + $0x148] sm:$0xff]  ;;  %v185_v59 = vadd.f32 %v316_v2, %v117_v46  ;;  %v121_v60 = vmul.f32 %v311_v1, %v53_v51  ;;  %v186_v62 = vadd.f32 %v316_v2, %v118_v50  ;;  %v73_v50 = vld [vmem:[%s894_s0 + $0x1d8] sm:$0xff] }
  0x17   :  { %231 = vst.msk [vmem:[%s897_s3 + $0x80] sm:$0xff] %vm214_vm0, %v166_v61  ;;  %v56_v61 = vld [vmem:[%s894_s0 + $0x150] sm:$0xff]  ;;  %v122_v63 = vmul.f32 %v311_v1, %v54_v54  ;;  %v187_v3 = vadd.f32 %v316_v2, %v119_v53  ;;  %v123_v4 = vmul.f32 %v311_v1, %v55_v58  ;;  %v188_v6 = vadd.f32 %v316_v2, %v120_v57  ;;  %v74_v53 = vld [vmem:[%s894_s0 + $0x1e0] sm:$0xff]  ;;  %v75_v57 = vld [vmem:[%s894_s0 + $0x1e8] sm:$0xff] }
  0x18   :  { %232 = vst.msk [vmem:[%s897_s3 + $0x88] sm:$0xff] %vm214_vm0, %v167_v0  ;;  %v57_v0 = vld [vmem:[%s894_s0 + $0x158] sm:$0xff]  ;;  %v124_v7 = vmul.f32 %v311_v1, %v56_v61  ;;  %v189_v9 = vadd.f32 %v316_v2, %v121_v60  ;;  %v76_v60 = vld [vmem:[%s894_s0 + $0x1f0] sm:$0xff] }
  0x19   :  { %233 = vst.msk [vmem:[%s897_s3 + $0x90] sm:$0xff] %vm214_vm0, %v168_v5  ;;  %v58_v5 = vld [vmem:[%s894_s0 + $0x160] sm:$0xff]  ;;  %v125_v10 = vmul.f32 %v311_v1, %v57_v0  ;;  %v190_v12 = vadd.f32 %v316_v2, %v122_v63  ;;  %v191_v15 = vadd.f32 %v316_v2, %v123_v4  ;;  %v143_v0 = vmul.f32 %v311_v1, %v75_v57 }
  0x1a   :  { %234 = vst.msk [vmem:[%s897_s3 + $0x98] sm:$0xff] %vm214_vm0, %v169_v8  ;;  %v59_v8 = vld [vmem:[%s894_s0 + $0x168] sm:$0xff]  ;;  %v126_v13 = vmul.f32 %v311_v1, %v58_v5  ;;  %v192_v18 = vadd.f32 %v316_v2, %v124_v7  ;;  %v144_v4 = vmul.f32 %v311_v1, %v76_v60 }
  0x1b   :  { %235 = vst.msk [vmem:[%s897_s3 + $0xa0] sm:$0xff] %vm214_vm0, %v170_v11  ;;  %v60_v11 = vld [vmem:[%s894_s0 + $0x170] sm:$0xff]  ;;  %v127_v16 = vmul.f32 %v311_v1, %v59_v8  ;;  %v193_v21 = vadd.f32 %v316_v2, %v125_v10 }
  0x1c   :  { %236 = vst.msk [vmem:[%s897_s3 + $0xa8] sm:$0xff] %vm214_vm0, %v171_v14  ;;  %v61_v14 = vld [vmem:[%s894_s0 + $0x178] sm:$0xff]  ;;  %v128_v19 = vmul.f32 %v311_v1, %v60_v11  ;;  %v194_v24 = vadd.f32 %v316_v2, %v126_v13  ;;  %v212_v7 = vadd.f32 %v316_v2, %v144_v4 }
  0x1d   :  { %237 = vst.msk [vmem:[%s897_s3 + $0xb0] sm:$0xff] %vm214_vm0, %v172_v17  ;;  %v62_v17 = vld [vmem:[%s894_s0 + $0x180] sm:$0xff]  ;;  %v129_v22 = vmul.f32 %v311_v1, %v61_v14  ;;  %v195_v27 = vadd.f32 %v316_v2, %v127_v16 }
  0x1e   :  { %238 = vst.msk [vmem:[%s897_s3 + $0xb8] sm:$0xff] %vm214_vm0, %v173_v20  ;;  %v63_v20 = vld [vmem:[%s894_s0 + $0x188] sm:$0xff]  ;;  %v130_v25 = vmul.f32 %v311_v1, %v62_v17  ;;  %v196_v30 = vadd.f32 %v316_v2, %v128_v19 }
  0x1f   :  { %239 = vst.msk [vmem:[%s897_s3 + $0xc0] sm:$0xff] %vm214_vm0, %v174_v23  ;;  %v64_v23 = vld [vmem:[%s894_s0 + $0x190] sm:$0xff]  ;;  %v131_v28 = vmul.f32 %v311_v1, %v63_v20  ;;  %v197_v33 = vadd.f32 %v316_v2, %v129_v22 }
  0x20   :  { %240 = vst.msk [vmem:[%s897_s3 + $0xc8] sm:$0xff] %vm214_vm0, %v175_v26  ;;  %v65_v26 = vld [vmem:[%s894_s0 + $0x198] sm:$0xff]  ;;  %v132_v31 = vmul.f32 %v311_v1, %v64_v23  ;;  %v198_v36 = vadd.f32 %v316_v2, %v130_v25 }
  0x21   :  { %241 = vst.msk [vmem:[%s897_s3 + $0xd0] sm:$0xff] %vm214_vm0, %v176_v29  ;;  %v66_v29 = vld [vmem:[%s894_s0 + $0x1a0] sm:$0xff]  ;;  %v133_v34 = vmul.f32 %v311_v1, %v65_v26  ;;  %v199_v39 = vadd.f32 %v316_v2, %v131_v28 }
  0x22   :  { %242 = vst.msk [vmem:[%s897_s3 + $0xd8] sm:$0xff] %vm214_vm0, %v177_v32  ;;  %v67_v32 = vld [vmem:[%s894_s0 + $0x1a8] sm:$0xff]  ;;  %v134_v37 = vmul.f32 %v311_v1, %v66_v29 }
  0x23   :  { %243 = vst.msk [vmem:[%s897_s3 + $0xe0] sm:$0xff] %vm214_vm0, %v178_v35  ;;  %v68_v35 = vld [vmem:[%s894_s0 + $0x1b0] sm:$0xff]  ;;  %v135_v40 = vmul.f32 %v311_v1, %v67_v32 }
  0x24   :  { %244 = vst.msk [vmem:[%s897_s3 + $0xe8] sm:$0xff] %vm214_vm0, %v179_v38  ;;  %v69_v38 = vld [vmem:[%s894_s0 + $0x1b8] sm:$0xff]  ;;  %v136_v43 = vmul.f32 %v311_v1, %v68_v35  ;;  %v202_v48 = vadd.f32 %v316_v2, %v134_v37 }
  0x25   :  { %245 = vst.msk [vmem:[%s897_s3 + $0xf0] sm:$0xff] %vm214_vm0, %v180_v42  ;;  %v200_v42 = vadd.f32 %v316_v2, %v132_v31  ;;  %v137_v46 = vmul.f32 %v311_v1, %v69_v38  ;;  %v203_v51 = vadd.f32 %v316_v2, %v135_v40 }
  0x26   :  { %246 = vst.msk [vmem:[%s897_s3 + $0xf8] sm:$0xff] %vm214_vm0, %v181_v45  ;;  %v201_v45 = vadd.f32 %v316_v2, %v133_v34  ;;  %v204_v54 = vadd.f32 %v316_v2, %v136_v43 }
  0x27   :  { %247 = vst.msk [vmem:[%s897_s3 + $0x100] sm:$0xff] %vm214_vm0, %v182_v49  ;;  %v138_v49 = vmul.f32 %v311_v1, %v70_v41  ;;  %v205_v58 = vadd.f32 %v316_v2, %v137_v46 }
  0x28   :  { %248 = vst.msk [vmem:[%s897_s3 + $0x108] sm:$0xff] %vm214_vm0, %v183_v52  ;;  %v139_v52 = vmul.f32 %v311_v1, %v71_v44 }
  0x29   :  { %249 = vst.msk [vmem:[%s897_s3 + $0x110] sm:$0xff] %vm214_vm0, %v184_v56  ;;  %v140_v56 = vmul.f32 %v311_v1, %v72_v47  ;;  %v206_v61 = vadd.f32 %v316_v2, %v138_v49 }
  0x2a   :  { %250 = vst.msk [vmem:[%s897_s3 + $0x118] sm:$0xff] %vm214_vm0, %v185_v59  ;;  %v141_v59 = vmul.f32 %v311_v1, %v73_v50  ;;  %v207_v63 = vadd.f32 %v316_v2, %v139_v52 }
  0x2b   :  { %251 = vst.msk [vmem:[%s897_s3 + $0x120] sm:$0xff] %vm214_vm0, %v186_v62  ;;  %v142_v62 = vmul.f32 %v311_v1, %v74_v53  ;;  %v211_v1 = vadd.f32 %v316_v2, %v143_v0 }
  0x2c   :  { %252 = vst.msk [vmem:[%s897_s3 + $0x128] sm:$0xff] %vm214_vm0, %v187_v3  ;;  %v208_v3 = vadd.f32 %v316_v2, %v140_v56  ;;  %v209_v5 = vadd.f32 %v316_v2, %v141_v59 }
  0x2d   :  { %253 = vst.msk [vmem:[%s897_s3 + $0x130] sm:$0xff] %vm214_vm0, %v188_v6  ;;  %v210_v6 = vadd.f32 %v316_v2, %v142_v62 }
  0x2e   :  { %254 = vst.msk [vmem:[%s897_s3 + $0x138] sm:$0xff] %vm214_vm0, %v189_v9 }
  0x2f   :  { %255 = vst.msk [vmem:[%s897_s3 + $0x140] sm:$0xff] %vm214_vm0, %v190_v12 }
  0x30   :  { %256 = vst.msk [vmem:[%s897_s3 + $0x148] sm:$0xff] %vm214_vm0, %v191_v15 }
  0x31   :  { %257 = vst.msk [vmem:[%s897_s3 + $0x150] sm:$0xff] %vm214_vm0, %v192_v18 }
  0x32   :  { %258 = vst.msk [vmem:[%s897_s3 + $0x158] sm:$0xff] %vm214_vm0, %v193_v21 }
  0x33   :  { %259 = vst.msk [vmem:[%s897_s3 + $0x160] sm:$0xff] %vm214_vm0, %v194_v24 }
  0x34   :  { %260 = vst.msk [vmem:[%s897_s3 + $0x168] sm:$0xff] %vm214_vm0, %v195_v27 }
  0x35   :  { %261 = vst.msk [vmem:[%s897_s3 + $0x170] sm:$0xff] %vm214_vm0, %v196_v30 }
  0x36   :  { %262 = vst.msk [vmem:[%s897_s3 + $0x178] sm:$0xff] %vm214_vm0, %v197_v33 }
  0x37   :  { %263 = vst.msk [vmem:[%s897_s3 + $0x180] sm:$0xff] %vm214_vm0, %v198_v36 }
  0x38   :  { %264 = vst.msk [vmem:[%s897_s3 + $0x188] sm:$0xff] %vm214_vm0, %v199_v39 }
  0x39   :  { %265 = vst.msk [vmem:[%s897_s3 + $0x190] sm:$0xff] %vm214_vm0, %v200_v42 }
  0x3a   :  { %266 = vst.msk [vmem:[%s897_s3 + $0x198] sm:$0xff] %vm214_vm0, %v201_v45 }
  0x3b   :  { %267 = vst.msk [vmem:[%s897_s3 + $0x1a0] sm:$0xff] %vm214_vm0, %v202_v48 }
  0x3c   :  { %268 = vst.msk [vmem:[%s897_s3 + $0x1a8] sm:$0xff] %vm214_vm0, %v203_v51 }
  0x3d   :  { %269 = vst.msk [vmem:[%s897_s3 + $0x1b0] sm:$0xff] %vm214_vm0, %v204_v54 }
  0x3e   :  { %270 = vst.msk [vmem:[%s897_s3 + $0x1b8] sm:$0xff] %vm214_vm0, %v205_v58 }
  0x3f   :  { %271 = vst.msk [vmem:[%s897_s3 + $0x1c0] sm:$0xff] %vm214_vm0, %v206_v61 }
  0x40   :  { %272 = vst.msk [vmem:[%s897_s3 + $0x1c8] sm:$0xff] %vm214_vm0, %v207_v63 }
  0x41   :  { %273 = vst.msk [vmem:[%s897_s3 + $0x1d0] sm:$0xff] %vm214_vm0, %v208_v3 }
  0x42   :  { %274 = vst.msk [vmem:[%s897_s3 + $0x1d8] sm:$0xff] %vm214_vm0, %v209_v5 }
  0x43   :  { %275 = vst.msk [vmem:[%s897_s3 + $0x1e0] sm:$0xff] %vm214_vm0, %v210_v6 }
  0x44   :  { %276 = vst.msk [vmem:[%s897_s3 + $0x1e8] sm:$0xff] %vm214_vm0, %v211_v1 }
  0x45   :  { %277 = vst.msk [vmem:[%s897_s3 + $0x1f0] sm:$0xff] %vm214_vm0, %v212_v7 }
  0x46   :  { %278 = vst.msk [vmem:[%s897_s3 + $0x1f8] sm:$0xff] %vm214_vm0, %v635_v55 }

// kernel: _lambda_.3
= control target key start
LH: loop header
LB: loop body
LE: loop exit
PB: predicated region body
PF: predicated region fallthrough
CT: control target
= control target key end

     0   :  { %vm3876_vm0 = vcmask 1043456   ;;  %vm722_vm1 = vcmask 1046528   ;;  %vm1205_vm2 = vcmask 1045504   ;;  %vm3683_vm3 = vcmask 31744   ;;  %s9713_s2 = inlined_call_operand.vmem [shape: f32[4,4], index: 2, kind: input, shape index: {}]   ;;  %s9714_s0 = inlined_call_operand.vmem [shape: f32[2,18,18,4], index: 0, kind: input, shape index: {}]   ;;  %s9715_s3 = inlined_call_operand.vmem [shape: f32[1,4], index: 3, kind: input, shape index: {}]   ;;  %s9716_s4 = inlined_call_operand.vmem [shape: f32[1,4], index: 4, kind: input, shape index: {}]   ;;  %s9717_s1 = inlined_call_operand.vmem [shape: f32[9,4], index: 1, kind: input, shape index: {}]   ;;  %s9718_s5 = inlined_call_operand.vmem [shape: f32[2,16,16,4], index: 5, kind: output, shape index: {0}]   ;;  %s9719_s6 = inlined_call_operand.vmem [shape: f32[1,2,4], index: 6, kind: output, shape index: {1}]  }
   0x1   :  { %v3682_v0 = vld [vmem:[%s9713_s2] sm:$0xf]  ;;  %v23_v2 = vld [vmem:[%s9714_s0 + $0x8] sm:$0xff]  ;;  %v25_v3 = vld [vmem:[%s9714_s0 + $0x18] sm:$0xff]  ;;  %vm4286_vm4 = vcmask 24576  }
   0x2   :  { %v22_v1 = vld [vmem:[%s9714_s0] sm:$0xff]  ;;  %4494 = vmatpush.msk.msra.mxu0 %vm3876_vm0, %v3682_v0  ;;  %v28_v5 = vld [vmem:[%s9714_s0 + $0x30] sm:$0xff]  ;;  %4559 = vmatpush.msk.msra.mxu1 %vm3876_vm0, %v3682_v0  ;;  %v29_v6 = vld [vmem:[%s9714_s0 + $0x38] sm:$0xff] }
   0x3   :  { %v26_v4 = vld [vmem:[%s9714_s0 + $0x20] sm:$0xff]  ;;  %4560 = vmatpush.msk.msra.mxu2 %vm3876_vm0, %v3682_v0  ;;  %4561 = vmatpush.msk.msra.mxu3 %vm3876_vm0, %v3682_v0  ;;  %v4777_v47 = vld [vmem:[%s9717_s1 + $0x8] ss:$0 sm:$0xff]  ;;  %v24_v56 = vld [vmem:[%s9714_s0 + $0x10] sm:$0x3] }
   0x4   :  { %v4687_v7 = vld [vmem:[%s9715_s3] ss:$0 sm:$0xff]  ;;  %v4708_v16 = vld [vmem:[%s9717_s1 + $0x1] ss:$0 sm:$0xff]  ;;  %v4713_v17 = vld [vmem:[%s9717_s1 + $0x2] ss:$0 sm:$0xff] }
   0x5   :  { %v4692_v8 = vld [vmem:[%s9716_s4] ss:$0 sm:$0xff]  ;;  %v135_v9 = vmul.f32 %v4687_v7, %v22_v1  ;;  %v136_v10 = vmul.f32 %v4687_v7, %v23_v2  ;;  %v138_v11 = vmul.f32 %v4687_v7, %v25_v3  ;;  %v139_v12 = vmul.f32 %v4687_v7, %v26_v4  ;;  %v4722_v22 = vld [vmem:[%s9717_s1 + $0x3] ss:$0 sm:$0xff]  ;;  %v4729_v25 = vld [vmem:[%s9717_s1 + $0x4] ss:$0 sm:$0xff] }
   0x6   :  { %v4701_v13 = vld [vmem:[%s9717_s1] ss:$0 sm:$0xff]  ;;  %v141_v14 = vmul.f32 %v4687_v7, %v28_v5  ;;  %v142_v15 = vmul.f32 %v4687_v7, %v29_v6  ;;  %v4734_v26 = vld [vmem:[%s9717_s1 + $0x5] ss:$0 sm:$0xff]  ;;  %v4753_v37 = vld [vmem:[%s9717_s1 + $0x6] ss:$0 sm:$0xff]  ;;  %v137_v5 = vmul.f32 %v4687_v7, %v24_v56 }
   0x7   :  { %v246_v18 = vadd.f32 %v4692_v8, %v135_v9  ;;  %v247_v19 = vadd.f32 %v4692_v8, %v136_v10  ;;  %v249_v20 = vadd.f32 %v4692_v8, %v138_v11  ;;  %v250_v21 = vadd.f32 %v4692_v8, %v139_v12  ;;  %v4758_v38 = vld [vmem:[%s9717_s1 + $0x7] ss:$0 sm:$0xff]  ;;  %v27_v57 = vld [vmem:[%s9714_s0 + $0x28] sm:$0x3]  ;;  %v30_v62 = vld [vmem:[%s9714_s0 + $0x40] sm:$0x3] }
   0x8   :  { %v252_v23 = vadd.f32 %v4692_v8, %v141_v14  ;;  %v253_v24 = vadd.f32 %v4692_v8, %v142_v15  ;;  %v140_v6 = vmul.f32 %v4687_v7, %v27_v57  ;;  %v143_v12 = vmul.f32 %v4687_v7, %v30_v62 }
   0x9   :  { %v354_v27 = vmax.f32 %v246_v18, 0.0  ;;  %v355_v28 = vmax.f32 %v247_v19, 0.0  ;;  %v4736_v29 = vmax.f32 %v249_v20, 0.0  ;;  %v4738_v30 = vmax.f32 %v250_v21, 0.0  ;;  %v31_v20 = vld [vmem:[%s9714_s0 + $0x48] sm:$0xff]  ;;  %v32_v21 = vld [vmem:[%s9714_s0 + $0x50] sm:$0xff] }
   0xa   :  { %v4740_v31 = vmax.f32 %v252_v23, 0.0  ;;  %v4742_v32 = vmax.f32 %v253_v24, 0.0  ;;  %v248_v15 = vadd.f32 %v4692_v8, %v137_v5  ;;  %v251_v18 = vadd.f32 %v4692_v8, %v140_v6 }
   0xb   :  { %v464_v33 = vmul.f32 %v4701_v13, %v354_v27  ;;  %v530_v34 = vmul.f32 %v4708_v16, %v354_v27  ;;  %v4747_v35 = vmul.f32 %v4708_v16, %v355_v28  ;;  %v1013_v36 = vmul.f32 %v4713_v17, %v354_v27 }
   0xc   :  { %v4761_v39 = vmul.f32 %v4713_v17, %v355_v28  ;;  %v1496_v40 = vmul.f32 %v4722_v22, %v4736_v29  ;;  %v1626_v41 = vmul.f32 %v4729_v25, %v4736_v29  ;;  %v4769_v42 = vmul.f32 %v4729_v25, %v4738_v30 }
   0xd   :  { %v723_v43 = vrot.slane %v530_v34, 1  ;;  %v724_v44 = vrot.slane %v4747_v35, 1  ;;  %v1206_v45 = vrot.slane %v1013_v36, 2  ;;  %v2108_v46 = vmul.f32 %v4734_v26, %v4736_v29 }
   0xe   :  { %v1207_v48 = vrot.slane %v4761_v39, 2  ;;  %v1818_v49 = vrot.slane %v1626_v41, 1  ;;  %v1819_v50 = vrot.slane %v4769_v42, 1  ;;  %v4783_v51 = vmul.f32 %v4734_v26, %v4738_v30 }
   0xf   :  { %v725_v52 = vsel %vm722_vm1, %v723_v43, %v724_v44  ;;  %v2300_v53 = vrot.slane %v2108_v46, 2  ;;  %v2590_v54 = vmul.f32 %v4753_v37, %v4740_v31  ;;  %v2720_v55 = vmul.f32 %v4758_v38, %v4740_v31 }
  0x10   :  { %v947_v58 = vadd.f32 %v725_v52, %v464_v33  ;;  %v1208_v59 = vsel %vm1205_vm2, %v1206_v45, %v1207_v48  ;;  %v1820_v60 = vsel %vm722_vm1, %v1818_v49, %v1819_v50  ;;  %v2301_v61 = vrot.slane %v4783_v51, 2 }
  0x11   :  { %v2721_v63 = vmul.f32 %v4758_v38, %v4742_v32  ;;  %v2912_v0 = vrot.slane %v2720_v55, 1  ;;  %v3202_v1 = vmul.f32 %v4777_v47, %v4740_v31  ;;  %v3203_v2 = vmul.f32 %v4777_v47, %v4742_v32 }
  0x12   :  { %v1430_v3 = vadd.f32 %v1208_v59, %v947_v58  ;;  %v2302_v4 = vsel %vm1205_vm2, %v2300_v53, %v2301_v61  ;;  %v465_v19 = vmul.f32 %v4701_v13, %v355_v28  ;;  %v254_v27 = vadd.f32 %v4692_v8, %v143_v12 }
  0x13   :  { %v2913_v9 = vrot.slane %v2721_v63, 1  ;;  %v3394_v10 = vrot.slane %v3202_v1, 2  ;;  %v3395_v11 = vrot.slane %v3203_v2, 2  ;;  %v1497_v33 = vmul.f32 %v4722_v22, %v4738_v30 }
  0x14   :  { %v1560_v14 = vadd.f32 %v1496_v40, %v1430_v3  ;;  %v356_v28 = vmax.f32 %v248_v15, 0.0  ;;  %v4832_v36 = vmax.f32 %v251_v18, 0.0  ;;  %v4836_v40 = vmul.f32 %v4753_v37, %v4742_v32 }
  0x15   :  { %v2914_v23 = vsel %vm722_vm1, %v2912_v0, %v2913_v9  ;;  %v3396_v24 = vsel %vm1205_vm2, %v3394_v10, %v3395_v11  ;;  %v4838_v41 = vmax.f32 %v254_v27, 0.0  ;;  %v144_v43 = vmul.f32 %v4687_v7, %v31_v20 }
  0x16   :  { %v2042_v34 = vadd.f32 %v1820_v60, %v1560_v14  ;;  %v145_v45 = vmul.f32 %v4687_v7, %v32_v21  ;;  %v466_v46 = vmul.f32 %v4701_v13, %v4736_v29  ;;  %v532_v51 = vmul.f32 %v4708_v16, %v356_v28 }
  0x17   :  { %v1015_v52 = vmul.f32 %v4713_v17, %v356_v28  ;;  %v1628_v53 = vmul.f32 %v4729_v25, %v4832_v36  ;;  %v2110_v55 = vmul.f32 %v4734_v26, %v4832_v36  ;;  %v2722_v56 = vmul.f32 %v4758_v38, %v4838_v41 }
  0x18   :  { %v2524_v49 = vadd.f32 %v2302_v4, %v2042_v34  ;;  %v3204_v57 = vmul.f32 %v4777_v47, %v4838_v41  ;;  %v255_v58 = vadd.f32 %v4692_v8, %v144_v43  ;;  %v726_v60 = vrot.slane %v532_v51, 1 }
  0x19   :  { %v1209_v62 = vrot.slane %v1015_v52, 2  ;;  %v1821_v63 = vrot.slane %v1628_v53, 1  ;;  %v2303_v0 = vrot.slane %v2110_v55, 2  ;;  %v2915_v1 = vrot.slane %v2722_v56, 1  ;;  %v33_v52 = vld [vmem:[%s9714_s0 + $0x58] sm:$0x3] }
  0x1a   :  { %v2654_v59 = vadd.f32 %v2590_v54, %v2524_v49  ;;  %v3397_v2 = vrot.slane %v3204_v57, 2  ;;  %v256_v3 = vadd.f32 %v4692_v8, %v145_v45  ;;  %v727_v5 = vsel %vm722_vm1, %v724_v44, %v726_v60 }
  0x1b   :  { %v1210_v6 = vsel %vm1205_vm2, %v1207_v48, %v1209_v62  ;;  %v1822_v54 = vsel %vm722_vm1, %v1819_v50, %v1821_v63  ;;  %v948_v10 = vadd.f32 %v727_v5, %v465_v19  ;;  %v2304_v12 = vsel %vm1205_vm2, %v2301_v61, %v2303_v0 }
  0x1c   :  { %v3136_v4 = vadd.f32 %v2914_v23, %v2654_v59  ;;  %v2916_v14 = vsel %vm722_vm1, %v2913_v9, %v2915_v1  ;;  %v3398_v15 = vsel %vm1205_vm2, %v3395_v11, %v3397_v2  ;;  %v4868_v20 = vmax.f32 %v255_v58, 0.0 }
  0x1d   :  { %v4870_v35 = vmax.f32 %v256_v3, 0.0  ;;  %v533_v39 = vmul.f32 %v4708_v16, %v4736_v29  ;;  %v1431_v44 = vadd.f32 %v1210_v6, %v948_v10  ;;  %v534_v42 = vmul.f32 %v4708_v16, %v4738_v30 }
  0x1e   :  { %v3618_v18 = vadd.f32 %v3396_v24, %v3136_v4  ;;  %v1016_v48 = vmul.f32 %v4713_v17, %v4736_v29  ;;  %v1017_v50 = vmul.f32 %v4713_v17, %v4738_v30  ;;  %v1498_v9 = vmul.f32 %v4722_v22, %v4740_v31 }
  0x1f   :  { %v728_v61 = vrot.slane %v533_v39, 1  ;;  %v1629_v11 = vmul.f32 %v4729_v25, %v4740_v31  ;;  %v4887_v19 = vmul.f32 %v4729_v25, %v4742_v32  ;;  %v1561_v21 = vadd.f32 %v1497_v33, %v1431_v44 }
  0x20   :  { %4495 = vmatmul.msk.f32.vlgmr.msra.gmra.mxu0 %vm3683_vm3, %v3618_v18  ;;  %v729_v23 = vrot.slane %v534_v42, 1  ;;  %v1211_v24 = vrot.slane %v1016_v48, 2  ;;  %v1212_v29 = vrot.slane %v1017_v50, 2  ;;  %v2111_v28 = vmul.f32 %v4734_v26, %v4740_v31 }
  0x21   :  { %v1823_v27 = vrot.slane %v1629_v11, 1  ;;  %v1824_v34 = vrot.slane %v4887_v19, 1  ;;  %v2112_v43 = vmul.f32 %v4734_v26, %v4742_v32  ;;  %v2043_v45 = vadd.f32 %v1822_v54, %v1561_v21 }
  0x22   :  { %v730_v49 = vsel %vm722_vm1, %v728_v61, %v729_v23  ;;  %v1213_v51 = vsel %vm1205_vm2, %v1211_v24, %v1212_v29  ;;  %v2592_v33 = vmul.f32 %v4753_v37, %v4868_v20  ;;  %v2305_v56 = vrot.slane %v2111_v28, 2 }
  0x23   :  { %v949_v53 = vadd.f32 %v730_v49, %v466_v46  ;;  %v1825_v55 = vsel %vm722_vm1, %v1823_v27, %v1824_v34  ;;  %v2306_v57 = vrot.slane %v2112_v43, 2  ;;  %v2525_v58 = vadd.f32 %v2304_v12, %v2043_v45  ;;  %v34_v27 = vld [vmem:[%s9714_s0 + $0x60] sm:$0xff] }
  0x24   :  { %v2723_v59 = vmul.f32 %v4758_v38, %v4868_v20  ;;  %v2724_v60 = vmul.f32 %v4758_v38, %v4870_v35  ;;  %v3205_v62 = vmul.f32 %v4777_v47, %v4868_v20  ;;  %v3206_v46 = vmul.f32 %v4777_v47, %v4870_v35 }
  0x25   :  { %v1432_v63 = vadd.f32 %v1213_v51, %v949_v53  ;;  %v2307_v0 = vsel %vm1205_vm2, %v2305_v56, %v2306_v57  ;;  %v146_v1 = vmul.f32 %v4687_v7, %v33_v52  ;;  %v2655_v2 = vadd.f32 %v4836_v40, %v2525_v58 }
  0x26   :  { %v2917_v3 = vrot.slane %v2723_v59, 1  ;;  %v2918_v4 = vrot.slane %v2724_v60, 1  ;;  %v3399_v5 = vrot.slane %v3205_v62, 2  ;;  %v3400_v54 = vrot.slane %v3206_v46, 2 }
  0x27   :  { %v1562_v6 = vadd.f32 %v1498_v9, %v1432_v63  ;;  %v257_v10 = vadd.f32 %v4692_v8, %v146_v1  ;;  %v467_v12 = vmul.f32 %v4701_v13, %v4738_v30  ;;  %v3137_v18 = vadd.f32 %v2916_v14, %v2655_v2 }
  0x28   :  { %v2919_v39 = vsel %vm722_vm1, %v2917_v3, %v2918_v4  ;;  %v535_v44 = vmul.f32 %v4708_v16, %v4832_v36  ;;  %v1018_v42 = vmul.f32 %v4713_v17, %v4832_v36  ;;  %v3401_v48 = vsel %vm1205_vm2, %v3399_v5, %v3400_v54 }
  0x29   :  { %v2044_v40 = vadd.f32 %v1825_v55, %v1562_v6  ;;  %v4922_v50 = vmax.f32 %v257_v10, 0.0  ;;  %v1499_v61 = vmul.f32 %v4722_v22, %v4742_v32  ;;  %v3619_v9 = vadd.f32 %v3398_v15, %v3137_v18  ;;  %v35_v15 = vld [vmem:[%s9714_s0 + $0x68] sm:$0xff] }
  0x2a   :  { %v731_v11 = vrot.slane %v535_v44, 1  ;;  %v1214_v30 = vrot.slane %v1018_v42, 2  ;;  %v1631_v14 = vmul.f32 %v4729_v25, %v4838_v41  ;;  %v2113_v21 = vmul.f32 %v4734_v26, %v4838_v41 }
  0x2b   :  { %v2526_v19 = vadd.f32 %v2307_v0, %v2044_v40  ;;  %v2593_v36 = vmul.f32 %v4753_v37, %v4870_v35  ;;  %v2725_v24 = vmul.f32 %v4758_v38, %v4922_v50  ;;  %4496 = vmatmul.msk.f32.gmra.mxu0 %vm3683_vm3, %v3619_v9  ;;  %v3207_v49 = vmul.f32 %v4777_v47, %v4922_v50 }
  0x2c   :  { %v732_v28 = vsel %vm722_vm1, %v729_v23, %v731_v11  ;;  %v1215_v43 = vsel %vm1205_vm2, %v1212_v29, %v1214_v30  ;;  %v1826_v45 = vrot.slane %v1631_v14, 1  ;;  %v2308_v53 = vrot.slane %v2113_v21, 2 }
  0x2d   :  { %v2656_v51 = vadd.f32 %v2592_v33, %v2526_v19  ;;  %v950_v52 = vadd.f32 %v732_v28, %v467_v12  ;;  %v2920_v55 = vrot.slane %v2725_v24, 1  ;;  %v3402_v58 = vrot.slane %v3207_v49, 2 }
  0x2e   :  { %v1827_v56 = vsel %vm722_vm1, %v1824_v34, %v1826_v45  ;;  %v147_v59 = vmul.f32 %v4687_v7, %v34_v27  ;;  %v148_v60 = vmul.f32 %v4687_v7, %v35_v15  ;;  %v2309_v23 = vsel %vm1205_vm2, %v2306_v57, %v2308_v53 }
  0x2f   :  { %v3138_v62 = vadd.f32 %v2919_v39, %v2656_v51  ;;  %v1433_v63 = vadd.f32 %v1215_v43, %v950_v52  ;;  %v2921_v29 = vsel %vm722_vm1, %v2918_v4, %v2920_v55  ;;  %v3403_v0 = vsel %vm1205_vm2, %v3400_v54, %v3402_v58  ;;  %v46_v43 = vld [vmem:[%s9714_s0 + $0xc0] sm:$0xff]  ;;  %v47_v52 = vld [vmem:[%s9714_s0 + $0xc8] sm:$0xff] }
  0x30   :  { %v258_v33 = vadd.f32 %v4692_v8, %v147_v59  ;;  %v259_v46 = vadd.f32 %v4692_v8, %v148_v60  ;;  %v468_v34 = vmul.f32 %v4701_v13, %v4740_v31  ;;  %v536_v3 = vmul.f32 %v4708_v16, %v4740_v31  ;;  %v49_v59 = vld [vmem:[%s9714_s0 + $0xd8] sm:$0xff]  ;;  %v50_v60 = vld [vmem:[%s9714_s0 + $0xe0] sm:$0xff] }
  0x31   :  { %v3620_v1 = vadd.f32 %v3401_v48, %v3138_v62  ;;  %v1563_v2 = vadd.f32 %v1499_v61, %v1433_v63  ;;  %v4959_v5 = vmul.f32 %v4708_v16, %v4742_v32  ;;  %v1019_v6 = vmul.f32 %v4713_v17, %v4740_v31 }
  0x32   :  { %v4961_v57 = vmax.f32 %v258_v33, 0.0  ;;  %v4963_v4 = vmax.f32 %v259_v46, 0.0  ;;  %v4969_v54 = vmul.f32 %v4713_v17, %v4742_v32  ;;  %v733_v12 = vrot.slane %v536_v3, 1  ;;  %v53_v33 = vld [vmem:[%s9714_s0 + $0xf8] sm:$0xff] }
  0x33   :  { %v2045_v10 = vadd.f32 %v1827_v56, %v1563_v2  ;;  %v734_v18 = vrot.slane %v4959_v5, 1  ;;  %v1500_v39 = vmul.f32 %v4722_v22, %v4868_v20  ;;  %4497 = vmatmul.msk.f32.gmra.mxu0 %vm3683_vm3, %v3620_v1  ;;  %v1216_v44 = vrot.slane %v1019_v6, 2 }
  0x34   :  { %v1217_v42 = vrot.slane %v4969_v54, 2  ;;  %v1632_v40 = vmul.f32 %v4729_v25, %v4868_v20  ;;  %v4980_v31 = vmul.f32 %v4729_v25, %v4870_v35  ;;  %v2114_v9 = vmul.f32 %v4734_v26, %v4868_v20 }
  0x35   :  { %v2527_v48 = vadd.f32 %v2309_v23, %v2045_v10  ;;  %v735_v61 = vsel %vm722_vm1, %v733_v12, %v734_v18  ;;  %v4989_v11 = vmul.f32 %v4734_v26, %v4870_v35  ;;  %v2594_v28 = vmul.f32 %v4753_v37, %v4961_v57 }
  0x36   :  { %v951_v30 = vadd.f32 %v735_v61, %v468_v34  ;;  %v1218_v14 = vsel %vm1205_vm2, %v1216_v44, %v1217_v42  ;;  %v1828_v19 = vrot.slane %v1632_v40, 1  ;;  %v1829_v21 = vrot.slane %v4980_v31, 1  ;;  %v36_v44 = vld [vmem:[%s9714_s0 + $0x70] sm:$0x3] }
  0x37   :  { %v2657_v24 = vadd.f32 %v2593_v36, %v2527_v48  ;;  %v2310_v27 = vrot.slane %v2114_v9, 2  ;;  %v2311_v15 = vrot.slane %v4989_v11, 2  ;;  %v2726_v51 = vmul.f32 %v4758_v38, %v4961_v57  ;;  %v37_v11 = vld [vmem:[%s9714_s0 + $0x78] sm:$0xff] }
  0x38   :  { %v1434_v45 = vadd.f32 %v1218_v14, %v951_v30  ;;  %v1830_v49 = vsel %vm722_vm1, %v1828_v19, %v1829_v21  ;;  %v5008_v36 = vmul.f32 %v4758_v38, %v4963_v4  ;;  %v3208_v56 = vmul.f32 %v4777_v47, %v4961_v57 }
  0x39   :  { %v3139_v53 = vadd.f32 %v2921_v29, %v2657_v24  ;;  %v2312_v55 = vsel %vm1205_vm2, %v2310_v27, %v2311_v15  ;;  %v5020_v58 = vmul.f32 %v4777_v47, %v4963_v4  ;;  %v2922_v63 = vrot.slane %v2726_v51, 1  ;;  %v52_v29 = vld [vmem:[%s9714_s0 + $0xf0] sm:$0xff] }
  0x3a   :  { %v1564_v62 = vadd.f32 %v1500_v39, %v1434_v45  ;;  %v2923_v23 = vrot.slane %v5008_v36, 1  ;;  %v159_v46 = vmul.f32 %v4687_v7, %v46_v43  ;;  %v3404_v1 = vrot.slane %v3208_v56, 2 }
  0x3b   :  { %v3621_v34 = vadd.f32 %v3403_v0, %v3139_v53  ;;  %v9726_v2 = vrot.slane %v5020_v58, 2  ;;  %v160_v3 = vmul.f32 %v4687_v7, %v47_v52  ;;  %v162_v12 = vmul.f32 %v4687_v7, %v49_v59 }
  0x3c   :  { %v2046_v6 = vadd.f32 %v1830_v49, %v1564_v62  ;;  %v2924_v10 = vsel %vm722_vm1, %v2922_v63, %v2923_v23  ;;  %v163_v39 = vmul.f32 %v4687_v7, %v50_v60  ;;  %v165_v40 = vmul.f32 %v4687_v7, %v52_v29 }
  0x3d   :  { %4498 = vmatmul.msk.f32.gmra.mxu0 %vm3683_vm3, %v3621_v34  ;;  %v3406_v0 = vsel %vm1205_vm2, %v3404_v1, %v9726_v2  ;;  %v166_v48 = vmul.f32 %v4687_v7, %v53_v33  ;;  %v270_v61 = vadd.f32 %v4692_v8, %v159_v46  ;;  %v271_v30 = vadd.f32 %v4692_v8, %v160_v3 }
  0x3e   :  { %v2528_v9 = vadd.f32 %v2312_v55, %v2046_v6  ;;  %v273_v14 = vadd.f32 %v4692_v8, %v162_v12  ;;  %v274_v19 = vadd.f32 %v4692_v8, %v163_v39  ;;  %v276_v24 = vadd.f32 %v4692_v8, %v165_v40 }
  0x3f   :  { %v277_v27 = vadd.f32 %v4692_v8, %v166_v48  ;;  %v5058_v43 = vmax.f32 %v270_v61, 0.0  ;;  %v149_v45 = vmul.f32 %v4687_v7, %v36_v44  ;;  %v5061_v51 = vmax.f32 %v271_v30, 0.0 }
  0x40   :  { %v2658_v49 = vadd.f32 %v2594_v28, %v2528_v9  ;;  %v5063_v52 = vmax.f32 %v273_v14, 0.0  ;;  %v5065_v53 = vmax.f32 %v274_v19, 0.0  ;;  %v5067_v55 = vmax.f32 %v276_v24, 0.0 }
  0x41   :  { %10016 = vst [vmem:[#allocation2_spill] sm:$0xff] %v5058_v43  ;;  %v5069_v56 = vmax.f32 %v277_v27, 0.0  ;;  %v480_v59 = vmul.f32 %v4701_v13, %v5058_v43  ;;  %v554_v60 = vmul.f32 %v4708_v16, %v5058_v43  ;;  %v5077_v28 = vmul.f32 %v4708_v16, %v5061_v51 }
  0x42   :  { %10017 = vst [vmem:[#allocation3_spill] sm:$0xff] %v5061_v51  ;;  %v3140_v62 = vadd.f32 %v2924_v10, %v2658_v49  ;;  %v1037_v63 = vmul.f32 %v4713_v17, %v5058_v43  ;;  %v5083_v29 = vmul.f32 %v4713_v17, %v5061_v51  ;;  %v1512_v46 = vmul.f32 %v4722_v22, %v5063_v52 }
  0x43   :  { %10018 = vst [vmem:[#allocation4_spill] sm:$0xff] %v5063_v52  ;;  %v763_v33 = vrot.slane %v554_v60, 1  ;;  %v1650_v34 = vmul.f32 %v4729_v25, %v5063_v52  ;;  %v5091_v1 = vmul.f32 %v4729_v25, %v5065_v53  ;;  %v9725_v6 = vrot.slane %v5077_v28, 1 }
  0x44   :  { %10019 = vst [vmem:[#allocation5_spill] sm:$0xff] %v5065_v53  ;;  %v3622_v3 = vadd.f32 %v3406_v0, %v3140_v62  ;;  %v1246_v10 = vrot.slane %v1037_v63, 2  ;;  %v9724_v12 = vrot.slane %v5083_v29, 2  ;;  %v2132_v40 = vmul.f32 %v4734_v26, %v5063_v52 }
  0x45   :  { %v1858_v39 = vrot.slane %v1650_v34, 1  ;;  %v9720_v44 = vrot.slane %v5091_v1, 1  ;;  %v5100_v48 = vmul.f32 %v4734_v26, %v5065_v53  ;;  %v765_v0 = vsel %vm722_vm1, %v763_v33, %v9725_v6 }
  0x46   :  { %4499 = vmatmul.msk.f32.gmra.mxu0 %vm3683_vm3, %v3622_v3  ;;  %v1248_v61 = vsel %vm1205_vm2, %v1246_v10, %v9724_v12  ;;  %v2606_v9 = vmul.f32 %v4753_v37, %v5067_v55  ;;  %v2744_v30 = vmul.f32 %v4758_v38, %v5067_v55  ;;  %v963_v14 = vadd.f32 %v765_v0, %v480_v59 }
  0x47   :  { %v1860_v19 = vsel %vm722_vm1, %v1858_v39, %v9720_v44  ;;  %v2340_v24 = vrot.slane %v2132_v40, 2  ;;  %v9723_v27 = vrot.slane %v5100_v48, 2  ;;  %v5119_v49 = vmul.f32 %v4758_v38, %v5069_v56 }
  0x48   :  { %v2952_v60 = vrot.slane %v2744_v30, 1  ;;  %v3226_v62 = vmul.f32 %v4777_v47, %v5067_v55  ;;  %v5125_v63 = vmul.f32 %v4777_v47, %v5069_v56  ;;  %v1446_v59 = vadd.f32 %v1248_v61, %v963_v14 }
  0x49   :  { %v2342_v33 = vsel %vm1205_vm2, %v2340_v24, %v9723_v27  ;;  %v260_v34 = vadd.f32 %v4692_v8, %v149_v45  ;;  %v469_v3 = vmul.f32 %v4701_v13, %v4742_v32  ;;  %v9722_v10 = vrot.slane %v5119_v49, 1 }
  0x4a   :  { %v3434_v39 = vrot.slane %v3226_v62, 2  ;;  %v9721_v40 = vrot.slane %v5125_v63, 2  ;;  %v538_v0 = vmul.f32 %v4708_v16, %v4838_v41  ;;  %v1576_v30 = vadd.f32 %v1512_v46, %v1446_v59 }
  0x4b   :  { %v5137_v44 = vmax.f32 %v260_v34, 0.0  ;;  %v1021_v61 = vmul.f32 %v4713_v17, %v4838_v41  ;;  %v1501_v45 = vmul.f32 %v4722_v22, %v4870_v35  ;;  %v2954_v32 = vsel %vm722_vm1, %v2952_v60, %v9722_v10  ;;  %v48_v60 = vld [vmem:[%s9714_s0 + $0xd0] sm:$0x3] }
  0x4c   :  { %v3436_v14 = vsel %vm1205_vm2, %v3434_v39, %v9721_v40  ;;  %v736_v24 = vrot.slane %v538_v0, 1  ;;  %v1634_v46 = vmul.f32 %v4729_v25, %v4922_v50  ;;  %v2058_v62 = vadd.f32 %v1860_v19, %v1576_v30  ;;  %v51_v30 = vld [vmem:[%s9714_s0 + $0xe8] sm:$0x3] }
  0x4d   :  { %v1219_v59 = vrot.slane %v1021_v61, 2  ;;  %v2116_v41 = vmul.f32 %v4734_v26, %v4922_v50  ;;  %v2595_v34 = vmul.f32 %v4753_v37, %v4963_v4  ;;  %v2728_v40 = vmul.f32 %v4758_v38, %v5137_v44 }
  0x4e   :  { %v737_v39 = vsel %vm722_vm1, %v734_v18, %v736_v24  ;;  %v1831_v0 = vrot.slane %v1634_v46, 1  ;;  %v3210_v19 = vmul.f32 %v4777_v47, %v5137_v44  ;;  %v2540_v61 = vadd.f32 %v2342_v33, %v2058_v62  ;;  %v54_v18 = vld [vmem:[%s9714_s0 + $0x100] sm:$0x3] }
  0x4f   :  { %v952_v10 = vadd.f32 %v737_v39, %v469_v3  ;;  %v1220_v27 = vsel %vm1205_vm2, %v1217_v42, %v1219_v59  ;;  %v2313_v5 = vrot.slane %v2116_v41, 2  ;;  %v2925_v46 = vrot.slane %v2728_v40, 1 }
  0x50   :  { %v1832_v24 = vsel %vm722_vm1, %v1829_v21, %v1831_v0  ;;  %v3407_v12 = vrot.slane %v3210_v19, 2  ;;  %v161_v6 = vmul.f32 %v4687_v7, %v48_v60  ;;  %v2670_v2 = vadd.f32 %v2606_v9, %v2540_v61 }
  0x51   :  { %v1435_v33 = vadd.f32 %v1220_v27, %v952_v10  ;;  %v2314_v54 = vsel %vm1205_vm2, %v2311_v15, %v2313_v5  ;;  %v164_v42 = vmul.f32 %v4687_v7, %v51_v30  ;;  %v2926_v3 = vsel %vm722_vm1, %v2923_v23, %v2925_v46 }
  0x52   :  { %v10020_v31 = vrot.slane %v5020_v58, 2  ;;  %v167_v40 = vmul.f32 %v4687_v7, %v54_v18  ;;  %v272_v62 = vadd.f32 %v4692_v8, %v161_v6  ;;  %v3152_v9 = vadd.f32 %v2954_v32, %v2670_v2  ;;  %v38_v58 = vld [vmem:[%s9714_s0 + $0x80] sm:$0xff] }
  0x53   :  { %v1565_v15 = vadd.f32 %v1501_v45, %v1435_v33  ;;  %v275_v27 = vadd.f32 %v4692_v8, %v164_v42  ;;  %v481_v36 = vmul.f32 %v4701_v13, %v5061_v51  ;;  %v1513_v6 = vmul.f32 %v4722_v22, %v5065_v53 }
  0x54   :  { %v3408_v21 = vsel %vm1205_vm2, %v10020_v31, %v3407_v12  ;;  %v278_v23 = vadd.f32 %v4692_v8, %v167_v40  ;;  %v5200_v12 = vmax.f32 %v272_v62, 0.0  ;;  %v5206_v2 = vmul.f32 %v4753_v37, %v5069_v56 }
  0x55   :  { %v3634_v10 = vadd.f32 %v3436_v14, %v3152_v9  ;;  %v2047_v45 = vadd.f32 %v1832_v24, %v1565_v15  ;;  %v5208_v32 = vmax.f32 %v275_v27, 0.0  ;;  %v150_v59 = vmul.f32 %v4687_v7, %v37_v11 }
  0x56   :  { %10021 = vst [vmem:[#allocation6_spill] sm:$0xff] %v5200_v12  ;;  %v5211_v41 = vmax.f32 %v278_v23, 0.0  ;;  %v556_v60 = vmul.f32 %v4708_v16, %v5200_v12  ;;  %v1039_v39 = vmul.f32 %v4713_v17, %v5200_v12  ;;  %v151_v0 = vmul.f32 %v4687_v7, %v38_v58 }
  0x57   :  { %10022 = vst [vmem:[#allocation7_spill] sm:$0xff] %v5208_v32  ;;  %4511 = vmatmul.msk.f32.vlgmr.msra.gmra.mxu1 %vm3683_vm3, %v3634_v10  ;;  %v2529_v19 = vadd.f32 %v2314_v54, %v2047_v45  ;;  %v1652_v14 = vmul.f32 %v4729_v25, %v5208_v32  ;;  %v2134_v30 = vmul.f32 %v4734_v26, %v5208_v32  ;;  %v10023_v40 = vrot.slane %v5077_v28, 1 }
  0x58   :  { %v261_v61 = vadd.f32 %v4692_v8, %v150_v59  ;;  %v766_v5 = vrot.slane %v556_v60, 1  ;;  %v1249_v18 = vrot.slane %v1039_v39, 2  ;;  %v2746_v24 = vmul.f32 %v4758_v38, %v5211_v41 }
  0x59   :  { %v3228_v46 = vmul.f32 %v4777_v47, %v5211_v41  ;;  %v2659_v33 = vadd.f32 %v2595_v34, %v2529_v19  ;;  %v1861_v42 = vrot.slane %v1652_v14, 1  ;;  %v2343_v31 = vrot.slane %v2134_v30, 2 }
  0x5a   :  { %v262_v54 = vadd.f32 %v4692_v8, %v151_v0  ;;  %v767_v62 = vsel %vm722_vm1, %v10023_v40, %v766_v5  ;;  %v10024_v11 = vrot.slane %v5083_v29, 2  ;;  %v2955_v15 = vrot.slane %v2746_v24, 1 }
  0x5b   :  { %v3437_v27 = vrot.slane %v3228_v46, 2  ;;  %v3141_v58 = vadd.f32 %v2926_v3, %v2659_v33  ;;  %v964_v23 = vadd.f32 %v767_v62, %v481_v36  ;;  %v10025_v10 = vrot.slane %v5091_v1, 1 }
  0x5c   :  { %v1250_v9 = vsel %vm1205_vm2, %v10024_v11, %v1249_v18  ;;  %v10026_v45 = vrot.slane %v5100_v48, 2  ;;  %v10027_v28 = vrot.slane %v5119_v49, 1  ;;  %v10028_v29 = vrot.slane %v5125_v63, 2 }
  0x5d   :  { %v1862_v34 = vsel %vm722_vm1, %v10025_v10, %v1861_v42  ;;  %v5247_v0 = vmax.f32 %v261_v61, 0.0  ;;  %v5249_v3 = vmax.f32 %v262_v54, 0.0  ;;  %v3623_v36 = vadd.f32 %v3408_v21, %v3141_v58 }
  0x5e   :  { %v2344_v59 = vsel %vm1205_vm2, %v10026_v45, %v2343_v31  ;;  %v2956_v60 = vsel %vm722_vm1, %v10027_v28, %v2955_v15  ;;  %v3438_v39 = vsel %vm1205_vm2, %v10028_v29, %v3437_v27  ;;  %v1447_v1 = vadd.f32 %v1250_v9, %v964_v23  ;;  %v55_v15 = vld [vmem:[%s9714_s0 + $0x108] sm:$0xff]  ;;  %v56_v29 = vld [vmem:[%s9714_s0 + $0x110] sm:$0xff] }
  0x5f   :  { %10029 = vst [vmem:[#allocation8_spill] sm:$0xff] %v5247_v0  ;;  %v470_v19 = vmul.f32 %v4701_v13, %v4868_v20  ;;  %v539_v48 = vmul.f32 %v4708_v16, %v4868_v20  ;;  %v5257_v49 = vmul.f32 %v4708_v16, %v4870_v35  ;;  %v1022_v63 = vmul.f32 %v4713_v17, %v4868_v20 }
  0x60   :  { %v5263_v14 = vmul.f32 %v4713_v17, %v4870_v35  ;;  %v1502_v21 = vmul.f32 %v4722_v22, %v4961_v57  ;;  %4500 = vmatmul.msk.f32.gmra.mxu0 %vm3683_vm3, %v3623_v36  ;;  %v1577_v30 = vadd.f32 %v1513_v6, %v1447_v1  ;;  %v1635_v5 = vmul.f32 %v4729_v25, %v4961_v57 }
  0x61   :  { %v738_v61 = vrot.slane %v539_v48, 1  ;;  %v5272_v18 = vmul.f32 %v4729_v25, %v4963_v4  ;;  %v739_v20 = vrot.slane %v5257_v49, 1  ;;  %v1221_v24 = vrot.slane %v1022_v63, 2 }
  0x62   :  { %v1222_v46 = vrot.slane %v5263_v14, 2  ;;  %v2117_v33 = vmul.f32 %v4734_v26, %v4961_v57  ;;  %v2059_v42 = vadd.f32 %v1862_v34, %v1577_v30  ;;  %v1833_v31 = vrot.slane %v1635_v5, 1 }
  0x63   :  { %v1834_v6 = vrot.slane %v5272_v18, 1  ;;  %v5281_v54 = vmul.f32 %v4734_v26, %v4963_v4  ;;  %v740_v40 = vsel %vm722_vm1, %v738_v61, %v739_v20  ;;  %v2596_v9 = vmul.f32 %v4753_v37, %v5247_v0  ;;  %v5456_v18 = vld [vmem:[%s9717_s1] ss:$0 sm:$0xff] }
  0x64   :  { %v1223_v62 = vsel %vm1205_vm2, %v1221_v24, %v1222_v46  ;;  %v2315_v11 = vrot.slane %v2117_v33, 2  ;;  %v2541_v27 = vadd.f32 %v2344_v59, %v2059_v42  ;;  %v953_v58 = vadd.f32 %v740_v40, %v470_v19 }
  0x65   :  { %v1835_v23 = vsel %vm722_vm1, %v1833_v31, %v1834_v6  ;;  %v9732_v10 = vrot.slane %v5281_v54, 2  ;;  %v2729_v34 = vmul.f32 %v4758_v38, %v5247_v0  ;;  %v5302_v45 = vmul.f32 %v4758_v38, %v5249_v3 }
  0x66   :  { %v3211_v28 = vmul.f32 %v4777_v47, %v5247_v0  ;;  %v5308_v59 = vmul.f32 %v4777_v47, %v5249_v3  ;;  %v2671_v36 = vadd.f32 %v5206_v2, %v2541_v27  ;;  %v1436_v1 = vadd.f32 %v1223_v62, %v953_v58 }
  0x67   :  { %v2317_v19 = vsel %vm1205_vm2, %v2315_v11, %v9732_v10  ;;  %v168_v48 = vmul.f32 %v4687_v7, %v55_v15  ;;  %v2927_v63 = vrot.slane %v2729_v34, 1  ;;  %v9731_v30 = vrot.slane %v5302_v45, 1 }
  0x68   :  { %v3409_v61 = vrot.slane %v3211_v28, 2  ;;  %v9727_v5 = vrot.slane %v5308_v59, 2  ;;  %v3153_v24 = vadd.f32 %v2956_v60, %v2671_v36  ;;  %v1566_v33 = vadd.f32 %v1502_v21, %v1436_v1 }
  0x69   :  { %v169_v42 = vmul.f32 %v4687_v7, %v56_v29  ;;  %v279_v31 = vadd.f32 %v4692_v8, %v168_v48  ;;  %v2929_v2 = vsel %vm722_vm1, %v2927_v63, %v9731_v30  ;;  %v482_v62 = vmul.f32 %v4701_v13, %v5063_v52 }
  0x6a   :  { %v3411_v40 = vsel %vm1205_vm2, %v3409_v61, %v9727_v5  ;;  %v557_v11 = vmul.f32 %v4708_v16, %v5063_v52  ;;  %v3635_v60 = vadd.f32 %v3438_v39, %v3153_v24  ;;  %v2048_v21 = vadd.f32 %v1835_v23, %v1566_v33  ;;  %v39_v5 = vld [vmem:[%s9714_s0 + $0x88] sm:$0x3] }
  0x6b   :  { %v280_v15 = vadd.f32 %v4692_v8, %v169_v42  ;;  %v5333_v27 = vmax.f32 %v279_v31, 0.0  ;;  %v5337_v58 = vmul.f32 %v4708_v16, %v5065_v53  ;;  %v1040_v28 = vmul.f32 %v4713_v17, %v5063_v52 }
  0x6c   :  { %v768_v34 = vrot.slane %v557_v11, 1  ;;  %v5343_v29 = vmul.f32 %v4713_v17, %v5065_v53  ;;  %4512 = vmatmul.msk.f32.gmra.mxu1 %vm3683_vm3, %v3635_v60  ;;  %v2530_v39 = vadd.f32 %v2317_v19, %v2048_v21  ;;  %v1514_v36 = vmul.f32 %v4722_v22, %v5067_v55 }
  0x6d   :  { %10030 = vst [vmem:[#allocation9_spill] sm:$0xff] %v5333_v27  ;;  %v5346_v23 = vmax.f32 %v280_v15, 0.0  ;;  %v1653_v1 = vmul.f32 %v4729_v25, %v5067_v55  ;;  %v9730_v48 = vrot.slane %v5337_v58, 1  ;;  %v1251_v63 = vrot.slane %v1040_v28, 2 }
  0x6e   :  { %v9728_v61 = vrot.slane %v5343_v29, 2  ;;  %v5356_v24 = vmul.f32 %v4729_v25, %v5069_v56  ;;  %v2660_v33 = vadd.f32 %v2596_v9, %v2530_v39  ;;  %v2135_v19 = vmul.f32 %v4734_v26, %v5067_v55 }
  0x6f   :  { %v1863_v42 = vrot.slane %v1653_v1, 1  ;;  %v5362_v31 = vmul.f32 %v4734_v26, %v5069_v56  ;;  %v770_v11 = vsel %vm722_vm1, %v768_v34, %v9730_v48  ;;  %v2608_v9 = vmul.f32 %v4753_v37, %v5333_v27 }
  0x70   :  { %v1253_v60 = vsel %vm1205_vm2, %v1251_v63, %v9728_v61  ;;  %v9729_v21 = vrot.slane %v5356_v24, 1  ;;  %v3142_v15 = vadd.f32 %v2929_v2, %v2660_v33  ;;  %v965_v28 = vadd.f32 %v770_v11, %v482_v62 }
  0x71   :  { %v2345_v39 = vrot.slane %v2135_v19, 2  ;;  %v2346_v1 = vrot.slane %v5362_v31, 2  ;;  %v2747_v63 = vmul.f32 %v4758_v38, %v5333_v27  ;;  %v5384_v61 = vmul.f32 %v4758_v38, %v5346_v23 }
  0x72   :  { %v1865_v34 = vsel %vm722_vm1, %v1863_v42, %v9729_v21  ;;  %v3229_v2 = vmul.f32 %v4777_v47, %v5333_v27  ;;  %v3624_v62 = vadd.f32 %v3411_v40, %v3142_v15  ;;  %v1448_v33 = vadd.f32 %v1253_v60, %v965_v28 }
  0x73   :  { %v2347_v19 = vsel %vm1205_vm2, %v2345_v39, %v2346_v1  ;;  %v5393_v11 = vmul.f32 %v4777_v47, %v5346_v23  ;;  %v2957_v42 = vrot.slane %v2747_v63, 1  ;;  %v2958_v21 = vrot.slane %v5384_v61, 1 }
  0x74   :  { %v3439_v48 = vrot.slane %v3229_v2, 2  ;;  %v152_v30 = vmul.f32 %v4687_v7, %v39_v5  ;;  %4501 = vmatmul.msk.f32.gmra.mxu0 %vm3683_vm3, %v3624_v62  ;;  %v1578_v10 = vadd.f32 %v1514_v36, %v1448_v33  ;;  %v471_v60 = vmul.f32 %v4701_v13, %v4870_v35  ;;  %v57_v36 = vld [vmem:[%s9714_s0 + $0x118] sm:$0x3] }
  0x75   :  { %v3440_v40 = vrot.slane %v5393_v11, 2  ;;  %v541_v15 = vmul.f32 %v4708_v16, %v4922_v50  ;;  %v2959_v28 = vsel %vm722_vm1, %v2957_v42, %v2958_v21  ;;  %v1024_v7 = vmul.f32 %v4713_v17, %v4922_v50  ;;  %v5447_v42 = vld [vmem:[%s9716_s4] ss:$0 sm:$0xff] }
  0x76   :  { %v263_v39 = vadd.f32 %v4692_v8, %v152_v30  ;;  %v1503_v5 = vmul.f32 %v4722_v22, %v4963_v4  ;;  %v2060_v13 = vadd.f32 %v1865_v34, %v1578_v10  ;;  %v1637_v63 = vmul.f32 %v4729_v25, %v5137_v44 }
  0x77   :  { %v3441_v16 = vsel %vm1205_vm2, %v3439_v48, %v3440_v40  ;;  %v741_v35 = vrot.slane %v541_v15, 1  ;;  %v1224_v30 = vrot.slane %v1024_v7, 2  ;;  %v2119_v17 = vmul.f32 %v4734_v26, %v5137_v44  ;;  %v5431_v48 = vld [vmem:[%s9715_s3] ss:$0 sm:$0xff] }
  0x78   :  { %v5419_v8 = vmax.f32 %v263_v39, 0.0  ;;  %v2597_v22 = vmul.f32 %v4753_v37, %v5249_v3  ;;  %v2542_v50 = vadd.f32 %v2347_v19, %v2060_v13  ;;  %v1836_v34 = vrot.slane %v1637_v63, 1  ;;  %v5465_v13 = vld [vmem:[%s9717_s1 + $0x1] ss:$0 sm:$0xff] }
  0x79   :  { %v742_v10 = vsel %vm722_vm1, %v739_v20, %v741_v35  ;;  %v170_v25 = vmul.f32 %v5431_v48, %v57_v36  ;;  %v1225_v26 = vsel %vm1205_vm2, %v1222_v46, %v1224_v30  ;;  %v2318_v62 = vrot.slane %v2119_v17, 2 }
  0x7a   :  { %v954_v2 = vadd.f32 %v742_v10, %v471_v60  ;;  %v2731_v33 = vmul.f32 %v4758_v38, %v5419_v8  ;;  %v2672_v49 = vadd.f32 %v2608_v9, %v2542_v50  ;;  %v1837_v20 = vsel %vm722_vm1, %v1834_v6, %v1836_v34  ;;  %v5482_v50 = vld [vmem:[%s9717_s1 + $0x3] ss:$0 sm:$0xff] }
  0x7b   :  { %v3213_v19 = vmul.f32 %v4777_v47, %v5419_v8  ;;  %v281_v14 = vadd.f32 %v5447_v42, %v170_v25  ;;  %v10031_v60 = vrot.slane %v5281_v54, 2  ;;  %v483_v6 = vmul.f32 %v5456_v18, %v5065_v53  ;;  %v58_v53 = vld [vmem:[%s9714_s0 + $0x120] sm:$0xff] }
  0x7c   :  { %v1437_v46 = vadd.f32 %v1225_v26, %v954_v2  ;;  %v2930_v9 = vrot.slane %v2731_v33, 1  ;;  %v3154_v39 = vadd.f32 %v2959_v28, %v2672_v49  ;;  %v559_v54 = vmul.f32 %v5465_v13, %v5208_v32  ;;  %v5475_v28 = vld [vmem:[%s9717_s1 + $0x2] ss:$0 sm:$0xff]  ;;  %v5492_v2 = vld [vmem:[%s9717_s1 + $0x4] ss:$0 sm:$0xff] }
  0x7d   :  { %v2319_v15 = vsel %vm1205_vm2, %v10031_v60, %v2318_v62  ;;  %v3412_v7 = vrot.slane %v3213_v19, 2  ;;  %v5460_v36 = vmax.f32 %v281_v14, 0.0  ;;  %v10032_v63 = vrot.slane %v5302_v45, 1  ;;  %v5499_v49 = vld [vmem:[%s9717_s1 + $0x5] ss:$0 sm:$0xff]  ;;  %v76_v19 = vld [vmem:[%s9714_s0 + $0x1b0] sm:$0xff] }
  0x7e   :  { %v1567_v35 = vadd.f32 %v1503_v5, %v1437_v46  ;;  %v1042_v17 = vmul.f32 %v5475_v28, %v5208_v32  ;;  %v1515_v5 = vmul.f32 %v5482_v50, %v5069_v56  ;;  %v3636_v10 = vadd.f32 %v3441_v16, %v3154_v39 }
  0x7f   :  { %v2931_v30 = vsel %vm722_vm1, %v10032_v63, %v2930_v9  ;;  %v10033_v45 = vrot.slane %v5308_v59, 2  ;;  %v771_v25 = vrot.slane %v559_v54, 1  ;;  %v1655_v26 = vmul.f32 %v5492_v2, %v5211_v41  ;;  %v79_v63 = vld [vmem:[%s9714_s0 + $0x1c8] sm:$0xff] }
  0x80   :  { %v2049_v62 = vadd.f32 %v1837_v20, %v1567_v35  ;;  %v1254_v33 = vrot.slane %v1042_v17, 2  ;;  %v2137_v59 = vmul.f32 %v5499_v49, %v5211_v41  ;;  %v2609_v16 = vmul.f32 %v4753_v37, %v5346_v23  ;;  %4513 = vmatmul.msk.f32.gmra.mxu1 %vm3683_vm3, %v3636_v10  ;;  %v77_v37 = vld [vmem:[%s9714_s0 + $0x1b8] sm:$0xff] }
  0x81   :  { %v3413_v34 = vsel %vm1205_vm2, %v10033_v45, %v3412_v7  ;;  %v10034_v20 = vrot.slane %v5337_v58, 1  ;;  %v1866_v46 = vrot.slane %v1655_v26, 1  ;;  %v2749_v60 = vmul.f32 %v4758_v38, %v5460_v36  ;;  %v80_v38 = vld [vmem:[%s9714_s0 + $0x1d0] sm:$0xff] }
  0x82   :  { %v3231_v9 = vmul.f32 %v4777_v47, %v5460_v36  ;;  %v2531_v39 = vadd.f32 %v2319_v15, %v2049_v62  ;;  %v10035_v54 = vrot.slane %v5343_v29, 2  ;;  %v2348_v58 = vrot.slane %v2137_v59, 2  ;;  %v82_v29 = vld [vmem:[%s9714_s0 + $0x1e0] sm:$0xff] }
  0x83   :  { %v772_v14 = vsel %vm722_vm1, %v10034_v20, %v771_v25  ;;  %v10036_v47 = vrot.slane %v5356_v24, 1  ;;  %v2960_v10 = vrot.slane %v2749_v60, 1  ;;  %v189_v45 = vmul.f32 %v5431_v48, %v76_v19 }
  0x84   :  { %v966_v7 = vadd.f32 %v772_v14, %v483_v6  ;;  %v1255_v35 = vsel %vm1205_vm2, %v10035_v54, %v1254_v33  ;;  %v3442_v15 = vrot.slane %v3231_v9, 2  ;;  %v83_v6 = vld [vmem:[%s9714_s0 + $0x1e8] sm:$0xff]  ;;  %v2661_v25 = vadd.f32 %v2597_v22, %v2531_v39 }
  0x85   :  { %v1867_v17 = vsel %vm722_vm1, %v10036_v47, %v1866_v46  ;;  %v2349_v24 = vsel %vm1205_vm2, %v2346_v1, %v2348_v58  ;;  %v190_v62 = vmul.f32 %v5431_v48, %v77_v37  ;;  %v2961_v33 = vsel %vm722_vm1, %v2958_v21, %v2960_v10 }
  0x86   :  { %v1449_v26 = vadd.f32 %v1255_v35, %v966_v7  ;;  %v3443_v59 = vsel %vm1205_vm2, %v3440_v40, %v3442_v15  ;;  %v192_v20 = vmul.f32 %v5431_v48, %v79_v63  ;;  %v193_v19 = vmul.f32 %v5431_v48, %v80_v38  ;;  %v40_v40 = vld [vmem:[%s9714_s0 + $0x90] sm:$0xff] }
  0x87   :  { %v3143_v22 = vadd.f32 %v2931_v30, %v2661_v25  ;;  %v195_v31 = vmul.f32 %v5431_v48, %v82_v29  ;;  %v196_v1 = vmul.f32 %v5431_v48, %v83_v6  ;;  %v300_v46 = vadd.f32 %v5447_v42, %v189_v45 }
  0x88   :  { %v1579_v14 = vadd.f32 %v1515_v5, %v1449_v26  ;;  %v301_v61 = vadd.f32 %v5447_v42, %v190_v62  ;;  %v303_v21 = vadd.f32 %v5447_v42, %v192_v20  ;;  %v304_v11 = vadd.f32 %v5447_v42, %v193_v19 }
  0x89   :  { %v3625_v60 = vadd.f32 %v3413_v34, %v3143_v22  ;;  %v306_v30 = vadd.f32 %v5447_v42, %v195_v31  ;;  %v307_v5 = vadd.f32 %v5447_v42, %v196_v1  ;;  %v408_v37 = vmax.f32 %v300_v46, 0.0 }
  0x8a   :  { %v2061_v9 = vadd.f32 %v1867_v17, %v1579_v14  ;;  %v5561_v39 = vmax.f32 %v301_v61, 0.0  ;;  %v5563_v7 = vmax.f32 %v303_v21, 0.0  ;;  %v5565_v54 = vmax.f32 %v304_v11, 0.0  ;;  %v41_v61 = vld [vmem:[%s9714_s0 + $0x98] sm:$0xff] }
  0x8b   :  { %4502 = vmatmul.msk.f32.gmra.mxu0 %vm3683_vm3, %v3625_v60  ;;  %v5568_v58 = vmax.f32 %v306_v30, 0.0  ;;  %v5570_v63 = vmax.f32 %v307_v5, 0.0  ;;  %v153_v34 = vmul.f32 %v5431_v48, %v40_v40  ;;  %v496_v38 = vmul.f32 %v5456_v18, %v408_v37  ;;  %v5624_v5 = vld [vmem:[%s9717_s1 + $0x7] ss:$0 sm:$0xff] }
  0x8c   :  { %10037 = vst [vmem:[#allocation10_spill] sm:$0xff] %v5563_v7  ;;  %v2543_v35 = vadd.f32 %v2349_v24, %v2061_v9  ;;  %v578_v47 = vmul.f32 %v5465_v13, %v408_v37  ;;  %v5577_v17 = vmul.f32 %v5465_v13, %v5561_v39  ;;  %v1061_v10 = vmul.f32 %v5475_v28, %v408_v37 }
  0x8d   :  { %10038 = vst [vmem:[#allocation11_spill] sm:$0xff] %v5565_v54  ;;  %v5582_v29 = vmul.f32 %v5475_v28, %v5561_v39  ;;  %v1528_v6 = vmul.f32 %v5482_v50, %v5563_v7  ;;  %v1674_v45 = vmul.f32 %v5492_v2, %v5563_v7  ;;  %v5591_v62 = vmul.f32 %v5492_v2, %v5565_v54 }
  0x8e   :  { %10039 = vst [vmem:[#allocation12_spill] sm:$0xff] %v5568_v58  ;;  %v2673_v15 = vadd.f32 %v2609_v16, %v2543_v35  ;;  %v803_v25 = vrot.slane %v578_v47, 1  ;;  %v9738_v26 = vrot.slane %v5577_v17, 1  ;;  %v1286_v24 = vrot.slane %v1061_v10, 2 }
  0x8f   :  { %10040 = vst [vmem:[#allocation13_spill] sm:$0xff] %v5570_v63  ;;  %v9737_v16 = vrot.slane %v5582_v29, 2  ;;  %v1898_v19 = vrot.slane %v1674_v45, 1  ;;  %v2156_v22 = vmul.f32 %v5499_v49, %v5563_v7  ;;  %v9736_v31 = vrot.slane %v5591_v62, 1 }
  0x90   :  { %v3155_v20 = vadd.f32 %v2961_v33, %v2673_v15  ;;  %v805_v14 = vsel %vm722_vm1, %v803_v25, %v9738_v26  ;;  %v5602_v1 = vmul.f32 %v5499_v49, %v5565_v54  ;;  %v5607_v33 = vld [vmem:[%s9717_s1 + $0x6] ss:$0 sm:$0xff]  ;;  %v5630_v37 = vmul.f32 %v5624_v5, %v5570_v63 }
  0x91   :  { %v2622_v46 = vmul.f32 %v5607_v33, %v5568_v58  ;;  %v979_v11 = vadd.f32 %v805_v14, %v496_v38  ;;  %v1288_v40 = vsel %vm1205_vm2, %v1286_v24, %v9737_v16  ;;  %v2380_v60 = vrot.slane %v2156_v22, 2  ;;  %v5636_v38 = vld [vmem:[%s9717_s1 + $0x8] ss:$0 sm:$0xff] }
  0x92   :  { %v3637_v21 = vadd.f32 %v3443_v59, %v3155_v20  ;;  %v1900_v9 = vsel %vm722_vm1, %v1898_v19, %v9736_v31  ;;  %v9735_v30 = vrot.slane %v5602_v1, 2  ;;  %v2768_v59 = vmul.f32 %v5624_v5, %v5568_v58 }
  0x93   :  { %v1462_v35 = vadd.f32 %v1288_v40, %v979_v11  ;;  %v3250_v47 = vmul.f32 %v5636_v38, %v5568_v58  ;;  %v5642_v10 = vmul.f32 %v5636_v38, %v5570_v63  ;;  %v154_v15 = vmul.f32 %v5431_v48, %v41_v61 }
  0x94   :  { %4514 = vmatmul.msk.f32.gmra.mxu1 %vm3683_vm3, %v3637_v21  ;;  %v2382_v45 = vsel %vm1205_vm2, %v2380_v60, %v9735_v30  ;;  %v2992_v25 = vrot.slane %v2768_v59, 1  ;;  %v9734_v24 = vrot.slane %v5630_v37, 1  ;;  %v264_v20 = vadd.f32 %v5447_v42, %v153_v34 }
  0x95   :  { %v1592_v19 = vadd.f32 %v1528_v6, %v1462_v35  ;;  %v3474_v22 = vrot.slane %v3250_v47, 2  ;;  %v9733_v14 = vrot.slane %v5642_v10, 2  ;;  %v265_v21 = vadd.f32 %v5447_v42, %v154_v15 }
  0x96   :  { %v2994_v11 = vsel %vm722_vm1, %v2992_v25, %v9734_v24  ;;  %v5655_v61 = vmax.f32 %v264_v20, 0.0  ;;  %v472_v40 = vmul.f32 %v5456_v18, %v4961_v57  ;;  %v542_v60 = vmul.f32 %v5465_v13, %v4961_v57 }
  0x97   :  { %v2074_v59 = vadd.f32 %v1900_v9, %v1592_v19  ;;  %v3476_v34 = vsel %vm1205_vm2, %v3474_v22, %v9733_v14  ;;  %v5664_v6 = vmax.f32 %v265_v21, 0.0  ;;  %v5668_v35 = vmul.f32 %v5465_v13, %v4963_v4 }
  0x98   :  { %10041 = vst [vmem:[#allocation14_spill] sm:$0xff] %v5655_v61  ;;  %v743_v47 = vrot.slane %v542_v60, 1  ;;  %v1025_v15 = vmul.f32 %v5475_v28, %v4961_v57  ;;  %v5674_v25 = vmul.f32 %v5475_v28, %v4963_v4  ;;  %v1504_v9 = vmul.f32 %v5482_v50, %v5247_v0 }
  0x99   :  { %v2556_v20 = vadd.f32 %v2382_v45, %v2074_v59  ;;  %v9745_v19 = vrot.slane %v5668_v35, 1  ;;  %v1638_v22 = vmul.f32 %v5492_v2, %v5247_v0  ;;  %v5683_v21 = vmul.f32 %v5492_v2, %v5249_v3 }
  0x9a   :  { %v1226_v60 = vrot.slane %v1025_v15, 2  ;;  %v9744_v57 = vrot.slane %v5674_v25, 2  ;;  %v2120_v14 = vmul.f32 %v5499_v49, %v5247_v0  ;;  %v5690_v24 = vmul.f32 %v5499_v49, %v5249_v3 }
  0x9b   :  { %v2686_v45 = vadd.f32 %v2622_v46, %v2556_v20  ;;  %v745_v59 = vsel %vm722_vm1, %v743_v47, %v9745_v19  ;;  %v1838_v30 = vrot.slane %v1638_v22, 1  ;;  %v9743_v31 = vrot.slane %v5683_v21, 1 }
  0x9c   :  { %v955_v16 = vadd.f32 %v745_v59, %v472_v40  ;;  %v1228_v15 = vsel %vm1205_vm2, %v1226_v60, %v9744_v57  ;;  %v2320_v26 = vrot.slane %v2120_v14, 2  ;;  %v9746_v32 = vrot.slane %v5690_v24, 2  ;;  %v59_v14 = vld [vmem:[%s9714_s0 + $0x128] sm:$0xff] }
  0x9d   :  { %v3168_v46 = vadd.f32 %v2994_v11, %v2686_v45  ;;  %v1840_v47 = vsel %vm722_vm1, %v1838_v30, %v9743_v31  ;;  %v2598_v20 = vmul.f32 %v5607_v33, %v5655_v61  ;;  %v2732_v40 = vmul.f32 %v5624_v5, %v5655_v61 }
  0x9e   :  { %v1438_v22 = vadd.f32 %v1228_v15, %v955_v16  ;;  %v2322_v60 = vsel %vm1205_vm2, %v2320_v26, %v9746_v32  ;;  %v5718_v11 = vmul.f32 %v5624_v5, %v5664_v6  ;;  %v3214_v30 = vmul.f32 %v5636_v38, %v5655_v61 }
  0x9f   :  { %v3650_v45 = vadd.f32 %v3476_v34, %v3168_v46  ;;  %v2932_v59 = vrot.slane %v2732_v40, 1  ;;  %v5724_v31 = vmul.f32 %v5636_v38, %v5664_v6  ;;  %v171_v57 = vmul.f32 %v5431_v48, %v58_v53 }
  0xa0   :  { %v1568_v16 = vadd.f32 %v1504_v9, %v1438_v22  ;;  %v9749_v15 = vrot.slane %v5718_v11, 1  ;;  %v3414_v19 = vrot.slane %v3214_v30, 2  ;;  %v172_v26 = vmul.f32 %v5431_v48, %v59_v14 }
  0xa1   :  { %4527 = vmatmul.msk.f32.vlgmr.msra.gmra.mxu2 %vm3683_vm3, %v3650_v45  ;;  %v9752_v32 = vrot.slane %v5724_v31, 2  ;;  %v282_v52 = vadd.f32 %v5447_v42, %v171_v57  ;;  %v484_v34 = vmul.f32 %v5456_v18, %v5067_v55  ;;  %v560_v46 = vmul.f32 %v5465_v13, %v5067_v55 }
  0xa2   :  { %v2050_v40 = vadd.f32 %v1840_v47, %v1568_v16  ;;  %v2934_v53 = vsel %vm722_vm1, %v2932_v59, %v9749_v15  ;;  %v283_v9 = vadd.f32 %v5447_v42, %v172_v26  ;;  %v5742_v14 = vmul.f32 %v5465_v13, %v5069_v56 }
  0xa3   :  { %v3416_v57 = vsel %vm1205_vm2, %v3414_v19, %v9752_v32  ;;  %v5747_v22 = vmax.f32 %v282_v52, 0.0  ;;  %v773_v30 = vrot.slane %v560_v46, 1  ;;  %v1043_v47 = vmul.f32 %v5475_v28, %v5067_v55 }
  0xa4   :  { %v2532_v45 = vadd.f32 %v2322_v60, %v2050_v40  ;;  %v5751_v16 = vmax.f32 %v283_v9, 0.0  ;;  %v9757_v59 = vrot.slane %v5742_v14, 1  ;;  %v5756_v26 = vmul.f32 %v5475_v28, %v5069_v56 }
  0xa5   :  { %10042 = vst [vmem:[#allocation15_spill] sm:$0xff] %v5747_v22  ;;  %v1256_v15 = vrot.slane %v1043_v47, 2  ;;  %v1516_v12 = vmul.f32 %v5482_v50, %v5333_v27  ;;  %v1656_v52 = vmul.f32 %v5492_v2, %v5333_v27  ;;  %v5764_v19 = vmul.f32 %v5492_v2, %v5346_v23 }
  0xa6   :  { %v2662_v55 = vadd.f32 %v2598_v20, %v2532_v45  ;;  %v775_v60 = vsel %vm722_vm1, %v773_v30, %v9757_v59  ;;  %v9759_v46 = vrot.slane %v5756_v26, 2  ;;  %v2138_v40 = vmul.f32 %v5499_v49, %v5333_v27 }
  0xa7   :  { %v967_v9 = vadd.f32 %v775_v60, %v484_v34  ;;  %v1868_v47 = vrot.slane %v1656_v52, 1  ;;  %v9758_v32 = vrot.slane %v5764_v19, 1  ;;  %v5775_v51 = vmul.f32 %v5499_v49, %v5346_v23  ;;  %v78_v34 = vld [vmem:[%s9714_s0 + $0x1c0] sm:$0x3] }
  0xa8   :  { %v3144_v43 = vadd.f32 %v2934_v53, %v2662_v55  ;;  %v1258_v20 = vsel %vm1205_vm2, %v1256_v15, %v9759_v46  ;;  %v2350_v45 = vrot.slane %v2138_v40, 2  ;;  %v2610_v30 = vmul.f32 %v5607_v33, %v5747_v22  ;;  %v81_v15 = vld [vmem:[%s9714_s0 + $0x1d8] sm:$0x3] }
  0xa9   :  { %v1450_v52 = vadd.f32 %v1258_v20, %v967_v9  ;;  %v1870_v60 = vsel %vm722_vm1, %v1868_v47, %v9758_v32  ;;  %v9774_v59 = vrot.slane %v5775_v51, 2  ;;  %v2750_v53 = vmul.f32 %v5624_v5, %v5747_v22  ;;  %v84_v20 = vld [vmem:[%s9714_s0 + $0x1f0] sm:$0x3] }
  0xaa   :  { %v3626_v55 = vadd.f32 %v3416_v57, %v3144_v43  ;;  %v5796_v40 = vmul.f32 %v5624_v5, %v5751_v16  ;;  %v3232_v9 = vmul.f32 %v5636_v38, %v5747_v22  ;;  %v5802_v47 = vmul.f32 %v5636_v38, %v5751_v16 }
  0xab   :  { %v1580_v32 = vadd.f32 %v1516_v12, %v1450_v52  ;;  %v2352_v43 = vsel %vm1205_vm2, %v2350_v45, %v9774_v59  ;;  %v2962_v57 = vrot.slane %v2750_v53, 1  ;;  %v191_v46 = vmul.f32 %v5431_v48, %v78_v34  ;;  %v42_v34 = vld [vmem:[%s9714_s0 + $0xa0] sm:$0x3] }
  0xac   :  { %10043 = vst [vmem:[#allocation16_spill] sm:$0xff] %v5802_v47  ;;  %4503 = vmatmul.msk.f32.gmra.mxu0 %vm3683_vm3, %v3626_v55  ;;  %v9773_v22 = vrot.slane %v5796_v40, 1  ;;  %v3444_v27 = vrot.slane %v3232_v9, 2  ;;  %v9772_v61 = vrot.slane %v5802_v47, 2  ;;  %v194_v0 = vmul.f32 %v5431_v48, %v81_v15 }
  0xad   :  { %v2062_v58 = vadd.f32 %v1870_v60, %v1580_v32  ;;  %v197_v7 = vmul.f32 %v5431_v48, %v84_v20  ;;  %v302_v12 = vadd.f32 %v5447_v42, %v191_v46  ;;  %v497_v45 = vmul.f32 %v5456_v18, %v5561_v39 }
  0xae   :  { %v2964_v52 = vsel %vm722_vm1, %v2962_v57, %v9773_v22  ;;  %v3446_v53 = vsel %vm1205_vm2, %v3444_v27, %v9772_v61  ;;  %v305_v32 = vadd.f32 %v5447_v42, %v194_v0  ;;  %v1529_v46 = vmul.f32 %v5482_v50, %v5565_v54 }
  0xaf   :  { %v2544_v60 = vadd.f32 %v2352_v43, %v2062_v58  ;;  %v308_v39 = vadd.f32 %v5447_v42, %v197_v7  ;;  %v410_v15 = vmax.f32 %v302_v12, 0.0  ;;  %v5834_v55 = vmul.f32 %v5607_v33, %v5570_v63 }
  0xb0   :  { %v5836_v9 = vmax.f32 %v305_v32, 0.0  ;;  %v155_v20 = vmul.f32 %v5431_v48, %v42_v34  ;;  %v473_v27 = vmul.f32 %v5456_v18, %v4963_v4  ;;  %v544_v0 = vmul.f32 %v5465_v13, %v5137_v44 }
  0xb1   :  { %v2674_v57 = vadd.f32 %v2610_v30, %v2544_v60  ;;  %v5843_v61 = vmax.f32 %v308_v39, 0.0  ;;  %v580_v7 = vmul.f32 %v5465_v13, %v410_v15  ;;  %v1063_v58 = vmul.f32 %v5475_v28, %v410_v15 }
  0xb2   :  { %10044 = vst [vmem:[#allocation17_spill] sm:$0xff] %v5836_v9  ;;  %v1676_v43 = vmul.f32 %v5492_v2, %v5836_v9  ;;  %v2158_v12 = vmul.f32 %v5499_v49, %v5836_v9  ;;  %v266_v34 = vadd.f32 %v5447_v42, %v155_v20  ;;  %v746_v32 = vrot.slane %v544_v0, 1 }
  0xb3   :  { %10045 = vst [vmem:[#allocation18_spill] sm:$0xff] %v5843_v61  ;;  %v3156_v4 = vadd.f32 %v2964_v52, %v2674_v57  ;;  %v806_v22 = vrot.slane %v580_v7, 1  ;;  %v1289_v59 = vrot.slane %v1063_v58, 2  ;;  %v2770_v30 = vmul.f32 %v5624_v5, %v5843_v61 }
  0xb4   :  { %v1901_v60 = vrot.slane %v1676_v43, 1  ;;  %v2383_v39 = vrot.slane %v2158_v12, 2  ;;  %v3252_v15 = vmul.f32 %v5636_v38, %v5843_v61  ;;  %v5856_v63 = vmax.f32 %v266_v34, 0.0 }
  0xb5   :  { %v3638_v54 = vadd.f32 %v3446_v53, %v3156_v4  ;;  %v10046_v47 = vrot.slane %v5577_v17, 1  ;;  %v10047_v20 = vrot.slane %v5582_v29, 2  ;;  %v2995_v0 = vrot.slane %v2770_v30, 1 }
  0xb6   :  { %v10048_v7 = vrot.slane %v5591_v62, 1  ;;  %v10049_v43 = vrot.slane %v5602_v1, 2  ;;  %v3477_v34 = vrot.slane %v3252_v15, 2  ;;  %v10050_v17 = vrot.slane %v5630_v37, 1  ;;  %v60_v1 = vld [vmem:[%s9714_s0 + $0x130] sm:$0x3] }
  0xb7   :  { %v807_v9 = vsel %vm722_vm1, %v10046_v47, %v806_v22  ;;  %v1290_v52 = vsel %vm1205_vm2, %v10047_v20, %v1289_v59  ;;  %4515 = vmatmul.msk.f32.gmra.mxu1 %vm3683_vm3, %v3638_v54  ;;  %v10051_v29 = vrot.slane %v5668_v35, 1  ;;  %v1027_v62 = vmul.f32 %v5475_v28, %v5137_v44 }
  0xb8   :  { %v980_v57 = vadd.f32 %v807_v9, %v497_v45  ;;  %v1902_v58 = vsel %vm722_vm1, %v10048_v7, %v1901_v60  ;;  %v2384_v12 = vsel %vm1205_vm2, %v10049_v43, %v2383_v39  ;;  %v2996_v22 = vsel %vm722_vm1, %v10050_v17, %v2995_v0 }
  0xb9   :  { %v747_v59 = vsel %vm722_vm1, %v10051_v29, %v746_v32  ;;  %v1505_v47 = vmul.f32 %v5482_v50, %v5249_v3  ;;  %v10052_v54 = vrot.slane %v5642_v10, 2  ;;  %v1640_v35 = vmul.f32 %v5492_v2, %v5419_v8 }
  0xba   :  { %v1463_v45 = vadd.f32 %v1290_v52, %v980_v57  ;;  %v956_v53 = vadd.f32 %v747_v59, %v473_v27  ;;  %v1229_v9 = vrot.slane %v1027_v62, 2  ;;  %v2122_v44 = vmul.f32 %v5499_v49, %v5419_v8 }
  0xbb   :  { %v3478_v37 = vsel %vm1205_vm2, %v10052_v54, %v3477_v34  ;;  %v2599_v32 = vmul.f32 %v5607_v33, %v5664_v6  ;;  %v2734_v4 = vmul.f32 %v5624_v5, %v5856_v63  ;;  %v1841_v60 = vrot.slane %v1640_v35, 1 }
  0xbc   :  { %v1593_v30 = vadd.f32 %v1529_v46, %v1463_v45  ;;  %v3216_v10 = vmul.f32 %v5636_v38, %v5856_v63  ;;  %v173_v27 = vmul.f32 %v5431_v48, %v60_v1  ;;  %v10053_v39 = vrot.slane %v5674_v25, 2 }
  0xbd   :  { %v2323_v20 = vrot.slane %v2122_v44, 2  ;;  %v2935_v52 = vrot.slane %v2734_v4, 1  ;;  %v485_v0 = vmul.f32 %v5456_v18, %v5069_v56  ;;  %v10054_v43 = vrot.slane %v5683_v21, 1 }
  0xbe   :  { %v1230_v15 = vsel %vm1205_vm2, %v10053_v39, %v1229_v9  ;;  %v2075_v57 = vadd.f32 %v1902_v58, %v1593_v30  ;;  %v3417_v34 = vrot.slane %v3216_v10, 2  ;;  %v10055_v17 = vrot.slane %v5690_v24, 2 }
  0xbf   :  { %v1439_v7 = vadd.f32 %v1230_v15, %v956_v53  ;;  %v1842_v46 = vsel %vm722_vm1, %v10054_v43, %v1841_v60  ;;  %v10056_v25 = vrot.slane %v5718_v11, 1  ;;  %v284_v62 = vadd.f32 %v5447_v42, %v173_v27 }
  0xc0   :  { %v2324_v29 = vsel %vm1205_vm2, %v10055_v17, %v2323_v20  ;;  %v562_v56 = vmul.f32 %v5465_v13, %v5211_v41  ;;  %v2557_v58 = vadd.f32 %v2384_v12, %v2075_v57  ;;  %v10057_v21 = vrot.slane %v5724_v31, 2  ;;  %v86_v20 = vld [vmem:[%s9714_s0 + $0x200] sm:$0xff] }
  0xc1   :  { %v2936_v59 = vsel %vm722_vm1, %v10056_v25, %v2935_v52  ;;  %v1569_v1 = vadd.f32 %v1505_v47, %v1439_v7  ;;  %v1045_v24 = vmul.f32 %v5475_v28, %v5211_v41  ;;  %v5920_v54 = vmax.f32 %v284_v62, 0.0 }
  0xc2   :  { %v3418_v45 = vsel %vm1205_vm2, %v10057_v21, %v3417_v34  ;;  %v776_v53 = vrot.slane %v562_v56, 1  ;;  %v1517_v11 = vmul.f32 %v5482_v50, %v5346_v23  ;;  %v1658_v35 = vmul.f32 %v5492_v2, %v5460_v36 }
  0xc3   :  { %10058 = vst [vmem:[#allocation19_spill] sm:$0xff] %v5920_v54  ;;  %v2687_v9 = vadd.f32 %v5834_v55, %v2557_v58  ;;  %v2051_v12 = vadd.f32 %v1842_v46, %v1569_v1  ;;  %v1259_v47 = vrot.slane %v1045_v24, 2  ;;  %v2140_v31 = vmul.f32 %v5499_v49, %v5460_v36  ;;  %v85_v55 = vld [vmem:[%s9714_s0 + $0x1f8] sm:$0xff]  ;;  %v10065_v24 = vld [vmem:[#allocation16_spill] sm:$0xff] }
  0xc4   :  { %v10059_v44 = vrot.slane %v5742_v14, 1  ;;  %v1871_v4 = vrot.slane %v1658_v35, 1  ;;  %v2611_v30 = vmul.f32 %v5607_v33, %v5751_v16  ;;  %v2752_v60 = vmul.f32 %v5624_v5, %v5920_v54 }
  0xc5   :  { %v3169_v10 = vadd.f32 %v2996_v22, %v2687_v9  ;;  %v2533_v27 = vadd.f32 %v2324_v29, %v2051_v12  ;;  %v10060_v15 = vrot.slane %v5756_v26, 2  ;;  %v10061_v52 = vrot.slane %v5764_v19, 1  ;;  %v10067_v9 = vld [vmem:[#allocation11_spill] sm:$0xff] }
  0xc6   :  { %v777_v41 = vsel %vm722_vm1, %v10059_v44, %v776_v53  ;;  %v2353_v7 = vrot.slane %v2140_v31, 2  ;;  %v2965_v43 = vrot.slane %v2752_v60, 1  ;;  %v3234_v46 = vmul.f32 %v5636_v38, %v5920_v54 }
  0xc7   :  { %v968_v39 = vadd.f32 %v777_v41, %v485_v0  ;;  %v1260_v14 = vsel %vm1205_vm2, %v10060_v15, %v1259_v47  ;;  %v1872_v57 = vsel %vm722_vm1, %v10061_v52, %v1871_v4  ;;  %v3651_v22 = vadd.f32 %v3478_v37, %v3169_v10 }
  0xc8   :  { %v2663_v34 = vadd.f32 %v2599_v32, %v2533_v27  ;;  %v198_v26 = vmul.f32 %v5431_v48, %v85_v55  ;;  %v10062_v17 = vrot.slane %v5775_v51, 2  ;;  %v10063_v25 = vrot.slane %v5796_v40, 1  ;;  %v10064_v32 = vld [vmem:[#allocation10_spill] sm:$0xff] }
  0xc9   :  { %v1451_v0 = vadd.f32 %v1260_v14, %v968_v39  ;;  %v3447_v62 = vrot.slane %v3234_v46, 2  ;;  %v199_v56 = vmul.f32 %v5431_v48, %v86_v20  ;;  %4528 = vmatmul.msk.f32.gmra.mxu2 %vm3683_vm3, %v3651_v22  ;;  %v498_v21 = vmul.f32 %v5456_v18, %v10064_v32  ;;  %v10071_v20 = vld [vmem:[#allocation13_spill] sm:$0xff] }
  0xca   :  { %v2354_v29 = vsel %vm1205_vm2, %v10062_v17, %v2353_v7  ;;  %v2966_v19 = vsel %vm722_vm1, %v10063_v25, %v2965_v43  ;;  %v3145_v58 = vadd.f32 %v2936_v59, %v2663_v34  ;;  %v309_v37 = vadd.f32 %v5447_v42, %v198_v26 }
  0xcb   :  { %v1581_v1 = vadd.f32 %v1517_v11, %v1451_v0  ;;  %v10066_v51 = vrot.slane %v10065_v24, 2  ;;  %v310_v40 = vadd.f32 %v5447_v42, %v199_v56  ;;  %v581_v35 = vmul.f32 %v5465_v13, %v10064_v32  ;;  %v43_v56 = vld [vmem:[%s9714_s0 + $0xa8] sm:$0xff] }
  0xcc   :  { %v5970_v12 = vmul.f32 %v5465_v13, %v10067_v9  ;;  %v3627_v59 = vadd.f32 %v3418_v45, %v3145_v58  ;;  %v5972_v47 = vmax.f32 %v309_v37, 0.0  ;;  %v1064_v31 = vmul.f32 %v5475_v28, %v10064_v32  ;;  %v10070_v45 = vld [vmem:[#allocation12_spill] sm:$0xff] }
  0xcd   :  { %v3448_v53 = vsel %vm1205_vm2, %v10066_v51, %v3447_v62  ;;  %v2063_v11 = vadd.f32 %v1872_v57, %v1581_v1  ;;  %v5976_v44 = vmax.f32 %v310_v40, 0.0  ;;  %v808_v41 = vrot.slane %v581_v35, 1  ;;  %v44_v32 = vld [vmem:[%s9714_s0 + $0xb0] sm:$0xff] }
  0xce   :  { %10068 = vst [vmem:[#allocation10_spill] sm:$0xff] %v5972_v47  ;;  %v9793_v4 = vrot.slane %v5970_v12, 1  ;;  %v5981_v60 = vmul.f32 %v5475_v28, %v10067_v9  ;;  %4504 = vmatmul.msk.f32.gmra.mxu0 %vm3683_vm3, %v3627_v59  ;;  %v1291_v10 = vrot.slane %v1064_v31, 2  ;;  %v1530_v27 = vmul.f32 %v5482_v50, %v10070_v45 }
  0xcf   :  { %10069 = vst [vmem:[#allocation16_spill] sm:$0xff] %v5976_v44  ;;  %v2545_v55 = vadd.f32 %v2354_v29, %v2063_v11  ;;  %v1677_v39 = vmul.f32 %v5492_v2, %v10070_v45  ;;  %v5994_v52 = vmul.f32 %v5492_v2, %v10071_v20  ;;  %v2159_v57 = vmul.f32 %v5499_v49, %v10070_v45 }
  0xd0   :  { %v810_v15 = vsel %vm722_vm1, %v808_v41, %v9793_v4  ;;  %v9792_v14 = vrot.slane %v5981_v60, 2  ;;  %v6000_v22 = vmul.f32 %v5499_v49, %v10071_v20  ;;  %v2624_v17 = vmul.f32 %v5607_v33, %v5972_v47 }
  0xd1   :  { %v2675_v7 = vadd.f32 %v2611_v30, %v2545_v55  ;;  %v981_v43 = vadd.f32 %v810_v15, %v498_v21  ;;  %v1903_v46 = vrot.slane %v1677_v39, 1  ;;  %v9788_v0 = vrot.slane %v5994_v52, 1 }
  0xd2   :  { %v1293_v34 = vsel %vm1205_vm2, %v1291_v10, %v9792_v14  ;;  %v2385_v26 = vrot.slane %v2159_v57, 2  ;;  %v9787_v30 = vrot.slane %v6000_v22, 2  ;;  %v2771_v62 = vmul.f32 %v5624_v5, %v5972_v47  ;;  %v10072_v10 = vld [vmem:[#allocation8_spill] sm:$0xff] }
  0xd3   :  { %v3157_v29 = vadd.f32 %v2966_v19, %v2675_v7  ;;  %v1464_v25 = vadd.f32 %v1293_v34, %v981_v43  ;;  %v1905_v58 = vsel %vm722_vm1, %v1903_v46, %v9788_v0  ;;  %v6019_v1 = vmul.f32 %v5624_v5, %v5976_v44  ;;  %v10075_v0 = vld [vmem:[#allocation9_spill] sm:$0xff] }
  0xd4   :  { %v3253_v19 = vmul.f32 %v5636_v38, %v5972_v47  ;;  %v6025_v37 = vmul.f32 %v5636_v38, %v5976_v44  ;;  %v2387_v51 = vsel %vm1205_vm2, %v2385_v26, %v9787_v30  ;;  %v2997_v40 = vrot.slane %v2771_v62, 1 }
  0xd5   :  { %v3639_v21 = vadd.f32 %v3448_v53, %v3157_v29  ;;  %v1594_v24 = vadd.f32 %v1530_v27, %v1464_v25  ;;  %v9786_v35 = vrot.slane %v6019_v1, 1  ;;  %v156_v31 = vmul.f32 %v5431_v48, %v43_v56  ;;  %v10074_v56 = vld [vmem:[#allocation14_spill] sm:$0xff] }
  0xd6   :  { %v3479_v59 = vrot.slane %v3253_v19, 2  ;;  %v9785_v11 = vrot.slane %v6025_v37, 2  ;;  %v157_v55 = vmul.f32 %v5431_v48, %v44_v32  ;;  %v474_v53 = vmul.f32 %v5456_v18, %v10072_v10 }
  0xd7   :  { %4516 = vmatmul.msk.f32.gmra.mxu1 %vm3683_vm3, %v3639_v21  ;;  %v2076_v41 = vadd.f32 %v1905_v58, %v1594_v24  ;;  %v545_v27 = vmul.f32 %v5465_v13, %v10072_v10  ;;  %v2999_v39 = vsel %vm722_vm1, %v2997_v40, %v9786_v35  ;;  %v267_v57 = vadd.f32 %v5447_v42, %v156_v31 }
  0xd8   :  { %v3481_v15 = vsel %vm1205_vm2, %v3479_v59, %v9785_v11  ;;  %v6051_v7 = vmul.f32 %v5465_v13, %v5249_v3  ;;  %v268_v46 = vadd.f32 %v5447_v42, %v157_v55  ;;  %v1028_v26 = vmul.f32 %v5475_v28, %v10072_v10 }
  0xd9   :  { %v2558_v43 = vadd.f32 %v2387_v51, %v2076_v41  ;;  %v748_v34 = vrot.slane %v545_v27, 1  ;;  %v6056_v29 = vmax.f32 %v267_v57, 0.0  ;;  %v6061_v62 = vmul.f32 %v5475_v28, %v5249_v3 }
  0xda   :  { %v9784_v25 = vrot.slane %v6051_v7, 1  ;;  %v1506_v58 = vmul.f32 %v5482_v50, %v10074_v56  ;;  %v6065_v32 = vmax.f32 %v268_v46, 0.0  ;;  %v1231_v21 = vrot.slane %v1028_v26, 2 }
  0xdb   :  { %10073 = vst [vmem:[#allocation11_spill] sm:$0xff] %v6056_v29  ;;  %v2688_v19 = vadd.f32 %v2624_v17, %v2558_v43  ;;  %v1641_v24 = vmul.f32 %v5492_v2, %v10074_v56  ;;  %v9783_v40 = vrot.slane %v6061_v62, 2  ;;  %v6075_v59 = vmul.f32 %v5492_v2, %v5664_v6 }
  0xdc   :  { %v750_v51 = vsel %vm722_vm1, %v748_v34, %v9784_v25  ;;  %v2123_v31 = vmul.f32 %v5499_v49, %v10074_v56  ;;  %v6081_v10 = vmul.f32 %v5499_v49, %v5664_v6  ;;  %v2600_v46 = vmul.f32 %v5607_v33, %v6056_v29 }
  0xdd   :  { %v3170_v17 = vadd.f32 %v2999_v39, %v2688_v19  ;;  %v957_v41 = vadd.f32 %v750_v51, %v474_v53  ;;  %v1843_v55 = vrot.slane %v1641_v24, 1  ;;  %v1233_v27 = vsel %vm1205_vm2, %v1231_v21, %v9783_v40  ;;  %v61_v39 = vld [vmem:[%s9714_s0 + $0x138] sm:$0xff]  ;;  %v62_v21 = vld [vmem:[%s9714_s0 + $0x140] sm:$0xff] }
  0xde   :  { %v9782_v57 = vrot.slane %v6075_v59, 1  ;;  %v2325_v43 = vrot.slane %v2123_v31, 2  ;;  %v9791_v26 = vrot.slane %v6081_v10, 2  ;;  %v2735_v19 = vmul.f32 %v5624_v5, %v6056_v29 }
  0xdf   :  { %v3652_v53 = vadd.f32 %v3481_v15, %v3170_v17  ;;  %v1440_v34 = vadd.f32 %v1233_v27, %v957_v41  ;;  %v6103_v51 = vmul.f32 %v5624_v5, %v6065_v32  ;;  %v3217_v15 = vmul.f32 %v5636_v38, %v6056_v29 }
  0xe0   :  { %v1845_v24 = vsel %vm722_vm1, %v1843_v55, %v9782_v57  ;;  %v6109_v31 = vmul.f32 %v5636_v38, %v6065_v32  ;;  %v2327_v41 = vsel %vm1205_vm2, %v2325_v43, %v9791_v26  ;;  %v2937_v27 = vrot.slane %v2735_v19, 1 }
  0xe1   :  { %4529 = vmatmul.msk.f32.gmra.mxu2 %vm3683_vm3, %v3652_v53  ;;  %v1570_v17 = vadd.f32 %v1506_v58, %v1440_v34  ;;  %v174_v55 = vmul.f32 %v5431_v48, %v61_v39  ;;  %v9790_v57 = vrot.slane %v6103_v51, 1  ;;  %v3419_v40 = vrot.slane %v3217_v15, 2 }
  0xe2   :  { %v9789_v25 = vrot.slane %v6109_v31, 2  ;;  %v175_v11 = vmul.f32 %v5431_v48, %v62_v21  ;;  %v486_v58 = vmul.f32 %v5456_v18, %v10075_v0  ;;  %v563_v53 = vmul.f32 %v5465_v13, %v10075_v0 }
  0xe3   :  { %v2052_v35 = vadd.f32 %v1845_v24, %v1570_v17  ;;  %v285_v30 = vadd.f32 %v5447_v42, %v174_v55  ;;  %v2939_v43 = vsel %vm722_vm1, %v2937_v27, %v9790_v57  ;;  %v6133_v19 = vmul.f32 %v5465_v13, %v5346_v23 }
  0xe4   :  { %v3421_v39 = vsel %vm1205_vm2, %v3419_v40, %v9789_v25  ;;  %v286_v34 = vadd.f32 %v5447_v42, %v175_v11  ;;  %v778_v15 = vrot.slane %v563_v53, 1  ;;  %v1046_v17 = vmul.f32 %v5475_v28, %v10075_v0  ;;  %v10078_v11 = vld [vmem:[#allocation15_spill] sm:$0xff] }
  0xe5   :  { %v2534_v21 = vadd.f32 %v2327_v41, %v2052_v35  ;;  %v6135_v24 = vmax.f32 %v285_v30, 0.0  ;;  %v9796_v27 = vrot.slane %v6133_v19, 1  ;;  %v6144_v40 = vmul.f32 %v5475_v28, %v5346_v23 }
  0xe6   :  { %v6139_v55 = vmax.f32 %v286_v34, 0.0  ;;  %v1518_v25 = vmul.f32 %v5482_v50, %v10078_v11  ;;  %v1261_v26 = vrot.slane %v1046_v17, 2  ;;  %v1659_v30 = vmul.f32 %v5492_v2, %v10078_v11 }
  0xe7   :  { %10076 = vst [vmem:[#allocation8_spill] sm:$0xff] %v6135_v24  ;;  %v2664_v57 = vadd.f32 %v2600_v46, %v2534_v21  ;;  %v6152_v35 = vmul.f32 %v5492_v2, %v5751_v16  ;;  %v780_v0 = vsel %vm722_vm1, %v778_v15, %v9796_v27  ;;  %v9801_v41 = vrot.slane %v6144_v40, 2 }
  0xe8   :  { %10077 = vst [vmem:[#allocation9_spill] sm:$0xff] %v6139_v55  ;;  %v2141_v53 = vmul.f32 %v5499_v49, %v10078_v11  ;;  %v6162_v46 = vmul.f32 %v5499_v49, %v5751_v16  ;;  %v969_v21 = vadd.f32 %v780_v0, %v486_v58  ;;  %v1873_v17 = vrot.slane %v1659_v30, 1  ;;  %v87_v11 = vld [vmem:[%s9714_s0 + $0x208] sm:$0x3] }
  0xe9   :  { %v3146_v34 = vadd.f32 %v2939_v43, %v2664_v57  ;;  %v9800_v14 = vrot.slane %v6152_v35, 1  ;;  %v1263_v4 = vsel %vm1205_vm2, %v1261_v26, %v9801_v41  ;;  %v2612_v27 = vmul.f32 %v5607_v33, %v6135_v24 }
  0xea   :  { %v2355_v29 = vrot.slane %v2141_v53, 2  ;;  %v9799_v15 = vrot.slane %v6162_v46, 2  ;;  %v1452_v57 = vadd.f32 %v1263_v4, %v969_v21  ;;  %v2753_v43 = vmul.f32 %v5624_v5, %v6135_v24 }
  0xeb   :  { %v3628_v56 = vadd.f32 %v3421_v39, %v3146_v34  ;;  %v1875_v58 = vsel %vm722_vm1, %v1873_v17, %v9800_v14  ;;  %v6184_v30 = vmul.f32 %v5624_v5, %v6139_v55  ;;  %v3235_v0 = vmul.f32 %v5636_v38, %v6135_v24  ;;  %v10079_v14 = vld [vmem:[#allocation17_spill] sm:$0xff] }
  0xec   :  { %v2357_v26 = vsel %vm1205_vm2, %v2355_v29, %v9799_v15  ;;  %v6190_v4 = vmul.f32 %v5636_v38, %v6139_v55  ;;  %v1582_v39 = vadd.f32 %v1518_v25, %v1452_v57  ;;  %v2967_v53 = vrot.slane %v2753_v43, 1 }
  0xed   :  { %4505 = vmatmul.msk.f32.gmra.mxu0 %vm3683_vm3, %v3628_v56  ;;  %v200_v34 = vmul.f32 %v5431_v48, %v87_v11  ;;  %v499_v29 = vmul.f32 %v5456_v18, %v10067_v9  ;;  %v9808_v21 = vrot.slane %v6184_v30, 1  ;;  %v3449_v17 = vrot.slane %v3235_v0, 2  ;;  %v45_v9 = vld [vmem:[%s9714_s0 + $0xb8] sm:$0x3] }
  0xee   :  { %v9809_v15 = vrot.slane %v6190_v4, 2  ;;  %v583_v41 = vmul.f32 %v5465_v13, %v10079_v14  ;;  %v2064_v24 = vadd.f32 %v1875_v58, %v1582_v39  ;;  %v1066_v25 = vmul.f32 %v5475_v28, %v10079_v14 }
  0xef   :  { %v311_v47 = vadd.f32 %v5447_v42, %v200_v34  ;;  %v1531_v56 = vmul.f32 %v5482_v50, %v10071_v20  ;;  %v2969_v11 = vsel %vm722_vm1, %v2967_v53, %v9808_v21  ;;  %v1679_v43 = vmul.f32 %v5492_v2, %v5843_v61 }
  0xf0   :  { %v3451_v57 = vsel %vm1205_vm2, %v3449_v17, %v9809_v15  ;;  %v811_v58 = vrot.slane %v583_v41, 1  ;;  %v2546_v14 = vadd.f32 %v2357_v26, %v2064_v24  ;;  %v1294_v39 = vrot.slane %v1066_v25, 2 }
  0xf1   :  { %v6216_v0 = vmax.f32 %v311_v47, 0.0  ;;  %v2161_v34 = vmul.f32 %v5499_v49, %v5843_v61  ;;  %v10081_v20 = vrot.slane %v5970_v12, 1  ;;  %v1906_v53 = vrot.slane %v1679_v43, 1 }
  0xf2   :  { %v2625_v21 = vmul.f32 %v5607_v33, %v5976_v44  ;;  %v158_v41 = vmul.f32 %v5431_v48, %v45_v9  ;;  %v2676_v17 = vadd.f32 %v2612_v27, %v2546_v14  ;;  %v10082_v24 = vrot.slane %v5981_v60, 2 }
  0xf3   :  { %10080 = vst [vmem:[#allocation17_spill] sm:$0xff] %v6216_v0  ;;  %v812_v45 = vsel %vm722_vm1, %v10081_v20, %v811_v58  ;;  %v2388_v26 = vrot.slane %v2161_v34, 2  ;;  %v10083_v25 = vrot.slane %v5994_v52, 1  ;;  %v2773_v12 = vmul.f32 %v5624_v5, %v6216_v0 }
  0xf4   :  { %v982_v15 = vadd.f32 %v812_v45, %v499_v29  ;;  %v1295_v47 = vsel %vm1205_vm2, %v10082_v24, %v1294_v39  ;;  %v3255_v20 = vmul.f32 %v5636_v38, %v6216_v0  ;;  %v269_v58 = vadd.f32 %v5447_v42, %v158_v41 }
  0xf5   :  { %v1907_v61 = vsel %vm722_vm1, %v10083_v25, %v1906_v53  ;;  %v3158_v48 = vadd.f32 %v2969_v11, %v2676_v17  ;;  %v10084_v45 = vrot.slane %v6000_v22, 2  ;;  %v475_v29 = vmul.f32 %v5456_v18, %v5249_v3 }
  0xf6   :  { %v1465_v27 = vadd.f32 %v1295_v47, %v982_v15  ;;  %v3000_v52 = vrot.slane %v2773_v12, 1  ;;  %v3482_v9 = vrot.slane %v3255_v20, 2  ;;  %v6242_v43 = vmax.f32 %v269_v58, 0.0  ;;  %v6282_v58 = vld [vmem:[%s9715_s3] ss:$0 sm:$0xff] }
  0xf7   :  { %v2389_v60 = vsel %vm1205_vm2, %v10084_v45, %v2388_v26  ;;  %v547_v14 = vmul.f32 %v5465_v13, %v5419_v8  ;;  %v3640_v39 = vadd.f32 %v3451_v57, %v3158_v48  ;;  %v1030_v42 = vmul.f32 %v5475_v28, %v5419_v8 }
  0xf8   :  { %10085 = vst [vmem:[#allocation20_spill] sm:$0xff] %v6242_v43  ;;  %v1595_v34 = vadd.f32 %v1531_v56, %v1465_v27  ;;  %v1507_v22 = vmul.f32 %v5482_v50, %v5664_v6  ;;  %v10086_v15 = vrot.slane %v6019_v1, 1  ;;  %v10087_v3 = vrot.slane %v6025_v37, 2  ;;  %v63_v50 = vld [vmem:[%s9714_s0 + $0x148] sm:$0x3] }
  0xf9   :  { %v751_v53 = vrot.slane %v547_v14, 1  ;;  %v1643_v13 = vmul.f32 %v5492_v2, %v5856_v63  ;;  %4517 = vmatmul.msk.f32.gmra.mxu1 %vm3683_vm3, %v3640_v39  ;;  %v1234_v57 = vrot.slane %v1030_v42, 2  ;;  %v2125_v8 = vmul.f32 %v5499_v49, %v5856_v63 }
  0xfa   :  { %v3001_v11 = vsel %vm722_vm1, %v10086_v15, %v3000_v52  ;;  %v3483_v18 = vsel %vm1205_vm2, %v10087_v3, %v3482_v9  ;;  %v2077_v56 = vadd.f32 %v1907_v61, %v1595_v34  ;;  %v2601_v28 = vmul.f32 %v5607_v33, %v6065_v32  ;;  %v6310_v34 = vld [vmem:[%s9717_s1 + $0x1] ss:$0 sm:$0xff]  ;;  %v6324_v3 = vld [vmem:[%s9717_s1 + $0x3] ss:$0 sm:$0xff] }
  0xfb   :  { %v10088_v1 = vrot.slane %v6051_v7, 1  ;;  %v1846_v41 = vrot.slane %v1643_v13, 1  ;;  %v2737_v2 = vmul.f32 %v5624_v5, %v6242_v43  ;;  %v3219_v61 = vmul.f32 %v5636_v38, %v6242_v43  ;;  %v10117_v43 = vld [vmem:[#allocation15_spill] sm:$0xff] }
  0xfc   :  { %v2559_v17 = vadd.f32 %v2389_v60, %v2077_v56  ;;  %v10089_v24 = vrot.slane %v6061_v62, 2  ;;  %v2328_v26 = vrot.slane %v2125_v8, 2  ;;  %v10090_v25 = vrot.slane %v6075_v59, 1  ;;  %v6291_v59 = vld [vmem:[%s9717_s1] ss:$0 sm:$0xff] }
  0xfd   :  { %v752_v37 = vsel %vm722_vm1, %v10088_v1, %v751_v53  ;;  %v2940_v12 = vrot.slane %v2737_v2, 1  ;;  %v3422_v20 = vrot.slane %v3219_v61, 2  ;;  %v176_v48 = vmul.f32 %v6282_v58, %v63_v50 }
  0xfe   :  { %v958_v49 = vadd.f32 %v752_v37, %v475_v29  ;;  %v1235_v47 = vsel %vm1205_vm2, %v10089_v24, %v1234_v57  ;;  %v1847_v7 = vsel %vm722_vm1, %v10090_v25, %v1846_v41  ;;  %v2689_v27 = vadd.f32 %v2625_v21, %v2559_v17  ;;  %v88_v41 = vld [vmem:[%s9714_s0 + $0x210] sm:$0xff] }
  0xff   :  { %v10091_v62 = vrot.slane %v6081_v10, 2  ;;  %v487_v29 = vmul.f32 %v6291_v59, %v5346_v23  ;;  %v10092_v52 = vrot.slane %v6103_v51, 1  ;;  %v10093_v14 = vrot.slane %v6109_v31, 2  ;;  %v6304_v10 = vld [vmem:[%s9716_s4] ss:$0 sm:$0xff] }
 0x100   :  { %v1441_v45 = vadd.f32 %v1235_v47, %v958_v49  ;;  %v287_v39 = vadd.f32 %v6304_v10, %v176_v48  ;;  %v565_v23 = vmul.f32 %v6310_v34, %v5460_v36  ;;  %v3171_v51 = vadd.f32 %v3001_v11, %v2689_v27  ;;  %v6317_v31 = vld [vmem:[%s9717_s1 + $0x2] ss:$0 sm:$0xff] }
 0x101   :  { %v2329_v60 = vsel %vm1205_vm2, %v10091_v62, %v2328_v26  ;;  %v2941_v9 = vsel %vm722_vm1, %v10092_v52, %v2940_v12  ;;  %v3423_v21 = vsel %vm1205_vm2, %v10093_v14, %v3422_v20  ;;  %v1048_v15 = vmul.f32 %v6317_v31, %v5460_v36  ;;  %v6340_v36 = vld [vmem:[%s9717_s1 + $0x5] ss:$0 sm:$0xff] }
 0x102   :  { %v1571_v42 = vadd.f32 %v1507_v22, %v1441_v45  ;;  %v1519_v53 = vmul.f32 %v6324_v3, %v5751_v16  ;;  %v6328_v13 = vmax.f32 %v287_v39, 0.0  ;;  %v781_v11 = vrot.slane %v565_v23, 1  ;;  %v6333_v22 = vld [vmem:[%s9717_s1 + $0x4] ss:$0 sm:$0xff]  ;;  %v10100_v23 = vld [vmem:[#allocation12_spill] sm:$0xff] }
 0x103   :  { %v1661_v56 = vmul.f32 %v6333_v22, %v5920_v54  ;;  %v2143_v57 = vmul.f32 %v6340_v36, %v5920_v54  ;;  %v3653_v8 = vadd.f32 %v3483_v18, %v3171_v51  ;;  %v1264_v1 = vrot.slane %v1048_v15, 2  ;;  %v89_v18 = vld [vmem:[%s9714_s0 + $0x218] sm:$0xff] }
 0x104   :  { %10094 = vst [vmem:[#allocation21_spill] sm:$0xff] %v6328_v13  ;;  %v2053_v50 = vadd.f32 %v1847_v7, %v1571_v42  ;;  %v2613_v37 = vmul.f32 %v5607_v33, %v6139_v55  ;;  %v10095_v2 = vrot.slane %v6133_v19, 1  ;;  %v2755_v24 = vmul.f32 %v5624_v5, %v6328_v13 }
 0x105   :  { %v1876_v17 = vrot.slane %v1661_v56, 1  ;;  %v2358_v49 = vrot.slane %v2143_v57, 2  ;;  %4530 = vmatmul.msk.f32.gmra.mxu2 %vm3683_vm3, %v3653_v8  ;;  %v10096_v25 = vrot.slane %v6144_v40, 2  ;;  %v3237_v19 = vmul.f32 %v5636_v38, %v6328_v13 }
 0x106   :  { %v782_v61 = vsel %vm722_vm1, %v10095_v2, %v781_v11  ;;  %v2535_v47 = vadd.f32 %v2329_v60, %v2053_v50  ;;  %v10097_v12 = vrot.slane %v6152_v35, 1  ;;  %v10098_v48 = vrot.slane %v6162_v46, 2 }
 0x107   :  { %v970_v26 = vadd.f32 %v782_v61, %v487_v29  ;;  %v1265_v7 = vsel %vm1205_vm2, %v10096_v25, %v1264_v1  ;;  %v2970_v45 = vrot.slane %v2755_v24, 1  ;;  %v201_v62 = vmul.f32 %v6282_v58, %v88_v41 }
 0x108   :  { %v1877_v20 = vsel %vm722_vm1, %v10097_v12, %v1876_v17  ;;  %v2359_v27 = vsel %vm1205_vm2, %v10098_v48, %v2358_v49  ;;  %v2665_v60 = vadd.f32 %v2601_v28, %v2535_v47  ;;  %v3452_v52 = vrot.slane %v3237_v19, 2  ;;  %v10105_v17 = vld [vmem:[#allocation10_spill] sm:$0xff] }
 0x109   :  { %v1453_v29 = vadd.f32 %v1265_v7, %v970_v26  ;;  %v202_v40 = vmul.f32 %v6282_v58, %v89_v18  ;;  %v10099_v14 = vrot.slane %v6184_v30, 1  ;;  %v312_v35 = vadd.f32 %v6304_v10, %v201_v62  ;;  %v10103_v30 = vld [vmem:[#allocation13_spill] sm:$0xff] }
 0x10a   :  { %v500_v51 = vmul.f32 %v6291_v59, %v10100_v23  ;;  %v584_v46 = vmul.f32 %v6310_v34, %v10100_v23  ;;  %v3147_v42 = vadd.f32 %v2941_v9, %v2665_v60  ;;  %v10101_v28 = vrot.slane %v6190_v4, 2 }
 0x10b   :  { %v2971_v39 = vsel %vm722_vm1, %v10099_v14, %v2970_v45  ;;  %v1583_v15 = vadd.f32 %v1519_v53, %v1453_v29  ;;  %v313_v56 = vadd.f32 %v6304_v10, %v202_v40  ;;  %v6383_v57 = vmax.f32 %v312_v35, 0.0 }
 0x10c   :  { %v3453_v11 = vsel %vm1205_vm2, %v10101_v28, %v3452_v52  ;;  %v6387_v8 = vmul.f32 %v6310_v34, %v10103_v30  ;;  %v813_v50 = vrot.slane %v584_v46, 1  ;;  %v1067_v1 = vmul.f32 %v6317_v31, %v10100_v23  ;;  %v101_v23 = vld [vmem:[%s9714_s0 + $0x278] sm:$0xff]  ;;  %v106_v28 = vld [vmem:[%s9714_s0 + $0x2a0] sm:$0xff] }
 0x10d   :  { %10102 = vst [vmem:[#allocation12_spill] sm:$0xff] %v6383_v57  ;;  %v3629_v41 = vadd.f32 %v3423_v21, %v3147_v42  ;;  %v2065_v2 = vadd.f32 %v1877_v20, %v1583_v15  ;;  %v6391_v9 = vmax.f32 %v313_v56, 0.0  ;;  %v6395_v4 = vmul.f32 %v6317_v31, %v10103_v30  ;;  %v6451_v42 = vld [vmem:[%s9717_s1 + $0x8] ss:$0 sm:$0xff]  ;;  %v104_v15 = vld [vmem:[%s9714_s0 + $0x290] sm:$0xff] }
 0x10e   :  { %v9821_v53 = vrot.slane %v6387_v8, 1  ;;  %v1296_v61 = vrot.slane %v1067_v1, 2  ;;  %v1532_v49 = vmul.f32 %v6324_v3, %v10105_v17  ;;  %v1680_v24 = vmul.f32 %v6333_v22, %v10105_v17  ;;  %v107_v56 = vld [vmem:[%s9714_s0 + $0x2a8] sm:$0xff] }
 0x10f   :  { %10104 = vst [vmem:[#allocation13_spill] sm:$0xff] %v6391_v9  ;;  %4506 = vmatmul.msk.f32.gmra.mxu0 %vm3683_vm3, %v3629_v41  ;;  %v2547_v18 = vadd.f32 %v2359_v27, %v2065_v2  ;;  %v9819_v21 = vrot.slane %v6395_v4, 2  ;;  %v6406_v47 = vmul.f32 %v6333_v22, %v5976_v44  ;;  %v2162_v26 = vmul.f32 %v6340_v36, %v10105_v17 }
 0x110   :  { %v815_v25 = vsel %vm722_vm1, %v813_v50, %v9821_v53  ;;  %v1908_v7 = vrot.slane %v1680_v24, 1  ;;  %v6415_v19 = vmul.f32 %v6340_v36, %v5976_v44  ;;  %v2626_v12 = vmul.f32 %v5607_v33, %v6383_v57  ;;  %v100_v33 = vld [vmem:[%s9714_s0 + $0x270] sm:$0xff] }
 0x111   :  { %v2677_v20 = vadd.f32 %v2613_v37, %v2547_v18  ;;  %v983_v48 = vadd.f32 %v815_v25, %v500_v51  ;;  %v1298_v27 = vsel %vm1205_vm2, %v1296_v61, %v9819_v21  ;;  %v9818_v45 = vrot.slane %v6406_v47, 1 }
 0x112   :  { %v2390_v62 = vrot.slane %v2162_v26, 2  ;;  %v9817_v60 = vrot.slane %v6415_v19, 2  ;;  %v2774_v29 = vmul.f32 %v5624_v5, %v6383_v57  ;;  %v6428_v52 = vmul.f32 %v5624_v5, %v6391_v9  ;;  %v103_v5 = vld [vmem:[%s9714_s0 + $0x288] sm:$0xff] }
 0x113   :  { %v3159_v37 = vadd.f32 %v2971_v39, %v2677_v20  ;;  %v1466_v40 = vadd.f32 %v1298_v27, %v983_v48  ;;  %v1910_v14 = vsel %vm722_vm1, %v1908_v7, %v9818_v45  ;;  %v3256_v35 = vmul.f32 %v5636_v38, %v6383_v57 }
 0x114   :  { %v2392_v39 = vsel %vm1205_vm2, %v2390_v62, %v9817_v60  ;;  %v3002_v51 = vrot.slane %v2774_v29, 1  ;;  %v9816_v46 = vrot.slane %v6428_v52, 1  ;;  %v6455_v38 = vmul.f32 %v6451_v42, %v6391_v9 }
 0x115   :  { %v3641_v50 = vadd.f32 %v3453_v11, %v3159_v37  ;;  %v1596_v1 = vadd.f32 %v1532_v49, %v1466_v40  ;;  %v3484_v41 = vrot.slane %v3256_v35, 2  ;;  %v213_v2 = vmul.f32 %v6282_v58, %v100_v33 }
 0x116   :  { %v3004_v61 = vsel %vm722_vm1, %v3002_v51, %v9816_v46  ;;  %v9814_v24 = vrot.slane %v6455_v38, 2  ;;  %v214_v18 = vmul.f32 %v6282_v58, %v101_v23  ;;  %v216_v26 = vmul.f32 %v6282_v58, %v103_v5  ;;  %v10109_v5 = vld [vmem:[#allocation14_spill] sm:$0xff] }
 0x117   :  { %4518 = vmatmul.msk.f32.gmra.mxu1 %vm3683_vm3, %v3641_v50  ;;  %v2078_v25 = vadd.f32 %v1910_v14, %v1596_v1  ;;  %v217_v7 = vmul.f32 %v6282_v58, %v104_v15  ;;  %v219_v11 = vmul.f32 %v6282_v58, %v106_v28  ;;  %v220_v49 = vmul.f32 %v6282_v58, %v107_v56 }
 0x118   :  { %v3486_v20 = vsel %vm1205_vm2, %v3484_v41, %v9814_v24  ;;  %v324_v48 = vadd.f32 %v6304_v10, %v213_v2  ;;  %v325_v27 = vadd.f32 %v6304_v10, %v214_v18  ;;  %v327_v62 = vadd.f32 %v6304_v10, %v216_v26 }
 0x119   :  { %v2560_v29 = vadd.f32 %v2392_v39, %v2078_v25  ;;  %v328_v33 = vadd.f32 %v6304_v10, %v217_v7  ;;  %v330_v37 = vadd.f32 %v6304_v10, %v219_v11  ;;  %v331_v40 = vadd.f32 %v6304_v10, %v220_v49 }
 0x11a   :  { %v6486_v14 = vmax.f32 %v324_v48, 0.0  ;;  %v6488_v35 = vmax.f32 %v325_v27, 0.0  ;;  %v6490_v23 = vmax.f32 %v327_v62, 0.0  ;;  %v476_v51 = vmul.f32 %v6291_v59, %v10109_v5 }
 0x11b   :  { %v2690_v15 = vadd.f32 %v2626_v12, %v2560_v29  ;;  %v6494_v28 = vmax.f32 %v328_v33, 0.0  ;;  %v6496_v56 = vmax.f32 %v330_v37, 0.0  ;;  %v6498_v39 = vmax.f32 %v331_v40, 0.0 }
 0x11c   :  { %10106 = vst [vmem:[#allocation22_spill] sm:$0xff] %v6486_v14  ;;  %v512_v50 = vmul.f32 %v6291_v59, %v6486_v14  ;;  %v602_v1 = vmul.f32 %v6310_v34, %v6486_v14  ;;  %v6506_v41 = vmul.f32 %v6310_v34, %v6488_v35  ;;  %v1085_v2 = vmul.f32 %v6317_v31, %v6486_v14 }
 0x11d   :  { %10107 = vst [vmem:[#allocation23_spill] sm:$0xff] %v6488_v35  ;;  %v3172_v12 = vadd.f32 %v3004_v61, %v2690_v15  ;;  %v6512_v18 = vmul.f32 %v6317_v31, %v6488_v35  ;;  %v1544_v26 = vmul.f32 %v6324_v3, %v6490_v23  ;;  %v1698_v25 = vmul.f32 %v6333_v22, %v6490_v23 }
 0x11e   :  { %10108 = vst [vmem:[#allocation24_spill] sm:$0xff] %v6490_v23  ;;  %v843_v7 = vrot.slane %v602_v1, 1  ;;  %v9812_v11 = vrot.slane %v6506_v41, 1  ;;  %v1326_v49 = vrot.slane %v1085_v2, 2  ;;  %v6521_v48 = vmul.f32 %v6333_v22, %v6494_v28 }
 0x11f   :  { %10110 = vst [vmem:[#allocation14_spill] sm:$0xff] %v6494_v28  ;;  %v3654_v27 = vadd.f32 %v3486_v20, %v3172_v12  ;;  %v9813_v61 = vrot.slane %v6512_v18, 2  ;;  %v1938_v62 = vrot.slane %v1698_v25, 1  ;;  %v2180_v29 = vmul.f32 %v6340_v36, %v6490_v23  ;;  %v6537_v20 = vld [vmem:[%s9717_s1 + $0x6] ss:$0 sm:$0xff] }
 0x120   :  { %10111 = vst [vmem:[#allocation25_spill] sm:$0xff] %v6496_v56  ;;  %v845_v33 = vsel %vm722_vm1, %v843_v7, %v9812_v11  ;;  %v9815_v37 = vrot.slane %v6521_v48, 1  ;;  %v6532_v40 = vmul.f32 %v6340_v36, %v6494_v28  ;;  %v2638_v15 = vmul.f32 %v6537_v20, %v6496_v56  ;;  %v6548_v25 = vld [vmem:[%s9717_s1 + $0x7] ss:$0 sm:$0xff] }
 0x121   :  { %4531 = vmatmul.msk.f32.gmra.mxu2 %vm3683_vm3, %v3654_v27  ;;  %v995_v1 = vadd.f32 %v845_v33, %v512_v50  ;;  %v1328_v2 = vsel %vm1205_vm2, %v1326_v49, %v9813_v61  ;;  %v2420_v12 = vrot.slane %v2180_v29, 2  ;;  %v2792_v7 = vmul.f32 %v6548_v25, %v6496_v56  ;;  %v10115_v23 = vld [vmem:[#allocation2_spill] sm:$0xff] }
 0x122   :  { %v1940_v11 = vsel %vm722_vm1, %v1938_v62, %v9815_v37  ;;  %v9820_v27 = vrot.slane %v6532_v40, 2  ;;  %v6558_v50 = vmul.f32 %v6548_v25, %v6498_v39  ;;  %v3274_v49 = vmul.f32 %v6451_v42, %v6496_v56 }
 0x123   :  { %v1478_v29 = vadd.f32 %v1328_v2, %v995_v1  ;;  %v3032_v33 = vrot.slane %v2792_v7, 1  ;;  %v6564_v61 = vmul.f32 %v6451_v42, %v6498_v39  ;;  %v548_v24 = vmul.f32 %v6310_v34, %v10109_v5 }
 0x124   :  { %v2422_v62 = vsel %vm1205_vm2, %v2420_v12, %v9820_v27  ;;  %v9822_v37 = vrot.slane %v6558_v50, 1  ;;  %v3514_v46 = vrot.slane %v3274_v49, 2  ;;  %v6574_v60 = vmul.f32 %v6310_v34, %v5664_v6  ;;  %v10113_v27 = vld [vmem:[#allocation11_spill] sm:$0xff] }
 0x125   :  { %v1608_v1 = vadd.f32 %v1544_v26, %v1478_v29  ;;  %v9827_v2 = vrot.slane %v6564_v61, 2  ;;  %v753_v7 = vrot.slane %v548_v24, 1  ;;  %v1031_v45 = vmul.f32 %v6317_v31, %v10109_v5 }
 0x126   :  { %v3034_v21 = vsel %vm722_vm1, %v3032_v33, %v9822_v37  ;;  %v9828_v12 = vrot.slane %v6574_v60, 1  ;;  %v6585_v49 = vmul.f32 %v6317_v31, %v5664_v6  ;;  %v1508_v53 = vmul.f32 %v6324_v3, %v10113_v27 }
 0x127   :  { %v2090_v26 = vadd.f32 %v1940_v11, %v1608_v1  ;;  %v3516_v24 = vsel %vm1205_vm2, %v3514_v46, %v9827_v2  ;;  %v1236_v29 = vrot.slane %v1031_v45, 2  ;;  %v1644_v5 = vmul.f32 %v6333_v22, %v10113_v27 }
 0x128   :  { %10112 = vst [vmem:[#allocation26_spill] sm:$0xff] %v6585_v49  ;;  %v755_v33 = vsel %vm722_vm1, %v753_v7, %v9828_v12  ;;  %v9837_v37 = vrot.slane %v6585_v49, 2  ;;  %v6600_v14 = vmul.f32 %v6333_v22, %v6065_v32  ;;  %v2126_v11 = vmul.f32 %v6340_v36, %v10113_v27 }
 0x129   :  { %v2572_v1 = vadd.f32 %v2422_v62, %v2090_v26  ;;  %v959_v56 = vadd.f32 %v755_v33, %v476_v51  ;;  %v1848_v46 = vrot.slane %v1644_v5, 1  ;;  %v6606_v45 = vmul.f32 %v6340_v36, %v6065_v32  ;;  %v64_v26 = vld [vmem:[%s9714_s0 + $0x150] sm:$0xff]  ;;  %v10116_v5 = vld [vmem:[#allocation3_spill] sm:$0xff] }
 0x12a   :  { %10114 = vst [vmem:[#allocation27_spill] sm:$0xff] %v6600_v14  ;;  %v1238_v7 = vsel %vm1205_vm2, %v1236_v29, %v9837_v37  ;;  %v9836_v2 = vrot.slane %v6600_v14, 1  ;;  %v2330_v12 = vrot.slane %v2126_v11, 2  ;;  %v2602_v57 = vmul.f32 %v6537_v20, %v10115_v23  ;;  %v65_v11 = vld [vmem:[%s9714_s0 + $0x158] sm:$0xff] }
 0x12b   :  { %v2702_v17 = vadd.f32 %v2638_v15, %v2572_v1  ;;  %v1442_v13 = vadd.f32 %v1238_v7, %v959_v56  ;;  %v9849_v62 = vrot.slane %v6606_v45, 2  ;;  %v2738_v51 = vmul.f32 %v6548_v25, %v10115_v23 }
 0x12c   :  { %v1850_v29 = vsel %vm722_vm1, %v1848_v46, %v9836_v2  ;;  %v6625_v33 = vmul.f32 %v6548_v25, %v10116_v5  ;;  %v3220_v56 = vmul.f32 %v6451_v42, %v10115_v23  ;;  %v6631_v15 = vmul.f32 %v6451_v42, %v10116_v5 }
 0x12d   :  { %v3184_v1 = vadd.f32 %v3034_v21, %v2702_v17  ;;  %v1572_v7 = vadd.f32 %v1508_v53, %v1442_v13  ;;  %v2332_v46 = vsel %vm1205_vm2, %v2330_v12, %v9849_v62  ;;  %v2942_v2 = vrot.slane %v2738_v51, 1 }
 0x12e   :  { %v9848_v37 = vrot.slane %v6625_v33, 1  ;;  %v3424_v27 = vrot.slane %v3220_v56, 2  ;;  %v9847_v23 = vrot.slane %v6631_v15, 2  ;;  %v177_v54 = vmul.f32 %v6282_v58, %v64_v26  ;;  %v10120_v56 = vld [vmem:[#allocation8_spill] sm:$0xff] }
 0x12f   :  { %v3666_v14 = vadd.f32 %v3516_v24, %v3184_v1  ;;  %v2054_v49 = vadd.f32 %v1850_v29, %v1572_v7  ;;  %v178_v5 = vmul.f32 %v6282_v58, %v65_v11  ;;  %v488_v17 = vmul.f32 %v6291_v59, %v10117_v43 }
 0x130   :  { %v2944_v13 = vsel %vm722_vm1, %v2942_v2, %v9848_v37  ;;  %v3426_v53 = vsel %vm1205_vm2, %v3424_v27, %v9847_v23  ;;  %v288_v21 = vadd.f32 %v6304_v10, %v177_v54  ;;  %v566_v12 = vmul.f32 %v6310_v34, %v10117_v43 }
 0x131   :  { %4543 = vmatmul.msk.f32.vlgmr.msra.gmra.mxu3 %vm3683_vm3, %v3666_v14  ;;  %v2536_v24 = vadd.f32 %v2332_v46, %v2054_v49  ;;  %v289_v51 = vadd.f32 %v6304_v10, %v178_v5  ;;  %v6658_v26 = vmul.f32 %v6310_v34, %v5751_v16  ;;  %v1049_v2 = vmul.f32 %v6317_v31, %v10117_v43 }
 0x132   :  { %v6662_v29 = vmax.f32 %v288_v21, 0.0  ;;  %v783_v27 = vrot.slane %v566_v12, 1  ;;  %v6666_v54 = vmul.f32 %v6317_v31, %v5751_v16  ;;  %v1520_v14 = vmul.f32 %v6324_v3, %v10120_v56 }
 0x133   :  { %10118 = vst [vmem:[#allocation15_spill] sm:$0xff] %v6658_v26  ;;  %v2666_v49 = vadd.f32 %v2602_v57, %v2536_v24  ;;  %v6670_v11 = vmax.f32 %v289_v51, 0.0  ;;  %v9850_v5 = vrot.slane %v6658_v26, 1  ;;  %v1266_v1 = vrot.slane %v1049_v2, 2 }
 0x134   :  { %10119 = vst [vmem:[#allocation28_spill] sm:$0xff] %v6662_v29  ;;  %v9854_v7 = vrot.slane %v6666_v54, 2  ;;  %v1662_v43 = vmul.f32 %v6333_v22, %v10120_v56  ;;  %v6678_v46 = vmul.f32 %v6333_v22, %v6139_v55  ;;  %v2144_v21 = vmul.f32 %v6340_v36, %v10120_v56 }
 0x135   :  { %10121 = vst [vmem:[#allocation29_spill] sm:$0xff] %v6670_v11  ;;  %v3148_v12 = vadd.f32 %v2944_v13, %v2666_v49  ;;  %v785_v57 = vsel %vm722_vm1, %v783_v27, %v9850_v5  ;;  %v6687_v24 = vmul.f32 %v6340_v36, %v6139_v55  ;;  %v2614_v51 = vmul.f32 %v6537_v20, %v6662_v29  ;;  %v90_v13 = vld [vmem:[%s9714_s0 + $0x220] sm:$0x3] }
 0x136   :  { %10122 = vst [vmem:[#allocation30_spill] sm:$0xff] %v6678_v46  ;;  %v971_v2 = vadd.f32 %v785_v57, %v488_v17  ;;  %v1268_v23 = vsel %vm1205_vm2, %v1266_v1, %v9854_v7  ;;  %v1878_v37 = vrot.slane %v1662_v43, 1  ;;  %v9853_v62 = vrot.slane %v6678_v46, 1 }
 0x137   :  { %10123 = vst [vmem:[#allocation31_spill] sm:$0xff] %v6687_v24  ;;  %v3630_v27 = vadd.f32 %v3426_v53, %v3148_v12  ;;  %v2360_v49 = vrot.slane %v2144_v21, 2  ;;  %v9857_v5 = vrot.slane %v6687_v24, 2  ;;  %v2756_v56 = vmul.f32 %v6548_v25, %v6662_v29 }
 0x138   :  { %v1454_v26 = vadd.f32 %v1268_v23, %v971_v2  ;;  %v1880_v17 = vsel %vm722_vm1, %v1878_v37, %v9853_v62  ;;  %v6706_v1 = vmul.f32 %v6548_v25, %v6670_v11  ;;  %v3238_v43 = vmul.f32 %v6451_v42, %v6662_v29  ;;  %v10126_v29 = vld [vmem:[#allocation18_spill] sm:$0xff] }
 0x139   :  { %4507 = vmatmul.msk.f32.gmra.mxu0 %vm3683_vm3, %v3630_v27  ;;  %v2362_v53 = vsel %vm1205_vm2, %v2360_v49, %v9857_v5  ;;  %v2972_v21 = vrot.slane %v2756_v56, 1  ;;  %v6716_v23 = vmul.f32 %v6451_v42, %v6670_v11  ;;  %v203_v37 = vmul.f32 %v6282_v58, %v90_v13 }
 0x13a   :  { %10124 = vst [vmem:[#allocation32_spill] sm:$0xff] %v6706_v1  ;;  %v1584_v12 = vadd.f32 %v1520_v14, %v1454_v26  ;;  %v9859_v57 = vrot.slane %v6706_v1, 1  ;;  %v3454_v2 = vrot.slane %v3238_v43, 2  ;;  %v501_v62 = vmul.f32 %v6291_v59, %v10103_v30 }
 0x13b   :  { %10125 = vst [vmem:[#allocation33_spill] sm:$0xff] %v6716_v23  ;;  %v9860_v27 = vrot.slane %v6716_v23, 2  ;;  %v314_v7 = vadd.f32 %v6304_v10, %v203_v37  ;;  %v586_v56 = vmul.f32 %v6310_v34, %v10126_v29  ;;  %v1069_v49 = vmul.f32 %v6317_v31, %v10126_v29 }
 0x13c   :  { %v2066_v5 = vadd.f32 %v1880_v17, %v1584_v12  ;;  %v2974_v26 = vsel %vm722_vm1, %v2972_v21, %v9859_v57  ;;  %v1533_v14 = vmul.f32 %v6324_v3, %v5976_v44  ;;  %v1682_v30 = vmul.f32 %v6333_v22, %v6216_v0  ;;  %v102_v57 = vld [vmem:[%s9714_s0 + $0x280] sm:$0x3] }
 0x13d   :  { %v3456_v13 = vsel %vm1205_vm2, %v3454_v2, %v9860_v27  ;;  %v6738_v43 = vmax.f32 %v314_v7, 0.0  ;;  %v816_v37 = vrot.slane %v586_v56, 1  ;;  %v1299_v24 = vrot.slane %v1069_v49, 2  ;;  %v105_v2 = vld [vmem:[%s9714_s0 + $0x298] sm:$0x3] }
 0x13e   :  { %v2548_v29 = vadd.f32 %v2362_v53, %v2066_v5  ;;  %v1911_v17 = vrot.slane %v1682_v30, 1  ;;  %v2164_v12 = vmul.f32 %v6340_v36, %v6216_v0  ;;  %v2627_v21 = vmul.f32 %v6537_v20, %v6391_v9  ;;  %v108_v27 = vld [vmem:[%s9714_s0 + $0x2b0] sm:$0x3] }
 0x13f   :  { %10127 = vst [vmem:[#allocation18_spill] sm:$0xff] %v6738_v43  ;;  %v10128_v7 = vrot.slane %v6387_v8, 1  ;;  %v10129_v5 = vrot.slane %v6395_v4, 2  ;;  %v2776_v49 = vmul.f32 %v6548_v25, %v6738_v43  ;;  %v3258_v30 = vmul.f32 %v6451_v42, %v6738_v43 }
 0x140   :  { %v2678_v0 = vadd.f32 %v2614_v51, %v2548_v29  ;;  %v10130_v8 = vrot.slane %v6406_v47, 1  ;;  %v10131_v43 = vrot.slane %v6415_v19, 2  ;;  %v221_v51 = vmul.f32 %v6282_v58, %v108_v27 }
 0x141   :  { %v817_v56 = vsel %vm722_vm1, %v10128_v7, %v816_v37  ;;  %v1300_v53 = vsel %vm1205_vm2, %v10129_v5, %v1299_v24  ;;  %v2393_v7 = vrot.slane %v2164_v12, 2  ;;  %v3005_v4 = vrot.slane %v2776_v49, 1 }
 0x142   :  { %v984_v9 = vadd.f32 %v817_v56, %v501_v62  ;;  %v1912_v37 = vsel %vm722_vm1, %v10130_v8, %v1911_v17  ;;  %v3487_v23 = vrot.slane %v3258_v30, 2  ;;  %v215_v24 = vmul.f32 %v6282_v58, %v102_v57 }
 0x143   :  { %v218_v5 = vmul.f32 %v6282_v58, %v105_v2  ;;  %v3160_v44 = vadd.f32 %v2974_v26, %v2678_v0  ;;  %v2394_v46 = vsel %vm1205_vm2, %v10131_v43, %v2393_v7  ;;  %v10132_v62 = vrot.slane %v6428_v52, 1 }
 0x144   :  { %v1467_v1 = vadd.f32 %v1300_v53, %v984_v9  ;;  %v10133_v29 = vrot.slane %v6455_v38, 2  ;;  %v326_v57 = vadd.f32 %v6304_v10, %v215_v24  ;;  %v332_v19 = vadd.f32 %v6304_v10, %v221_v51 }
 0x145   :  { %v3006_v47 = vsel %vm722_vm1, %v10132_v62, %v3005_v4  ;;  %v329_v12 = vadd.f32 %v6304_v10, %v218_v5  ;;  %v3642_v0 = vadd.f32 %v3456_v13, %v3160_v44  ;;  %v513_v26 = vmul.f32 %v6291_v59, %v6488_v35 }
 0x146   :  { %v3488_v17 = vsel %vm1205_vm2, %v10133_v29, %v3487_v23  ;;  %v1597_v9 = vadd.f32 %v1533_v14, %v1467_v1  ;;  %v6783_v27 = vmax.f32 %v326_v57, 0.0  ;;  %v1545_v38 = vmul.f32 %v6324_v3, %v6494_v28 }
 0x147   :  { %v6785_v52 = vmax.f32 %v329_v12, 0.0  ;;  %v6791_v23 = vmul.f32 %v6537_v20, %v6498_v39  ;;  %4519 = vmatmul.msk.f32.gmra.mxu1 %vm3683_vm3, %v3642_v0  ;;  %v6794_v1 = vmax.f32 %v332_v19, 0.0  ;;  %v477_v14 = vmul.f32 %v6291_v59, %v5664_v6 }
 0x148   :  { %10134 = vst [vmem:[#allocation34_spill] sm:$0xff] %v6783_v27  ;;  %v2079_v44 = vadd.f32 %v1912_v37, %v1597_v9  ;;  %v550_v13 = vmul.f32 %v6310_v34, %v5856_v63  ;;  %v604_v43 = vmul.f32 %v6310_v34, %v6783_v27  ;;  %v1087_v2 = vmul.f32 %v6317_v31, %v6783_v27  ;;  %v10179_v27 = vld [vmem:[#allocation5_spill] sm:$0xff] }
 0x149   :  { %10135 = vst [vmem:[#allocation35_spill] sm:$0xff] %v6785_v52  ;;  %v1700_v56 = vmul.f32 %v6333_v22, %v6785_v52  ;;  %v2182_v53 = vmul.f32 %v6340_v36, %v6785_v52  ;;  %v2794_v30 = vmul.f32 %v6548_v25, %v6794_v1  ;;  %v3276_v6 = vmul.f32 %v6451_v42, %v6794_v1 }
 0x14a   :  { %v2561_v49 = vadd.f32 %v2394_v46, %v2079_v44  ;;  %v756_v8 = vrot.slane %v550_v13, 1  ;;  %v846_v37 = vrot.slane %v604_v43, 1  ;;  %v1329_v7 = vrot.slane %v1087_v2, 2 }
 0x14b   :  { %v1941_v4 = vrot.slane %v1700_v56, 1  ;;  %v2423_v24 = vrot.slane %v2182_v53, 2  ;;  %v3035_v51 = vrot.slane %v2794_v30, 1  ;;  %v3517_v62 = vrot.slane %v3276_v6, 2  ;;  %v10144_v6 = vld [vmem:[#allocation3_spill] sm:$0xff] }
 0x14c   :  { %v2691_v5 = vadd.f32 %v2627_v21, %v2561_v49  ;;  %v10136_v29 = vrot.slane %v6574_v60, 1  ;;  %v10137_v46 = vrot.slane %v6506_v41, 1  ;;  %v10138_v0 = vrot.slane %v6512_v18, 2 }
 0x14d   :  { %v10139_v19 = vrot.slane %v6521_v48, 1  ;;  %v10140_v21 = vrot.slane %v6532_v40, 2  ;;  %v10141_v2 = vrot.slane %v6558_v50, 1  ;;  %v10142_v56 = vrot.slane %v6564_v61, 2  ;;  %v10143_v40 = vld [vmem:[#allocation20_spill] sm:$0xff] }
 0x14e   :  { %v757_v57 = vsel %vm722_vm1, %v10136_v29, %v756_v8  ;;  %v847_v12 = vsel %vm722_vm1, %v10137_v46, %v846_v37  ;;  %v1330_v9 = vsel %vm1205_vm2, %v10138_v0, %v1329_v7  ;;  %v3173_v43 = vadd.f32 %v3006_v47, %v2691_v5  ;;  %v66_v50 = vld [vmem:[%s9714_s0 + $0x160] sm:$0x3]  ;;  %v10148_v46 = vld [vmem:[#allocation27_spill] sm:$0xff] }
 0x14f   :  { %v1942_v44 = vsel %vm722_vm1, %v10139_v19, %v1941_v4  ;;  %v2424_v13 = vsel %vm1205_vm2, %v10140_v21, %v2423_v24  ;;  %v996_v60 = vadd.f32 %v847_v12, %v513_v26  ;;  %v3036_v41 = vsel %vm722_vm1, %v10141_v2, %v3035_v51  ;;  %v10145_v37 = vld [vmem:[#allocation6_spill] sm:$0xff] }
 0x150   :  { %v3518_v18 = vsel %vm1205_vm2, %v10142_v56, %v3517_v62  ;;  %v960_v53 = vadd.f32 %v757_v57, %v477_v14  ;;  %v1033_v48 = vmul.f32 %v6317_v31, %v5856_v63  ;;  %v1509_v49 = vmul.f32 %v6324_v3, %v6065_v32  ;;  %v10146_v62 = vld [vmem:[#allocation26_spill] sm:$0xff] }
 0x151   :  { %v1646_v30 = vmul.f32 %v6333_v22, %v10143_v40  ;;  %v3655_v47 = vadd.f32 %v3488_v17, %v3173_v43  ;;  %v1479_v26 = vadd.f32 %v1330_v9, %v996_v60  ;;  %v2128_v61 = vmul.f32 %v6340_v36, %v10143_v40 }
 0x152   :  { %v2603_v14 = vmul.f32 %v6537_v20, %v10144_v6  ;;  %v1239_v8 = vrot.slane %v1033_v48, 2  ;;  %v2740_v7 = vmul.f32 %v6548_v25, %v10145_v37  ;;  %v3222_v4 = vmul.f32 %v6451_v42, %v10145_v37 }
 0x153   :  { %v1851_v63 = vrot.slane %v1646_v30, 1  ;;  %4532 = vmatmul.msk.f32.gmra.mxu2 %vm3683_vm3, %v3655_v47  ;;  %v1609_v24 = vadd.f32 %v1545_v38, %v1479_v26  ;;  %v2333_v5 = vrot.slane %v2128_v61, 2  ;;  %v179_v17 = vmul.f32 %v6282_v58, %v66_v50  ;;  %v10153_v50 = vld [vmem:[#allocation19_spill] sm:$0xff] }
 0x154   :  { %v489_v51 = vmul.f32 %v6291_v59, %v5751_v16  ;;  %v10147_v29 = vrot.slane %v10146_v62, 2  ;;  %v10149_v12 = vrot.slane %v10148_v46, 1  ;;  %v2945_v9 = vrot.slane %v2740_v7, 1 }
 0x155   :  { %v3427_v19 = vrot.slane %v3222_v4, 2  ;;  %v2091_v21 = vadd.f32 %v1942_v44, %v1609_v24  ;;  %v10150_v38 = vrot.slane %v6606_v45, 2  ;;  %v290_v2 = vadd.f32 %v6304_v10, %v179_v17  ;;  %v10156_v17 = vld [vmem:[#allocation15_spill] sm:$0xff] }
 0x156   :  { %v1240_v57 = vsel %vm1205_vm2, %v10147_v29, %v1239_v8  ;;  %v1852_v0 = vsel %vm722_vm1, %v10149_v12, %v1851_v63  ;;  %v10151_v16 = vrot.slane %v6625_v33, 1  ;;  %v10152_v48 = vrot.slane %v6631_v15, 2  ;;  %v10155_v63 = vld [vmem:[#allocation21_spill] sm:$0xff] }
 0x157   :  { %v1443_v43 = vadd.f32 %v1240_v57, %v960_v53  ;;  %v2334_v60 = vsel %vm1205_vm2, %v10150_v38, %v2333_v5  ;;  %v568_v47 = vmul.f32 %v6310_v34, %v10153_v50  ;;  %v1051_v44 = vmul.f32 %v6317_v31, %v10153_v50  ;;  %v91_v5 = vld [vmem:[%s9714_s0 + $0x228] sm:$0xff]  ;;  %v10159_v38 = vld [vmem:[#allocation30_spill] sm:$0xff] }
 0x158   :  { %v2946_v56 = vsel %vm722_vm1, %v10151_v16, %v2945_v9  ;;  %v3428_v30 = vsel %vm1205_vm2, %v10152_v48, %v3427_v19  ;;  %v2573_v53 = vadd.f32 %v2424_v13, %v2091_v21  ;;  %v6874_v26 = vmax.f32 %v290_v2, 0.0  ;;  %v10161_v48 = vld [vmem:[#allocation31_spill] sm:$0xff] }
 0x159   :  { %v1573_v45 = vadd.f32 %v1509_v49, %v1443_v43  ;;  %v1521_v61 = vmul.f32 %v6324_v3, %v6139_v55  ;;  %v786_v33 = vrot.slane %v568_v47, 1  ;;  %v1269_v8 = vrot.slane %v1051_v44, 2  ;;  %v92_v43 = vld [vmem:[%s9714_s0 + $0x230] sm:$0xff] }
 0x15a   :  { %10154 = vst [vmem:[#allocation20_spill] sm:$0xff] %v6874_v26  ;;  %v1664_v15 = vmul.f32 %v6333_v22, %v10155_v63  ;;  %v2146_v7 = vmul.f32 %v6340_v36, %v10155_v63  ;;  %v2703_v4 = vadd.f32 %v6791_v23, %v2573_v53  ;;  %v2615_v13 = vmul.f32 %v6537_v20, %v6670_v11  ;;  %v10163_v53 = vld [vmem:[#allocation32_spill] sm:$0xff] }
 0x15b   :  { %v2055_v24 = vadd.f32 %v1852_v0, %v1573_v45  ;;  %v2758_v49 = vmul.f32 %v6548_v25, %v6874_v26  ;;  %v10157_v62 = vrot.slane %v10156_v17, 1  ;;  %v10158_v57 = vrot.slane %v6666_v54, 2 }
 0x15c   :  { %v1881_v23 = vrot.slane %v1664_v15, 1  ;;  %v2363_v12 = vrot.slane %v2146_v7, 2  ;;  %v3185_v0 = vadd.f32 %v3036_v41, %v2703_v4  ;;  %v10160_v2 = vrot.slane %v10159_v38, 1  ;;  %v10165_v4 = vld [vmem:[#allocation10_spill] sm:$0xff]  ;;  %v10171_v38 = vld [vmem:[#allocation12_spill] sm:$0xff] }
 0x15d   :  { %v787_v29 = vsel %vm722_vm1, %v10157_v62, %v786_v33  ;;  %v1270_v46 = vsel %vm1205_vm2, %v10158_v57, %v1269_v8  ;;  %v2537_v9 = vadd.f32 %v2334_v60, %v2055_v24  ;;  %v2975_v21 = vrot.slane %v2758_v49, 1  ;;  %v10167_v62 = vld [vmem:[#allocation33_spill] sm:$0xff] }
 0x15e   :  { %v972_v19 = vadd.f32 %v787_v29, %v489_v51  ;;  %v1882_v16 = vsel %vm722_vm1, %v10160_v2, %v1881_v23  ;;  %v10162_v50 = vrot.slane %v10161_v48, 2  ;;  %v3240_v47 = vmul.f32 %v6451_v42, %v6874_v26 }
 0x15f   :  { %v204_v41 = vmul.f32 %v6282_v58, %v91_v5  ;;  %v3667_v60 = vadd.f32 %v3518_v18, %v3185_v0  ;;  %v2667_v51 = vadd.f32 %v2603_v14, %v2537_v9  ;;  %v10164_v45 = vrot.slane %v10163_v53, 1  ;;  %v10166_v14 = vld [vmem:[#allocation16_spill] sm:$0xff] }
 0x160   :  { %v2364_v54 = vsel %vm1205_vm2, %v10162_v50, %v2363_v12  ;;  %v1455_v44 = vadd.f32 %v1270_v46, %v972_v19  ;;  %v3457_v8 = vrot.slane %v3240_v47, 2  ;;  %v205_v15 = vmul.f32 %v6282_v58, %v92_v43  ;;  %v10172_v50 = vld [vmem:[#allocation13_spill] sm:$0xff] }
 0x161   :  { %v2976_v33 = vsel %vm722_vm1, %v10164_v45, %v2975_v21  ;;  %v315_v7 = vadd.f32 %v6304_v10, %v204_v41  ;;  %v502_v24 = vmul.f32 %v6291_v59, %v10165_v4  ;;  %4544 = vmatmul.msk.f32.gmra.mxu3 %vm3683_vm3, %v3667_v60  ;;  %v3149_v49 = vadd.f32 %v2946_v56, %v2667_v51 }
 0x162   :  { %v1585_v17 = vadd.f32 %v1521_v61, %v1455_v44  ;;  %v587_v18 = vmul.f32 %v6310_v34, %v10165_v4  ;;  %v6920_v5 = vmul.f32 %v6310_v34, %v10166_v14  ;;  %v10168_v29 = vrot.slane %v10167_v62, 2 }
 0x163   :  { %v316_v46 = vadd.f32 %v6304_v10, %v205_v15  ;;  %v6926_v23 = vmax.f32 %v315_v7, 0.0  ;;  %v1070_v12 = vmul.f32 %v6317_v31, %v10165_v4  ;;  %v3631_v56 = vadd.f32 %v3428_v30, %v3149_v49 }
 0x164   :  { %v3458_v57 = vsel %vm1205_vm2, %v10168_v29, %v3457_v8  ;;  %v2067_v61 = vadd.f32 %v1882_v16, %v1585_v17  ;;  %v818_v0 = vrot.slane %v587_v18, 1  ;;  %v9878_v9 = vrot.slane %v6920_v5, 1  ;;  %v110_v29 = vld [vmem:[%s9714_s0 + $0x2c0] sm:$0xff] }
 0x165   :  { %10169 = vst [vmem:[#allocation3_spill] sm:$0xff] %v6926_v23  ;;  %v6931_v19 = vmax.f32 %v316_v46, 0.0  ;;  %v6935_v21 = vmul.f32 %v6317_v31, %v10166_v14  ;;  %v1301_v43 = vrot.slane %v1070_v12, 2  ;;  %v1534_v2 = vmul.f32 %v6324_v3, %v10171_v38  ;;  %4508 = vmatmul.msk.f32.gmra.mxu0 %vm3683_vm3, %v3631_v56 }
 0x166   :  { %v2549_v48 = vadd.f32 %v2364_v54, %v2067_v61  ;;  %v820_v30 = vsel %vm722_vm1, %v818_v0, %v9878_v9  ;;  %v1683_v16 = vmul.f32 %v6333_v22, %v10171_v38  ;;  %v6947_v47 = vmul.f32 %v6333_v22, %v10172_v50 }
 0x167   :  { %10170 = vst [vmem:[#allocation6_spill] sm:$0xff] %v6931_v19  ;;  %v985_v41 = vadd.f32 %v820_v30, %v502_v24  ;;  %v9877_v60 = vrot.slane %v6935_v21, 2  ;;  %v2165_v51 = vmul.f32 %v6340_v36, %v10171_v38  ;;  %v6954_v54 = vmul.f32 %v6340_v36, %v10172_v50  ;;  %v10185_v38 = vld [vmem:[#allocation28_spill] sm:$0xff] }
 0x168   :  { %v2679_v44 = vadd.f32 %v2615_v13, %v2549_v48  ;;  %v1913_v53 = vrot.slane %v1683_v16, 1  ;;  %v9876_v45 = vrot.slane %v6947_v47, 1  ;;  %v2628_v8 = vmul.f32 %v6537_v20, %v6926_v23  ;;  %v109_v13 = vld [vmem:[%s9714_s0 + $0x2b8] sm:$0xff] }
 0x169   :  { %v1303_v15 = vsel %vm1205_vm2, %v1301_v43, %v9877_v60  ;;  %v2395_v7 = vrot.slane %v2165_v51, 2  ;;  %v9875_v4 = vrot.slane %v6954_v54, 2  ;;  %v2777_v24 = vmul.f32 %v6548_v25, %v6926_v23  ;;  %v10173_v51 = vld [vmem:[#allocation24_spill] sm:$0xff] }
 0x16a   :  { %v3161_v49 = vadd.f32 %v2976_v33, %v2679_v44  ;;  %v1468_v17 = vadd.f32 %v1303_v15, %v985_v41  ;;  %v1915_v18 = vsel %vm722_vm1, %v1913_v53, %v9876_v45  ;;  %v6973_v62 = vmul.f32 %v6548_v25, %v6931_v19 }
 0x16b   :  { %v2397_v46 = vsel %vm1205_vm2, %v2395_v7, %v9875_v4  ;;  %v3007_v12 = vrot.slane %v2777_v24, 1  ;;  %v3259_v33 = vmul.f32 %v6451_v42, %v6926_v23  ;;  %v6985_v56 = vmul.f32 %v6451_v42, %v6931_v19  ;;  %v7195_v23 = vld [vmem:[%s9717_s1 + $0x3] ss:$0 sm:$0xff] }
 0x16c   :  { %v3643_v61 = vadd.f32 %v3458_v57, %v3161_v49  ;;  %v1598_v0 = vadd.f32 %v1534_v2, %v1468_v17  ;;  %v9873_v43 = vrot.slane %v6973_v62, 1  ;;  %v222_v48 = vmul.f32 %v6282_v58, %v109_v13 }
 0x16d   :  { %v3489_v30 = vrot.slane %v3259_v33, 2  ;;  %v9872_v16 = vrot.slane %v6985_v56, 2  ;;  %v223_v41 = vmul.f32 %v6282_v58, %v110_v29  ;;  %v514_v44 = vmul.f32 %v6291_v59, %v10173_v51 }
 0x16e   :  { %4520 = vmatmul.msk.f32.gmra.mxu1 %vm3683_vm3, %v3643_v61  ;;  %v2080_v53 = vadd.f32 %v1915_v18, %v1598_v0  ;;  %v3009_v57 = vsel %vm722_vm1, %v3007_v12, %v9873_v43  ;;  %v333_v2 = vadd.f32 %v6304_v10, %v222_v48  ;;  %v605_v15 = vmul.f32 %v6310_v34, %v10173_v51  ;;  %v10175_v61 = vld [vmem:[#allocation25_spill] sm:$0xff] }
 0x16f   :  { %v3491_v7 = vsel %vm1205_vm2, %v3489_v30, %v9872_v16  ;;  %v334_v58 = vadd.f32 %v6304_v10, %v223_v41  ;;  %v7006_v24 = vmul.f32 %v6310_v34, %v6494_v28  ;;  %v1088_v13 = vmul.f32 %v6317_v31, %v10173_v51 }
 0x170   :  { %v2562_v49 = vadd.f32 %v2397_v46, %v2080_v53  ;;  %v7010_v17 = vmax.f32 %v333_v2, 0.0  ;;  %v848_v18 = vrot.slane %v605_v15, 1  ;;  %v7014_v29 = vmul.f32 %v6317_v31, %v6494_v28 }
 0x171   :  { %v7016_v12 = vmax.f32 %v334_v58, 0.0  ;;  %v9874_v33 = vrot.slane %v7006_v24, 1  ;;  %v1331_v10 = vrot.slane %v1088_v13, 2  ;;  %v1546_v0 = vmul.f32 %v6324_v3, %v10175_v61 }
 0x172   :  { %10174 = vst [vmem:[#allocation26_spill] sm:$0xff] %v7010_v17  ;;  %v2692_v48 = vadd.f32 %v2628_v8, %v2562_v49  ;;  %v9883_v30 = vrot.slane %v7014_v29, 2  ;;  %v1701_v46 = vmul.f32 %v6333_v22, %v10175_v61  ;;  %v7026_v41 = vmul.f32 %v6333_v22, %v6498_v39 }
 0x173   :  { %v850_v53 = vsel %vm722_vm1, %v848_v18, %v9874_v33  ;;  %v2183_v2 = vmul.f32 %v6340_v36, %v10175_v61  ;;  %v7035_v15 = vmul.f32 %v6340_v36, %v6498_v39  ;;  %v2640_v8 = vmul.f32 %v6537_v20, %v7010_v17 }
 0x174   :  { %v3174_v58 = vadd.f32 %v3009_v57, %v2692_v48  ;;  %v997_v13 = vadd.f32 %v850_v53, %v514_v44  ;;  %v1333_v49 = vsel %vm1205_vm2, %v1331_v10, %v9883_v30  ;;  %v1943_v16 = vrot.slane %v1701_v46, 1 }
 0x175   :  { %v9880_v43 = vrot.slane %v7026_v41, 1  ;;  %v2425_v18 = vrot.slane %v2183_v2, 2  ;;  %v9879_v33 = vrot.slane %v7035_v15, 2  ;;  %v2795_v4 = vmul.f32 %v6548_v25, %v7010_v17 }
 0x176   :  { %v3656_v45 = vadd.f32 %v3491_v7, %v3174_v58  ;;  %v1480_v60 = vadd.f32 %v1333_v49, %v997_v13  ;;  %v7048_v9 = vmul.f32 %v6548_v25, %v7016_v12  ;;  %v3277_v44 = vmul.f32 %v6451_v42, %v7010_v17  ;;  %v10176_v58 = vld [vmem:[#allocation11_spill] sm:$0xff] }
 0x177   :  { %v1945_v57 = vsel %vm722_vm1, %v1943_v16, %v9880_v43  ;;  %v2427_v10 = vsel %vm1205_vm2, %v2425_v18, %v9879_v33  ;;  %v3037_v48 = vrot.slane %v2795_v4, 1  ;;  %v7060_v7 = vmul.f32 %v6451_v42, %v7016_v12 }
 0x178   :  { %4533 = vmatmul.msk.f32.gmra.mxu2 %vm3683_vm3, %v3656_v45  ;;  %v1610_v46 = vadd.f32 %v1546_v0, %v1480_v60  ;;  %v9882_v53 = vrot.slane %v7048_v9, 1  ;;  %v3519_v2 = vrot.slane %v3277_v44, 2  ;;  %v478_v13 = vmul.f32 %v6291_v59, %v10176_v58  ;;  %v10177_v0 = vld [vmem:[#allocation2_spill] sm:$0xff] }
 0x179   :  { %v9881_v16 = vrot.slane %v7060_v7, 2  ;;  %v551_v49 = vmul.f32 %v6310_v34, %v10176_v58  ;;  %v7071_v4 = vmul.f32 %v6310_v34, %v6065_v32  ;;  %v1034_v18 = vmul.f32 %v6317_v31, %v10176_v58 }
 0x17a   :  { %v2092_v45 = vadd.f32 %v1945_v57, %v1610_v46  ;;  %v3039_v60 = vsel %vm722_vm1, %v3037_v48, %v9882_v53  ;;  %v7080_v59 = vmul.f32 %v6317_v31, %v6065_v32  ;;  %v1510_v44 = vmul.f32 %v6324_v3, %v10177_v0 }
 0x17b   :  { %v3521_v34 = vsel %vm1205_vm2, %v3519_v2, %v9881_v16  ;;  %v758_v33 = vrot.slane %v551_v49, 1  ;;  %v9884_v43 = vrot.slane %v7071_v4, 1  ;;  %v1241_v58 = vrot.slane %v1034_v18, 2 }
 0x17c   :  { %v2574_v57 = vadd.f32 %v2427_v10, %v2092_v45  ;;  %v9893_v46 = vrot.slane %v7080_v59, 2  ;;  %v1647_v48 = vmul.f32 %v6333_v22, %v10177_v0  ;;  %v7093_v31 = vmul.f32 %v6333_v22, %v10144_v6  ;;  %v10178_v10 = vld [vmem:[#allocation4_spill] sm:$0xff] }
 0x17d   :  { %v760_v3 = vsel %vm722_vm1, %v758_v33, %v9884_v43  ;;  %v2129_v2 = vmul.f32 %v6340_v36, %v10177_v0  ;;  %v7102_v49 = vmul.f32 %v6340_v36, %v10144_v6  ;;  %v2604_v18 = vmul.f32 %v6537_v20, %v10178_v10 }
 0x17e   :  { %v2704_v45 = vadd.f32 %v2640_v8, %v2574_v57  ;;  %v961_v16 = vadd.f32 %v760_v3, %v478_v13  ;;  %v1243_v22 = vsel %vm1205_vm2, %v1241_v58, %v9893_v46  ;;  %v1853_v53 = vrot.slane %v1647_v48, 1  ;;  %v67_v13 = vld [vmem:[%s9714_s0 + $0x168] sm:$0xff]  ;;  %v68_v58 = vld [vmem:[%s9714_s0 + $0x170] sm:$0xff] }
 0x17f   :  { %v9890_v30 = vrot.slane %v7093_v31, 1  ;;  %v2335_v33 = vrot.slane %v2129_v2, 2  ;;  %v9892_v43 = vrot.slane %v7102_v49, 2  ;;  %v2741_v0 = vmul.f32 %v6548_v25, %v10178_v10 }
 0x180   :  { %v3186_v36 = vadd.f32 %v3039_v60, %v2704_v45  ;;  %v1444_v51 = vadd.f32 %v1243_v22, %v961_v16  ;;  %v7115_v35 = vmul.f32 %v6548_v25, %v10179_v27  ;;  %v3223_v8 = vmul.f32 %v6451_v42, %v10178_v10 }
 0x181   :  { %v1855_v60 = vsel %vm722_vm1, %v1853_v53, %v9890_v30  ;;  %v2337_v16 = vsel %vm1205_vm2, %v2335_v33, %v9892_v43  ;;  %v2947_v57 = vrot.slane %v2741_v0, 1  ;;  %v7133_v48 = vmul.f32 %v6451_v42, %v10179_v27  ;;  %v7140_v53 = vld [vmem:[%s9715_s3] ss:$0 sm:$0xff] }
 0x182   :  { %10180 = vst [vmem:[#allocation27_spill] sm:$0xff] %v7115_v35  ;;  %v3668_v3 = vadd.f32 %v3521_v34, %v3186_v36  ;;  %v1574_v2 = vadd.f32 %v1510_v44, %v1444_v51  ;;  %v9891_v10 = vrot.slane %v7115_v35, 1  ;;  %v3429_v45 = vrot.slane %v3223_v8, 2  ;;  %v7147_v0 = vld [vmem:[%s9717_s1] ss:$0 sm:$0xff]  ;;  %v10182_v51 = vld [vmem:[#allocation8_spill] sm:$0xff] }
 0x183   :  { %10181 = vst [vmem:[#allocation19_spill] sm:$0xff] %v7133_v48  ;;  %v9896_v22 = vrot.slane %v7133_v48, 2  ;;  %v180_v30 = vmul.f32 %v7140_v53, %v67_v13  ;;  %v181_v33 = vmul.f32 %v7140_v53, %v68_v58  ;;  %v490_v44 = vmul.f32 %v7147_v0, %v10182_v51  ;;  %v7158_v8 = vld [vmem:[%s9717_s1 + $0x1] ss:$0 sm:$0xff] }
 0x184   :  { %4545 = vmatmul.msk.f32.gmra.mxu3 %vm3683_vm3, %v3668_v3  ;;  %v2056_v34 = vadd.f32 %v1855_v60, %v1574_v2  ;;  %v2949_v36 = vsel %vm722_vm1, %v2947_v57, %v9891_v10  ;;  %v569_v13 = vmul.f32 %v7158_v8, %v10182_v51  ;;  %v7164_v58 = vmul.f32 %v7158_v8, %v6139_v55  ;;  %v7172_v57 = vld [vmem:[%s9716_s4] ss:$0 sm:$0xff]  ;;  %v7179_v10 = vld [vmem:[%s9717_s1 + $0x2] ss:$0 sm:$0xff] }
 0x185   :  { %v3431_v60 = vsel %vm1205_vm2, %v3429_v45, %v9896_v22  ;;  %v291_v3 = vadd.f32 %v7172_v57, %v180_v30  ;;  %v292_v2 = vadd.f32 %v7172_v57, %v181_v33  ;;  %v1052_v43 = vmul.f32 %v7179_v10, %v10182_v51 }
 0x186   :  { %10183 = vst [vmem:[#allocation15_spill] sm:$0xff] %v7164_v58  ;;  %v2538_v46 = vadd.f32 %v2337_v16, %v2056_v34  ;;  %v788_v17 = vrot.slane %v569_v13, 1  ;;  %v9902_v45 = vrot.slane %v7164_v58, 1  ;;  %v7186_v22 = vmul.f32 %v7179_v10, %v6139_v55 }
 0x187   :  { %v7188_v61 = vmax.f32 %v291_v3, 0.0  ;;  %v7190_v30 = vmax.f32 %v292_v2, 0.0  ;;  %v1271_v33 = vrot.slane %v1052_v43, 2  ;;  %v1522_v16 = vmul.f32 %v7195_v23, %v10185_v38  ;;  %v7206_v3 = vld [vmem:[%s9717_s1 + $0x4] ss:$0 sm:$0xff] }
 0x188   :  { %v2668_v51 = vadd.f32 %v2604_v18, %v2538_v46  ;;  %v790_v34 = vsel %vm722_vm1, %v788_v17, %v9902_v45  ;;  %v9912_v13 = vrot.slane %v7186_v22, 2  ;;  %v1665_v43 = vmul.f32 %v7206_v3, %v10185_v38  ;;  %v7217_v46 = vld [vmem:[%s9717_s1 + $0x5] ss:$0 sm:$0xff] }
 0x189   :  { %10184 = vst [vmem:[#allocation30_spill] sm:$0xff] %v7188_v61  ;;  %v973_v2 = vadd.f32 %v790_v34, %v490_v44  ;;  %v7212_v48 = vmul.f32 %v7206_v3, %v6670_v11  ;;  %v2147_v17 = vmul.f32 %v7217_v46, %v10185_v38  ;;  %v7223_v18 = vmul.f32 %v7217_v46, %v6670_v11  ;;  %v93_v38 = vld [vmem:[%s9714_s0 + $0x238] sm:$0x3] }
 0x18a   :  { %v3150_v45 = vadd.f32 %v2949_v36, %v2668_v51  ;;  %v1273_v44 = vsel %vm1205_vm2, %v1271_v33, %v9912_v13  ;;  %v1883_v34 = vrot.slane %v1665_v43, 1  ;;  %v2616_v58 = vmul.f32 %v6537_v20, %v7188_v61 }
 0x18b   :  { %10186 = vst [vmem:[#allocation31_spill] sm:$0xff] %v7223_v18  ;;  %v1456_v26 = vadd.f32 %v1273_v44, %v973_v2  ;;  %v9915_v63 = vrot.slane %v7212_v48, 1  ;;  %v2365_v55 = vrot.slane %v2147_v17, 2  ;;  %v9916_v35 = vrot.slane %v7223_v18, 2 }
 0x18c   :  { %v3632_v11 = vadd.f32 %v3431_v60, %v3150_v45  ;;  %v2759_v36 = vmul.f32 %v6548_v25, %v7188_v61  ;;  %v7239_v33 = vmul.f32 %v6548_v25, %v7190_v30  ;;  %v3241_v51 = vmul.f32 %v6451_v42, %v7188_v61 }
 0x18d   :  { %v1586_v43 = vadd.f32 %v1522_v16, %v1456_v26  ;;  %v1885_v2 = vsel %vm722_vm1, %v1883_v34, %v9915_v63  ;;  %v2367_v17 = vsel %vm1205_vm2, %v2365_v55, %v9916_v35  ;;  %v7251_v60 = vmul.f32 %v6451_v42, %v7190_v30  ;;  %v10189_v63 = vld [vmem:[#allocation17_spill] sm:$0xff]  ;;  %v10190_v35 = vld [vmem:[#allocation18_spill] sm:$0xff] }
 0x18e   :  { %10187 = vst [vmem:[#allocation32_spill] sm:$0xff] %v7239_v33  ;;  %4509 = vmatmul.msk.f32.gmra.mxu0 %vm3683_vm3, %v3632_v11  ;;  %v2977_v45 = vrot.slane %v2759_v36, 1  ;;  %v9917_v44 = vrot.slane %v7239_v33, 1  ;;  %v3459_v13 = vrot.slane %v3241_v51, 2  ;;  %v206_v26 = vmul.f32 %v7140_v53, %v93_v38  ;;  %v111_v51 = vld [vmem:[%s9714_s0 + $0x2c8] sm:$0x3] }
 0x18f   :  { %10188 = vst [vmem:[#allocation10_spill] sm:$0xff] %v7251_v60  ;;  %v2068_v16 = vadd.f32 %v1885_v2, %v1586_v43  ;;  %v9921_v61 = vrot.slane %v7251_v60, 2  ;;  %v503_v34 = vmul.f32 %v7147_v0, %v10166_v14  ;;  %v589_v55 = vmul.f32 %v7158_v8, %v10189_v63 }
 0x190   :  { %v2979_v42 = vsel %vm722_vm1, %v2977_v45, %v9917_v44  ;;  %v317_v11 = vadd.f32 %v7172_v57, %v206_v26  ;;  %v1072_v36 = vmul.f32 %v7179_v10, %v10189_v63  ;;  %v1535_v38 = vmul.f32 %v7195_v23, %v10172_v50 }
 0x191   :  { %v2550_v14 = vadd.f32 %v2367_v17, %v2068_v16  ;;  %v3461_v43 = vsel %vm1205_vm2, %v3459_v13, %v9921_v61  ;;  %v821_v2 = vrot.slane %v589_v55, 1  ;;  %v1685_v45 = vmul.f32 %v7206_v3, %v10190_v35 }
 0x192   :  { %v7277_v26 = vmax.f32 %v317_v11, 0.0  ;;  %v1304_v44 = vrot.slane %v1072_v36, 2  ;;  %v2167_v63 = vmul.f32 %v7217_v46, %v10190_v35  ;;  %v2629_v50 = vmul.f32 %v6537_v20, %v6931_v19 }
 0x193   :  { %v2680_v33 = vadd.f32 %v2616_v58, %v2550_v14  ;;  %v10192_v17 = vrot.slane %v6920_v5, 1  ;;  %v1916_v60 = vrot.slane %v1685_v45, 1  ;;  %v224_v13 = vmul.f32 %v7140_v53, %v111_v51  ;;  %v7298_v5 = vld [vmem:[%s9717_s1 + $0x8] ss:$0 sm:$0xff] }
 0x194   :  { %10191 = vst [vmem:[#allocation16_spill] sm:$0xff] %v7277_v26  ;;  %v10193_v61 = vrot.slane %v6935_v21, 2  ;;  %v2398_v36 = vrot.slane %v2167_v63, 2  ;;  %v2779_v35 = vmul.f32 %v6548_v25, %v7277_v26  ;;  %v10194_v19 = vrot.slane %v6947_v47, 1 }
 0x195   :  { %v822_v16 = vsel %vm722_vm1, %v10192_v17, %v821_v2  ;;  %v3162_v18 = vadd.f32 %v2979_v42, %v2680_v33  ;;  %v335_v21 = vadd.f32 %v7172_v57, %v224_v13  ;;  %v515_v47 = vmul.f32 %v7147_v0, %v6494_v28 }
 0x196   :  { %v986_v55 = vadd.f32 %v822_v16, %v503_v34  ;;  %v1305_v11 = vsel %vm1205_vm2, %v10193_v61, %v1304_v44  ;;  %v1917_v58 = vsel %vm722_vm1, %v10194_v19, %v1916_v60  ;;  %v3261_v34 = vmul.f32 %v7298_v5, %v7277_v26 }
 0x197   :  { %v10195_v44 = vrot.slane %v6954_v54, 2  ;;  %v3010_v33 = vrot.slane %v2779_v35, 1  ;;  %v3644_v19 = vadd.f32 %v3461_v43, %v3162_v18  ;;  %v7308_v42 = vmax.f32 %v335_v21, 0.0 }
 0x198   :  { %v1469_v61 = vadd.f32 %v1305_v11, %v986_v55  ;;  %v3492_v60 = vrot.slane %v3261_v34, 2  ;;  %v607_v14 = vmul.f32 %v7158_v8, %v6785_v52  ;;  %v10196_v45 = vrot.slane %v6973_v62, 1 }
 0x199   :  { %v2399_v51 = vsel %vm1205_vm2, %v10195_v44, %v2398_v36  ;;  %v1090_v54 = vmul.f32 %v7179_v10, %v6785_v52  ;;  %v1547_v35 = vmul.f32 %v7195_v23, %v6498_v39  ;;  %4521 = vmatmul.msk.f32.gmra.mxu1 %vm3683_vm3, %v3644_v19  ;;  %v10197_v18 = vrot.slane %v6985_v56, 2 }
 0x19a   :  { %v1599_v2 = vadd.f32 %v1535_v38, %v1469_v61  ;;  %v3011_v63 = vsel %vm722_vm1, %v10196_v45, %v3010_v33  ;;  %v851_v17 = vrot.slane %v607_v14, 1  ;;  %v1703_v38 = vmul.f32 %v7206_v3, %v6794_v1 }
 0x19b   :  { %v3493_v43 = vsel %vm1205_vm2, %v10197_v18, %v3492_v60  ;;  %v2185_v62 = vmul.f32 %v7217_v46, %v6794_v1  ;;  %v1334_v13 = vrot.slane %v1090_v54, 2  ;;  %v2641_v55 = vmul.f32 %v6537_v20, %v7016_v12 }
 0x19c   :  { %v2081_v16 = vadd.f32 %v1917_v58, %v1599_v2  ;;  %v2797_v11 = vmul.f32 %v6548_v25, %v7308_v42  ;;  %v10198_v36 = vrot.slane %v7006_v24, 1  ;;  %v1946_v34 = vrot.slane %v1703_v38, 1 }
 0x19d   :  { %v2428_v21 = vrot.slane %v2185_v62, 2  ;;  %v3279_v61 = vmul.f32 %v7298_v5, %v7308_v42  ;;  %v10199_v58 = vrot.slane %v7014_v29, 2  ;;  %v10200_v20 = vrot.slane %v7026_v41, 1 }
 0x19e   :  { %v852_v56 = vsel %vm722_vm1, %v10198_v36, %v851_v17  ;;  %v2563_v44 = vadd.f32 %v2399_v51, %v2081_v16  ;;  %v3040_v60 = vrot.slane %v2797_v11, 1  ;;  %v10201_v24 = vrot.slane %v7035_v15, 2 }
 0x19f   :  { %v998_v33 = vadd.f32 %v852_v56, %v515_v47  ;;  %v1335_v19 = vsel %vm1205_vm2, %v10199_v58, %v1334_v13  ;;  %v1947_v25 = vsel %vm722_vm1, %v10200_v20, %v1946_v34  ;;  %v3522_v2 = vrot.slane %v3279_v61, 2 }
 0x1a0   :  { %v2429_v14 = vsel %vm1205_vm2, %v10201_v24, %v2428_v21  ;;  %v479_v45 = vmul.f32 %v7147_v0, %v6065_v32  ;;  %v2693_v54 = vadd.f32 %v2629_v50, %v2563_v44  ;;  %v10202_v47 = vrot.slane %v7048_v9, 1 }
 0x1a1   :  { %v1481_v51 = vadd.f32 %v1335_v19, %v998_v33  ;;  %v553_v18 = vmul.f32 %v7158_v8, %v10143_v40  ;;  %v10203_v41 = vrot.slane %v7060_v7, 2  ;;  %v1036_v15 = vmul.f32 %v7179_v10, %v10143_v40  ;;  %v7366_v7 = vld [vmem:[%s9717_s1 + $0x6] ss:$0 sm:$0xff] }
 0x1a2   :  { %v3041_v29 = vsel %vm722_vm1, %v10202_v47, %v3040_v60  ;;  %v1511_v38 = vmul.f32 %v7195_v23, %v10144_v6  ;;  %v1649_v32 = vmul.f32 %v7206_v3, %v10145_v37  ;;  %v3175_v50 = vadd.f32 %v3011_v63, %v2693_v54  ;;  %v7373_v6 = vld [vmem:[%s9717_s1 + $0x7] ss:$0 sm:$0xff]  ;;  %v10204_v63 = vld [vmem:[#allocation7_spill] sm:$0xff]  ;;  %v10211_v54 = vld [vmem:[#allocation9_spill] sm:$0xff] }
 0x1a3   :  { %v3523_v17 = vsel %vm1205_vm2, %v10203_v41, %v3522_v2  ;;  %v1611_v9 = vadd.f32 %v1547_v35, %v1481_v51  ;;  %v761_v62 = vrot.slane %v553_v18, 1  ;;  %v2131_v16 = vmul.f32 %v7217_v46, %v10145_v37  ;;  %v69_v37 = vld [vmem:[%s9714_s0 + $0x178] sm:$0x3]  ;;  %v10209_v2 = vld [vmem:[#allocation27_spill] sm:$0xff] }
 0x1a4   :  { %v1244_v13 = vrot.slane %v1036_v15, 2  ;;  %v1856_v11 = vrot.slane %v1649_v32, 1  ;;  %v2605_v40 = vmul.f32 %v7366_v7, %v10179_v27  ;;  %v2743_v35 = vmul.f32 %v7373_v6, %v10204_v63  ;;  %v10212_v47 = vld [vmem:[#allocation21_spill] sm:$0xff] }
 0x1a5   :  { %v3657_v36 = vadd.f32 %v3493_v43, %v3175_v50  ;;  %v2093_v56 = vadd.f32 %v1947_v25, %v1611_v9  ;;  %v10205_v34 = vrot.slane %v7071_v4, 1  ;;  %v2338_v61 = vrot.slane %v2131_v16, 2  ;;  %v10213_v9 = vld [vmem:[#allocation29_spill] sm:$0xff]  ;;  %v10214_v16 = vld [vmem:[#allocation20_spill] sm:$0xff] }
 0x1a6   :  { %v10206_v44 = vrot.slane %v7080_v59, 2  ;;  %v10207_v58 = vrot.slane %v7093_v31, 1  ;;  %v2950_v60 = vrot.slane %v2743_v35, 1  ;;  %v10208_v43 = vrot.slane %v7102_v49, 2 }
 0x1a7   :  { %v762_v21 = vsel %vm722_vm1, %v10205_v34, %v761_v62  ;;  %4534 = vmatmul.msk.f32.gmra.mxu2 %vm3683_vm3, %v3657_v36  ;;  %v2575_v20 = vadd.f32 %v2429_v14, %v2093_v56  ;;  %v3225_v25 = vmul.f32 %v7298_v5, %v10204_v63  ;;  %v182_v24 = vmul.f32 %v7140_v53, %v69_v37  ;;  %v10215_v63 = vld [vmem:[#allocation19_spill] sm:$0xff] }
 0x1a8   :  { %v962_v27 = vadd.f32 %v762_v21, %v479_v45  ;;  %v1245_v33 = vsel %vm1205_vm2, %v10206_v44, %v1244_v13  ;;  %v1857_v19 = vsel %vm722_vm1, %v10207_v58, %v1856_v11  ;;  %v2339_v4 = vsel %vm1205_vm2, %v10208_v43, %v2338_v61  ;;  %v10217_v34 = vld [vmem:[#allocation15_spill] sm:$0xff] }
 0x1a9   :  { %v10210_v45 = vrot.slane %v10209_v2, 1  ;;  %v491_v51 = vmul.f32 %v7147_v0, %v10211_v54  ;;  %v571_v14 = vmul.f32 %v7158_v8, %v10212_v47  ;;  %v2705_v18 = vadd.f32 %v2641_v55, %v2575_v20  ;;  %v95_v44 = vld [vmem:[%s9714_s0 + $0x248] sm:$0xff] }
 0x1aa   :  { %v1445_v59 = vadd.f32 %v1245_v33, %v962_v27  ;;  %v3432_v49 = vrot.slane %v3225_v25, 2  ;;  %v293_v41 = vadd.f32 %v7172_v57, %v182_v24  ;;  %v1054_v15 = vmul.f32 %v7179_v10, %v10212_v47 }
 0x1ab   :  { %v2951_v31 = vsel %vm722_vm1, %v10210_v45, %v2950_v60  ;;  %v791_v50 = vrot.slane %v571_v14, 1  ;;  %v1523_v62 = vmul.f32 %v7195_v23, %v10213_v9  ;;  %v1667_v13 = vmul.f32 %v7206_v3, %v10214_v16 }
 0x1ac   :  { %v1575_v32 = vadd.f32 %v1511_v38, %v1445_v59  ;;  %v3187_v11 = vadd.f32 %v3041_v29, %v2705_v18  ;;  %v10216_v35 = vrot.slane %v10215_v63, 2  ;;  %v7413_v55 = vmax.f32 %v293_v41, 0.0  ;;  %v94_v29 = vld [vmem:[%s9714_s0 + $0x240] sm:$0xff]  ;;  %v10223_v18 = vld [vmem:[#allocation12_spill] sm:$0xff] }
 0x1ad   :  { %v1274_v36 = vrot.slane %v1054_v15, 2  ;;  %v10218_v21 = vrot.slane %v10217_v34, 1  ;;  %v1886_v61 = vrot.slane %v1667_v13, 1  ;;  %v2149_v27 = vmul.f32 %v7217_v46, %v10214_v16 }
 0x1ae   :  { %v3433_v37 = vsel %vm1205_vm2, %v10216_v35, %v3432_v49  ;;  %v2057_v56 = vadd.f32 %v1857_v19, %v1575_v32  ;;  %v3669_v33 = vadd.f32 %v3523_v17, %v3187_v11  ;;  %v10219_v19 = vrot.slane %v7186_v22, 2  ;;  %v10224_v11 = vld [vmem:[#allocation32_spill] sm:$0xff] }
 0x1af   :  { %v792_v38 = vsel %vm722_vm1, %v10218_v21, %v791_v50  ;;  %v2617_v20 = vmul.f32 %v7366_v7, %v7190_v30  ;;  %v10220_v25 = vrot.slane %v7212_v48, 1  ;;  %v2368_v59 = vrot.slane %v2149_v27, 2  ;;  %v10227_v21 = vld [vmem:[#allocation10_spill] sm:$0xff] }
 0x1b0   :  { %v974_v58 = vadd.f32 %v792_v38, %v491_v51  ;;  %v1275_v60 = vsel %vm1205_vm2, %v10219_v19, %v1274_v36  ;;  %v2539_v43 = vadd.f32 %v2339_v4, %v2057_v56  ;;  %v2761_v2 = vmul.f32 %v7373_v6, %v7413_v55  ;;  %4546 = vmatmul.msk.f32.gmra.mxu3 %vm3683_vm3, %v3669_v33  ;;  %v10221_v4 = vld [vmem:[#allocation31_spill] sm:$0xff]  ;;  %v10226_v36 = vld [vmem:[#allocation13_spill] sm:$0xff] }
 0x1b1   :  { %v1887_v24 = vsel %vm722_vm1, %v10220_v25, %v1886_v61  ;;  %v3243_v22 = vmul.f32 %v7298_v5, %v7413_v55  ;;  %v207_v45 = vmul.f32 %v7140_v53, %v94_v29  ;;  %v208_v54 = vmul.f32 %v7140_v53, %v95_v44 }
 0x1b2   :  { %v1457_v17 = vadd.f32 %v1275_v60, %v974_v58  ;;  %v2669_v51 = vadd.f32 %v2605_v40, %v2539_v43  ;;  %v10222_v47 = vrot.slane %v10221_v4, 2  ;;  %v2980_v14 = vrot.slane %v2761_v2, 1  ;;  %v10231_v43 = vld [vmem:[#allocation3_spill] sm:$0xff]  ;;  %v10232_v2 = vld [vmem:[#allocation6_spill] sm:$0xff] }
 0x1b3   :  { %v504_v49 = vmul.f32 %v7147_v0, %v10223_v18  ;;  %v3462_v15 = vrot.slane %v3243_v22, 2  ;;  %v318_v32 = vadd.f32 %v7172_v57, %v207_v45  ;;  %v319_v50 = vadd.f32 %v7172_v57, %v208_v54 }
 0x1b4   :  { %v2369_v48 = vsel %vm1205_vm2, %v10222_v47, %v2368_v59  ;;  %v1587_v41 = vadd.f32 %v1523_v62, %v1457_v17  ;;  %v3151_v13 = vadd.f32 %v2951_v31, %v2669_v51  ;;  %v10225_v63 = vrot.slane %v10224_v11, 1  ;;  %v7464_v31 = vpop.f32.mrf.mxu0 }
 0x1b5   :  { %v590_v40 = vmul.f32 %v7158_v8, %v10223_v18  ;;  %v7455_v56 = vmul.f32 %v7158_v8, %v10226_v36  ;;  %v10228_v62 = vrot.slane %v10227_v21, 2  ;;  %v7460_v61 = vmax.f32 %v318_v32, 0.0  ;;  %4089 = vst.msk [vmem:[%s9718_s5] sm:$0xff] %vm3683_vm3, %v7464_v31  ;;  %v112_v32 = vld [vmem:[%s9714_s0 + $0x2d0] sm:$0xff] }
 0x1b6   :  { %v2981_v35 = vsel %vm722_vm1, %v10225_v63, %v2980_v14  ;;  %v2069_v34 = vadd.f32 %v1887_v24, %v1587_v41  ;;  %v7462_v27 = vmax.f32 %v319_v50, 0.0  ;;  %v3633_v29 = vadd.f32 %v3433_v37, %v3151_v13 }
 0x1b7   :  { %v3463_v38 = vsel %vm1205_vm2, %v10228_v62, %v3462_v15  ;;  %10229 = vst [vmem:[#allocation33_spill] sm:$0xff] %v7460_v61  ;;  %v823_v44 = vrot.slane %v590_v40, 1  ;;  %v9937_v33 = vrot.slane %v7455_v56, 1  ;;  %v1073_v58 = vmul.f32 %v7179_v10, %v10223_v18 }
 0x1b8   :  { %10230 = vst [vmem:[#allocation11_spill] sm:$0xff] %v7462_v27  ;;  %v2551_v19 = vadd.f32 %v2369_v48, %v2069_v34  ;;  %v7476_v60 = vmul.f32 %v7179_v10, %v10226_v36  ;;  %v1536_v37 = vmul.f32 %v7195_v23, %v10231_v43  ;;  %v1686_v25 = vmul.f32 %v7206_v3, %v10231_v43 }
 0x1b9   :  { %4510 = vmatmul.msk.f32.gmra.mxu0 %vm3683_vm3, %v3633_v29  ;;  %v825_v24 = vsel %vm722_vm1, %v823_v44, %v9937_v33  ;;  %v1306_v59 = vrot.slane %v1073_v58, 2  ;;  %v7488_v17 = vmul.f32 %v7206_v3, %v10232_v2  ;;  %v2168_v22 = vmul.f32 %v7217_v46, %v10231_v43 }
 0x1ba   :  { %v2681_v45 = vadd.f32 %v2617_v20, %v2551_v19  ;;  %v987_v54 = vadd.f32 %v825_v24, %v504_v49  ;;  %v9935_v51 = vrot.slane %v7476_v60, 2  ;;  %v1918_v4 = vrot.slane %v1686_v25, 1 }
 0x1bb   :  { %v9933_v47 = vrot.slane %v7488_v17, 1  ;;  %v7496_v48 = vmul.f32 %v7217_v46, %v10232_v2  ;;  %v2400_v14 = vrot.slane %v2168_v22, 2  ;;  %v2630_v18 = vmul.f32 %v7366_v7, %v7460_v61 }
 0x1bc   :  { %v3163_v41 = vadd.f32 %v2981_v35, %v2681_v45  ;;  %v1308_v15 = vsel %vm1205_vm2, %v1306_v59, %v9935_v51  ;;  %v2780_v20 = vmul.f32 %v7373_v6, %v7460_v61  ;;  %v7507_v49 = vmul.f32 %v7373_v6, %v7462_v27  ;;  %v113_v35 = vld [vmem:[%s9714_s0 + $0x2d8] sm:$0xff] }
 0x1bd   :  { %v1470_v50 = vadd.f32 %v1308_v15, %v987_v54  ;;  %v1920_v13 = vsel %vm722_vm1, %v1918_v4, %v9933_v47  ;;  %v9932_v11 = vrot.slane %v7496_v48, 2  ;;  %v3262_v63 = vmul.f32 %v7298_v5, %v7460_v61  ;;  %v10233_v59 = vld [vmem:[#allocation25_spill] sm:$0xff] }
 0x1be   :  { %v3645_v40 = vadd.f32 %v3463_v38, %v3163_v41  ;;  %v3012_v34 = vrot.slane %v2780_v20, 1  ;;  %v9930_v21 = vrot.slane %v7507_v49, 1  ;;  %v7524_v62 = vmul.f32 %v7298_v5, %v7462_v27 }
 0x1bf   :  { %v1600_v29 = vadd.f32 %v1536_v37, %v1470_v50  ;;  %v2402_v44 = vsel %vm1205_vm2, %v2400_v14, %v9932_v11  ;;  %v3494_v58 = vrot.slane %v3262_v63, 2  ;;  %v225_v19 = vmul.f32 %v7140_v53, %v112_v32  ;;  %v10236_v11 = vld [vmem:[#allocation28_spill] sm:$0xff] }
 0x1c0   :  { %4522 = vmatmul.msk.f32.gmra.mxu1 %vm3683_vm3, %v3645_v40  ;;  %v3014_v38 = vsel %vm722_vm1, %v3012_v34, %v9930_v21  ;;  %v9928_v25 = vrot.slane %v7524_v62, 2  ;;  %v226_v24 = vmul.f32 %v7140_v53, %v113_v35  ;;  %v516_v37 = vmul.f32 %v7147_v0, %v10233_v59 }
 0x1c1   :  { %v2082_v22 = vadd.f32 %v1920_v13, %v1600_v29  ;;  %v336_v45 = vadd.f32 %v7172_v57, %v225_v19  ;;  %v608_v54 = vmul.f32 %v7158_v8, %v10233_v59  ;;  %v7543_v4 = vmul.f32 %v7158_v8, %v6498_v39  ;;  %v10235_v29 = vld [vmem:[#allocation26_spill] sm:$0xff] }
 0x1c2   :  { %v3496_v14 = vsel %vm1205_vm2, %v3494_v58, %v9928_v25  ;;  %v337_v41 = vadd.f32 %v7172_v57, %v226_v24  ;;  %v1091_v15 = vmul.f32 %v7179_v10, %v10233_v59  ;;  %v7553_v20 = vmul.f32 %v7179_v10, %v6498_v39 }
 0x1c3   :  { %v2564_v32 = vadd.f32 %v2402_v44, %v2082_v22  ;;  %v7555_v50 = vmax.f32 %v336_v45, 0.0  ;;  %v853_v13 = vrot.slane %v608_v54, 1  ;;  %v9926_v63 = vrot.slane %v7543_v4, 1 }
 0x1c4   :  { %v7558_v35 = vmax.f32 %v337_v41, 0.0  ;;  %v1336_v40 = vrot.slane %v1091_v15, 2  ;;  %v9927_v34 = vrot.slane %v7553_v20, 2  ;;  %v1548_v58 = vmul.f32 %v7195_v23, %v10235_v29 }
 0x1c5   :  { %10234 = vst [vmem:[#allocation2_spill] sm:$0xff] %v7555_v50  ;;  %v2694_v19 = vadd.f32 %v2630_v18, %v2564_v32  ;;  %v855_v24 = vsel %vm722_vm1, %v853_v13, %v9926_v63  ;;  %v1704_v44 = vmul.f32 %v7206_v3, %v10235_v29  ;;  %v7570_v59 = vmul.f32 %v7206_v3, %v7016_v12 }
 0x1c6   :  { %v999_v22 = vadd.f32 %v855_v24, %v516_v37  ;;  %v1338_v45 = vsel %vm1205_vm2, %v1336_v40, %v9927_v34  ;;  %v2186_v54 = vmul.f32 %v7217_v46, %v10235_v29  ;;  %v7579_v18 = vmul.f32 %v7217_v46, %v7016_v12 }
 0x1c7   :  { %v3176_v41 = vadd.f32 %v3014_v38, %v2694_v19  ;;  %v1948_v15 = vrot.slane %v1704_v44, 1  ;;  %v9929_v32 = vrot.slane %v7570_v59, 1  ;;  %v2642_v13 = vmul.f32 %v7366_v7, %v7555_v50  ;;  %v70_v44 = vld [vmem:[%s9714_s0 + $0x180] sm:$0xff] }
 0x1c8   :  { %v1482_v63 = vadd.f32 %v1338_v45, %v999_v22  ;;  %v2430_v37 = vrot.slane %v2186_v54, 2  ;;  %v9931_v24 = vrot.slane %v7579_v18, 2  ;;  %v2798_v40 = vmul.f32 %v7373_v6, %v7555_v50  ;;  %v71_v22 = vld [vmem:[%s9714_s0 + $0x188] sm:$0xff] }
 0x1c9   :  { %v3658_v34 = vadd.f32 %v3496_v14, %v3176_v41  ;;  %v1950_v25 = vsel %vm722_vm1, %v1948_v15, %v9929_v32  ;;  %v7592_v38 = vmul.f32 %v7373_v6, %v7558_v35  ;;  %v3280_v19 = vmul.f32 %v7298_v5, %v7555_v50 }
 0x1ca   :  { %v1612_v14 = vadd.f32 %v1548_v58, %v1482_v63  ;;  %v2432_v45 = vsel %vm1205_vm2, %v2430_v37, %v9931_v24  ;;  %v3042_v54 = vrot.slane %v2798_v40, 1  ;;  %v7607_v41 = vmul.f32 %v7298_v5, %v7558_v35 }
 0x1cb   :  { %4535 = vmatmul.msk.f32.gmra.mxu2 %vm3683_vm3, %v3658_v34  ;;  %v9934_v15 = vrot.slane %v7592_v38, 1  ;;  %v3524_v32 = vrot.slane %v3280_v19, 2  ;;  %v7613_v21 = vsel %vm3683_vm3, %v7464_v31, 0.0  ;;  %v4288_v63 = vmul.f32 %v7464_v31, %v7464_v31 }
 0x1cc   :  { %v2094_v58 = vadd.f32 %v1950_v25, %v1612_v14  ;;  %v9936_v37 = vrot.slane %v7607_v41, 2  ;;  %v183_v40 = vmul.f32 %v7140_v53, %v70_v44  ;;  %v184_v24 = vmul.f32 %v7140_v53, %v71_v22 }
 0x1cd   :  { %v3044_v34 = vsel %vm722_vm1, %v3042_v54, %v9934_v15  ;;  %v7624_v19 = vsel %vm3683_vm3, %v4288_v63, 0.0  ;;  %v492_v47 = vmul.f32 %v7147_v0, %v10236_v11  ;;  %v572_v31 = vmul.f32 %v7158_v8, %v10236_v11 }
 0x1ce   :  { %v2576_v25 = vadd.f32 %v2432_v45, %v2094_v58  ;;  %v3526_v44 = vsel %vm1205_vm2, %v3524_v32, %v9936_v37  ;;  %v294_v22 = vadd.f32 %v7172_v57, %v183_v40  ;;  %v295_v14 = vadd.f32 %v7172_v57, %v184_v24  ;;  %v10239_v40 = vld [vmem:[#allocation30_spill] sm:$0xff] }
 0x1cf   :  { %v7637_v54 = vmul.f32 %v7158_v8, %v10213_v9  ;;  %v793_v63 = vrot.slane %v572_v31, 1  ;;  %v1055_v15 = vmul.f32 %v7179_v10, %v10236_v11  ;;  %v7643_v51 = vmul.f32 %v7179_v10, %v10213_v9 }
 0x1d0   :  { %v2706_v45 = vadd.f32 %v2642_v13, %v2576_v25  ;;  %v7645_v58 = vmax.f32 %v294_v22, 0.0  ;;  %v7647_v32 = vmax.f32 %v295_v14, 0.0  ;;  %v1524_v24 = vmul.f32 %v7195_v23, %v10239_v40 }
 0x1d1   :  { %10237 = vst [vmem:[#allocation4_spill] sm:$0xff] %v7643_v51  ;;  %v9950_v37 = vrot.slane %v7637_v54, 1  ;;  %v1276_v33 = vrot.slane %v1055_v15, 2  ;;  %v9949_v31 = vrot.slane %v7643_v51, 2  ;;  %v1668_v11 = vmul.f32 %v7206_v3, %v10239_v40 }
 0x1d2   :  { %10238 = vst [vmem:[#allocation5_spill] sm:$0xff] %v7645_v58  ;;  %v3188_v52 = vadd.f32 %v3044_v34, %v2706_v45  ;;  %v7657_v28 = vmul.f32 %v7206_v3, %v7190_v30  ;;  %v2150_v13 = vmul.f32 %v7217_v46, %v10239_v40  ;;  %v7663_v25 = vmul.f32 %v7217_v46, %v7190_v30  ;;  %v96_v45 = vld [vmem:[%s9714_s0 + $0x250] sm:$0x3] }
 0x1d3   :  { %v795_v15 = vsel %vm722_vm1, %v793_v63, %v9950_v37  ;;  %v1278_v22 = vsel %vm1205_vm2, %v1276_v33, %v9949_v31  ;;  %v1888_v34 = vrot.slane %v1668_v11, 1  ;;  %v2618_v14 = vmul.f32 %v7366_v7, %v7645_v58  ;;  %v7686_v31 = vpop.f32.mrf.mxu0 }
 0x1d4   :  { %10240 = vst [vmem:[#allocation8_spill] sm:$0xff] %v7657_v28  ;;  %v3670_v40 = vadd.f32 %v3526_v44, %v3188_v52  ;;  %v975_v50 = vadd.f32 %v795_v15, %v492_v47  ;;  %v9956_v29 = vrot.slane %v7657_v28, 1  ;;  %v2370_v61 = vrot.slane %v2150_v13, 2 }
 0x1d5   :  { %10241 = vst [vmem:[#allocation17_spill] sm:$0xff] %v7663_v25  ;;  %v9954_v43 = vrot.slane %v7663_v25, 2  ;;  %v2762_v63 = vmul.f32 %v7373_v6, %v7645_v58  ;;  %v7682_v33 = vmul.f32 %v7373_v6, %v7647_v32  ;;  %v3244_v11 = vmul.f32 %v7298_v5, %v7645_v58 }
 0x1d6   :  { %4547 = vmatmul.msk.f32.gmra.mxu3 %vm3683_vm3, %v3670_v40  ;;  %v1458_v52 = vadd.f32 %v1278_v22, %v975_v50  ;;  %v1890_v47 = vsel %vm722_vm1, %v1888_v34, %v9956_v29  ;;  %v7694_v44 = vmul.f32 %v7298_v5, %v7647_v32  ;;  %v209_v13 = vmul.f32 %v7140_v53, %v96_v45  ;;  %v10244_v45 = vld [vmem:[#allocation18_spill] sm:$0xff] }
 0x1d7   :  { %10242 = vst [vmem:[#allocation7_spill] sm:$0xff] %v7682_v33  ;;  %v2372_v15 = vsel %vm1205_vm2, %v2370_v61, %v9954_v43  ;;  %v2982_v37 = vrot.slane %v2762_v63, 1  ;;  %v9955_v58 = vrot.slane %v7682_v33, 1  ;;  %v3464_v51 = vrot.slane %v3244_v11, 2 }
 0x1d8   :  { %10243 = vst [vmem:[#allocation27_spill] sm:$0xff] %v7694_v44  ;;  %v1588_v50 = vadd.f32 %v1524_v24, %v1458_v52  ;;  %v9958_v40 = vrot.slane %v7694_v44, 2  ;;  %v320_v22 = vadd.f32 %v7172_v57, %v209_v13  ;;  %v505_v34 = vmul.f32 %v7147_v0, %v10226_v36 }
 0x1d9   :  { %4090 = vst.msk [vmem:[%s9718_s5 + $0x8] sm:$0xff] %vm3683_vm3, %v7686_v31  ;;  %v2984_v61 = vsel %vm722_vm1, %v2982_v37, %v9955_v58  ;;  %v592_v63 = vmul.f32 %v7158_v8, %v10244_v45  ;;  %v1075_v11 = vmul.f32 %v7179_v10, %v10244_v45  ;;  %v1537_v24 = vmul.f32 %v7195_v23, %v10232_v2  ;;  %v114_v37 = vld [vmem:[%s9714_s0 + $0x2e0] sm:$0x3] }
 0x1da   :  { %v2070_v52 = vadd.f32 %v1890_v47, %v1588_v50  ;;  %v3466_v13 = vsel %vm1205_vm2, %v3464_v51, %v9958_v40  ;;  %v7722_v43 = vmax.f32 %v320_v22, 0.0  ;;  %v1688_v36 = vmul.f32 %v7206_v3, %v7277_v26 }
 0x1db   :  { %v826_v58 = vrot.slane %v592_v63, 1  ;;  %v1309_v29 = vrot.slane %v1075_v11, 2  ;;  %v2170_v45 = vmul.f32 %v7217_v46, %v7277_v26  ;;  %v2631_v47 = vmul.f32 %v7366_v7, %v7462_v27 }
 0x1dc   :  { %10245 = vst [vmem:[#allocation9_spill] sm:$0xff] %v7722_v43  ;;  %v2552_v50 = vadd.f32 %v2372_v15, %v2070_v52  ;;  %v1921_v2 = vrot.slane %v1688_v36, 1  ;;  %v2782_v51 = vmul.f32 %v7373_v6, %v7722_v43  ;;  %v3264_v22 = vmul.f32 %v7298_v5, %v7722_v43 }
 0x1dd   :  { %v10246_v40 = vrot.slane %v7455_v56, 1  ;;  %v10247_v63 = vrot.slane %v7476_v60, 2  ;;  %v2403_v26 = vrot.slane %v2170_v45, 2  ;;  %v227_v33 = vmul.f32 %v7140_v53, %v114_v37 }
 0x1de   :  { %v2682_v27 = vadd.f32 %v2618_v14, %v2552_v50  ;;  %v10248_v52 = vrot.slane %v7488_v17, 1  ;;  %v3015_v25 = vrot.slane %v2782_v51, 1  ;;  %v10249_v43 = vrot.slane %v7496_v48, 2 }
 0x1df   :  { %v827_v44 = vsel %vm722_vm1, %v10246_v40, %v826_v58  ;;  %v1310_v11 = vsel %vm1205_vm2, %v10247_v63, %v1309_v29  ;;  %v3497_v28 = vrot.slane %v3264_v22, 2  ;;  %v338_v58 = vadd.f32 %v7172_v57, %v227_v33 }
 0x1e0   :  { %v988_v15 = vadd.f32 %v827_v44, %v505_v34  ;;  %v1922_v36 = vsel %vm722_vm1, %v10248_v52, %v1921_v2  ;;  %v2404_v56 = vsel %vm1205_vm2, %v10249_v43, %v2403_v26  ;;  %v517_v60 = vmul.f32 %v7147_v0, %v6498_v39 }
 0x1e1   :  { %v3164_v29 = vadd.f32 %v2984_v61, %v2682_v27  ;;  %v10250_v14 = vrot.slane %v7507_v49, 1  ;;  %v610_v2 = vmul.f32 %v7158_v8, %v6794_v1  ;;  %v10251_v17 = vrot.slane %v7524_v62, 2 }
 0x1e2   :  { %v1471_v40 = vadd.f32 %v1310_v11, %v988_v15  ;;  %v7761_v26 = vmax.f32 %v338_v58, 0.0  ;;  %v1093_v43 = vmul.f32 %v7179_v10, %v6794_v1  ;;  %v1549_v39 = vmul.f32 %v7195_v23, %v7016_v12  ;;  %v72_v15 = vld [vmem:[%s9714_s0 + $0x190] sm:$0x3] }
 0x1e3   :  { %v3016_v44 = vsel %vm722_vm1, %v10250_v14, %v3015_v25  ;;  %v3498_v48 = vsel %vm1205_vm2, %v10251_v17, %v3497_v28  ;;  %v3646_v27 = vadd.f32 %v3466_v13, %v3164_v29  ;;  %v856_v49 = vrot.slane %v610_v2, 1 }
 0x1e4   :  { %v1601_v33 = vadd.f32 %v1537_v24, %v1471_v40  ;;  %v1706_v25 = vmul.f32 %v7206_v3, %v7308_v42  ;;  %v1339_v34 = vrot.slane %v1093_v43, 2  ;;  %v2188_v62 = vmul.f32 %v7217_v46, %v7308_v42 }
 0x1e5   :  { %v2643_v28 = vmul.f32 %v7366_v7, %v7558_v35  ;;  %v2800_v61 = vmul.f32 %v7373_v6, %v7761_v26  ;;  %4523 = vmatmul.msk.f32.gmra.mxu1 %vm3683_vm3, %v3646_v27  ;;  %v10252_v13 = vrot.slane %v7543_v4, 1  ;;  %v3282_v45 = vmul.f32 %v7298_v5, %v7761_v26 }
 0x1e6   :  { %v2083_v1 = vadd.f32 %v1922_v36, %v1601_v33  ;;  %v1951_v37 = vrot.slane %v1706_v25, 1  ;;  %v10253_v51 = vrot.slane %v7553_v20, 2  ;;  %v2433_v63 = vrot.slane %v2188_v62, 2 }
 0x1e7   :  { %v857_v24 = vsel %vm722_vm1, %v10252_v13, %v856_v49  ;;  %v3045_v11 = vrot.slane %v2800_v61, 1  ;;  %v10254_v4 = vrot.slane %v7570_v59, 1  ;;  %v3527_v58 = vrot.slane %v3282_v45, 2  ;;  %v97_v13 = vld [vmem:[%s9714_s0 + $0x258] sm:$0xff]  ;;  %v10259_v45 = vld [vmem:[#allocation4_spill] sm:$0xff] }
 0x1e8   :  { %v1000_v50 = vadd.f32 %v857_v24, %v517_v60  ;;  %v1340_v22 = vsel %vm1205_vm2, %v10253_v51, %v1339_v34  ;;  %v2565_v52 = vadd.f32 %v2404_v56, %v2083_v1  ;;  %v4154_v29 = vsel %vm3683_vm3, %v7686_v31, 0.0 }
 0x1e9   :  { %v1952_v36 = vsel %vm722_vm1, %v10254_v4, %v1951_v37  ;;  %v10255_v20 = vrot.slane %v7579_v18, 2  ;;  %v10256_v14 = vrot.slane %v7592_v38, 1  ;;  %v7799_v17 = vadd.f32 %v4154_v29, %v7613_v21 }
 0x1ea   :  { %v1483_v60 = vadd.f32 %v1340_v22, %v1000_v50  ;;  %v2695_v56 = vadd.f32 %v2631_v47, %v2565_v52  ;;  %v10257_v59 = vrot.slane %v7607_v41, 2  ;;  %v4289_v27 = vmul.f32 %v7686_v31, %v7686_v31 }
 0x1eb   :  { %v2434_v40 = vsel %vm1205_vm2, %v10255_v20, %v2433_v63  ;;  %v3046_v2 = vsel %vm722_vm1, %v10256_v14, %v3045_v11  ;;  %v185_v33 = vmul.f32 %v7140_v53, %v72_v15  ;;  %v493_v49 = vmul.f32 %v7147_v0, %v10213_v9  ;;  %v10263_v14 = vld [vmem:[#allocation17_spill] sm:$0xff] }
 0x1ec   :  { %v3528_v43 = vsel %vm1205_vm2, %v10257_v59, %v3527_v58  ;;  %v1613_v18 = vadd.f32 %v1549_v39, %v1483_v60  ;;  %v574_v38 = vmul.f32 %v7158_v8, %v10214_v16  ;;  %v1057_v21 = vmul.f32 %v7179_v10, %v10214_v16  ;;  %v10261_v60 = vld [vmem:[#allocation8_spill] sm:$0xff] }
 0x1ed   :  { %v3177_v47 = vadd.f32 %v3016_v44, %v2695_v56  ;;  %v4353_v41 = vsel %vm3683_vm3, %v4289_v27, 0.0  ;;  %v296_v25 = vadd.f32 %v7172_v57, %v185_v33  ;;  %v1525_v31 = vmul.f32 %v7195_v23, %v7190_v30 }
 0x1ee   :  { %v2095_v34 = vadd.f32 %v1952_v36, %v1613_v18  ;;  %v7818_v39 = vadd.f32 %v4353_v41, %v7624_v19  ;;  %v796_v62 = vrot.slane %v574_v38, 1  ;;  %v1279_v9 = vrot.slane %v1057_v21, 2  ;;  %v98_v19 = vld [vmem:[%s9714_s0 + $0x260] sm:$0xff]  ;;  %v10265_v21 = vld [vmem:[#allocation7_spill] sm:$0xff] }
 0x1ef   :  { %v3659_v61 = vadd.f32 %v3498_v48, %v3177_v47  ;;  %v7820_v1 = vmax.f32 %v296_v25, 0.0  ;;  %v1670_v16 = vmul.f32 %v7206_v3, %v7413_v55  ;;  %v2152_v44 = vmul.f32 %v7217_v46, %v7413_v55  ;;  %v10267_v25 = vld [vmem:[#allocation3_spill] sm:$0xff] }
 0x1f0   :  { %v2577_v24 = vadd.f32 %v2434_v40, %v2095_v34  ;;  %v10258_v37 = vrot.slane %v7637_v54, 1  ;;  %v10260_v50 = vrot.slane %v10259_v45, 2  ;;  %v2619_v22 = vmul.f32 %v7366_v7, %v7647_v32 }
 0x1f1   :  { %4536 = vmatmul.msk.f32.gmra.mxu2 %vm3683_vm3, %v3659_v61  ;;  %v1891_v11 = vrot.slane %v1670_v16, 1  ;;  %v2373_v15 = vrot.slane %v2152_v44, 2  ;;  %v2764_v52 = vmul.f32 %v7373_v6, %v7820_v1  ;;  %v3246_v54 = vmul.f32 %v7298_v5, %v7820_v1  ;;  %v10268_v61 = vld [vmem:[#allocation27_spill] sm:$0xff] }
 0x1f2   :  { %v797_v48 = vsel %vm722_vm1, %v10258_v37, %v796_v62  ;;  %v1280_v51 = vsel %vm1205_vm2, %v10260_v50, %v1279_v9  ;;  %v2707_v4 = vadd.f32 %v2643_v28, %v2577_v24  ;;  %v210_v36 = vmul.f32 %v7140_v53, %v97_v13  ;;  %v10272_v24 = vld [vmem:[#allocation6_spill] sm:$0xff]  ;;  %v10273_v50 = vld [vmem:[#allocation33_spill] sm:$0xff] }
 0x1f3   :  { %v976_v63 = vadd.f32 %v797_v48, %v493_v49  ;;  %v211_v58 = vmul.f32 %v7140_v53, %v98_v19  ;;  %v10262_v20 = vrot.slane %v10261_v60, 1  ;;  %v10264_v56 = vrot.slane %v10263_v14, 2 }
 0x1f4   :  { %v2985_v27 = vrot.slane %v2764_v52, 1  ;;  %v3189_v33 = vadd.f32 %v3046_v2, %v2707_v4  ;;  %v3467_v18 = vrot.slane %v3246_v54, 2  ;;  %v321_v28 = vadd.f32 %v7172_v57, %v210_v36 }
 0x1f5   :  { %v1459_v29 = vadd.f32 %v1280_v51, %v976_v63  ;;  %v1892_v40 = vsel %vm722_vm1, %v10262_v20, %v1891_v11  ;;  %v2374_v59 = vsel %vm1205_vm2, %v10264_v56, %v2373_v15  ;;  %v322_v49 = vadd.f32 %v7172_v57, %v211_v58  ;;  %v10274_v11 = vld [vmem:[#allocation11_spill] sm:$0xff] }
 0x1f6   :  { %v10266_v47 = vrot.slane %v10265_v21, 1  ;;  %v506_v34 = vmul.f32 %v7147_v0, %v10267_v25  ;;  %v593_v62 = vmul.f32 %v7158_v8, %v10267_v25  ;;  %v3671_v9 = vadd.f32 %v3528_v43, %v3189_v33 }
 0x1f7   :  { %v1589_v38 = vadd.f32 %v1525_v31, %v1459_v29  ;;  %v10269_v16 = vrot.slane %v10268_v61, 2  ;;  %v7865_v44 = vmax.f32 %v321_v28, 0.0  ;;  %v7867_v13 = vmax.f32 %v322_v49, 0.0  ;;  %v7869_v31 = vpop.f32.mrf.mxu0 }
 0x1f8   :  { %v2986_v41 = vsel %vm722_vm1, %v10266_v47, %v2985_v27  ;;  %v7873_v37 = vmul.f32 %v7158_v8, %v10272_v24  ;;  %v828_v48 = vrot.slane %v593_v62, 1  ;;  %v1076_v45 = vmul.f32 %v7179_v10, %v10267_v25  ;;  %4091 = vst.msk [vmem:[%s9718_s5 + $0x10] sm:$0xff] %vm3683_vm3, %v7869_v31  ;;  %4548 = vmatmul.msk.f32.gmra.mxu3 %vm3683_vm3, %v3671_v9  ;;  %v115_v27 = vld [vmem:[%s9714_s0 + $0x2e8] sm:$0xff]  ;;  %v116_v25 = vld [vmem:[%s9714_s0 + $0x2f0] sm:$0xff] }
 0x1f9   :  { %v3468_v2 = vsel %vm1205_vm2, %v10269_v16, %v3467_v18  ;;  %10270 = vst [vmem:[#allocation21_spill] sm:$0xff] %v7865_v44  ;;  %v2071_v19 = vadd.f32 %v1892_v40, %v1589_v38  ;;  %v7885_v43 = vmul.f32 %v7179_v10, %v10272_v24  ;;  %v1538_v51 = vmul.f32 %v7195_v23, %v10273_v50 }
 0x1fa   :  { %10271 = vst [vmem:[#allocation29_spill] sm:$0xff] %v7867_v13  ;;  %v1689_v63 = vmul.f32 %v7206_v3, %v10273_v50  ;;  %v7893_v15 = vmul.f32 %v7206_v3, %v10274_v11  ;;  %v9981_v4 = vrot.slane %v7873_v37, 1  ;;  %v1311_v54 = vrot.slane %v1076_v45, 2 }
 0x1fb   :  { %v2553_v52 = vadd.f32 %v2374_v59, %v2071_v19  ;;  %v2171_v36 = vmul.f32 %v7217_v46, %v10273_v50  ;;  %v9980_v58 = vrot.slane %v7885_v43, 2  ;;  %v7902_v20 = vmul.f32 %v7217_v46, %v10274_v11 }
 0x1fc   :  { %v1923_v29 = vrot.slane %v1689_v63, 1  ;;  %v9979_v60 = vrot.slane %v7893_v15, 1  ;;  %v830_v14 = vsel %vm722_vm1, %v828_v48, %v9981_v4  ;;  %v2632_v59 = vmul.f32 %v7366_v7, %v7865_v44 }
 0x1fd   :  { %v2683_v40 = vadd.f32 %v2619_v22, %v2553_v52  ;;  %v2405_v56 = vrot.slane %v2171_v36, 2  ;;  %v989_v33 = vadd.f32 %v830_v14, %v506_v34  ;;  %v1313_v18 = vsel %vm1205_vm2, %v1311_v54, %v9980_v58 }
 0x1fe   :  { %v1925_v22 = vsel %vm722_vm1, %v1923_v29, %v9979_v60  ;;  %v9978_v28 = vrot.slane %v7902_v20, 2  ;;  %v2783_v38 = vmul.f32 %v7373_v6, %v7865_v44  ;;  %v7923_v21 = vmul.f32 %v7373_v6, %v7867_v13  ;;  %v10275_v29 = vld [vmem:[#allocation26_spill] sm:$0xff] }
 0x1ff   :  { %v3165_v49 = vadd.f32 %v2986_v41, %v2683_v40  ;;  %v3265_v47 = vmul.f32 %v7298_v5, %v7865_v44  ;;  %v1472_v34 = vadd.f32 %v1313_v18, %v989_v33  ;;  %v7935_v41 = vmul.f32 %v7298_v5, %v7867_v13 }
 0x200   :  { %v2407_v62 = vsel %vm1205_vm2, %v2405_v56, %v9978_v28  ;;  %v228_v9 = vmul.f32 %v7140_v53, %v115_v27  ;;  %v3017_v16 = vrot.slane %v2783_v38, 1  ;;  %v9976_v19 = vrot.slane %v7923_v21, 1  ;;  %v10277_v38 = vld [vmem:[#allocation2_spill] sm:$0xff]  ;;  %v99_v28 = vld [vmem:[%s9714_s0 + $0x268] sm:$0x3] }
 0x201   :  { %v3647_v61 = vadd.f32 %v3468_v2, %v3165_v49  ;;  %v3499_v48 = vrot.slane %v3265_v47, 2  ;;  %v1602_v45 = vadd.f32 %v1538_v51, %v1472_v34  ;;  %v9975_v63 = vrot.slane %v7935_v41, 2 }
 0x202   :  { %v229_v52 = vmul.f32 %v7140_v53, %v116_v25  ;;  %v339_v54 = vadd.f32 %v7172_v57, %v228_v9  ;;  %v3019_v36 = vsel %vm722_vm1, %v3017_v16, %v9976_v19  ;;  %v518_v2 = vmul.f32 %v7147_v0, %v10275_v29 }
 0x203   :  { %4524 = vmatmul.msk.f32.gmra.mxu1 %vm3683_vm3, %v3647_v61  ;;  %v611_v40 = vmul.f32 %v7158_v8, %v10275_v29  ;;  %v7952_v51 = vmul.f32 %v7158_v8, %v7016_v12  ;;  %v2084_v14 = vadd.f32 %v1925_v22, %v1602_v45  ;;  %v3501_v53 = vsel %vm1205_vm2, %v3499_v48, %v9975_v63 }
 0x204   :  { %v340_v56 = vadd.f32 %v7172_v57, %v229_v52  ;;  %v7958_v27 = vmax.f32 %v339_v54, 0.0  ;;  %v1094_v0 = vmul.f32 %v7179_v10, %v10275_v29  ;;  %v7965_v49 = vmul.f32 %v7179_v10, %v7016_v12 }
 0x205   :  { %v858_v33 = vrot.slane %v611_v40, 1  ;;  %v9974_v18 = vrot.slane %v7952_v51, 1  ;;  %v2566_v8 = vadd.f32 %v2407_v62, %v2084_v14  ;;  %v1550_v47 = vmul.f32 %v7195_v23, %v10277_v38 }
 0x206   :  { %10276 = vst [vmem:[#allocation20_spill] sm:$0xff] %v7958_v27  ;;  %v7967_v22 = vmax.f32 %v340_v56, 0.0  ;;  %v1707_v57 = vmul.f32 %v7206_v3, %v10277_v38  ;;  %v1341_v34 = vrot.slane %v1094_v0, 2  ;;  %v9973_v9 = vrot.slane %v7965_v49, 2 }
 0x207   :  { %v860_v25 = vsel %vm722_vm1, %v858_v33, %v9974_v18  ;;  %v7979_v10 = vmul.f32 %v7206_v3, %v7558_v35  ;;  %v2696_v62 = vadd.f32 %v2632_v59, %v2566_v8  ;;  %v2189_v23 = vmul.f32 %v7217_v46, %v10277_v38  ;;  %v10283_v38 = vld [vmem:[#allocation16_spill] sm:$0xff] }
 0x208   :  { %v1001_v61 = vadd.f32 %v860_v25, %v518_v2  ;;  %v1953_v16 = vrot.slane %v1707_v57, 1  ;;  %v1343_v48 = vsel %vm1205_vm2, %v1341_v34, %v9973_v9  ;;  %v7989_v52 = vmul.f32 %v7217_v46, %v7558_v35  ;;  %v73_v57 = vld [vmem:[%s9714_s0 + $0x198] sm:$0xff]  ;;  %v74_v25 = vld [vmem:[%s9714_s0 + $0x1a0] sm:$0xff] }
 0x209   :  { %v9972_v45 = vrot.slane %v7979_v10, 1  ;;  %v2644_v3 = vmul.f32 %v7366_v7, %v7958_v27  ;;  %v3178_v54 = vadd.f32 %v3019_v36, %v2696_v62  ;;  %v2435_v29 = vrot.slane %v2189_v23, 2 }
 0x20a   :  { %v1484_v59 = vadd.f32 %v1343_v48, %v1001_v61  ;;  %v2801_v2 = vmul.f32 %v7373_v6, %v7958_v27  ;;  %v9971_v14 = vrot.slane %v7989_v52, 2  ;;  %v8001_v56 = vmul.f32 %v7373_v6, %v7967_v22 }
 0x20b   :  { %v1955_v40 = vsel %vm722_vm1, %v1953_v16, %v9972_v45  ;;  %v3283_v46 = vmul.f32 %v7298_v5, %v7958_v27  ;;  %v3660_v33 = vadd.f32 %v3501_v53, %v3178_v54  ;;  %v8007_v8 = vmul.f32 %v7298_v5, %v7967_v22  ;;  %v8034_v54 = vld [vmem:[%s9715_s3] ss:$0 sm:$0xff] }
 0x20c   :  { %v1614_v36 = vadd.f32 %v1550_v47, %v1484_v59  ;;  %v3047_v0 = vrot.slane %v2801_v2, 1  ;;  %v2437_v34 = vsel %vm1205_vm2, %v2435_v29, %v9971_v14  ;;  %v9970_v53 = vrot.slane %v8001_v56, 1  ;;  %v10278_v2 = vld [vmem:[#allocation30_spill] sm:$0xff] }
 0x20d   :  { %v3529_v47 = vrot.slane %v3283_v46, 2  ;;  %v4156_v62 = vsel %vm3683_vm3, %v7869_v31, 0.0  ;;  %4537 = vmatmul.msk.f32.gmra.mxu2 %vm3683_vm3, %v3660_v33  ;;  %v9969_v61 = vrot.slane %v8007_v8, 2  ;;  %v4290_v23 = vmul.f32 %v7869_v31, %v7869_v31 }
 0x20e   :  { %v2096_v5 = vadd.f32 %v1955_v40, %v1614_v36  ;;  %v8024_v16 = vadd.f32 %v4156_v62, %v7799_v17  ;;  %v3049_v48 = vsel %vm722_vm1, %v3047_v0, %v9970_v53  ;;  %v186_v59 = vmul.f32 %v8034_v54, %v73_v57  ;;  %v8041_v17 = vld [vmem:[%s9717_s1] ss:$0 sm:$0xff]  ;;  %v8052_v36 = vld [vmem:[%s9717_s1 + $0x1] ss:$0 sm:$0xff] }
 0x20f   :  { %v187_v29 = vmul.f32 %v8034_v54, %v74_v25  ;;  %v494_v31 = vmul.f32 %v8041_v17, %v10278_v2  ;;  %v3531_v46 = vsel %vm1205_vm2, %v3529_v47, %v9969_v61  ;;  %v4355_v33 = vsel %vm3683_vm3, %v4290_v23, 0.0  ;;  %v8062_v25 = vld [vmem:[%s9716_s4] ss:$0 sm:$0xff] }
 0x210   :  { %v2578_v40 = vadd.f32 %v2437_v34, %v2096_v5  ;;  %v575_v0 = vmul.f32 %v8052_v36, %v10278_v2  ;;  %v8057_v57 = vadd.f32 %v4355_v33, %v7818_v39  ;;  %v297_v34 = vadd.f32 %v8062_v25, %v186_v59  ;;  %v8073_v39 = vld [vmem:[%s9717_s1 + $0x2] ss:$0 sm:$0xff] }
 0x211   :  { %v298_v47 = vadd.f32 %v8062_v25, %v187_v29  ;;  %v8068_v62 = vmul.f32 %v8052_v36, %v7190_v30  ;;  %v1058_v33 = vmul.f32 %v8073_v39, %v10278_v2  ;;  %v8079_v61 = vmul.f32 %v8073_v39, %v7190_v30 }
 0x212   :  { %v2708_v5 = vadd.f32 %v2644_v3, %v2578_v40  ;;  %v798_v23 = vrot.slane %v575_v0, 1  ;;  %v405_v59 = vmax.f32 %v297_v34, 0.0  ;;  %v8087_v3 = vld [vmem:[%s9717_s1 + $0x3] ss:$0 sm:$0xff]  ;;  %v10279_v40 = vld [vmem:[#allocation5_spill] sm:$0xff]  ;;  %v10288_v50 = vrot.slane %v7902_v20, 2 }
 0x213   :  { %v8081_v29 = vmax.f32 %v298_v47, 0.0  ;;  %v9977_v53 = vrot.slane %v8068_v62, 1  ;;  %v1526_v0 = vmul.f32 %v8087_v3, %v10279_v40  ;;  %v1281_v45 = vrot.slane %v1058_v33, 2  ;;  %v8095_v34 = vld [vmem:[%s9717_s1 + $0x4] ss:$0 sm:$0xff] }
 0x214   :  { %v3190_v14 = vadd.f32 %v3049_v48, %v2708_v5  ;;  %v9982_v2 = vrot.slane %v8079_v61, 2  ;;  %v1671_v47 = vmul.f32 %v8095_v34, %v10279_v40  ;;  %v8104_v18 = vmul.f32 %v8095_v34, %v7647_v32  ;;  %v8109_v48 = vld [vmem:[%s9717_s1 + $0x5] ss:$0 sm:$0xff] }
 0x215   :  { %v800_v9 = vsel %vm722_vm1, %v798_v23, %v9977_v53  ;;  %v2153_v5 = vmul.f32 %v8109_v48, %v10279_v40  ;;  %v8115_v33 = vmul.f32 %v8109_v48, %v7647_v32  ;;  %v2620_v4 = vmul.f32 %v7366_v7, %v405_v59 }
 0x216   :  { %v3672_v63 = vadd.f32 %v3531_v46, %v3190_v14  ;;  %v977_v19 = vadd.f32 %v800_v9, %v494_v31  ;;  %v1283_v23 = vsel %vm1205_vm2, %v1281_v45, %v9982_v2  ;;  %v1893_v53 = vrot.slane %v1671_v47, 1  ;;  %v8135_v31 = vld [vmem:[%s9717_s1 + $0x8] ss:$0 sm:$0xff]  ;;  %v8138_v47 = vpop.f32.mrf.mxu0 }
 0x217   :  { %10280 = vst [vmem:[#allocation19_spill] sm:$0xff] %v8115_v33  ;;  %v9983_v60 = vrot.slane %v8104_v18, 1  ;;  %v2375_v58 = vrot.slane %v2153_v5, 2  ;;  %v9986_v40 = vrot.slane %v8115_v33, 2  ;;  %v2765_v9 = vmul.f32 %v7373_v6, %v405_v59 }
 0x218   :  { %4549 = vmatmul.msk.f32.gmra.mxu3 %vm3683_vm3, %v3672_v63  ;;  %v1460_v14 = vadd.f32 %v1283_v23, %v977_v19  ;;  %v8130_v45 = vmul.f32 %v7373_v6, %v8081_v29  ;;  %v3247_v46 = vmul.f32 %v8135_v31, %v405_v59  ;;  %v8148_v5 = vmul.f32 %v8135_v31, %v8081_v29 }
 0x219   :  { %v1895_v63 = vsel %vm722_vm1, %v1893_v53, %v9983_v60  ;;  %v2377_v19 = vsel %vm1205_vm2, %v2375_v58, %v9986_v40  ;;  %v212_v23 = vmul.f32 %v8034_v54, %v99_v28  ;;  %4092 = vst.msk [vmem:[%s9718_s5 + $0x18] sm:$0xff] %vm3683_vm3, %v8138_v47  ;;  %v2987_v2 = vrot.slane %v2765_v9, 1 }
 0x21a   :  { %10281 = vst [vmem:[#allocation15_spill] sm:$0xff] %v8130_v45  ;;  %v1590_v59 = vadd.f32 %v1526_v0, %v1460_v14  ;;  %v9992_v53 = vrot.slane %v8130_v45, 1  ;;  %v3469_v60 = vrot.slane %v3247_v46, 2  ;;  %v9993_v27 = vrot.slane %v8148_v5, 2 }
 0x21b   :  { %10282 = vst [vmem:[#allocation31_spill] sm:$0xff] %v8148_v5  ;;  %v323_v58 = vadd.f32 %v8062_v25, %v212_v23  ;;  %v507_v40 = vmul.f32 %v8041_v17, %v10272_v24  ;;  %v595_v28 = vmul.f32 %v8052_v36, %v10283_v38  ;;  %v1078_v0 = vmul.f32 %v8073_v39, %v10283_v38  ;;  %v10284_v23 = vld [vmem:[#allocation9_spill] sm:$0xff] }
 0x21c   :  { %v2072_v44 = vadd.f32 %v1895_v63, %v1590_v59  ;;  %v2989_v33 = vsel %vm722_vm1, %v2987_v2, %v9992_v53  ;;  %v1539_v14 = vmul.f32 %v8087_v3, %v10274_v11  ;;  %v3471_v9 = vsel %vm1205_vm2, %v3469_v60, %v9993_v27  ;;  %v117_v53 = vld [vmem:[%s9714_s0 + $0x2f8] sm:$0x3] }
 0x21d   :  { %v8173_v46 = vmax.f32 %v323_v58, 0.0  ;;  %v831_v24 = vrot.slane %v595_v28, 1  ;;  %v1691_v63 = vmul.f32 %v8095_v34, %v10284_v23  ;;  %v1314_v45 = vrot.slane %v1078_v0, 2 }
 0x21e   :  { %v2554_v59 = vadd.f32 %v2377_v19, %v2072_v44  ;;  %v2173_v2 = vmul.f32 %v8109_v48, %v10284_v23  ;;  %v2633_v38 = vmul.f32 %v7366_v7, %v7867_v13  ;;  %v10285_v60 = vrot.slane %v7873_v37, 1 }
 0x21f   :  { %v1926_v28 = vrot.slane %v1691_v63, 1  ;;  %v2785_v27 = vmul.f32 %v7373_v6, %v8173_v46  ;;  %v3267_v44 = vmul.f32 %v8135_v31, %v8173_v46  ;;  %v10286_v23 = vrot.slane %v7885_v43, 2 }
 0x220   :  { %v832_v58 = vsel %vm722_vm1, %v10285_v60, %v831_v24  ;;  %v2684_v19 = vadd.f32 %v2620_v4, %v2554_v59  ;;  %v2408_v13 = vrot.slane %v2173_v2, 2  ;;  %v10287_v5 = vrot.slane %v7893_v15, 1 }
 0x221   :  { %v990_v0 = vadd.f32 %v832_v58, %v507_v40  ;;  %v1315_v7 = vsel %vm1205_vm2, %v10286_v23, %v1314_v45  ;;  %v3020_v11 = vrot.slane %v2785_v27, 1  ;;  %v3502_v24 = vrot.slane %v3267_v44, 2 }
 0x222   :  { %v1927_v37 = vsel %vm722_vm1, %v10287_v5, %v1926_v28  ;;  %v230_v63 = vmul.f32 %v8034_v54, %v117_v53  ;;  %v3166_v60 = vadd.f32 %v2989_v33, %v2684_v19  ;;  %v2409_v4 = vsel %vm1205_vm2, %v10288_v50, %v2408_v13  ;;  %v8238_v19 = vld [vmem:[%s9717_s1 + $0x7] ss:$0 sm:$0xff] }
 0x223   :  { %v1473_v6 = vadd.f32 %v1315_v7, %v990_v0  ;;  %v519_v43 = vmul.f32 %v8041_v17, %v7016_v12  ;;  %v10289_v40 = vrot.slane %v7923_v21, 1  ;;  %v10290_v15 = vrot.slane %v7935_v41, 2 }
 0x224   :  { %v341_v5 = vadd.f32 %v8062_v25, %v230_v63  ;;  %v613_v33 = vmul.f32 %v8052_v36, %v7308_v42  ;;  %v3648_v53 = vadd.f32 %v3471_v9, %v3166_v60  ;;  %v1096_v13 = vmul.f32 %v8073_v39, %v7308_v42  ;;  %v8226_v42 = vld [vmem:[%s9717_s1 + $0x6] ss:$0 sm:$0xff]  ;;  %v75_v60 = vld [vmem:[%s9714_s0 + $0x1a8] sm:$0x3] }
 0x225   :  { %v3021_v45 = vsel %vm722_vm1, %v10289_v40, %v3020_v11  ;;  %v3503_v27 = vsel %vm1205_vm2, %v10290_v15, %v3502_v24  ;;  %v1603_v20 = vadd.f32 %v1539_v14, %v1473_v6  ;;  %v1551_v12 = vmul.f32 %v8087_v3, %v7558_v35 }
 0x226   :  { %v8216_v50 = vmax.f32 %v341_v5, 0.0  ;;  %v861_v11 = vrot.slane %v613_v33, 1  ;;  %v1709_v21 = vmul.f32 %v8095_v34, %v7761_v26  ;;  %v2191_v41 = vmul.f32 %v8109_v48, %v7761_v26  ;;  %4525 = vmatmul.msk.f32.gmra.mxu1 %vm3683_vm3, %v3648_v53 }
 0x227   :  { %v2085_v23 = vadd.f32 %v1927_v37, %v1603_v20  ;;  %v1344_v9 = vrot.slane %v1096_v13, 2  ;;  %v2645_v14 = vmul.f32 %v8226_v42, %v7967_v22  ;;  %v4158_v59 = vsel %vm3683_vm3, %v8138_v47, 0.0 }
 0x228   :  { %v10291_v2 = vrot.slane %v7952_v51, 1  ;;  %v1956_v28 = vrot.slane %v1709_v21, 1  ;;  %v2438_v44 = vrot.slane %v2191_v41, 2  ;;  %v2803_v0 = vmul.f32 %v8238_v19, %v8216_v50 }
 0x229   :  { %v2567_v7 = vadd.f32 %v2409_v4, %v2085_v23  ;;  %v10292_v24 = vrot.slane %v7965_v49, 2  ;;  %v3285_v51 = vmul.f32 %v8135_v31, %v8216_v50  ;;  %v10293_v6 = vrot.slane %v7979_v10, 1 }
 0x22a   :  { %v862_v58 = vsel %vm722_vm1, %v10291_v2, %v861_v11  ;;  %v10294_v15 = vrot.slane %v7989_v52, 2  ;;  %v8257_v49 = vadd.f32 %v4158_v59, %v8024_v16  ;;  %v4291_v20 = vmul.f32 %v8138_v47, %v8138_v47 }
 0x22b   :  { %v1002_v37 = vadd.f32 %v862_v58, %v519_v43  ;;  %v1345_v63 = vsel %vm1205_vm2, %v10292_v24, %v1344_v9  ;;  %v1957_v40 = vsel %vm722_vm1, %v10293_v6, %v1956_v28  ;;  %v3050_v43 = vrot.slane %v2803_v0, 1 }
 0x22c   :  { %v2439_v4 = vsel %vm1205_vm2, %v10294_v15, %v2438_v44  ;;  %v2697_v5 = vadd.f32 %v2633_v38, %v2567_v7  ;;  %v3532_v53 = vrot.slane %v3285_v51, 2  ;;  %v10295_v13 = vrot.slane %v8001_v56, 1  ;;  %v10300_v15 = vld [vmem:[#allocation33_spill] sm:$0xff] }
 0x22d   :  { %v1485_v33 = vadd.f32 %v1345_v63, %v1002_v37  ;;  %v188_v11 = vmul.f32 %v8034_v54, %v75_v60  ;;  %v495_v52 = vmul.f32 %v8041_v17, %v7190_v30  ;;  %v577_v21 = vmul.f32 %v8052_v36, %v7413_v55 }
 0x22e   :  { %v3051_v10 = vsel %vm722_vm1, %v10295_v13, %v3050_v43  ;;  %v3179_v16 = vadd.f32 %v3021_v45, %v2697_v5  ;;  %v10296_v38 = vrot.slane %v8007_v8, 2  ;;  %v4357_v47 = vsel %vm3683_vm3, %v4291_v20, 0.0  ;;  %v10301_v43 = vld [vmem:[#allocation19_spill] sm:$0xff] }
 0x22f   :  { %v1615_v41 = vadd.f32 %v1551_v12, %v1485_v33  ;;  %v8274_v56 = vadd.f32 %v4357_v47, %v8057_v57  ;;  %v299_v9 = vadd.f32 %v8062_v25, %v188_v11  ;;  %v801_v59 = vrot.slane %v577_v21, 1 }
 0x230   :  { %v3533_v23 = vsel %vm1205_vm2, %v10296_v38, %v3532_v53  ;;  %v1060_v30 = vmul.f32 %v8073_v39, %v7413_v55  ;;  %v3661_v2 = vadd.f32 %v3503_v27, %v3179_v16  ;;  %v1527_v45 = vmul.f32 %v8087_v3, %v7647_v32 }
 0x231   :  { %v2097_v58 = vadd.f32 %v1957_v40, %v1615_v41  ;;  %v1673_v8 = vmul.f32 %v8095_v34, %v7820_v1  ;;  %v407_v12 = vmax.f32 %v299_v9, 0.0  ;;  %v10297_v28 = vrot.slane %v8068_v62, 1  ;;  %v10306_v41 = vld [vmem:[#allocation31_spill] sm:$0xff] }
 0x232   :  { %v1284_v44 = vrot.slane %v1060_v30, 2  ;;  %v2155_v0 = vmul.f32 %v8109_v48, %v7820_v1  ;;  %4538 = vmatmul.msk.f32.gmra.mxu2 %vm3683_vm3, %v3661_v2  ;;  %v2621_v32 = vmul.f32 %v8226_v42, %v8081_v29  ;;  %v10298_v37 = vrot.slane %v8079_v61, 2  ;;  %v8324_v30 = vpop.f32.mrf.mxu1 }
 0x233   :  { %v802_v57 = vsel %vm722_vm1, %v10297_v28, %v801_v59  ;;  %v2579_v55 = vadd.f32 %v2439_v4, %v2097_v58  ;;  %v1896_v7 = vrot.slane %v1673_v8, 1  ;;  %v2767_v62 = vmul.f32 %v8238_v19, %v407_v12  ;;  %v8322_v59 = vpop.f32.mrf.mxu0  ;;  %v10308_v28 = vld [vmem:[#allocation21_spill] sm:$0xff]  ;;  %4105 = vst.msk [vmem:[%s9718_s5 + $0x80] sm:$0xff] %vm3683_vm3, %v8324_v30 }
 0x234   :  { %v978_v27 = vadd.f32 %v802_v57, %v495_v52  ;;  %v1285_v24 = vsel %vm1205_vm2, %v10298_v37, %v1284_v44  ;;  %v2378_v63 = vrot.slane %v2155_v0, 2  ;;  %v3249_v51 = vmul.f32 %v8135_v31, %v407_v12  ;;  %v10304_v52 = vld [vmem:[#allocation15_spill] sm:$0xff]  ;;  %4093 = vst.msk [vmem:[%s9718_s5 + $0x20] sm:$0xff] %vm3683_vm3, %v8322_v59  ;;  %v10309_v0 = vld [vmem:[#allocation29_spill] sm:$0xff] }
 0x235   :  { %v2709_v60 = vadd.f32 %v2645_v14, %v2579_v55  ;;  %v10299_v1 = vrot.slane %v8104_v18, 1  ;;  %v508_v4 = vmul.f32 %v8041_v17, %v10300_v15  ;;  %v10302_v29 = vrot.slane %v10301_v43, 2  ;;  %v10303_v14 = vld [vmem:[#allocation11_spill] sm:$0xff]  ;;  %v118_v43 = vld [vmem:[%s9714_s0 + $0x300] sm:$0xff] }
 0x236   :  { %v1461_v6 = vadd.f32 %v1285_v24, %v978_v27  ;;  %v2990_v5 = vrot.slane %v2767_v62, 1  ;;  %v3472_v33 = vrot.slane %v3249_v51, 2  ;;  %v596_v53 = vmul.f32 %v8052_v36, %v10300_v15 }
 0x237   :  { %v1897_v40 = vsel %vm722_vm1, %v10299_v1, %v1896_v7  ;;  %v2379_v61 = vsel %vm1205_vm2, %v10302_v29, %v2378_v63  ;;  %v3191_v20 = vadd.f32 %v3051_v10, %v2709_v60  ;;  %v8308_v11 = vmul.f32 %v8052_v36, %v10303_v14 }
 0x238   :  { %v1591_v13 = vadd.f32 %v1527_v45, %v1461_v6  ;;  %v1079_v18 = vmul.f32 %v8073_v39, %v10300_v15  ;;  %v10305_v21 = vrot.slane %v10304_v52, 1  ;;  %v10307_v38 = vrot.slane %v10306_v41, 2 }
 0x239   :  { %v833_v9 = vrot.slane %v596_v53, 1  ;;  %v8320_v10 = vmul.f32 %v8073_v39, %v10303_v14  ;;  %v3673_v2 = vadd.f32 %v3533_v23, %v3191_v20  ;;  %v834_v45 = vrot.slane %v8308_v11, 1 }
 0x23a   :  { %v2991_v16 = vsel %vm722_vm1, %v10305_v21, %v2990_v5  ;;  %v3473_v47 = vsel %vm1205_vm2, %v10307_v38, %v3472_v33  ;;  %v2073_v58 = vadd.f32 %v1897_v40, %v1591_v13  ;;  %v1316_v8 = vrot.slane %v1079_v18, 2  ;;  %v10310_v40 = vld [vmem:[#allocation22_spill] sm:$0xff]  ;;  %v10311_v5 = vld [vmem:[#allocation23_spill] sm:$0xff] }
 0x23b   :  { %v1317_v12 = vrot.slane %v8320_v10, 2  ;;  %v1540_v57 = vmul.f32 %v8087_v3, %v10308_v28  ;;  %v1692_v44 = vmul.f32 %v8095_v34, %v10308_v28  ;;  %v8339_v23 = vmul.f32 %v8095_v34, %v10309_v0  ;;  %4550 = vmatmul.msk.f32.gmra.mxu3 %vm3683_vm3, %v3673_v2  ;;  %v119_v33 = vld [vmem:[%s9714_s0 + $0x308] sm:$0xff] }
 0x23c   :  { %v2555_v55 = vadd.f32 %v2379_v61, %v2073_v58  ;;  %v835_v27 = vsel %vm722_vm1, %v833_v9, %v834_v45  ;;  %v2174_v7 = vmul.f32 %v8109_v48, %v10308_v28  ;;  %v8354_v37 = vmul.f32 %v8109_v48, %v10309_v0 }
 0x23d   :  { %v991_v24 = vadd.f32 %v835_v27, %v508_v4  ;;  %v1318_v63 = vsel %vm1205_vm2, %v1316_v8, %v1317_v12  ;;  %v1928_v62 = vrot.slane %v1692_v44, 1  ;;  %v1929_v51 = vrot.slane %v8339_v23, 1  ;;  %v10312_v27 = vld [vmem:[#allocation2_spill] sm:$0xff] }
 0x23e   :  { %v2685_v60 = vadd.f32 %v2621_v32, %v2555_v55  ;;  %v2410_v6 = vrot.slane %v2174_v7, 2  ;;  %v2411_v1 = vrot.slane %v8354_v37, 2  ;;  %v2634_v15 = vmul.f32 %v8226_v42, %v10310_v40 }
 0x23f   :  { %v1474_v29 = vadd.f32 %v1318_v63, %v991_v24  ;;  %v1930_v4 = vsel %vm722_vm1, %v1928_v62, %v1929_v51  ;;  %v2786_v61 = vmul.f32 %v8238_v19, %v10310_v40  ;;  %v8373_v32 = vmul.f32 %v8238_v19, %v10311_v5 }
 0x240   :  { %v3167_v53 = vadd.f32 %v2991_v16, %v2685_v60  ;;  %v2412_v20 = vsel %vm1205_vm2, %v2410_v6, %v2411_v1  ;;  %v3268_v13 = vmul.f32 %v8135_v31, %v10310_v40  ;;  %v8385_v18 = vmul.f32 %v8135_v31, %v10311_v5 }
 0x241   :  { %v1604_v52 = vadd.f32 %v1540_v57, %v1474_v29  ;;  %v3022_v21 = vrot.slane %v2786_v61, 1  ;;  %v10006_v41 = vrot.slane %v8373_v32, 1  ;;  %v231_v38 = vmul.f32 %v8034_v54, %v118_v43 }
 0x242   :  { %v3649_v9 = vadd.f32 %v3473_v47, %v3167_v53  ;;  %v3504_v2 = vrot.slane %v3268_v13, 2  ;;  %v10000_v16 = vrot.slane %v8385_v18, 2  ;;  %v232_v58 = vmul.f32 %v8034_v54, %v119_v33  ;;  %v10313_v33 = vld [vmem:[#allocation20_spill] sm:$0xff] }
 0x243   :  { %v2086_v8 = vadd.f32 %v1930_v4, %v1604_v52  ;;  %v3024_v44 = vsel %vm722_vm1, %v3022_v21, %v10006_v41  ;;  %v342_v55 = vadd.f32 %v8062_v25, %v231_v38  ;;  %v520_v57 = vmul.f32 %v8041_v17, %v10312_v27 }
 0x244   :  { %4526 = vmatmul.msk.f32.gmra.mxu1 %vm3683_vm3, %v3649_v9  ;;  %v3506_v47 = vsel %vm1205_vm2, %v3504_v2, %v10000_v16  ;;  %v343_v7 = vadd.f32 %v8062_v25, %v232_v58  ;;  %v614_v24 = vmul.f32 %v8052_v36, %v10312_v27  ;;  %v8406_v63 = vmul.f32 %v8052_v36, %v7558_v35 }
 0x245   :  { %v2568_v62 = vadd.f32 %v2412_v20, %v2086_v8  ;;  %v8408_v60 = vmax.f32 %v342_v55, 0.0  ;;  %v1097_v6 = vmul.f32 %v8073_v39, %v10312_v27  ;;  %v8414_v43 = vmul.f32 %v8073_v39, %v7558_v35 }
 0x246   :  { %v8416_v29 = vmax.f32 %v343_v7, 0.0  ;;  %v863_v4 = vrot.slane %v614_v24, 1  ;;  %v10001_v61 = vrot.slane %v8406_v63, 1  ;;  %v1552_v53 = vmul.f32 %v8087_v3, %v10313_v33 }
 0x247   :  { %v2698_v13 = vadd.f32 %v2634_v15, %v2568_v62  ;;  %v1346_v52 = vrot.slane %v1097_v6, 2  ;;  %v10005_v20 = vrot.slane %v8414_v43, 2  ;;  %v1710_v21 = vmul.f32 %v8095_v34, %v10313_v33 }
 0x248   :  { %v865_v38 = vsel %vm722_vm1, %v863_v4, %v10001_v61  ;;  %v8429_v9 = vmul.f32 %v8095_v34, %v7967_v22  ;;  %v2192_v2 = vmul.f32 %v8109_v48, %v10313_v33  ;;  %v8435_v15 = vmul.f32 %v8109_v48, %v7967_v22 }
 0x249   :  { %v3180_v58 = vadd.f32 %v3024_v44, %v2698_v13  ;;  %v1003_v8 = vadd.f32 %v865_v38, %v520_v57  ;;  %v1348_v55 = vsel %vm1205_vm2, %v1346_v52, %v10005_v20  ;;  %v1958_v27 = vrot.slane %v1710_v21, 1  ;;  %v8463_v38 = vpop.f32.mrf.mxu0 }
 0x24a   :  { %v10003_v7 = vrot.slane %v8429_v9, 1  ;;  %v2440_v24 = vrot.slane %v2192_v2, 2  ;;  %v10002_v62 = vrot.slane %v8435_v15, 2  ;;  %v2804_v16 = vmul.f32 %v8238_v19, %v8408_v60  ;;  %v8465_v2 = vpop.f32.mrf.mxu1  ;;  %4094 = vst.msk [vmem:[%s9718_s5 + $0x28] sm:$0xff] %vm3683_vm3, %v8463_v38 }
 0x24b   :  { %v3662_v6 = vadd.f32 %v3506_v47, %v3180_v58  ;;  %v1486_v4 = vadd.f32 %v1348_v55, %v1003_v8  ;;  %v8446_v61 = vmul.f32 %v8238_v19, %v8416_v29  ;;  %v3286_v57 = vmul.f32 %v8135_v31, %v8408_v60  ;;  %4106 = vst.msk [vmem:[%s9718_s5 + $0x88] sm:$0xff] %vm3683_vm3, %v8465_v2 }
 0x24c   :  { %v1960_v44 = vsel %vm722_vm1, %v1958_v27, %v10003_v7  ;;  %v8455_v13 = vmul.f32 %v8135_v31, %v8416_v29  ;;  %v2442_v52 = vsel %vm1205_vm2, %v2440_v24, %v10002_v62  ;;  %v4160_v21 = vsel %vm3683_vm3, %v8322_v59, 0.0 }
 0x24d   :  { %4539 = vmatmul.msk.f32.gmra.mxu2 %vm3683_vm3, %v3662_v6  ;;  %v1616_v47 = vadd.f32 %v1552_v53, %v1486_v4  ;;  %v3052_v58 = vrot.slane %v2804_v16, 1  ;;  %v10004_v8 = vrot.slane %v8446_v61, 1  ;;  %v8469_v55 = vadd.f32 %v4160_v21, %v8257_v49 }
 0x24e   :  { %v4292_v53 = vmul.f32 %v8322_v59, %v8322_v59  ;;  %v2646_v24 = vmul.f32 %v8226_v42, %v8408_v60  ;;  %v3534_v6 = vrot.slane %v3286_v57, 2  ;;  %v10007_v16 = vrot.slane %v8455_v13, 2  ;;  %v10314_v59 = vld [vmem:[#allocation9_spill] sm:$0xff] }
 0x24f   :  { %v2098_v27 = vadd.f32 %v1960_v44, %v1616_v47  ;;  %v598_v4 = vmul.f32 %v8052_v36, %v10314_v59  ;;  %v509_v57 = vmul.f32 %v8041_v17, %v10303_v14  ;;  %v1081_v47 = vmul.f32 %v8073_v39, %v10314_v59 }
 0x250   :  { %v4359_v49 = vsel %vm3683_vm3, %v4292_v53, 0.0  ;;  %v3054_v62 = vsel %vm722_vm1, %v3052_v58, %v10004_v8  ;;  %v1694_v53 = vmul.f32 %v8095_v34, %v8173_v46  ;;  %v120_v58 = vld [vmem:[%s9714_s0 + $0x310] sm:$0x3]  ;;  %v521_v23 = vmul.f32 %v8041_v17, %v7558_v35 }
 0x251   :  { %v2580_v21 = vadd.f32 %v2442_v52, %v2098_v27  ;;  %v8490_v44 = vadd.f32 %v4359_v49, %v8274_v56  ;;  %v836_v7 = vrot.slane %v598_v4, 1  ;;  %v2176_v52 = vmul.f32 %v8109_v48, %v8173_v46  ;;  %v10315_v49 = vld [vmem:[#allocation34_spill] sm:$0xff] }
 0x252   :  { %v3536_v56 = vsel %vm1205_vm2, %v3534_v6, %v10007_v16  ;;  %v1319_v14 = vrot.slane %v1081_v47, 2  ;;  %v2788_v59 = vmul.f32 %v8238_v19, %v10315_v49  ;;  %v1931_v8 = vrot.slane %v1694_v53, 1 }
 0x253   :  { %v2710_v27 = vadd.f32 %v2646_v24, %v2580_v21  ;;  %v837_v4 = vsel %vm722_vm1, %v834_v45, %v836_v7  ;;  %v2413_v20 = vrot.slane %v2176_v52, 2  ;;  %v3270_v24 = vmul.f32 %v8135_v31, %v10315_v49 }
 0x254   :  { %v992_v41 = vadd.f32 %v837_v4, %v509_v57  ;;  %v1320_v6 = vsel %vm1205_vm2, %v1317_v12, %v1319_v14  ;;  %v1541_v47 = vmul.f32 %v8087_v3, %v10309_v0  ;;  %v2635_v16 = vmul.f32 %v8226_v42, %v10311_v5 }
 0x255   :  { %v3192_v21 = vadd.f32 %v3054_v62, %v2710_v27  ;;  %v3025_v11 = vrot.slane %v2788_v59, 1  ;;  %v233_v45 = vmul.f32 %v8034_v54, %v120_v58  ;;  %v1932_v62 = vsel %vm722_vm1, %v1929_v51, %v1931_v8 }
 0x256   :  { %v1475_v53 = vadd.f32 %v1320_v6, %v992_v41  ;;  %v2414_v10 = vsel %vm1205_vm2, %v2411_v1, %v2413_v20  ;;  %v3507_v12 = vrot.slane %v3270_v24, 2  ;;  %v616_v52 = vmul.f32 %v8052_v36, %v7761_v26 }
 0x257   :  { %v3674_v7 = vadd.f32 %v3536_v56, %v3192_v21  ;;  %v344_v57 = vadd.f32 %v8062_v25, %v233_v45  ;;  %v1099_v27 = vmul.f32 %v8073_v39, %v7761_v26  ;;  %v1712_v37 = vmul.f32 %v8095_v34, %v8216_v50 }
 0x258   :  { %v1605_v41 = vadd.f32 %v1541_v47, %v1475_v53  ;;  %v2194_v51 = vmul.f32 %v8109_v48, %v8216_v50  ;;  %v10316_v1 = vrot.slane %v8373_v32, 1  ;;  %v866_v56 = vrot.slane %v616_v52, 1 }
 0x259   :  { %4551 = vmatmul.msk.f32.gmra.mxu3 %vm3683_vm3, %v3674_v7  ;;  %v8545_v8 = vmax.f32 %v344_v57, 0.0  ;;  %v1349_v26 = vrot.slane %v1099_v27, 2  ;;  %v1961_v59 = vrot.slane %v1712_v37, 1  ;;  %v4162_v35 = vsel %vm3683_vm3, %v8463_v38, 0.0 }
 0x25a   :  { %v3026_v20 = vsel %vm722_vm1, %v10316_v1, %v3025_v11  ;;  %v2087_v14 = vadd.f32 %v1932_v62, %v1605_v41  ;;  %v2443_v58 = vrot.slane %v2194_v51, 2  ;;  %v10317_v4 = vrot.slane %v8406_v63, 1 }
 0x25b   :  { %v10318_v21 = vrot.slane %v8414_v43, 2  ;;  %v2806_v6 = vmul.f32 %v8238_v19, %v8545_v8  ;;  %v3288_v47 = vmul.f32 %v8135_v31, %v8545_v8  ;;  %v10319_v45 = vrot.slane %v8385_v18, 2 }
 0x25c   :  { %v867_v24 = vsel %vm722_vm1, %v10317_v4, %v866_v56  ;;  %v2569_v11 = vadd.f32 %v2414_v10, %v2087_v14  ;;  %v1553_v63 = vmul.f32 %v8087_v3, %v7967_v22  ;;  %v8565_v43 = vadd.f32 %v4162_v35, %v8469_v55 }
 0x25d   :  { %v1350_v32 = vsel %vm1205_vm2, %v10318_v21, %v1349_v26  ;;  %v3508_v7 = vsel %vm1205_vm2, %v10319_v45, %v3507_v12  ;;  %v1004_v53 = vadd.f32 %v867_v24, %v521_v23  ;;  %v3055_v62 = vrot.slane %v2806_v6, 1 }
 0x25e   :  { %v3537_v57 = vrot.slane %v3288_v47, 2  ;;  %v4293_v52 = vmul.f32 %v8463_v38, %v8463_v38  ;;  %v2699_v27 = vadd.f32 %v2635_v16, %v2569_v11  ;;  %v10320_v10 = vrot.slane %v8429_v9, 1 }
 0x25f   :  { %v1487_v41 = vadd.f32 %v1350_v32, %v1004_v53  ;;  %v2647_v12 = vmul.f32 %v8226_v42, %v8416_v29  ;;  %v10321_v23 = vrot.slane %v8435_v15, 2  ;;  %v10322_v51 = vrot.slane %v8446_v61, 1 }
 0x260   :  { %v1962_v18 = vsel %vm722_vm1, %v10320_v10, %v1961_v59  ;;  %v10323_v1 = vrot.slane %v8455_v13, 2  ;;  %v4361_v16 = vsel %vm3683_vm3, %v4293_v52, 0.0  ;;  %v3181_v9 = vadd.f32 %v3026_v20, %v2699_v27  ;;  %v8601_v59 = vpop.f32.mrf.mxu0 }
 0x261   :  { %v2444_v37 = vsel %vm1205_vm2, %v10321_v23, %v2443_v58  ;;  %v3056_v55 = vsel %vm722_vm1, %v10322_v51, %v3055_v62  ;;  %v1617_v56 = vadd.f32 %v1553_v63, %v1487_v41  ;;  %v8585_v26 = vadd.f32 %v4361_v16, %v8490_v44  ;;  %v8603_v44 = vpop.f32.mrf.mxu1  ;;  %4095 = vst.msk [vmem:[%s9718_s5 + $0x30] sm:$0xff] %vm3683_vm3, %v8601_v59 }
 0x262   :  { %v3538_v38 = vsel %vm1205_vm2, %v10323_v1, %v3537_v57  ;;  %v510_v15 = vmul.f32 %v8041_v17, %v10308_v28  ;;  %v599_v14 = vmul.f32 %v8052_v36, %v10308_v28  ;;  %v8593_v61 = vmul.f32 %v8052_v36, %v10309_v0  ;;  %4107 = vst.msk [vmem:[%s9718_s5 + $0x90] sm:$0xff] %vm3683_vm3, %v8603_v44  ;;  %v10324_v57 = vld [vmem:[#allocation24_spill] sm:$0xff] }
 0x263   :  { %v1082_v13 = vmul.f32 %v8073_v39, %v10308_v28  ;;  %v8599_v20 = vmul.f32 %v8073_v39, %v10309_v0  ;;  %v3663_v58 = vadd.f32 %v3508_v7, %v3181_v9  ;;  %v2099_v35 = vadd.f32 %v1962_v18, %v1617_v56 }
 0x264   :  { %v1542_v4 = vmul.f32 %v8087_v3, %v10310_v40  ;;  %v1695_v24 = vmul.f32 %v8095_v34, %v10310_v40  ;;  %v838_v28 = vrot.slane %v599_v14, 1  ;;  %v839_v21 = vrot.slane %v8593_v61, 1  ;;  %v122_v14 = vld [vmem:[%s9714_s0 + $0x320] sm:$0xff] }
 0x265   :  { %v1321_v32 = vrot.slane %v1082_v13, 2  ;;  %v1322_v6 = vrot.slane %v8599_v20, 2  ;;  %4540 = vmatmul.msk.f32.gmra.mxu2 %vm3683_vm3, %v3663_v58  ;;  %v2581_v47 = vadd.f32 %v2444_v37, %v2099_v35  ;;  %v8624_v11 = vmul.f32 %v8095_v34, %v10311_v5  ;;  %v10325_v37 = vld [vmem:[#allocation14_spill] sm:$0xff] }
 0x266   :  { %v1933_v45 = vrot.slane %v1695_v24, 1  ;;  %v2177_v7 = vmul.f32 %v8109_v48, %v10310_v40  ;;  %v840_v53 = vsel %vm722_vm1, %v838_v28, %v839_v21  ;;  %v8636_v62 = vmul.f32 %v8109_v48, %v10311_v5 }
 0x267   :  { %v1323_v63 = vsel %vm1205_vm2, %v1321_v32, %v1322_v6  ;;  %v2636_v52 = vmul.f32 %v8226_v42, %v10324_v57  ;;  %v2711_v27 = vadd.f32 %v2647_v12, %v2581_v47  ;;  %v993_v41 = vadd.f32 %v840_v53, %v510_v15  ;;  %v121_v12 = vld [vmem:[%s9714_s0 + $0x318] sm:$0xff] }
 0x268   :  { %v1934_v10 = vrot.slane %v8624_v11, 1  ;;  %v2415_v40 = vrot.slane %v2177_v7, 2  ;;  %v10015_v18 = vrot.slane %v8636_v62, 2  ;;  %v2789_v23 = vmul.f32 %v8238_v19, %v10324_v57 }
 0x269   :  { %v8646_v51 = vmul.f32 %v8238_v19, %v10325_v37  ;;  %v3271_v1 = vmul.f32 %v8135_v31, %v10324_v57  ;;  %v3193_v16 = vadd.f32 %v3056_v55, %v2711_v27  ;;  %v1476_v9 = vadd.f32 %v1323_v63, %v993_v41 }
 0x26a   :  { %v1935_v56 = vsel %vm722_vm1, %v1933_v45, %v1934_v10  ;;  %v8658_v15 = vmul.f32 %v8135_v31, %v10325_v37  ;;  %v2417_v13 = vsel %vm1205_vm2, %v2415_v40, %v10015_v18  ;;  %v3027_v58 = vrot.slane %v2789_v23, 1 }
 0x26b   :  { %v10014_v55 = vrot.slane %v8646_v51, 1  ;;  %v3509_v35 = vrot.slane %v3271_v1, 2  ;;  %v3675_v24 = vadd.f32 %v3538_v38, %v3193_v16  ;;  %v1606_v28 = vadd.f32 %v1542_v4, %v1476_v9 }
 0x26c   :  { %v10008_v32 = vrot.slane %v8658_v15, 2  ;;  %v234_v47 = vmul.f32 %v8034_v54, %v121_v12  ;;  %v235_v7 = vmul.f32 %v8034_v54, %v122_v14  ;;  %v522_v53 = vmul.f32 %v8041_v17, %v10313_v33 }
 0x26d   :  { %v3029_v45 = vsel %vm722_vm1, %v3027_v58, %v10014_v55  ;;  %v617_v63 = vmul.f32 %v8052_v36, %v10313_v33  ;;  %4552 = vmatmul.msk.f32.gmra.mxu3 %vm3683_vm3, %v3675_v24  ;;  %v2088_v38 = vadd.f32 %v1935_v56, %v1606_v28  ;;  %v8684_v27 = vmul.f32 %v8052_v36, %v7967_v22 }
 0x26e   :  { %v3511_v4 = vsel %vm1205_vm2, %v3509_v35, %v10008_v32  ;;  %v345_v57 = vadd.f32 %v8062_v25, %v234_v47  ;;  %v346_v41 = vadd.f32 %v8062_v25, %v235_v7  ;;  %v1100_v23 = vmul.f32 %v8073_v39, %v10313_v33 }
 0x26f   :  { %v868_v40 = vrot.slane %v617_v63, 1  ;;  %v8691_v1 = vmul.f32 %v8073_v39, %v7967_v22  ;;  %v2570_v12 = vadd.f32 %v2417_v13, %v2088_v38  ;;  %v10013_v9 = vrot.slane %v8684_v27, 1 }
 0x270   :  { %v8693_v16 = vmax.f32 %v345_v57, 0.0  ;;  %v1554_v56 = vmul.f32 %v8087_v3, %v8408_v60  ;;  %v8698_v14 = vmax.f32 %v346_v41, 0.0  ;;  %v1351_v58 = vrot.slane %v1100_v23, 2 }
 0x271   :  { %v10011_v35 = vrot.slane %v8691_v1, 2  ;;  %v1713_v33 = vmul.f32 %v8095_v34, %v8408_v60  ;;  %v2700_v24 = vadd.f32 %v2636_v52, %v2570_v12  ;;  %v870_v13 = vsel %vm722_vm1, %v868_v40, %v10013_v9 }
 0x272   :  { %v8708_v28 = vmul.f32 %v8095_v34, %v8416_v29  ;;  %v2195_v47 = vmul.f32 %v8109_v48, %v8408_v60  ;;  %v1005_v7 = vadd.f32 %v870_v13, %v522_v53  ;;  %v8717_v52 = vmul.f32 %v8109_v48, %v8416_v29 }
 0x273   :  { %v1353_v63 = vsel %vm1205_vm2, %v1351_v58, %v10011_v35  ;;  %v1963_v38 = vrot.slane %v1713_v33, 1  ;;  %v3182_v57 = vadd.f32 %v3029_v45, %v2700_v24  ;;  %v2807_v32 = vmul.f32 %v8238_v19, %v8693_v16 }
 0x274   :  { %v10009_v41 = vrot.slane %v8708_v28, 1  ;;  %v2445_v40 = vrot.slane %v2195_v47, 2  ;;  %v1488_v23 = vadd.f32 %v1353_v63, %v1005_v7  ;;  %v10010_v12 = vrot.slane %v8717_v52, 2  ;;  %v8743_v63 = vpop.f32.mrf.mxu1 }
 0x275   :  { %v8725_v53 = vmul.f32 %v8238_v19, %v8698_v14  ;;  %v3664_v58 = vadd.f32 %v3511_v4, %v3182_v57  ;;  %v3289_v45 = vmul.f32 %v8135_v31, %v8693_v16  ;;  %v8734_v24 = vmul.f32 %v8135_v31, %v8698_v14  ;;  %v8741_v4 = vpop.f32.mrf.mxu0  ;;  %4108 = vst.msk [vmem:[%s9718_s5 + $0x98] sm:$0xff] %vm3683_vm3, %v8743_v63 }
 0x276   :  { %v1965_v33 = vsel %vm722_vm1, %v1963_v38, %v10009_v41  ;;  %v1618_v13 = vadd.f32 %v1554_v56, %v1488_v23  ;;  %v2447_v47 = vsel %vm1205_vm2, %v2445_v40, %v10010_v12  ;;  %v2648_v7 = vmul.f32 %v8226_v42, %v8693_v16  ;;  %4096 = vst.msk [vmem:[%s9718_s5 + $0x38] sm:$0xff] %vm3683_vm3, %v8741_v4 }
 0x277   :  { %4541 = vmatmul.msk.f32.gmra.mxu2 %vm3683_vm3, %v3664_v58  ;;  %v3057_v38 = vrot.slane %v2807_v32, 1  ;;  %v10012_v57 = vrot.slane %v8725_v53, 1  ;;  %v4164_v41 = vsel %vm3683_vm3, %v8601_v59, 0.0  ;;  %v4294_v56 = vmul.f32 %v8601_v59, %v8601_v59 }
 0x278   :  { %v2100_v40 = vadd.f32 %v1965_v33, %v1618_v13  ;;  %v3539_v23 = vrot.slane %v3289_v45, 2  ;;  %v3540_v12 = vrot.slane %v8734_v24, 2  ;;  %v8758_v32 = vadd.f32 %v4164_v41, %v8565_v43 }
 0x279   :  { %v4363_v59 = vsel %vm3683_vm3, %v4294_v56, 0.0  ;;  %v601_v33 = vmul.f32 %v8052_v36, %v8173_v46  ;;  %v1084_v45 = vmul.f32 %v8073_v39, %v8173_v46  ;;  %v3059_v43 = vsel %vm722_vm1, %v3057_v38, %v10012_v57 }
 0x27a   :  { %v2582_v58 = vadd.f32 %v2447_v47, %v2100_v40  ;;  %v8767_v35 = vadd.f32 %v4363_v59, %v8585_v26  ;;  %v511_v41 = vmul.f32 %v8041_v17, %v10309_v0  ;;  %v1697_v13 = vmul.f32 %v8095_v34, %v10315_v49  ;;  %v123_v47 = vld [vmem:[%s9714_s0 + $0x328] sm:$0x3] }
 0x27b   :  { %v2179_v26 = vmul.f32 %v8109_v48, %v10315_v49  ;;  %v3541_v46 = vsel %vm1205_vm2, %v3539_v23, %v3540_v12  ;;  %v841_v40 = vrot.slane %v601_v33, 1  ;;  %v1324_v38 = vrot.slane %v1084_v45, 2  ;;  %v10326_v0 = vld [vmem:[#allocation35_spill] sm:$0xff] }
 0x27c   :  { %v2712_v56 = vadd.f32 %v2648_v7, %v2582_v58  ;;  %v1936_v59 = vrot.slane %v1697_v13, 1  ;;  %v2791_v9 = vmul.f32 %v8238_v19, %v10326_v0  ;;  %v3273_v55 = vmul.f32 %v8135_v31, %v10326_v0 }
 0x27d   :  { %v2418_v57 = vrot.slane %v2179_v26, 2  ;;  %v842_v18 = vsel %vm722_vm1, %v839_v21, %v841_v40  ;;  %v1325_v7 = vsel %vm1205_vm2, %v1322_v6, %v1324_v38  ;;  %v236_v23 = vmul.f32 %v8034_v54, %v123_v47 }
 0x27e   :  { %v3194_v49 = vadd.f32 %v3059_v43, %v2712_v56  ;;  %v994_v58 = vadd.f32 %v842_v18, %v511_v41  ;;  %v1543_v33 = vmul.f32 %v8087_v3, %v10311_v5  ;;  %v2637_v45 = vmul.f32 %v8226_v42, %v10325_v37  ;;  %v8814_v37 = vpop.f32.mrf.mxu0  ;;  %v8816_v41 = vpop.f32.mrf.mxu1 }
 0x27f   :  { %v1937_v61 = vsel %vm722_vm1, %v1934_v10, %v1936_v59  ;;  %v3030_v43 = vrot.slane %v2791_v9, 1  ;;  %v347_v21 = vadd.f32 %v8062_v25, %v236_v23  ;;  %v10327_v6 = vrot.slane %v8636_v62, 2  ;;  %4097 = vst.msk [vmem:[%s9718_s5 + $0x40] sm:$0xff] %vm3683_vm3, %v8814_v37 }
 0x280   :  { %v3676_v13 = vadd.f32 %v3541_v46, %v3194_v49  ;;  %v1477_v20 = vadd.f32 %v1325_v7, %v994_v58  ;;  %v619_v18 = vmul.f32 %v8052_v36, %v8216_v50  ;;  %v1102_v5 = vmul.f32 %v8073_v39, %v8216_v50  ;;  %v8830_v50 = vpop.f32.mrf.mxu2  ;;  %4109 = vst.msk [vmem:[%s9718_s5 + $0xa0] sm:$0xff] %vm3683_vm3, %v8816_v41 }
 0x281   :  { %v2419_v26 = vsel %vm1205_vm2, %v10327_v6, %v2418_v57  ;;  %v3512_v11 = vrot.slane %v3273_v55, 2  ;;  %v8819_v10 = vmax.f32 %v347_v21, 0.0  ;;  %v523_v62 = vmul.f32 %v8041_v17, %v7967_v22  ;;  %4121 = vst.msk [vmem:[%s9718_s5 + $0x100] sm:$0xff] %vm3683_vm3, %v8830_v50  ;;  %v124_v21 = vld [vmem:[%s9714_s0 + $0x330] sm:$0xff] }
 0x282   :  { %4553 = vmatmul.msk.f32.gmra.mxu3 %vm3683_vm3, %v3676_v13  ;;  %v1715_v9 = vmul.f32 %v8095_v34, %v8545_v8  ;;  %v1607_v57 = vadd.f32 %v1543_v33, %v1477_v20  ;;  %v871_v47 = vrot.slane %v619_v18, 1  ;;  %v1354_v56 = vrot.slane %v1102_v5, 2 }
 0x283   :  { %v2197_v55 = vmul.f32 %v8109_v48, %v8545_v8  ;;  %v10328_v22 = vrot.slane %v8646_v51, 1  ;;  %v2809_v40 = vmul.f32 %v8238_v19, %v8819_v10  ;;  %v3291_v38 = vmul.f32 %v8135_v31, %v8819_v10 }
 0x284   :  { %v1966_v46 = vrot.slane %v1715_v9, 1  ;;  %v2089_v48 = vadd.f32 %v1937_v61, %v1607_v57  ;;  %v10329_v59 = vrot.slane %v8684_v27, 1  ;;  %v10330_v0 = vrot.slane %v8691_v1, 2 }
 0x285   :  { %v3031_v17 = vsel %vm722_vm1, %v10328_v22, %v3030_v43  ;;  %v2448_v7 = vrot.slane %v2197_v55, 2  ;;  %v10331_v23 = vrot.slane %v8658_v15, 2  ;;  %v1555_v33 = vmul.f32 %v8087_v3, %v8416_v29  ;;  %v125_v15 = vld [vmem:[%s9714_s0 + $0x338] sm:$0xff]  ;;  %v8903_v55 = vld [vmem:[%s9717_s1] ss:$0 sm:$0xff] }
 0x286   :  { %v872_v51 = vsel %vm722_vm1, %v10329_v59, %v871_v47  ;;  %v1355_v49 = vsel %vm1205_vm2, %v10330_v0, %v1354_v56  ;;  %v3060_v13 = vrot.slane %v2809_v40, 1  ;;  %v2571_v43 = vadd.f32 %v2419_v26, %v2089_v48 }
 0x287   :  { %v3513_v31 = vsel %vm1205_vm2, %v10331_v23, %v3512_v11  ;;  %v1006_v58 = vadd.f32 %v872_v51, %v523_v62  ;;  %v3542_v61 = vrot.slane %v3291_v38, 2  ;;  %v4166_v27 = vsel %vm3683_vm3, %v8741_v4, 0.0 }
 0x288   :  { %v4295_v1 = vmul.f32 %v8741_v4, %v8741_v4  ;;  %v10332_v3 = vrot.slane %v8708_v28, 1  ;;  %v2649_v26 = vmul.f32 %v8226_v42, %v8698_v14  ;;  %v8878_v18 = vadd.f32 %v4166_v27, %v8758_v32  ;;  %v8894_v32 = vld [vmem:[%s9715_s3] ss:$0 sm:$0xff] }
 0x289   :  { %v1489_v20 = vadd.f32 %v1355_v49, %v1006_v58  ;;  %v2701_v4 = vadd.f32 %v2637_v45, %v2571_v43  ;;  %v10333_v5 = vrot.slane %v8717_v52, 2  ;;  %v10334_v62 = vrot.slane %v8725_v53, 1  ;;  %v8944_v58 = vpop.f32.mrf.mxu1  ;;  %v8952_v43 = vld [vmem:[%s9717_s1 + $0x4] ss:$0 sm:$0xff] }
 0x28a   :  { %v1967_v6 = vsel %vm722_vm1, %v10332_v3, %v1966_v46  ;;  %v4365_v57 = vsel %vm3683_vm3, %v4295_v1, 0.0  ;;  %v237_v56 = vmul.f32 %v8034_v54, %v124_v21  ;;  %v238_v52 = vmul.f32 %v8894_v32, %v125_v15  ;;  %v8970_v1 = vpop.f32.mrf.mxu2  ;;  %4110 = vst.msk [vmem:[%s9718_s5 + $0xa8] sm:$0xff] %vm3683_vm3, %v8944_v58 }
 0x28b   :  { %v2449_v11 = vsel %vm1205_vm2, %v10333_v5, %v2448_v7  ;;  %v3061_v9 = vsel %vm722_vm1, %v10334_v62, %v3060_v13  ;;  %v1619_v28 = vadd.f32 %v1555_v33, %v1489_v20  ;;  %v8888_v47 = vadd.f32 %v4365_v57, %v8767_v35  ;;  %4122 = vst.msk [vmem:[%s9718_s5 + $0x108] sm:$0xff] %vm3683_vm3, %v8970_v1 }
 0x28c   :  { %v3183_v45 = vadd.f32 %v3031_v17, %v2701_v4  ;;  %v3543_v53 = vsel %vm1205_vm2, %v3540_v12, %v3542_v61  ;;  %v524_v54 = vmul.f32 %v8903_v55, %v8408_v60  ;;  %v620_v35 = vmul.f32 %v8052_v36, %v8408_v60  ;;  %v8914_v12 = vld [vmem:[%s9717_s1 + $0x1] ss:$0 sm:$0xff] }
 0x28d   :  { %v2101_v22 = vadd.f32 %v1967_v6, %v1619_v28  ;;  %v348_v46 = vadd.f32 %v8062_v25, %v237_v56  ;;  %v349_v17 = vadd.f32 %v8062_v25, %v238_v52  ;;  %v8918_v24 = vmul.f32 %v8914_v12, %v8416_v29  ;;  %v9003_v56 = vld [vmem:[%s9717_s1 + $0x8] ss:$0 sm:$0xff] }
 0x28e   :  { %v3665_v40 = vadd.f32 %v3513_v31, %v3183_v45  ;;  %v873_v38 = vrot.slane %v620_v35, 1  ;;  %v1103_v48 = vmul.f32 %v8073_v39, %v8408_v60  ;;  %v8924_v36 = vmul.f32 %v8073_v39, %v8416_v29  ;;  %v8936_v60 = vld [vmem:[%s9717_s1 + $0x3] ss:$0 sm:$0xff]  ;;  %v8942_v31 = vpop.f32.mrf.mxu0 }
 0x28f   :  { %v2583_v59 = vadd.f32 %v2449_v11, %v2101_v22  ;;  %v8926_v25 = vmax.f32 %v348_v46, 0.0  ;;  %v8928_v51 = vmax.f32 %v349_v17, 0.0  ;;  %v874_v0 = vrot.slane %v8918_v24, 1  ;;  %4098 = vst.msk [vmem:[%s9718_s5 + $0x48] sm:$0xff] %vm3683_vm3, %v8942_v31 }
 0x290   :  { %4542 = vmatmul.msk.f32.gmra.mxu2 %vm3683_vm3, %v3665_v40  ;;  %v1356_v49 = vrot.slane %v1103_v48, 2  ;;  %v1357_v7 = vrot.slane %v8924_v36, 2  ;;  %v1556_v39 = vmul.f32 %v8936_v60, %v8693_v16  ;;  %v1716_v23 = vmul.f32 %v8095_v34, %v8693_v16  ;;  %v8961_v34 = vld [vmem:[%s9717_s1 + $0x5] ss:$0 sm:$0xff] }
 0x291   :  { %v2713_v33 = vadd.f32 %v2649_v26, %v2583_v59  ;;  %v875_v13 = vsel %vm722_vm1, %v873_v38, %v874_v0  ;;  %v8956_v61 = vmul.f32 %v8952_v43, %v8698_v14  ;;  %v2198_v27 = vmul.f32 %v8961_v34, %v8693_v16  ;;  %v126_v38 = vld [vmem:[%s9714_s0 + $0x340] sm:$0x3] }
 0x292   :  { %v1007_v21 = vadd.f32 %v875_v13, %v524_v54  ;;  %v1358_v15 = vsel %vm1205_vm2, %v1356_v49, %v1357_v7  ;;  %v1968_v20 = vrot.slane %v1716_v23, 1  ;;  %v8977_v3 = vmul.f32 %v8961_v34, %v8698_v14 }
 0x293   :  { %v3195_v6 = vadd.f32 %v3061_v9, %v2713_v33  ;;  %v1969_v26 = vrot.slane %v8956_v61, 1  ;;  %v2450_v4 = vrot.slane %v2198_v27, 2  ;;  %v2810_v62 = vmul.f32 %v8238_v19, %v8926_v25 }
 0x294   :  { %v1490_v5 = vadd.f32 %v1358_v15, %v1007_v21  ;;  %v2451_v11 = vrot.slane %v8977_v3, 2  ;;  %v8995_v57 = vmul.f32 %v8238_v19, %v8928_v51  ;;  %v3292_v52 = vmul.f32 %v9003_v56, %v8926_v25  ;;  %v9036_v21 = vld [vmem:[%s9717_s1 + $0x2] ss:$0 sm:$0xff] }
 0x295   :  { %v3677_v9 = vadd.f32 %v3543_v53, %v3195_v6  ;;  %v1970_v28 = vsel %vm722_vm1, %v1968_v20, %v1969_v26  ;;  %v9009_v45 = vmul.f32 %v9003_v56, %v8928_v51  ;;  %v2650_v35 = vmul.f32 %v8226_v42, %v8926_v25  ;;  %v9042_v20 = vpop.f32.mrf.mxu1 }
 0x296   :  { %v1620_v54 = vadd.f32 %v1556_v39, %v1490_v5  ;;  %v2452_v53 = vsel %vm1205_vm2, %v2450_v4, %v2451_v11  ;;  %v3062_v22 = vrot.slane %v2810_v62, 1  ;;  %v3063_v46 = vrot.slane %v8995_v57, 1  ;;  %v9040_v15 = vpop.f32.mrf.mxu0  ;;  %v9048_v4 = vld [vmem:[%s9716_s4] ss:$0 sm:$0xff]  ;;  %4111 = vst.msk [vmem:[%s9718_s5 + $0xb0] sm:$0xff] %vm3683_vm3, %v9042_v20 }
 0x297   :  { %4554 = vmatmul.msk.f32.gmra.mxu3 %vm3683_vm3, %v3677_v9  ;;  %v4168_v17 = vsel %vm3683_vm3, %v8814_v37, 0.0  ;;  %v4296_v40 = vmul.f32 %v8814_v37, %v8814_v37  ;;  %v3544_v59 = vrot.slane %v3292_v52, 2  ;;  %v3545_v49 = vrot.slane %v9009_v45, 2  ;;  %4099 = vst.msk [vmem:[%s9718_s5 + $0x50] sm:$0xff] %vm3683_vm3, %v9040_v15 }
 0x298   :  { %v2102_v48 = vadd.f32 %v1970_v28, %v1620_v54  ;;  %v4169_v42 = vadd.f32 %v4168_v17, %v8878_v18  ;;  %v239_v13 = vmul.f32 %v8894_v32, %v126_v38  ;;  %v3064_v27 = vsel %vm722_vm1, %v3062_v22, %v3063_v46 }
 0x299   :  { %v4367_v39 = vsel %vm3683_vm3, %v4296_v40, 0.0  ;;  %v622_v37 = vmul.f32 %v8914_v12, %v8545_v8  ;;  %v1105_v18 = vmul.f32 %v9036_v21, %v8545_v8  ;;  %v3546_v6 = vsel %vm1205_vm2, %v3544_v59, %v3545_v49  ;;  %v9058_v8 = vpop.f32.mrf.mxu2 }
 0x29a   :  { %v2584_v23 = vadd.f32 %v2452_v53, %v2102_v48  ;;  %v4368_v33 = vadd.f32 %v4367_v39, %v8888_v47  ;;  %v350_v5 = vadd.f32 %v9048_v4, %v239_v13  ;;  %v525_v62 = vmul.f32 %v8903_v55, %v8416_v29  ;;  %4123 = vst.msk [vmem:[%s9718_s5 + $0x110] sm:$0xff] %vm3683_vm3, %v9058_v8  ;;  %v127_v13 = vld [vmem:[%s9714_s0 + $0x348] sm:$0xff] }
 0x29b   :  { %v876_v57 = vrot.slane %v622_v37, 1  ;;  %v1359_v9 = vrot.slane %v1105_v18, 2  ;;  %v1718_v28 = vmul.f32 %v8952_v43, %v8819_v10  ;;  %v2200_v52 = vmul.f32 %v8961_v34, %v8819_v10  ;;  %v9111_v18 = vld [vmem:[%s9717_s1 + $0x6] ss:$0 sm:$0xff] }
 0x29c   :  { %v2714_v47 = vadd.f32 %v2650_v35, %v2584_v23  ;;  %v9069_v45 = vmax.f32 %v350_v5, 0.0  ;;  %v1557_v54 = vmul.f32 %v8936_v60, %v8698_v14  ;;  %v4170_v53 = vsel %vm3683_vm3, %v8942_v31, 0.0 }
 0x29d   :  { %v877_v35 = vsel %vm722_vm1, %v874_v0, %v876_v57  ;;  %v1360_v22 = vsel %vm1205_vm2, %v1357_v7, %v1359_v9  ;;  %v1971_v17 = vrot.slane %v1718_v28, 1  ;;  %v2453_v40 = vrot.slane %v2200_v52, 2 }
 0x29e   :  { %v3196_v29 = vadd.f32 %v3064_v27, %v2714_v47  ;;  %v1008_v48 = vadd.f32 %v877_v35, %v525_v62  ;;  %v2812_v59 = vmul.f32 %v8238_v19, %v9069_v45  ;;  %v3294_v39 = vmul.f32 %v9003_v56, %v9069_v45  ;;  %v128_v19 = vld [vmem:[%s9714_s0 + $0x350] sm:$0xff] }
 0x29f   :  { %v9090_v23 = vadd.f32 %v4170_v53, %v4169_v42  ;;  %v4297_v24 = vmul.f32 %v8942_v31, %v8942_v31  ;;  %v1972_v42 = vsel %vm722_vm1, %v1969_v26, %v1971_v17  ;;  %v2454_v37 = vsel %vm1205_vm2, %v2451_v11, %v2453_v40 }
 0x2a0   :  { %v3678_v38 = vadd.f32 %v3546_v6, %v3196_v29  ;;  %v1491_v36 = vadd.f32 %v1360_v22, %v1008_v48  ;;  %v3065_v0 = vrot.slane %v2812_v59, 1  ;;  %v3547_v7 = vrot.slane %v3294_v39, 2 }
 0x2a1   :  { %v4369_v27 = vsel %vm3683_vm3, %v4297_v24, 0.0  ;;  %v2651_v47 = vmul.f32 %v9111_v18, %v8928_v51  ;;  %v240_v5 = vmul.f32 %v8894_v32, %v127_v13  ;;  %v241_v3 = vmul.f32 %v8894_v32, %v128_v19 }
 0x2a2   :  { %4555 = vmatmul.msk.f32.gmra.mxu3 %vm3683_vm3, %v3678_v38  ;;  %v1621_v31 = vadd.f32 %v1557_v54, %v1491_v36  ;;  %v9115_v6 = vadd.f32 %v4369_v27, %v4368_v33  ;;  %v3066_v61 = vsel %vm722_vm1, %v3063_v46, %v3065_v0  ;;  %v3548_v26 = vsel %vm1205_vm2, %v3545_v49, %v3547_v7  ;;  %v9143_v38 = vpop.f32.mrf.mxu0  ;;  %v9161_v36 = vpop.f32.mrf.mxu2 }
 0x2a3   :  { %v526_v11 = vmul.f32 %v8903_v55, %v8693_v16  ;;  %v623_v57 = vmul.f32 %v8914_v12, %v8693_v16  ;;  %v9127_v9 = vmul.f32 %v8914_v12, %v8698_v14  ;;  %v351_v33 = vadd.f32 %v9048_v4, %v240_v5  ;;  %4100 = vst.msk [vmem:[%s9718_s5 + $0x58] sm:$0xff] %vm3683_vm3, %v9143_v38  ;;  %v9163_v0 = vpop.f32.mrf.mxu3 }
 0x2a4   :  { %v2103_v62 = vadd.f32 %v1972_v42, %v1621_v31  ;;  %v352_v46 = vadd.f32 %v9048_v4, %v241_v3  ;;  %v1106_v49 = vmul.f32 %v9036_v21, %v8693_v16  ;;  %v9135_v28 = vmul.f32 %v9036_v21, %v8698_v14  ;;  %v9145_v16 = vpop.f32.mrf.mxu1  ;;  %4124 = vst.msk [vmem:[%s9718_s5 + $0x118] sm:$0xff] %vm3683_vm3, %v9161_v36  ;;  %v4627_v3 = vld [vmem:[%s9717_s1 + $0x7] ss:$0 sm:$0xff] }
 0x2a5   :  { %v878_v29 = vrot.slane %v623_v57, 1  ;;  %v879_v54 = vrot.slane %v9127_v9, 1  ;;  %v1558_v53 = vmul.f32 %v8936_v60, %v8926_v25  ;;  %v459_v35 = vmax.f32 %v351_v33, 0.0  ;;  %4112 = vst.msk [vmem:[%s9718_s5 + $0xb8] sm:$0xff] %vm3683_vm3, %v9145_v16 }
 0x2a6   :  { %v2585_v52 = vadd.f32 %v2454_v37, %v2103_v62  ;;  %v9140_v22 = vmax.f32 %v352_v46, 0.0  ;;  %v1361_v17 = vrot.slane %v1106_v49, 2  ;;  %v1362_v40 = vrot.slane %v9135_v28, 2  ;;  %4137 = vst.msk [vmem:[%s9718_s5 + $0x180] sm:$0xff] %vm3683_vm3, %v9163_v0 }
 0x2a7   :  { %v880_v59 = vsel %vm722_vm1, %v878_v29, %v879_v54  ;;  %v1719_v39 = vmul.f32 %v8952_v43, %v8926_v25  ;;  %v9154_v24 = vmul.f32 %v8952_v43, %v8928_v51  ;;  %v2201_v19 = vmul.f32 %v8961_v34, %v8926_v25 }
 0x2a8   :  { %v2715_v48 = vadd.f32 %v2651_v47, %v2585_v52  ;;  %v1009_v7 = vadd.f32 %v880_v59, %v526_v11  ;;  %v1363_v13 = vsel %vm1205_vm2, %v1361_v17, %v1362_v40  ;;  %v9172_v42 = vmul.f32 %v8961_v34, %v8928_v51 }
 0x2a9   :  { %v1973_v31 = vrot.slane %v1719_v39, 1  ;;  %v1974_v37 = vrot.slane %v9154_v24, 1  ;;  %v2455_v47 = vrot.slane %v2201_v19, 2  ;;  %v2813_v62 = vmul.f32 %v4627_v3, %v459_v35 }
 0x2aa   :  { %v3197_v27 = vadd.f32 %v3066_v61, %v2715_v48  ;;  %v1492_v25 = vadd.f32 %v1363_v13, %v1009_v7  ;;  %v2456_v5 = vrot.slane %v9172_v42, 2  ;;  %v9198_v57 = vmul.f32 %v4627_v3, %v9140_v22  ;;  %v129_v13 = vld [vmem:[%s9714_s0 + $0x358] sm:$0x3]  ;;  %v3933_v19 = vpop.f32.mrf.mxu0 }
 0x2ab   :  { %v1975_v11 = vsel %vm722_vm1, %v1973_v31, %v1974_v37  ;;  %v3295_v33 = vmul.f32 %v9003_v56, %v459_v35  ;;  %v2652_v52 = vmul.f32 %v9111_v18, %v459_v35  ;;  %v9207_v29 = vmul.f32 %v9003_v56, %v9140_v22  ;;  %4101 = vst.msk [vmem:[%s9718_s5 + $0x60] sm:$0xff] %vm3683_vm3, %v3933_v19 }
 0x2ac   :  { %v3679_v61 = vadd.f32 %v3548_v26, %v3197_v27  ;;  %v1622_v46 = vadd.f32 %v1558_v53, %v1492_v25  ;;  %v2457_v49 = vsel %vm1205_vm2, %v2455_v47, %v2456_v5  ;;  %v3067_v26 = vrot.slane %v2813_v62, 1  ;;  %v9222_v27 = vpop.f32.mrf.mxu1  ;;  %v9231_v25 = vpop.f32.mrf.mxu3 }
 0x2ad   :  { %v3068_v17 = vrot.slane %v9198_v57, 1  ;;  %v4172_v48 = vsel %vm3683_vm3, %v9040_v15, 0.0  ;;  %v4298_v53 = vmul.f32 %v9040_v15, %v9040_v15  ;;  %v3549_v39 = vrot.slane %v3295_v33, 2  ;;  %v9229_v15 = vpop.f32.mrf.mxu2  ;;  %4113 = vst.msk [vmem:[%s9718_s5 + $0xc0] sm:$0xff] %vm3683_vm3, %v9222_v27 }
 0x2ae   :  { %4556 = vmatmul.msk.f32.gmra.mxu3 %vm3683_vm3, %v3679_v61  ;;  %v2104_v59 = vadd.f32 %v1975_v11, %v1622_v46  ;;  %v3550_v7 = vrot.slane %v9207_v29, 2  ;;  %v9217_v35 = vadd.f32 %v4172_v48, %v9090_v23  ;;  %v242_v61 = vmul.f32 %v8894_v32, %v129_v13  ;;  %4125 = vst.msk [vmem:[%s9718_s5 + $0x120] sm:$0xff] %vm3683_vm3, %v9229_v15 }
 0x2af   :  { %v4371_v31 = vsel %vm3683_vm3, %v4298_v53, 0.0  ;;  %v3069_v62 = vsel %vm722_vm1, %v3067_v26, %v3068_v17  ;;  %v625_v11 = vmul.f32 %v8914_v12, %v8819_v10  ;;  %v527_v46 = vmul.f32 %v8903_v55, %v8698_v14  ;;  %4138 = vst.msk [vmem:[%s9718_s5 + $0x188] sm:$0xff] %vm3683_vm3, %v9231_v25 }
 0x2b0   :  { %v2586_v23 = vadd.f32 %v2457_v49, %v2104_v59  ;;  %v9234_v47 = vadd.f32 %v4371_v31, %v9115_v6  ;;  %v3551_v33 = vsel %vm1205_vm2, %v3549_v39, %v3550_v7  ;;  %v1108_v32 = vmul.f32 %v9036_v21, %v8819_v10 }
 0x2b1   :  { %v353_v12 = vadd.f32 %v9048_v4, %v242_v61  ;;  %v881_v49 = vrot.slane %v625_v11, 1  ;;  %v2203_v26 = vmul.f32 %v8961_v34, %v9069_v45  ;;  %v4299_v31 = vmul.f32 %v9143_v38, %v9143_v38 }
 0x2b2   :  { %v2716_v6 = vadd.f32 %v2652_v52, %v2586_v23  ;;  %v1721_v52 = vmul.f32 %v8952_v43, %v9069_v45  ;;  %v1364_v14 = vrot.slane %v1108_v32, 2  ;;  %v1559_v43 = vmul.f32 %v8936_v60, %v8928_v51  ;;  %v3936_v39 = vpop.f32.mrf.mxu0 }
 0x2b3   :  { %v461_v55 = vmax.f32 %v353_v12, 0.0  ;;  %v882_v10 = vsel %vm722_vm1, %v879_v54, %v881_v49  ;;  %v2458_v34 = vrot.slane %v2203_v26, 2  ;;  %4102 = vst.msk [vmem:[%s9718_s5 + $0x68] sm:$0xff] %vm3683_vm3, %v3936_v39  ;;  %v4300_v11 = vmul.f32 %v3933_v19, %v3933_v19 }
 0x2b4   :  { %v3198_v48 = vadd.f32 %v3069_v62, %v2716_v6  ;;  %v1976_v21 = vrot.slane %v1721_v52, 1  ;;  %v1010_v59 = vadd.f32 %v882_v10, %v527_v46  ;;  %v1365_v4 = vsel %vm1205_vm2, %v1362_v40, %v1364_v14  ;;  %v9277_v13 = vpop.f32.mrf.mxu1  ;;  %v9285_v54 = vpop.f32.mrf.mxu3 }
 0x2b5   :  { %v2815_v45 = vmul.f32 %v4627_v3, %v461_v55  ;;  %v9283_v9 = vpop.f32.mrf.mxu2  ;;  %4114 = vst.msk [vmem:[%s9718_s5 + $0xc8] sm:$0xff] %vm3683_vm3, %v9277_v13  ;;  %v3297_v60 = vmul.f32 %v9003_v56, %v461_v55  ;;  %v2459_v24 = vsel %vm1205_vm2, %v2456_v5, %v2458_v34  ;;  %v2653_v56 = vmul.f32 %v9111_v18, %v9140_v22 }
 0x2b6   :  { %v3680_v53 = vadd.f32 %v3551_v33, %v3198_v48  ;;  %v1493_v28 = vadd.f32 %v1365_v4, %v1010_v59  ;;  %v1977_v51 = vsel %vm722_vm1, %v1974_v37, %v1976_v21  ;;  %4126 = vst.msk [vmem:[%s9718_s5 + $0x128] sm:$0xff] %vm3683_vm3, %v9283_v9  ;;  %v4174_v62 = vsel %vm3683_vm3, %v9143_v38, 0.0 }
 0x2b7   :  { %4139 = vst.msk [vmem:[%s9718_s5 + $0x190] sm:$0xff] %vm3683_vm3, %v9285_v54  ;;  %v3070_v37 = vrot.slane %v2815_v45, 1  ;;  %v3552_v23 = vrot.slane %v3297_v60, 2  ;;  %v4176_v5 = vsel %vm3683_vm3, %v3933_v19, 0.0  ;;  %v4175_v38 = vadd.f32 %v4174_v62, %v9217_v35 }
 0x2b8   :  { %4557 = vmatmul.msk.f32.gmra.mxu3 %vm3683_vm3, %v3680_v53  ;;  %v1623_v40 = vadd.f32 %v1559_v43, %v1493_v28  ;;  %v4373_v46 = vsel %vm3683_vm3, %v4299_v31, 0.0  ;;  %v4301_v32 = vmul.f32 %v3936_v39, %v3936_v39  ;;  %v4375_v12 = vsel %vm3683_vm3, %v4300_v11, 0.0 }
 0x2b9   :  { %v3071_v42 = vsel %vm722_vm1, %v3068_v17, %v3070_v37  ;;  %v3553_v57 = vsel %vm1205_vm2, %v3550_v7, %v3552_v23  ;;  %v4178_v17 = vsel %vm3683_vm3, %v3936_v39, 0.0  ;;  %v4177_v19 = vadd.f32 %v4176_v5, %v4175_v38 }
 0x2ba   :  { %v2105_v3 = vadd.f32 %v1977_v51, %v1623_v40  ;;  %v3939_v6 = vpop.f32.mrf.mxu0  ;;  %v4374_v49 = vadd.f32 %v4373_v46, %v9234_v47  ;;  %v4377_v48 = vsel %vm3683_vm3, %v4301_v32, 0.0  ;;  %v4304_v39 = vmul.f32 %v8324_v30, %v8324_v30 }
 0x2bb   :  { %4103 = vst.msk [vmem:[%s9718_s5 + $0x70] sm:$0xff] %vm3683_vm3, %v3939_v6  ;;  %v4180_v52 = vsel %vm3683_vm3, %v3939_v6, 0.0  ;;  %v4179_v7 = vadd.f32 %v4178_v17, %v4177_v19  ;;  %v4302_v14 = vmul.f32 %v3939_v6, %v3939_v6  ;;  %v4184_v28 = vsel %vm3683_vm3, %v8324_v30, 0.0 }
 0x2bc   :  { %v2587_v61 = vadd.f32 %v2459_v24, %v2105_v3  ;;  %v9316_v33 = vpop.f32.mrf.mxu1  ;;  %v9347_v26 = vpop.f32.mrf.mxu3  ;;  %v4376_v55 = vadd.f32 %v4375_v12, %v4374_v49  ;;  %v4305_v60 = vmul.f32 %v8465_v2, %v8465_v2  ;;  %v4186_v37 = vsel %vm3683_vm3, %v8465_v2, 0.0 }
 0x2bd   :  { %v9326_v18 = vpop.f32.mrf.mxu2  ;;  %4115 = vst.msk [vmem:[%s9718_s5 + $0xd0] sm:$0xff] %vm3683_vm3, %v9316_v33  ;;  %v4181_v10 = vadd.f32 %v4180_v52, %v4179_v7  ;;  %v4379_v47 = vsel %vm3683_vm3, %v4302_v14, 0.0  ;;  %v4383_v30 = vsel %vm3683_vm3, %v4304_v39, 0.0  ;;  %v4306_v31 = vmul.f32 %v8603_v44, %v8603_v44 }
 0x2be   :  { %v2717_v22 = vadd.f32 %v2653_v56, %v2587_v61  ;;  %4127 = vst.msk [vmem:[%s9718_s5 + $0x130] sm:$0xff] %vm3683_vm3, %v9326_v18  ;;  %v4378_v59 = vadd.f32 %v4377_v48, %v4376_v55  ;;  %v4188_v62 = vsel %vm3683_vm3, %v8603_v44, 0.0  ;;  %v4385_v2 = vsel %vm3683_vm3, %v4305_v60, 0.0 }
 0x2bf   :  { %4140 = vst.msk [vmem:[%s9718_s5 + $0x198] sm:$0xff] %vm3683_vm3, %v9347_v26  ;;  %v4307_v11 = vmul.f32 %v8743_v63, %v8743_v63  ;;  %v4190_v5 = vsel %vm3683_vm3, %v8743_v63, 0.0  ;;  %v4387_v44 = vsel %vm3683_vm3, %v4306_v31, 0.0  ;;  %v4308_v46 = vmul.f32 %v8816_v41, %v8816_v41 }
 0x2c0   :  { %v3199_v35 = vadd.f32 %v3071_v42, %v2717_v22  ;;  %v4380_v51 = vadd.f32 %v4379_v47, %v4378_v59  ;;  %v4192_v63 = vsel %vm3683_vm3, %v8816_v41, 0.0  ;;  %v4194_v12 = vsel %vm3683_vm3, %v8944_v58, 0.0 }
 0x2c1   :  { %v4389_v17 = vsel %vm3683_vm3, %v4307_v11, 0.0  ;;  %v4310_v7 = vmul.f32 %v9042_v20, %v9042_v20  ;;  %v4196_v41 = vsel %vm3683_vm3, %v9042_v20, 0.0  ;;  %v4311_v55 = vmul.f32 %v9145_v16, %v9145_v16 }
 0x2c2   :  { %v3681_v29 = vadd.f32 %v3553_v57, %v3199_v35  ;;  %v3942_v21 = vpop.f32.mrf.mxu0  ;;  %v4309_v35 = vmul.f32 %v8944_v58, %v8944_v58  ;;  %v4312_v39 = vmul.f32 %v9222_v27, %v9222_v27 }
 0x2c3   :  { %4104 = vst.msk [vmem:[%s9718_s5 + $0x78] sm:$0xff] %vm3683_vm3, %v3942_v21  ;;  %v4182_v4 = vsel %vm3683_vm3, %v3942_v21, 0.0  ;;  %v4303_v45 = vmul.f32 %v3942_v21, %v3942_v21  ;;  %v4198_v21 = vsel %vm3683_vm3, %v9145_v16, 0.0  ;;  %v4395_v20 = vsel %vm3683_vm3, %v4310_v7, 0.0 }
 0x2c4   :  { %4558 = vmatmul.msk.f32.gmra.mxu3 %vm3683_vm3, %v3681_v29  ;;  %v9357_v53 = vpop.f32.mrf.mxu1  ;;  %v4183_v34 = vadd.f32 %v4182_v4, %v4181_v10  ;;  %v9385_v56 = vpop.f32.mrf.mxu3  ;;  %v4391_v29 = vsel %vm3683_vm3, %v4308_v46, 0.0  ;;  %v4393_v58 = vsel %vm3683_vm3, %v4309_v35, 0.0  ;;  %v4200_v16 = vsel %vm3683_vm3, %v9222_v27, 0.0 }
 0x2c5   :  { %v9364_v43 = vpop.f32.mrf.mxu2  ;;  %4116 = vst.msk [vmem:[%s9718_s5 + $0xd8] sm:$0xff] %vm3683_vm3, %v9357_v53  ;;  %v4381_v24 = vsel %vm3683_vm3, %v4303_v45, 0.0  ;;  %v4204_v27 = vsel %vm3683_vm3, %v9316_v33, 0.0  ;;  %v4206_v11 = vsel %vm3683_vm3, %v9357_v53, 0.0 }
 0x2c6   :  { %4128 = vst.msk [vmem:[%s9718_s5 + $0x138] sm:$0xff] %vm3683_vm3, %v9364_v43  ;;  %v4185_v40 = vadd.f32 %v4184_v28, %v4183_v34  ;;  %v4382_v3 = vadd.f32 %v4381_v24, %v4380_v51  ;;  %v4397_v28 = vsel %vm3683_vm3, %v4311_v55, 0.0  ;;  %v4313_v51 = vmul.f32 %v9277_v13, %v9277_v13 }
 0x2c7   :  { %4141 = vst.msk [vmem:[%s9718_s5 + $0x1a0] sm:$0xff] %vm3683_vm3, %v9385_v56 }
 0x2c8   :  { %v4187_v23 = vadd.f32 %v4186_v37, %v4185_v40  ;;  %v4384_v61 = vadd.f32 %v4383_v30, %v4382_v3  ;;  %v4202_v40 = vsel %vm3683_vm3, %v9277_v13, 0.0  ;;  %v4399_v3 = vsel %vm3683_vm3, %v4312_v39, 0.0 }
 0x2c9   :  { %v4314_v30 = vmul.f32 %v9316_v33, %v9316_v33  ;;  %v4401_v13 = vsel %vm3683_vm3, %v4313_v51, 0.0  ;;  %v4216_v39 = vsel %vm3683_vm3, %v8830_v50, 0.0  ;;  %v4218_v51 = vsel %vm3683_vm3, %v8970_v1, 0.0 }
 0x2ca   :  { %v4189_v6 = vadd.f32 %v4188_v62, %v4187_v23  ;;  %v4386_v22 = vadd.f32 %v4385_v2, %v4384_v61  ;;  %v4315_v61 = vmul.f32 %v9357_v53, %v9357_v53 }
 0x2cb   :  { %v4403_v33 = vsel %vm3683_vm3, %v4314_v30, 0.0 }
 0x2cc   :  { %v3981_v42 = vpop.f32.mrf.mxu1  ;;  %v4191_v32 = vadd.f32 %v4190_v5, %v4189_v6  ;;  %v4388_v57 = vadd.f32 %v4387_v44, %v4386_v22  ;;  %v9423_v52 = vpop.f32.mrf.mxu3 }
 0x2cd   :  { %4117 = vst.msk [vmem:[%s9718_s5 + $0xe0] sm:$0xff] %vm3683_vm3, %v3981_v42  ;;  %v9406_v38 = vpop.f32.mrf.mxu2  ;;  %v4316_v44 = vmul.f32 %v3981_v42, %v3981_v42  ;;  %v4208_v53 = vsel %vm3683_vm3, %v3981_v42, 0.0 }
 0x2ce   :  { %4129 = vst.msk [vmem:[%s9718_s5 + $0x140] sm:$0xff] %vm3683_vm3, %v9406_v38  ;;  %v4193_v19 = vadd.f32 %v4192_v63, %v4191_v32  ;;  %v4390_v49 = vadd.f32 %v4389_v17, %v4388_v57  ;;  %v4405_v32 = vsel %vm3683_vm3, %v4315_v61, 0.0 }
 0x2cf   :  { %4142 = vst.msk [vmem:[%s9718_s5 + $0x1a8] sm:$0xff] %vm3683_vm3, %v9423_v52 }
 0x2d0   :  { %v4195_v48 = vadd.f32 %v4194_v12, %v4193_v19  ;;  %v4392_v14 = vadd.f32 %v4391_v29, %v4390_v49  ;;  %v4407_v12 = vsel %vm3683_vm3, %v4316_v44, 0.0 }
 0x2d2   :  { %v4197_v10 = vadd.f32 %v4196_v41, %v4195_v48  ;;  %v4394_v59 = vadd.f32 %v4393_v58, %v4392_v14 }
 0x2d4   :  { %v3984_v47 = vpop.f32.mrf.mxu1  ;;  %v4199_v34 = vadd.f32 %v4198_v21, %v4197_v10  ;;  %v4396_v45 = vadd.f32 %v4395_v20, %v4394_v59  ;;  %v9461_v37 = vpop.f32.mrf.mxu3  ;;  %v4320_v21 = vmul.f32 %v8830_v50, %v8830_v50  ;;  %v4220_v50 = vsel %vm3683_vm3, %v9058_v8, 0.0 }
 0x2d5   :  { %4118 = vst.msk [vmem:[%s9718_s5 + $0xe8] sm:$0xff] %vm3683_vm3, %v3984_v47  ;;  %v9444_v4 = vpop.f32.mrf.mxu2  ;;  %v4317_v57 = vmul.f32 %v3984_v47, %v3984_v47  ;;  %v4210_v35 = vsel %vm3683_vm3, %v3984_v47, 0.0 }
 0x2d6   :  { %4130 = vst.msk [vmem:[%s9718_s5 + $0x148] sm:$0xff] %vm3683_vm3, %v9444_v4  ;;  %v4201_v60 = vadd.f32 %v4200_v16, %v4199_v34  ;;  %v4398_v24 = vadd.f32 %v4397_v28, %v4396_v45  ;;  %v4321_v45 = vmul.f32 %v8970_v1, %v8970_v1 }
 0x2d7   :  { %4143 = vst.msk [vmem:[%s9718_s5 + $0x1b0] sm:$0xff] %vm3683_vm3, %v9461_v37  ;;  %v4409_v48 = vsel %vm3683_vm3, %v4317_v57, 0.0  ;;  %v4326_v57 = vmul.f32 %v9326_v18, %v9326_v18 }
 0x2d8   :  { %v4203_v31 = vadd.f32 %v4202_v40, %v4201_v60  ;;  %v4400_v23 = vadd.f32 %v4399_v3, %v4398_v24  ;;  %v4415_v24 = vsel %vm3683_vm3, %v4320_v21, 0.0  ;;  %v4322_v3 = vmul.f32 %v9058_v8, %v9058_v8 }
 0x2d9   :  { %v4417_v1 = vsel %vm3683_vm3, %v4321_v45, 0.0  ;;  %v4224_v8 = vsel %vm3683_vm3, %v9229_v15, 0.0  ;;  %v4234_v21 = vsel %vm3683_vm3, %v9444_v4, 0.0 }
 0x2da   :  { %v4205_v62 = vadd.f32 %v4204_v27, %v4203_v31  ;;  %v4402_v6 = vadd.f32 %v4401_v13, %v4400_v23  ;;  %v4323_v27 = vmul.f32 %v9161_v36, %v9161_v36  ;;  %v4222_v13 = vsel %vm3683_vm3, %v9161_v36, 0.0 }
 0x2db   :  { %v4325_v36 = vmul.f32 %v9283_v9, %v9283_v9 }
 0x2dc   :  { %v3987_v2 = vpop.f32.mrf.mxu1  ;;  %v4207_v22 = vadd.f32 %v4206_v11, %v4205_v62  ;;  %v4404_v46 = vadd.f32 %v4403_v33, %v4402_v6  ;;  %v9493_v19 = vpop.f32.mrf.mxu3  ;;  %v4324_v11 = vmul.f32 %v9229_v15, %v9229_v15  ;;  %v4228_v15 = vsel %vm3683_vm3, %v9326_v18, 0.0 }
 0x2dd   :  { %4119 = vst.msk [vmem:[%s9718_s5 + $0xf0] sm:$0xff] %vm3683_vm3, %v3987_v2  ;;  %v9482_v5 = vpop.f32.mrf.mxu2  ;;  %v4318_v29 = vmul.f32 %v3987_v2, %v3987_v2  ;;  %v4212_v7 = vsel %vm3683_vm3, %v3987_v2, 0.0  ;;  %v4419_v2 = vsel %vm3683_vm3, %v4322_v3, 0.0  ;;  %v4232_v18 = vsel %vm3683_vm3, %v9406_v38, 0.0 }
 0x2de   :  { %4131 = vst.msk [vmem:[%s9718_s5 + $0x150] sm:$0xff] %vm3683_vm3, %v9482_v5  ;;  %v4209_v63 = vadd.f32 %v4208_v53, %v4207_v22  ;;  %v4406_v17 = vadd.f32 %v4405_v32, %v4404_v46  ;;  %v4421_v22 = vsel %vm3683_vm3, %v4323_v27, 0.0  ;;  %v4226_v46 = vsel %vm3683_vm3, %v9283_v9, 0.0 }
 0x2df   :  { %4144 = vst.msk [vmem:[%s9718_s5 + $0x1b8] sm:$0xff] %vm3683_vm3, %v9493_v19  ;;  %v4411_v59 = vsel %vm3683_vm3, %v4318_v29, 0.0  ;;  %v4425_v9 = vsel %vm3683_vm3, %v4325_v36, 0.0  ;;  %v4230_v29 = vsel %vm3683_vm3, %v9364_v43, 0.0 }
 0x2e0   :  { %v4211_v49 = vadd.f32 %v4210_v35, %v4209_v63  ;;  %v4408_v42 = vadd.f32 %v4407_v12, %v4406_v17  ;;  %v4423_v63 = vsel %vm3683_vm3, %v4324_v11, 0.0  ;;  %v4327_v12 = vmul.f32 %v9364_v43, %v9364_v43 }
 0x2e1   :  { %v4329_v43 = vmul.f32 %v9444_v4, %v9444_v4 }
 0x2e2   :  { %v4213_v41 = vadd.f32 %v4212_v7, %v4211_v49  ;;  %v4410_v58 = vadd.f32 %v4409_v48, %v4408_v42  ;;  %v4427_v48 = vsel %vm3683_vm3, %v4326_v57, 0.0 }
 0x2e3   :  { %v4433_v45 = vsel %vm3683_vm3, %v4329_v43, 0.0 }
 0x2e4   :  { %v3990_v14 = vpop.f32.mrf.mxu1  ;;  %v4412_v34 = vadd.f32 %v4411_v59, %v4410_v58  ;;  %v9525_v40 = vpop.f32.mrf.mxu3 }
 0x2e5   :  { %4120 = vst.msk [vmem:[%s9718_s5 + $0xf8] sm:$0xff] %vm3683_vm3, %v3990_v14  ;;  %v4214_v55 = vsel %vm3683_vm3, %v3990_v14, 0.0  ;;  %v4319_v10 = vmul.f32 %v3990_v14, %v3990_v14  ;;  %v9508_v47 = vpop.f32.mrf.mxu2 }
 0x2e6   :  { %v4215_v20 = vadd.f32 %v4214_v55, %v4213_v41  ;;  %4132 = vst.msk [vmem:[%s9718_s5 + $0x158] sm:$0xff] %vm3683_vm3, %v9508_v47  ;;  %v4328_v41 = vmul.f32 %v9406_v38, %v9406_v38  ;;  %v4429_v55 = vsel %vm3683_vm3, %v4327_v12, 0.0  ;;  %v4236_v38 = vsel %vm3683_vm3, %v9482_v5, 0.0 }
 0x2e7   :  { %v4413_v16 = vsel %vm3683_vm3, %v4319_v10, 0.0  ;;  %4145 = vst.msk [vmem:[%s9718_s5 + $0x1c0] sm:$0xff] %vm3683_vm3, %v9525_v40  ;;  %v4238_v3 = vsel %vm3683_vm3, %v9508_v47, 0.0 }
 0x2e8   :  { %v4217_v28 = vadd.f32 %v4216_v39, %v4215_v20  ;;  %v4414_v60 = vadd.f32 %v4413_v16, %v4412_v34  ;;  %v4431_v20 = vsel %vm3683_vm3, %v4328_v41, 0.0  ;;  %v4330_v39 = vmul.f32 %v9482_v5, %v9482_v5 }
 0x2ea   :  { %v4219_v30 = vadd.f32 %v4218_v51, %v4217_v28  ;;  %v4416_v31 = vadd.f32 %v4415_v24, %v4414_v60  ;;  %v4331_v51 = vmul.f32 %v9508_v47, %v9508_v47  ;;  %v4435_v4 = vsel %vm3683_vm3, %v4330_v39, 0.0 }
 0x2ec   :  { %v4221_v23 = vadd.f32 %v4220_v50, %v4219_v30  ;;  %v4418_v62 = vadd.f32 %v4417_v1, %v4416_v31  ;;  %v4437_v50 = vsel %vm3683_vm3, %v4331_v51, 0.0  ;;  %v4342_v51 = vmul.f32 %v9461_v37, %v9461_v37 }
 0x2ed   :  { %v4029_v61 = vpop.f32.mrf.mxu2 }
 0x2ee   :  { %v4223_v6 = vadd.f32 %v4222_v13, %v4221_v23  ;;  %4133 = vst.msk [vmem:[%s9718_s5 + $0x160] sm:$0xff] %vm3683_vm3, %v4029_v61  ;;  %v4420_v33 = vadd.f32 %v4419_v2, %v4418_v62  ;;  %v4332_v31 = vmul.f32 %v4029_v61, %v4029_v61  ;;  %v4240_v23 = vsel %vm3683_vm3, %v4029_v61, 0.0 }
 0x2ef   :  { %v4336_v61 = vmul.f32 %v9163_v0, %v9163_v0 }
 0x2f0   :  { %v4225_v44 = vadd.f32 %v4224_v8, %v4223_v6  ;;  %v4422_v53 = vadd.f32 %v4421_v22, %v4420_v33  ;;  %v9556_v32 = vpop.f32.mrf.mxu3  ;;  %v4439_v62 = vsel %vm3683_vm3, %v4332_v31, 0.0  ;;  %v4344_v31 = vmul.f32 %v9525_v40, %v9525_v40 }
 0x2f1   :  { %4146 = vst.msk [vmem:[%s9718_s5 + $0x1c8] sm:$0xff] %vm3683_vm3, %v9556_v32 }
 0x2f2   :  { %v4227_v17 = vadd.f32 %v4226_v46, %v4225_v44  ;;  %v4424_v35 = vadd.f32 %v4423_v63, %v4422_v53 }
 0x2f4   :  { %v4229_v49 = vadd.f32 %v4228_v15, %v4227_v17  ;;  %v4426_v42 = vadd.f32 %v4425_v9, %v4424_v35  ;;  %v4248_v35 = vsel %vm3683_vm3, %v9163_v0, 0.0  ;;  %v4337_v9 = vmul.f32 %v9231_v25, %v9231_v25 }
 0x2f5   :  { %v4032_v7 = vpop.f32.mrf.mxu2  ;;  %v4252_v0 = vsel %vm3683_vm3, %v9285_v54, 0.0 }
 0x2f6   :  { %v4231_v14 = vadd.f32 %v4230_v29, %v4229_v49  ;;  %4134 = vst.msk [vmem:[%s9718_s5 + $0x168] sm:$0xff] %vm3683_vm3, %v4032_v7  ;;  %v4428_v58 = vadd.f32 %v4427_v48, %v4426_v42  ;;  %v4333_v47 = vmul.f32 %v4032_v7, %v4032_v7  ;;  %v4242_v11 = vsel %vm3683_vm3, %v4032_v7, 0.0 }
 0x2f7   :  { %v4447_v42 = vsel %vm3683_vm3, %v4336_v61, 0.0  ;;  %v4250_v7 = vsel %vm3683_vm3, %v9231_v25, 0.0  ;;  %v4338_v48 = vmul.f32 %v9285_v54, %v9285_v54 }
 0x2f8   :  { %v4233_v10 = vadd.f32 %v4232_v18, %v4231_v14  ;;  %v4430_v59 = vadd.f32 %v4429_v55, %v4428_v58  ;;  %v4441_v8 = vsel %vm3683_vm3, %v4333_v47, 0.0  ;;  %v4449_v18 = vsel %vm3683_vm3, %v4337_v9, 0.0 }
 0x2f9   :  { %v4339_v58 = vmul.f32 %v9347_v26, %v9347_v26  ;;  %v4451_v25 = vsel %vm3683_vm3, %v4338_v48, 0.0  ;;  %v4345_v47 = vmul.f32 %v9556_v32, %v9556_v32 }
 0x2fa   :  { %v4235_v34 = vadd.f32 %v4234_v21, %v4233_v10  ;;  %v4432_v16 = vadd.f32 %v4431_v20, %v4430_v59  ;;  %v4254_v21 = vsel %vm3683_vm3, %v9347_v26, 0.0  ;;  %v4340_v59 = vmul.f32 %v9385_v56, %v9385_v56 }
 0x2fb   :  { %v4453_v39 = vsel %vm3683_vm3, %v4339_v58, 0.0  ;;  %v4258_v26 = vsel %vm3683_vm3, %v9423_v52, 0.0 }
 0x2fc   :  { %v4237_v28 = vadd.f32 %v4236_v38, %v4235_v34  ;;  %v4434_v60 = vadd.f32 %v4433_v45, %v4432_v16  ;;  %v4256_v34 = vsel %vm3683_vm3, %v9385_v56, 0.0  ;;  %v4341_v38 = vmul.f32 %v9423_v52, %v9423_v52 }
 0x2fd   :  { %v4035_v24 = vpop.f32.mrf.mxu2  ;;  %v4260_v56 = vsel %vm3683_vm3, %v9461_v37, 0.0  ;;  %v4262_v52 = vsel %vm3683_vm3, %v9493_v19, 0.0  ;;  %v4264_v37 = vsel %vm3683_vm3, %v9525_v40, 0.0 }
 0x2fe   :  { %4135 = vst.msk [vmem:[%s9718_s5 + $0x170] sm:$0xff] %vm3683_vm3, %v4035_v24  ;;  %v4436_v5 = vadd.f32 %v4435_v4, %v4434_v60  ;;  %v4239_v30 = vadd.f32 %v4238_v3, %v4237_v28  ;;  %v4334_v33 = vmul.f32 %v4035_v24, %v4035_v24  ;;  %v4244_v36 = vsel %vm3683_vm3, %v4035_v24, 0.0 }
 0x2ff   :  { %v4455_v28 = vsel %vm3683_vm3, %v4340_v59, 0.0  ;;  %v4457_v4 = vsel %vm3683_vm3, %v4341_v38, 0.0  ;;  %v4343_v3 = vmul.f32 %v9493_v19, %v9493_v19 }
 0x300   :  { %v4438_v27 = vadd.f32 %v4437_v50, %v4436_v5  ;;  %v4241_v13 = vadd.f32 %v4240_v23, %v4239_v30  ;;  %v4443_v46 = vsel %vm3683_vm3, %v4334_v33, 0.0  ;;  %v4459_v50 = vsel %vm3683_vm3, %v4342_v51, 0.0 }
 0x302   :  { %v4440_v2 = vadd.f32 %v4439_v62, %v4438_v27  ;;  %v4243_v6 = vadd.f32 %v4242_v11, %v4241_v13  ;;  %v4461_v62 = vsel %vm3683_vm3, %v4343_v3, 0.0  ;;  %v4463_v11 = vsel %vm3683_vm3, %v4344_v31, 0.0 }
 0x304   :  { %v4442_v22 = vadd.f32 %v4441_v8, %v4440_v2  ;;  %v4245_v44 = vadd.f32 %v4244_v36, %v4243_v6  ;;  %v4266_v6 = vsel %vm3683_vm3, %v9556_v32, 0.0 }
 0x305   :  { %v9603_v1 = vpop.f32.mrf.mxu3 }
 0x306   :  { %4147 = vst.msk [vmem:[%s9718_s5 + $0x1d0] sm:$0xff] %vm3683_vm3, %v9603_v1  ;;  %v4444_v53 = vadd.f32 %v4443_v46, %v4442_v22  ;;  %v4465_v22 = vsel %vm3683_vm3, %v4345_v47, 0.0  ;;  %v4268_v46 = vsel %vm3683_vm3, %v9603_v1, 0.0 }
 0x313   :  { %v4038_v63 = vpop.f32.mrf.mxu2 }
 0x314   :  { %4136 = vst.msk [vmem:[%s9718_s5 + $0x178] sm:$0xff] %vm3683_vm3, %v4038_v63  ;;  %v4246_v57 = vsel %vm3683_vm3, %v4038_v63, 0.0  ;;  %v4335_v17 = vmul.f32 %v4038_v63, %v4038_v63 }
 0x315   :  { %v4247_v15 = vadd.f32 %v4246_v57, %v4245_v44  ;;  %v4346_v44 = vmul.f32 %v9603_v1, %v9603_v1 }
 0x316   :  { %v4445_v12 = vsel %vm3683_vm3, %v4335_v17, 0.0 }
 0x317   :  { %v4249_v49 = vadd.f32 %v4248_v35, %v4247_v15  ;;  %v4446_v29 = vadd.f32 %v4445_v12, %v4444_v53  ;;  %v4467_v32 = vsel %vm3683_vm3, %v4346_v44, 0.0 }
 0x319   :  { %v4251_v41 = vadd.f32 %v4250_v7, %v4249_v49  ;;  %v4448_v14 = vadd.f32 %v4447_v42, %v4446_v29 }
 0x31a   :  { %v4074_v55 = vpop.f32.mrf.mxu3 }
 0x31b   :  { %v4253_v43 = vadd.f32 %v4252_v0, %v4251_v41  ;;  %v4450_v10 = vadd.f32 %v4449_v18, %v4448_v14  ;;  %4148 = vst.msk [vmem:[%s9718_s5 + $0x1d8] sm:$0xff] %vm3683_vm3, %v4074_v55  ;;  %v4347_v63 = vmul.f32 %v4074_v55, %v4074_v55  ;;  %v4270_v57 = vsel %vm3683_vm3, %v4074_v55, 0.0 }
 0x31d   :  { %v4255_v54 = vadd.f32 %v4254_v21, %v4253_v43  ;;  %v4452_v20 = vadd.f32 %v4451_v25, %v4450_v10  ;;  %v4469_v35 = vsel %vm3683_vm3, %v4347_v63, 0.0 }
 0x31f   :  { %v4257_v16 = vadd.f32 %v4256_v34, %v4255_v54  ;;  %v4454_v45 = vadd.f32 %v4453_v39, %v4452_v20 }
 0x321   :  { %v4259_v60 = vadd.f32 %v4258_v26, %v4257_v16  ;;  %v4456_v24 = vadd.f32 %v4455_v28, %v4454_v45 }
 0x323   :  { %v4458_v5 = vadd.f32 %v4457_v4, %v4456_v24  ;;  %v4261_v30 = vadd.f32 %v4260_v56, %v4259_v60 }
 0x325   :  { %v4263_v27 = vadd.f32 %v4262_v52, %v4261_v30  ;;  %v4460_v23 = vadd.f32 %v4459_v50, %v4458_v5  ;;  %v4077_v13 = vpop.f32.mrf.mxu3 }
 0x326   :  { %4149 = vst.msk [vmem:[%s9718_s5 + $0x1e0] sm:$0xff] %vm3683_vm3, %v4077_v13  ;;  %v4348_v9 = vmul.f32 %v4077_v13, %v4077_v13  ;;  %v4272_v1 = vsel %vm3683_vm3, %v4077_v13, 0.0 }
 0x327   :  { %v4265_v19 = vadd.f32 %v4264_v37, %v4263_v27  ;;  %v4462_v2 = vadd.f32 %v4461_v62, %v4460_v23 }
 0x328   :  { %v4471_v29 = vsel %vm3683_vm3, %v4348_v9, 0.0 }
 0x329   :  { %v4267_v8 = vadd.f32 %v4266_v6, %v4265_v19  ;;  %v4464_v33 = vadd.f32 %v4463_v11, %v4462_v2 }
 0x32b   :  { %v4466_v40 = vadd.f32 %v4465_v22, %v4464_v33  ;;  %v4269_v53 = vadd.f32 %v4268_v46, %v4267_v8 }
 0x32d   :  { %v4468_v61 = vadd.f32 %v4467_v32, %v4466_v40  ;;  %v4271_v17 = vadd.f32 %v4270_v57, %v4269_v53 }
 0x32f   :  { %v4470_v12 = vadd.f32 %v4469_v35, %v4468_v61  ;;  %v4273_v49 = vadd.f32 %v4272_v1, %v4271_v17 }
 0x331   :  { %v4080_v36 = vpop.f32.mrf.mxu3  ;;  %v4472_v7 = vadd.f32 %v4471_v29, %v4470_v12 }
 0x332   :  { %4150 = vst.msk [vmem:[%s9718_s5 + $0x1e8] sm:$0xff] %vm3683_vm3, %v4080_v36  ;;  %v4349_v42 = vmul.f32 %v4080_v36, %v4080_v36  ;;  %v4274_v48 = vsel %vm3683_vm3, %v4080_v36, 0.0 }
 0x333   :  { %v4275_v41 = vadd.f32 %v4274_v48, %v4273_v49 }
 0x334   :  { %v4473_v14 = vsel %vm3683_vm3, %v4349_v42, 0.0 }
 0x335   :  { %v4474_v0 = vadd.f32 %v4473_v14, %v4472_v7 }
 0x33b   :  { %v4083_v15 = vpop.f32.mrf.mxu3 }
 0x33c   :  { %4151 = vst.msk [vmem:[%s9718_s5 + $0x1f0] sm:$0xff] %vm3683_vm3, %v4083_v15  ;;  %v4350_v18 = vmul.f32 %v4083_v15, %v4083_v15  ;;  %v4276_v58 = vsel %vm3683_vm3, %v4083_v15, 0.0 }
 0x33d   :  { %v4277_v55 = vadd.f32 %v4276_v58, %v4275_v41 }
 0x33e   :  { %v4475_v43 = vsel %vm3683_vm3, %v4350_v18, 0.0 }
 0x33f   :  { %v4476_v10 = vadd.f32 %v4475_v43, %v4474_v0 }
 0x347   :  { %v4086_v25 = vpop.f32.mrf.mxu3 }
 0x348   :  { %4152 = vst.msk [vmem:[%s9718_s5 + $0x1f8] sm:$0xff] %vm3683_vm3, %v4086_v25  ;;  %v4278_v21 = vsel %vm3683_vm3, %v4086_v25, 0.0  ;;  %v4351_v59 = vmul.f32 %v4086_v25, %v4086_v25 }
 0x349   :  { %v4279_v54 = vadd.f32 %v4278_v21, %v4277_v55 }
 0x34a   :  { %v4477_v20 = vsel %vm3683_vm3, %v4351_v59, 0.0 }
 0x34b   :  { %v4280_v39 = vrot.slane %v4279_v54, 4  ;;  %v4478_v34 = vadd.f32 %v4477_v20, %v4476_v10 }
 0x34d   :  { %v4281_v38 = vadd.f32 %v4280_v39, %v4279_v54  ;;  %v4479_v16 = vrot.slane %v4478_v34, 4 }
 0x34f   :  { %v4282_v45 = vrot.slane %v4281_v38, 2  ;;  %v4480_v28 = vadd.f32 %v4479_v16, %v4478_v34 }
 0x351   :  { %v4283_v26 = vadd.f32 %v4282_v45, %v4281_v38  ;;  %v4481_v51 = vrot.slane %v4480_v28, 2 }
 0x353   :  { %v4284_v60 = vrot.slane %v4283_v26, 1  ;;  %v4482_v24 = vadd.f32 %v4481_v51, %v4480_v28 }
 0x355   :  { %v4285_v4 = vadd.f32 %v4284_v60, %v4283_v26  ;;  %v4483_v56 = vrot.slane %v4482_v24, 1 }
 0x357   :  { %4287 = vst.msk [vmem:[%s9719_s6] sm:$0x1] %vm4286_vm4, %v4285_v4  ;;  %v4484_v3 = vadd.f32 %v4483_v56, %v4482_v24 }
 0x359   :  { %4485 = vst.msk [vmem:[%s9719_s6 + $0x1] sm:$0x1] %vm4286_vm4, %v4484_v3 }

// kernel: _lambda_.4
= control target key start
LH: loop header
LB: loop body
LE: loop exit
PB: predicated region body
PF: predicated region fallthrough
CT: control target
= control target key end

     0   :  { %vm4041_vm0 = vcmask 1043456   ;;  %vm887_vm1 = vcmask 1046528   ;;  %vm1370_vm2 = vcmask 1045504   ;;  %vm3848_vm3 = vcmask 31744   ;;  %s10278_s2 = inlined_call_operand.vmem [shape: f32[4,8], index: 2, kind: input, shape index: {}]   ;;  %s10279_s0 = inlined_call_operand.vmem [shape: f32[2,18,18,4], index: 0, kind: input, shape index: {}]   ;;  %s10280_s3 = inlined_call_operand.vmem [shape: f32[1,4], index: 3, kind: input, shape index: {}]   ;;  %s10281_s4 = inlined_call_operand.vmem [shape: f32[1,4], index: 4, kind: input, shape index: {}]   ;;  %s10282_s5 = inlined_call_operand.vmem [shape: f32[18,18,4], index: 5, kind: input, shape index: {}]   ;;  %s10283_s1 = inlined_call_operand.vmem [shape: f32[9,4], index: 1, kind: input, shape index: {}]   ;;  %s10284_s6 = inlined_call_operand.vmem [shape: f32[2,16,16,8], index: 6, kind: output, shape index: {0}]   ;;  %s10285_s7 = inlined_call_operand.vmem [shape: f32[1,2,8], index: 7, kind: output, shape index: {1}]  }
   0x1   :  { %v3847_v0 = vld [vmem:[%s10278_s2] sm:$0xf]  ;;  %v26_v2 = vld [vmem:[%s10279_s0 + $0x8] sm:$0xff]  ;;  %v28_v3 = vld [vmem:[%s10279_s0 + $0x18] sm:$0xff]  ;;  %vm4254_vm4 = vcmask 64512   ;;  %vm4452_vm5 = vcmask 57344  }
   0x2   :  { %v25_v1 = vld [vmem:[%s10279_s0] sm:$0xff]  ;;  %4660 = vmatpush.msk.msra.mxu0 %vm4041_vm0, %v3847_v0  ;;  %4725 = vmatpush.msk.msra.mxu1 %vm4041_vm0, %v3847_v0  ;;  %v31_v5 = vld [vmem:[%s10279_s0 + $0x30] sm:$0xff]  ;;  %v32_v6 = vld [vmem:[%s10279_s0 + $0x38] sm:$0xff] }
   0x3   :  { %v29_v4 = vld [vmem:[%s10279_s0 + $0x20] sm:$0xff]  ;;  %4726 = vmatpush.msk.msra.mxu2 %vm4041_vm0, %v3847_v0  ;;  %4727 = vmatpush.msk.msra.mxu3 %vm4041_vm0, %v3847_v0  ;;  %v466_v16 = vld [vmem:[%s10282_s5 + $0x8] sm:$0xff]  ;;  %v468_v17 = vld [vmem:[%s10282_s5 + $0x18] sm:$0xff] }
   0x4   :  { %v4912_v7 = vld [vmem:[%s10280_s3] ss:$0 sm:$0xff]  ;;  %v471_v23 = vld [vmem:[%s10282_s5 + $0x30] sm:$0xff]  ;;  %v472_v24 = vld [vmem:[%s10282_s5 + $0x38] sm:$0xff] }
   0x5   :  { %v4917_v8 = vld [vmem:[%s10281_s4] ss:$0 sm:$0xff]  ;;  %v138_v9 = vmul.f32 %v4912_v7, %v25_v1  ;;  %v139_v10 = vmul.f32 %v4912_v7, %v26_v2  ;;  %v141_v11 = vmul.f32 %v4912_v7, %v28_v3  ;;  %v142_v12 = vmul.f32 %v4912_v7, %v29_v4  ;;  %v4955_v26 = vld [vmem:[%s10283_s1 + $0x1] ss:$0 sm:$0xff]  ;;  %v4962_v29 = vld [vmem:[%s10283_s1 + $0x2] ss:$0 sm:$0xff] }
   0x6   :  { %v144_v13 = vmul.f32 %v4912_v7, %v31_v5  ;;  %v145_v14 = vmul.f32 %v4912_v7, %v32_v6  ;;  %v465_v15 = vld [vmem:[%s10282_s5] sm:$0xff]  ;;  %v5020_v59 = vld [vmem:[%s10283_s1 + $0x8] ss:$0 sm:$0xff]  ;;  %v27_v4 = vld [vmem:[%s10279_s0 + $0x10] sm:$0x3] }
   0x7   :  { %v469_v18 = vld [vmem:[%s10282_s5 + $0x20] sm:$0xff]  ;;  %v249_v19 = vadd.f32 %v4917_v8, %v138_v9  ;;  %v250_v20 = vadd.f32 %v4917_v8, %v139_v10  ;;  %v252_v21 = vadd.f32 %v4917_v8, %v141_v11  ;;  %v253_v22 = vadd.f32 %v4917_v8, %v142_v12  ;;  %v30_v5 = vld [vmem:[%s10279_s0 + $0x28] sm:$0x3] }
   0x8   :  { %v4950_v25 = vld [vmem:[%s10283_s1] ss:$0 sm:$0xff]  ;;  %v255_v27 = vadd.f32 %v4917_v8, %v144_v13  ;;  %v256_v28 = vadd.f32 %v4917_v8, %v145_v14  ;;  %v4967_v30 = vld [vmem:[%s10283_s1 + $0x3] ss:$0 sm:$0xff]  ;;  %v4972_v37 = vld [vmem:[%s10283_s1 + $0x4] ss:$0 sm:$0xff] }
   0x9   :  { %v357_v31 = vmax.f32 %v249_v19, 0.0  ;;  %v358_v32 = vmax.f32 %v250_v20, 0.0  ;;  %v360_v33 = vmax.f32 %v252_v21, 0.0  ;;  %v361_v34 = vmax.f32 %v253_v22, 0.0  ;;  %v4981_v42 = vld [vmem:[%s10283_s1 + $0x5] ss:$0 sm:$0xff] }
   0xa   :  { %v363_v35 = vmax.f32 %v255_v27, 0.0  ;;  %v364_v36 = vmax.f32 %v256_v28, 0.0  ;;  %v4996_v49 = vld [vmem:[%s10283_s1 + $0x6] ss:$0 sm:$0xff]  ;;  %v5001_v50 = vld [vmem:[%s10283_s1 + $0x7] ss:$0 sm:$0xff]  ;;  %v140_v19 = vmul.f32 %v4912_v7, %v27_v4  ;;  %v143_v20 = vmul.f32 %v4912_v7, %v30_v5 }
   0xb   :  { %v519_v38 = vmul.f32 %v465_v15, %v357_v31  ;;  %v520_v39 = vmul.f32 %v466_v16, %v358_v32  ;;  %v4974_v40 = vmul.f32 %v468_v17, %v360_v33  ;;  %v4976_v41 = vmul.f32 %v469_v18, %v361_v34  ;;  %v33_v12 = vld [vmem:[%s10279_s0 + $0x40] sm:$0x3]  ;;  %v34_v33 = vld [vmem:[%s10279_s0 + $0x48] sm:$0xff]  ;;  %v35_v34 = vld [vmem:[%s10279_s0 + $0x50] sm:$0xff] }
   0xc   :  { %v4983_v43 = vmul.f32 %v471_v23, %v363_v35  ;;  %v4985_v44 = vmul.f32 %v472_v24, %v364_v36  ;;  %v146_v24 = vmul.f32 %v4912_v7, %v33_v12  ;;  %v251_v28 = vadd.f32 %v4917_v8, %v140_v19 }
   0xd   :  { %v629_v45 = vmul.f32 %v4950_v25, %v519_v38  ;;  %v695_v46 = vmul.f32 %v4955_v26, %v519_v38  ;;  %v4990_v47 = vmul.f32 %v4955_v26, %v520_v39  ;;  %v1178_v48 = vmul.f32 %v4962_v29, %v519_v38 }
   0xe   :  { %v5004_v51 = vmul.f32 %v4962_v29, %v520_v39  ;;  %v1661_v52 = vmul.f32 %v4967_v30, %v4974_v40  ;;  %v1791_v53 = vmul.f32 %v4972_v37, %v4974_v40  ;;  %v5012_v54 = vmul.f32 %v4972_v37, %v4976_v41 }
   0xf   :  { %v888_v55 = vrot.slane %v695_v46, 1  ;;  %v889_v56 = vrot.slane %v4990_v47, 1  ;;  %v1371_v57 = vrot.slane %v1178_v48, 2  ;;  %v2273_v58 = vmul.f32 %v4981_v42, %v4974_v40 }
  0x10   :  { %v1372_v60 = vrot.slane %v5004_v51, 2  ;;  %v1983_v61 = vrot.slane %v1791_v53, 1  ;;  %v1984_v62 = vrot.slane %v5012_v54, 1  ;;  %v5026_v63 = vmul.f32 %v4981_v42, %v4976_v41 }
  0x11   :  { %v890_v0 = vsel %vm887_vm1, %v888_v55, %v889_v56  ;;  %v2465_v1 = vrot.slane %v2273_v58, 2  ;;  %v2755_v2 = vmul.f32 %v4996_v49, %v4983_v43  ;;  %v2885_v3 = vmul.f32 %v5001_v50, %v4983_v43  ;;  %v473_v55 = vld [vmem:[%s10282_s5 + $0x40] sm:$0x3] }
  0x12   :  { %v1112_v6 = vadd.f32 %v890_v0, %v629_v45  ;;  %v1373_v9 = vsel %vm1370_vm2, %v1371_v57, %v1372_v60  ;;  %v1985_v10 = vsel %vm887_vm1, %v1983_v61, %v1984_v62  ;;  %v2466_v11 = vrot.slane %v5026_v63, 2  ;;  %v467_v45 = vld [vmem:[%s10282_s5 + $0x10] sm:$0x3] }
  0x13   :  { %v5053_v13 = vmul.f32 %v5001_v50, %v4985_v44  ;;  %v3077_v14 = vrot.slane %v2885_v3, 1  ;;  %v3367_v15 = vmul.f32 %v5020_v59, %v4983_v43  ;;  %v5059_v16 = vmul.f32 %v5020_v59, %v4985_v44 }
  0x14   :  { %v1595_v17 = vadd.f32 %v1373_v9, %v1112_v6  ;;  %v2467_v18 = vsel %vm1370_vm2, %v2465_v1, %v2466_v11  ;;  %v254_v31 = vadd.f32 %v4917_v8, %v143_v20  ;;  %v630_v32 = vmul.f32 %v4950_v25, %v520_v39  ;;  %v470_v39 = vld [vmem:[%s10282_s5 + $0x28] sm:$0x3] }
  0x15   :  { %v3078_v21 = vrot.slane %v5053_v13, 1  ;;  %v3559_v22 = vrot.slane %v3367_v15, 2  ;;  %v3560_v23 = vrot.slane %v5059_v16, 2  ;;  %v257_v38 = vadd.f32 %v4917_v8, %v146_v24 }
  0x16   :  { %v1725_v27 = vadd.f32 %v1661_v52, %v1595_v17  ;;  %v1662_v46 = vmul.f32 %v4967_v30, %v4976_v41  ;;  %v359_v52 = vmax.f32 %v251_v28, 0.0  ;;  %v362_v53 = vmax.f32 %v254_v31, 0.0 }
  0x17   :  { %v3079_v35 = vsel %vm887_vm1, %v3077_v14, %v3078_v21  ;;  %v3561_v36 = vsel %vm1370_vm2, %v3559_v22, %v3560_v23  ;;  %v5094_v57 = vmul.f32 %v4996_v49, %v4985_v44  ;;  %v365_v58 = vmax.f32 %v257_v38, 0.0 }
  0x18   :  { %v2207_v48 = vadd.f32 %v1985_v10, %v1725_v27  ;;  %v147_v61 = vmul.f32 %v4912_v7, %v34_v33  ;;  %v148_v0 = vmul.f32 %v4912_v7, %v35_v34  ;;  %v631_v1 = vmul.f32 %v4950_v25, %v4974_v40 }
  0x19   :  { %v521_v4 = vmul.f32 %v467_v45, %v359_v52  ;;  %v5100_v5 = vmul.f32 %v470_v39, %v362_v53  ;;  %v698_v6 = vmul.f32 %v4955_v26, %v4974_v40  ;;  %v5104_v9 = vmul.f32 %v473_v55, %v365_v58  ;;  %v474_v45 = vld [vmem:[%s10282_s5 + $0x48] sm:$0xff]  ;;  %v475_v39 = vld [vmem:[%s10282_s5 + $0x50] sm:$0xff] }
  0x1a   :  { %v2689_v3 = vadd.f32 %v2467_v18, %v2207_v48  ;;  %v258_v10 = vadd.f32 %v4917_v8, %v147_v61  ;;  %v259_v12 = vadd.f32 %v4917_v8, %v148_v0  ;;  %v5110_v13 = vmul.f32 %v4955_v26, %v4976_v41 }
  0x1b   :  { %v697_v15 = vmul.f32 %v4955_v26, %v521_v4  ;;  %v1180_v16 = vmul.f32 %v4962_v29, %v521_v4  ;;  %v1793_v17 = vmul.f32 %v4972_v37, %v5100_v5  ;;  %v2275_v18 = vmul.f32 %v4981_v42, %v5100_v5 }
  0x1c   :  { %v2819_v14 = vadd.f32 %v2755_v2, %v2689_v3  ;;  %v2887_v19 = vmul.f32 %v5001_v50, %v5104_v9  ;;  %v3369_v20 = vmul.f32 %v5020_v59, %v5104_v9  ;;  %v366_v22 = vmax.f32 %v258_v10, 0.0 }
  0x1d   :  { %v891_v27 = vrot.slane %v697_v15, 1  ;;  %v1374_v2 = vrot.slane %v1180_v16, 2  ;;  %v1986_v28 = vrot.slane %v1793_v17, 1  ;;  %v2468_v31 = vrot.slane %v2275_v18, 2 }
  0x1e   :  { %v3301_v24 = vadd.f32 %v3079_v35, %v2819_v14  ;;  %v3080_v33 = vrot.slane %v2887_v19, 1  ;;  %v3562_v34 = vrot.slane %v3369_v20, 2  ;;  %v367_v38 = vmax.f32 %v259_v12, 0.0 }
  0x1f   :  { %v892_v35 = vsel %vm887_vm1, %v889_v56, %v891_v27  ;;  %v1375_v52 = vsel %vm1370_vm2, %v1372_v60, %v1374_v2  ;;  %v1987_v53 = vsel %vm887_vm1, %v1984_v62, %v1986_v28  ;;  %v2469_v58 = vsel %vm1370_vm2, %v2466_v11, %v2468_v31 }
  0x20   :  { %v3783_v48 = vadd.f32 %v3561_v36, %v3301_v24  ;;  %v1113_v55 = vadd.f32 %v892_v35, %v630_v32  ;;  %v3081_v61 = vsel %vm887_vm1, %v3078_v21, %v3080_v33  ;;  %v3563_v36 = vsel %vm1370_vm2, %v3560_v23, %v3562_v34 }
  0x21   :  { %v5143_v47 = vmul.f32 %v474_v45, %v366_v22  ;;  %v5145_v51 = vmul.f32 %v475_v39, %v367_v38  ;;  %v893_v56 = vrot.slane %v698_v6, 1  ;;  %v894_v54 = vrot.slane %v5110_v13, 1 }
  0x22   :  { %4661 = vmatmul.msk.f32.vlgmr.msra.gmra.mxu0 %vm3848_vm3, %v3783_v48  ;;  %v1596_v60 = vadd.f32 %v1375_v52, %v1113_v55  ;;  %v1181_v62 = vmul.f32 %v4962_v29, %v4974_v40  ;;  %v1182_v63 = vmul.f32 %v4962_v29, %v4976_v41  ;;  %v1663_v11 = vmul.f32 %v4967_v30, %v4983_v43 }
  0x23   :  { %v895_v21 = vsel %vm887_vm1, %v893_v56, %v894_v54  ;;  %v1794_v23 = vmul.f32 %v4972_v37, %v4983_v43  ;;  %v1795_v32 = vmul.f32 %v4972_v37, %v4985_v44  ;;  %v2276_v0 = vmul.f32 %v4981_v42, %v4983_v43 }
  0x24   :  { %v1726_v3 = vadd.f32 %v1662_v46, %v1596_v60  ;;  %v1114_v4 = vadd.f32 %v895_v21, %v631_v1  ;;  %v1376_v40 = vrot.slane %v1181_v62, 2  ;;  %v1377_v6 = vrot.slane %v1182_v63, 2  ;;  %v36_v46 = vld [vmem:[%s10279_s0 + $0x58] sm:$0x3] }
  0x25   :  { %v1988_v10 = vrot.slane %v1794_v23, 1  ;;  %v1989_v12 = vrot.slane %v1795_v32, 1  ;;  %v2277_v13 = vmul.f32 %v4981_v42, %v4985_v44  ;;  %v2470_v14 = vrot.slane %v2276_v0, 2 }
  0x26   :  { %v2208_v15 = vadd.f32 %v1987_v53, %v1726_v3  ;;  %v1378_v16 = vsel %vm1370_vm2, %v1376_v40, %v1377_v6  ;;  %v2757_v17 = vmul.f32 %v4996_v49, %v5143_v47  ;;  %v2888_v18 = vmul.f32 %v5001_v50, %v5143_v47 }
  0x27   :  { %v1597_v1 = vadd.f32 %v1378_v16, %v1114_v4  ;;  %v1990_v19 = vsel %vm887_vm1, %v1988_v10, %v1989_v12  ;;  %v2471_v20 = vrot.slane %v2277_v13, 2  ;;  %v2889_v22 = vmul.f32 %v5001_v50, %v5145_v51 }
  0x28   :  { %v2690_v24 = vadd.f32 %v2469_v58, %v2208_v15  ;;  %v3082_v27 = vrot.slane %v2888_v18, 1  ;;  %v3370_v2 = vmul.f32 %v5020_v59, %v5143_v47  ;;  %v3371_v28 = vmul.f32 %v5020_v59, %v5145_v51 }
  0x29   :  { %v1727_v31 = vadd.f32 %v1663_v11, %v1597_v1  ;;  %v2472_v33 = vsel %vm1370_vm2, %v2470_v14, %v2471_v20  ;;  %v3083_v34 = vrot.slane %v2889_v22, 1  ;;  %v149_v38 = vmul.f32 %v4912_v7, %v36_v46  ;;  %v38_v14 = vld [vmem:[%s10279_s0 + $0x68] sm:$0xff] }
  0x2a   :  { %v2820_v45 = vadd.f32 %v5094_v57, %v2690_v24  ;;  %v3564_v39 = vrot.slane %v3370_v2, 2  ;;  %v3565_v48 = vrot.slane %v3371_v28, 2  ;;  %v632_v35 = vmul.f32 %v4950_v25, %v4976_v41  ;;  %v476_v57 = vld [vmem:[%s10282_s5 + $0x58] sm:$0x3] }
  0x2b   :  { %v2209_v52 = vadd.f32 %v1990_v19, %v1727_v31  ;;  %v3084_v53 = vsel %vm887_vm1, %v3082_v27, %v3083_v34  ;;  %v260_v55 = vadd.f32 %v4917_v8, %v149_v38  ;;  %v700_v58 = vmul.f32 %v4955_v26, %v5100_v5 }
  0x2c   :  { %v3302_v56 = vadd.f32 %v3081_v61, %v2820_v45  ;;  %v3566_v60 = vsel %vm1370_vm2, %v3564_v39, %v3565_v48  ;;  %v1183_v62 = vmul.f32 %v4962_v29, %v5100_v5  ;;  %v1664_v41 = vmul.f32 %v4967_v30, %v4985_v44  ;;  %v37_v61 = vld [vmem:[%s10279_s0 + $0x60] sm:$0xff] }
  0x2d   :  { %v2691_v63 = vadd.f32 %v2472_v33, %v2209_v52  ;;  %v368_v11 = vmax.f32 %v260_v55, 0.0  ;;  %v896_v21 = vrot.slane %v700_v58, 1  ;;  %v1796_v23 = vmul.f32 %v4972_v37, %v5104_v9  ;;  %v478_v52 = vld [vmem:[%s10282_s5 + $0x68] sm:$0xff] }
  0x2e   :  { %v3784_v32 = vadd.f32 %v3563_v36, %v3302_v56  ;;  %v1379_v0 = vrot.slane %v1183_v62, 2  ;;  %v2278_v3 = vmul.f32 %v4981_v42, %v5104_v9  ;;  %v2758_v5 = vmul.f32 %v4996_v49, %v5145_v51 }
  0x2f   :  { %v2821_v4 = vadd.f32 %v2757_v17, %v2691_v63  ;;  %v5204_v40 = vmul.f32 %v476_v57, %v368_v11  ;;  %v897_v10 = vsel %vm887_vm1, %v894_v54, %v896_v21  ;;  %v1991_v13 = vrot.slane %v1796_v23, 1 }
  0x30   :  { %4662 = vmatmul.msk.f32.gmra.mxu0 %vm3848_vm3, %v3784_v32  ;;  %v1115_v36 = vadd.f32 %v897_v10, %v632_v35  ;;  %v1380_v15 = vsel %vm1370_vm2, %v1377_v6, %v1379_v0  ;;  %v2473_v16 = vrot.slane %v2278_v3, 2  ;;  %v150_v18 = vmul.f32 %v4912_v7, %v37_v61 }
  0x31   :  { %v3303_v46 = vadd.f32 %v3084_v53, %v2821_v4  ;;  %v1992_v17 = vsel %vm887_vm1, %v1989_v12, %v1991_v13  ;;  %v2890_v1 = vmul.f32 %v5001_v50, %v5204_v40  ;;  %v3372_v54 = vmul.f32 %v5020_v59, %v5204_v40  ;;  %v477_v12 = vld [vmem:[%s10282_s5 + $0x60] sm:$0xff] }
  0x32   :  { %v1598_v19 = vadd.f32 %v1380_v15, %v1115_v36  ;;  %v2474_v22 = vsel %vm1370_vm2, %v2471_v20, %v2473_v16  ;;  %v151_v24 = vmul.f32 %v4912_v7, %v38_v14  ;;  %v261_v27 = vadd.f32 %v4917_v8, %v150_v18  ;;  %v49_v18 = vld [vmem:[%s10279_s0 + $0xc0] sm:$0xff] }
  0x33   :  { %v3785_v6 = vadd.f32 %v3566_v60, %v3303_v46  ;;  %v3085_v2 = vrot.slane %v2890_v1, 1  ;;  %v3567_v28 = vrot.slane %v3372_v54, 2  ;;  %v633_v31 = vmul.f32 %v4950_v25, %v4983_v43  ;;  %v50_v54 = vld [vmem:[%s10279_s0 + $0xc8] sm:$0xff] }
  0x34   :  { %v1728_v33 = vadd.f32 %v1664_v41, %v1598_v19  ;;  %v262_v38 = vadd.f32 %v4917_v8, %v151_v24  ;;  %v369_v45 = vmax.f32 %v261_v27, 0.0  ;;  %v701_v20 = vmul.f32 %v4955_v26, %v4983_v43 }
  0x35   :  { %v3086_v39 = vsel %vm887_vm1, %v3083_v34, %v3085_v2  ;;  %v3568_v35 = vsel %vm1370_vm2, %v3565_v48, %v3567_v28  ;;  %v5236_v53 = vmul.f32 %v4955_v26, %v4985_v44  ;;  %v1184_v55 = vmul.f32 %v4962_v29, %v4983_v43  ;;  %v53_v2 = vld [vmem:[%s10279_s0 + $0xe0] sm:$0xff]  ;;  %v55_v28 = vld [vmem:[%s10279_s0 + $0xf0] sm:$0xff] }
  0x36   :  { %v2210_v58 = vadd.f32 %v1992_v17, %v1728_v33  ;;  %v370_v56 = vmax.f32 %v262_v38, 0.0  ;;  %v5240_v60 = vmul.f32 %v477_v12, %v369_v45  ;;  %v898_v57 = vrot.slane %v701_v20, 1  ;;  %v56_v38 = vld [vmem:[%s10279_s0 + $0xf8] sm:$0xff] }
  0x37   :  { %v899_v34 = vrot.slane %v5236_v53, 1  ;;  %v5245_v48 = vmul.f32 %v4962_v29, %v4985_v44  ;;  %v1381_v62 = vrot.slane %v1184_v55, 2  ;;  %v1665_v41 = vmul.f32 %v4967_v30, %v5143_v47  ;;  %v57_v53 = vld [vmem:[%s10279_s0 + $0x100] sm:$0x3] }
  0x38   :  { %4663 = vmatmul.msk.f32.gmra.mxu0 %vm3848_vm3, %v3785_v6  ;;  %v2692_v63 = vadd.f32 %v2474_v22, %v2210_v58  ;;  %v5250_v11 = vmul.f32 %v478_v52, %v370_v56  ;;  %v1797_v43 = vmul.f32 %v4972_v37, %v5143_v47  ;;  %v5256_v21 = vmul.f32 %v4972_v37, %v5145_v51  ;;  %v52_v6 = vld [vmem:[%s10279_s0 + $0xd8] sm:$0xff] }
  0x39   :  { %v900_v23 = vsel %vm887_vm1, %v898_v57, %v899_v34  ;;  %v1382_v61 = vrot.slane %v5245_v48, 2  ;;  %v2279_v32 = vmul.f32 %v4981_v42, %v5143_v47  ;;  %v5266_v0 = vmul.f32 %v4981_v42, %v5145_v51 }
  0x3a   :  { %v2822_v3 = vadd.f32 %v2758_v5, %v2692_v63  ;;  %v1116_v4 = vadd.f32 %v900_v23, %v633_v31  ;;  %v1993_v10 = vrot.slane %v1797_v43, 1  ;;  %v1994_v13 = vrot.slane %v5256_v21, 1  ;;  %v40_v21 = vld [vmem:[%s10279_s0 + $0x78] sm:$0xff] }
  0x3b   :  { %v1383_v14 = vsel %vm1370_vm2, %v1381_v62, %v1382_v61  ;;  %v2475_v36 = vrot.slane %v2279_v32, 2  ;;  %v2476_v15 = vrot.slane %v5266_v0, 2  ;;  %v2759_v16 = vmul.f32 %v4996_v49, %v5240_v60  ;;  %v39_v62 = vld [vmem:[%s10279_s0 + $0x70] sm:$0x3] }
  0x3c   :  { %v3304_v46 = vadd.f32 %v3086_v39, %v2822_v3  ;;  %v1599_v5 = vadd.f32 %v1383_v14, %v1116_v4  ;;  %v1995_v17 = vsel %vm887_vm1, %v1993_v10, %v1994_v13  ;;  %v2891_v1 = vmul.f32 %v5001_v50, %v5240_v60  ;;  %v489_v14 = vld [vmem:[%s10282_s5 + $0xc0] sm:$0xff] }
  0x3d   :  { %v2477_v19 = vsel %vm1370_vm2, %v2475_v36, %v2476_v15  ;;  %v5291_v22 = vmul.f32 %v5001_v50, %v5250_v11  ;;  %v3373_v24 = vmul.f32 %v5020_v59, %v5240_v60  ;;  %v5297_v27 = vmul.f32 %v5020_v59, %v5250_v11 }
  0x3e   :  { %v3786_v12 = vadd.f32 %v3568_v35, %v3304_v46  ;;  %v1729_v31 = vadd.f32 %v1665_v41, %v1599_v5  ;;  %v3087_v33 = vrot.slane %v2891_v1, 1  ;;  %v162_v45 = vmul.f32 %v4912_v7, %v49_v18  ;;  %v490_v5 = vld [vmem:[%s10282_s5 + $0xc8] sm:$0xff]  ;;  %v493_v1 = vld [vmem:[%s10282_s5 + $0xe0] sm:$0xff] }
  0x3f   :  { %v3088_v20 = vrot.slane %v5291_v22, 1  ;;  %v3569_v39 = vrot.slane %v3373_v24, 2  ;;  %v3570_v52 = vrot.slane %v5297_v27, 2  ;;  %v163_v55 = vmul.f32 %v4912_v7, %v50_v54  ;;  %v41_v22 = vld [vmem:[%s10279_s0 + $0x80] sm:$0xff]  ;;  %v491_v27 = vld [vmem:[%s10282_s5 + $0xd0] sm:$0x3] }
  0x40   :  { %4664 = vmatmul.msk.f32.gmra.mxu0 %vm3848_vm3, %v3786_v12  ;;  %v2211_v58 = vadd.f32 %v1995_v17, %v1729_v31  ;;  %v165_v35 = vmul.f32 %v4912_v7, %v52_v6  ;;  %v166_v56 = vmul.f32 %v4912_v7, %v53_v2  ;;  %v168_v57 = vmul.f32 %v4912_v7, %v55_v28  ;;  %v492_v17 = vld [vmem:[%s10282_s5 + $0xd8] sm:$0xff]  ;;  %v495_v28 = vld [vmem:[%s10282_s5 + $0xf0] sm:$0xff] }
  0x41   :  { %v3089_v41 = vsel %vm887_vm1, %v3087_v33, %v3088_v20  ;;  %v3571_v63 = vsel %vm1370_vm2, %v3569_v39, %v3570_v52  ;;  %v169_v43 = vmul.f32 %v4912_v7, %v56_v38  ;;  %v273_v23 = vadd.f32 %v4917_v8, %v162_v45  ;;  %v496_v12 = vld [vmem:[%s10282_s5 + $0xf8] sm:$0xff] }
  0x42   :  { %v2693_v32 = vadd.f32 %v2477_v19, %v2211_v58  ;;  %v274_v3 = vadd.f32 %v4917_v8, %v163_v55  ;;  %v276_v4 = vadd.f32 %v4917_v8, %v165_v35  ;;  %v277_v10 = vadd.f32 %v4917_v8, %v166_v56 }
  0x43   :  { %v279_v36 = vadd.f32 %v4917_v8, %v168_v57  ;;  %v280_v18 = vadd.f32 %v4917_v8, %v169_v43  ;;  %v381_v46 = vmax.f32 %v273_v23, 0.0  ;;  %v152_v54 = vmul.f32 %v4912_v7, %v39_v62 }
  0x44   :  { %v2823_v19 = vadd.f32 %v2759_v16, %v2693_v32  ;;  %v382_v24 = vmax.f32 %v274_v3, 0.0  ;;  %v384_v6 = vmax.f32 %v276_v4, 0.0  ;;  %v385_v2 = vmax.f32 %v277_v10, 0.0 }
  0x45   :  { %v387_v31 = vmax.f32 %v279_v36, 0.0  ;;  %v388_v33 = vmax.f32 %v280_v18, 0.0  ;;  %v5354_v38 = vmul.f32 %v489_v14, %v381_v46  ;;  %v263_v45 = vadd.f32 %v4917_v8, %v152_v54 }
  0x46   :  { %v3305_v39 = vadd.f32 %v3089_v41, %v2823_v19  ;;  %v5357_v55 = vmul.f32 %v490_v5, %v382_v24  ;;  %v5359_v16 = vmul.f32 %v492_v17, %v384_v6  ;;  %v5361_v58 = vmul.f32 %v493_v1, %v385_v2 }
  0x47   :  { %10575 = vst [vmem:[#allocation2_spill] sm:$0xff] %v5354_v38  ;;  %v5363_v35 = vmul.f32 %v495_v28, %v387_v31  ;;  %v5365_v56 = vmul.f32 %v496_v12, %v388_v33  ;;  %v645_v57 = vmul.f32 %v4950_v25, %v5354_v38  ;;  %v719_v62 = vmul.f32 %v4955_v26, %v5354_v38 }
  0x48   :  { %10576 = vst [vmem:[#allocation3_spill] sm:$0xff] %v5357_v55  ;;  %v3787_v43 = vadd.f32 %v3571_v63, %v3305_v39  ;;  %v5373_v41 = vmul.f32 %v4955_v26, %v5357_v55  ;;  %v1202_v23 = vmul.f32 %v4962_v29, %v5354_v38  ;;  %v5379_v32 = vmul.f32 %v4962_v29, %v5357_v55  ;;  %v479_v39 = vld [vmem:[%s10282_s5 + $0x70] sm:$0x3] }
  0x49   :  { %10577 = vst [vmem:[#allocation4_spill] sm:$0xff] %v5359_v16  ;;  %v928_v3 = vrot.slane %v719_v62, 1  ;;  %v1677_v4 = vmul.f32 %v4967_v30, %v5359_v16  ;;  %v1815_v10 = vmul.f32 %v4972_v37, %v5359_v16  ;;  %v5387_v63 = vmul.f32 %v4972_v37, %v5361_v58 }
  0x4a   :  { %10578 = vst [vmem:[#allocation5_spill] sm:$0xff] %v5361_v58  ;;  %4665 = vmatmul.msk.f32.gmra.mxu0 %vm3848_vm3, %v3787_v43  ;;  %v10291_v14 = vrot.slane %v5373_v41, 1  ;;  %v1411_v36 = vrot.slane %v1202_v23, 2  ;;  %v10287_v18 = vrot.slane %v5379_v32, 2  ;;  %v2297_v46 = vmul.f32 %v4981_v42, %v5359_v16 }
  0x4b   :  { %v2023_v5 = vrot.slane %v1815_v10, 1  ;;  %v10286_v17 = vrot.slane %v5387_v63, 1  ;;  %v5397_v1 = vmul.f32 %v4981_v42, %v5361_v58  ;;  %v2771_v54 = vmul.f32 %v4996_v49, %v5363_v35 }
  0x4c   :  { %v930_v19 = vsel %vm887_vm1, %v928_v3, %v10291_v14  ;;  %v1413_v24 = vsel %vm1370_vm2, %v1411_v36, %v10287_v18  ;;  %v2505_v6 = vrot.slane %v2297_v46, 2  ;;  %v2909_v2 = vmul.f32 %v5001_v50, %v5363_v35 }
  0x4d   :  { %v1128_v28 = vadd.f32 %v930_v19, %v645_v57  ;;  %v2025_v12 = vsel %vm887_vm1, %v2023_v5, %v10286_v17  ;;  %v10290_v31 = vrot.slane %v5397_v1, 2  ;;  %v5415_v33 = vmul.f32 %v5001_v50, %v5365_v56 }
  0x4e   :  { %v3117_v62 = vrot.slane %v2909_v2, 1  ;;  %v3391_v43 = vmul.f32 %v5020_v59, %v5363_v35  ;;  %v5424_v57 = vmul.f32 %v5020_v59, %v5365_v56  ;;  %v371_v23 = vmax.f32 %v263_v45, 0.0 }
  0x4f   :  { %v1611_v3 = vadd.f32 %v1413_v24, %v1128_v28  ;;  %v2507_v10 = vsel %vm1370_vm2, %v2505_v6, %v10290_v31  ;;  %v10289_v36 = vrot.slane %v5415_v33, 1  ;;  %v634_v46 = vmul.f32 %v4950_v25, %v4985_v44 }
  0x50   :  { %v3599_v5 = vrot.slane %v3391_v43, 2  ;;  %v10288_v19 = vrot.slane %v5424_v57, 2  ;;  %v5433_v2 = vmul.f32 %v479_v39, %v371_v23  ;;  %v703_v17 = vmul.f32 %v4955_v26, %v5104_v9 }
  0x51   :  { %v1741_v18 = vadd.f32 %v1677_v4, %v1611_v3  ;;  %v3119_v45 = vsel %vm887_vm1, %v3117_v62, %v10289_v36  ;;  %v1186_v24 = vmul.f32 %v4962_v29, %v5104_v9  ;;  %v1666_v6 = vmul.f32 %v4967_v30, %v5145_v51  ;;  %v51_v3 = vld [vmem:[%s10279_s0 + $0xd0] sm:$0x3] }
  0x52   :  { %v3601_v44 = vsel %vm1370_vm2, %v3599_v5, %v10288_v19  ;;  %v901_v28 = vrot.slane %v703_v17, 1  ;;  %v1799_v39 = vmul.f32 %v4972_v37, %v5204_v40  ;;  %v2281_v4 = vmul.f32 %v4981_v42, %v5204_v40 }
  0x53   :  { %v2223_v43 = vadd.f32 %v2025_v12, %v1741_v18  ;;  %v1384_v23 = vrot.slane %v1186_v24, 2  ;;  %v2760_v62 = vmul.f32 %v4996_v49, %v5250_v11  ;;  %v2893_v9 = vmul.f32 %v5001_v50, %v5433_v2  ;;  %v54_v12 = vld [vmem:[%s10279_s0 + $0xe8] sm:$0x3] }
  0x54   :  { %v902_v17 = vsel %vm887_vm1, %v899_v34, %v901_v28  ;;  %v1996_v5 = vrot.slane %v1799_v39, 1  ;;  %v2478_v19 = vrot.slane %v2281_v4, 2  ;;  %v3375_v18 = vmul.f32 %v5020_v59, %v5433_v2 }
  0x55   :  { %v2705_v24 = vadd.f32 %v2507_v10, %v2223_v43  ;;  %v1117_v36 = vadd.f32 %v902_v17, %v634_v46  ;;  %v1385_v31 = vsel %vm1370_vm2, %v1382_v61, %v1384_v23  ;;  %v3090_v14 = vrot.slane %v2893_v9, 1  ;;  %v494_v43 = vld [vmem:[%s10282_s5 + $0xe8] sm:$0x3]  ;;  %v497_v17 = vld [vmem:[%s10282_s5 + $0x100] sm:$0x3] }
  0x56   :  { %v1997_v34 = vsel %vm887_vm1, %v1994_v13, %v1996_v5  ;;  %v2479_v28 = vsel %vm1370_vm2, %v2476_v15, %v2478_v19  ;;  %v3572_v39 = vrot.slane %v3375_v18, 2  ;;  %v164_v10 = vmul.f32 %v4912_v7, %v51_v3 }
  0x57   :  { %v2835_v46 = vadd.f32 %v2771_v54, %v2705_v24  ;;  %v1600_v48 = vadd.f32 %v1385_v31, %v1117_v36  ;;  %v3091_v61 = vsel %vm887_vm1, %v3088_v20, %v3090_v14  ;;  %v167_v4 = vmul.f32 %v4912_v7, %v54_v12 }
  0x58   :  { %v3573_v0 = vsel %vm1370_vm2, %v3570_v52, %v3572_v39  ;;  %v170_v13 = vmul.f32 %v4912_v7, %v57_v53  ;;  %v275_v15 = vadd.f32 %v4917_v8, %v164_v10  ;;  %v646_v54 = vmul.f32 %v4950_v25, %v5357_v55 }
  0x59   :  { %v3317_v20 = vadd.f32 %v3119_v45, %v2835_v46  ;;  %v1730_v14 = vadd.f32 %v1666_v6, %v1600_v48  ;;  %v278_v31 = vadd.f32 %v4917_v8, %v167_v4  ;;  %v1678_v52 = vmul.f32 %v4967_v30, %v5361_v58 }
  0x5a   :  { %v281_v36 = vadd.f32 %v4917_v8, %v170_v13  ;;  %v383_v19 = vmax.f32 %v275_v15, 0.0  ;;  %v5508_v45 = vmul.f32 %v4996_v49, %v5365_v56  ;;  %v153_v6 = vmul.f32 %v4912_v7, %v40_v21 }
  0x5b   :  { %v3799_v23 = vadd.f32 %v3601_v44, %v3317_v20  ;;  %v2212_v9 = vadd.f32 %v1997_v34, %v1730_v14  ;;  %v386_v3 = vmax.f32 %v278_v31, 0.0  ;;  %v154_v5 = vmul.f32 %v4912_v7, %v41_v22 }
  0x5c   :  { %v389_v18 = vmax.f32 %v281_v36, 0.0  ;;  %v5515_v12 = vmul.f32 %v491_v27, %v383_v19  ;;  %v264_v24 = vadd.f32 %v4917_v8, %v153_v6  ;;  %v635_v53 = vmul.f32 %v4950_v25, %v5143_v47 }
  0x5d   :  { %4677 = vmatmul.msk.f32.vlgmr.msra.gmra.mxu1 %vm3848_vm3, %v3799_v23  ;;  %v2694_v39 = vadd.f32 %v2479_v28, %v2212_v9  ;;  %v5521_v44 = vmul.f32 %v494_v43, %v386_v3  ;;  %v265_v34 = vadd.f32 %v4917_v8, %v154_v5  ;;  %v704_v10 = vmul.f32 %v4955_v26, %v5143_v47  ;;  %v480_v28 = vld [vmem:[%s10282_s5 + $0x78] sm:$0xff] }
  0x5e   :  { %10579 = vst [vmem:[#allocation6_spill] sm:$0xff] %v5515_v12  ;;  %v5526_v46 = vmul.f32 %v497_v17, %v389_v18  ;;  %v721_v48 = vmul.f32 %v4955_v26, %v5515_v12  ;;  %v1204_v4 = vmul.f32 %v4962_v29, %v5515_v12  ;;  %v372_v21 = vmax.f32 %v264_v24, 0.0 }
  0x5f   :  { %10580 = vst [vmem:[#allocation7_spill] sm:$0xff] %v5521_v44  ;;  %v2824_v13 = vadd.f32 %v2760_v62, %v2694_v39  ;;  %v1817_v15 = vmul.f32 %v4972_v37, %v5521_v44  ;;  %v2299_v22 = vmul.f32 %v4981_v42, %v5521_v44  ;;  %v373_v20 = vmax.f32 %v265_v34, 0.0  ;;  %v481_v62 = vld [vmem:[%s10282_s5 + $0x80] sm:$0xff] }
  0x60   :  { %v931_v14 = vrot.slane %v721_v48, 1  ;;  %v1414_v31 = vrot.slane %v1204_v4, 2  ;;  %v2911_v27 = vmul.f32 %v5001_v50, %v5526_v46  ;;  %v3393_v36 = vmul.f32 %v5020_v59, %v5526_v46 }
  0x61   :  { %v3306_v19 = vadd.f32 %v3091_v61, %v2824_v13  ;;  %v2026_v43 = vrot.slane %v1817_v15, 1  ;;  %v2508_v6 = vrot.slane %v2299_v22, 2  ;;  %v5546_v23 = vmul.f32 %v480_v28, %v372_v21 }
  0x62   :  { %v10582_v9 = vrot.slane %v5373_v41, 1  ;;  %v10583_v17 = vrot.slane %v5379_v32, 2  ;;  %v3120_v18 = vrot.slane %v2911_v27, 1  ;;  %v3602_v24 = vrot.slane %v3393_v36, 2 }
  0x63   :  { %10581 = vst [vmem:[#allocation8_spill] sm:$0xff] %v5546_v23  ;;  %v3788_v39 = vadd.f32 %v3573_v0, %v3306_v19  ;;  %v10584_v34 = vrot.slane %v5387_v63, 1  ;;  %v10585_v4 = vrot.slane %v5397_v1, 2  ;;  %v10586_v41 = vrot.slane %v5415_v33, 1 }
  0x64   :  { %v932_v3 = vsel %vm887_vm1, %v10582_v9, %v931_v14  ;;  %v1415_v5 = vsel %vm1370_vm2, %v10583_v17, %v1414_v31  ;;  %v10587_v32 = vrot.slane %v5424_v57, 2  ;;  %v5566_v15 = vmul.f32 %v481_v62, %v373_v20  ;;  %v58_v17 = vld [vmem:[%s10279_s0 + $0x108] sm:$0xff] }
  0x65   :  { %v1129_v61 = vadd.f32 %v932_v3, %v646_v54  ;;  %v2027_v48 = vsel %vm887_vm1, %v10584_v34, %v2026_v43  ;;  %v2509_v21 = vsel %vm1370_vm2, %v10585_v4, %v2508_v6  ;;  %v3121_v28 = vsel %vm887_vm1, %v10586_v41, %v3120_v18  ;;  %4666 = vmatmul.msk.f32.gmra.mxu0 %vm3848_vm3, %v3788_v39  ;;  %v59_v4 = vld [vmem:[%s10279_s0 + $0x110] sm:$0xff] }
  0x66   :  { %v3603_v13 = vsel %vm1370_vm2, %v10587_v32, %v3602_v24  ;;  %10588 = vst [vmem:[#allocation9_spill] sm:$0xff] %v5566_v15  ;;  %v5570_v0 = vmul.f32 %v4955_v26, %v5145_v51  ;;  %v903_v1 = vrot.slane %v704_v10, 1  ;;  %v1187_v54 = vmul.f32 %v4962_v29, %v5143_v47 }
  0x67   :  { %v1612_v63 = vadd.f32 %v1415_v5, %v1129_v61  ;;  %v5577_v33 = vmul.f32 %v4962_v29, %v5145_v51  ;;  %v1667_v22 = vmul.f32 %v4967_v30, %v5240_v60  ;;  %v1800_v20 = vmul.f32 %v4972_v37, %v5240_v60 }
  0x68   :  { %v904_v57 = vrot.slane %v5570_v0, 1  ;;  %v5586_v14 = vmul.f32 %v4972_v37, %v5250_v11  ;;  %v1386_v31 = vrot.slane %v1187_v54, 2  ;;  %v2282_v27 = vmul.f32 %v4981_v42, %v5240_v60 }
  0x69   :  { %v1742_v10 = vadd.f32 %v1678_v52, %v1612_v63  ;;  %v1387_v47 = vrot.slane %v5577_v33, 2  ;;  %v1998_v19 = vrot.slane %v1800_v20, 1  ;;  %v5597_v6 = vmul.f32 %v4981_v42, %v5250_v11  ;;  %v5812_v33 = vld [vmem:[%s10283_s1 + $0x8] ss:$0 sm:$0xff] }
  0x6a   :  { %v905_v36 = vsel %vm887_vm1, %v903_v1, %v904_v57  ;;  %v1999_v43 = vrot.slane %v5586_v14, 1  ;;  %v2480_v3 = vrot.slane %v2282_v27, 2  ;;  %v2761_v24 = vmul.f32 %v4996_v49, %v5546_v23 }
  0x6b   :  { %v2224_v62 = vadd.f32 %v2027_v48, %v1742_v10  ;;  %v1118_v9 = vadd.f32 %v905_v36, %v635_v53  ;;  %v1388_v52 = vsel %vm1370_vm2, %v1386_v31, %v1387_v47  ;;  %v2481_v18 = vrot.slane %v5597_v6, 2 }
  0x6c   :  { %v2000_v5 = vsel %vm887_vm1, %v1998_v19, %v1999_v43  ;;  %v2894_v53 = vmul.f32 %v5001_v50, %v5546_v23  ;;  %v5615_v34 = vmul.f32 %v5001_v50, %v5566_v15  ;;  %v3376_v48 = vmul.f32 %v5020_v59, %v5546_v23 }
  0x6d   :  { %v2706_v39 = vadd.f32 %v2509_v21, %v2224_v62  ;;  %v1601_v61 = vadd.f32 %v1388_v52, %v1118_v9  ;;  %v2482_v41 = vsel %vm1370_vm2, %v2480_v3, %v2481_v18  ;;  %v5627_v21 = vmul.f32 %v5020_v59, %v5566_v15 }
  0x6e   :  { %v3092_v32 = vrot.slane %v2894_v53, 1  ;;  %v171_v63 = vmul.f32 %v4912_v7, %v58_v17  ;;  %v10299_v20 = vrot.slane %v5615_v34, 1  ;;  %v3574_v10 = vrot.slane %v3376_v48, 2  ;;  %v499_v53 = vld [vmem:[%s10282_s5 + $0x110] sm:$0xff] }
  0x6f   :  { %v2836_v1 = vadd.f32 %v5508_v45, %v2706_v39  ;;  %v1731_v54 = vadd.f32 %v1667_v22, %v1601_v61  ;;  %v10298_v31 = vrot.slane %v5627_v21, 2  ;;  %v172_v27 = vmul.f32 %v4912_v7, %v59_v4  ;;  %v498_v45 = vld [vmem:[%s10282_s5 + $0x108] sm:$0xff] }
  0x70   :  { %v282_v36 = vadd.f32 %v4917_v8, %v171_v63  ;;  %v647_v19 = vmul.f32 %v4950_v25, %v5359_v16  ;;  %v3094_v52 = vsel %vm887_vm1, %v3092_v32, %v10299_v20  ;;  %v722_v22 = vmul.f32 %v4955_v26, %v5359_v16 }
  0x71   :  { %v3318_v62 = vadd.f32 %v3121_v28, %v2836_v1  ;;  %v2213_v9 = vadd.f32 %v2000_v5, %v1731_v54  ;;  %v3576_v7 = vsel %vm1370_vm2, %v3574_v10, %v10298_v31  ;;  %v283_v3 = vadd.f32 %v4917_v8, %v172_v27 }
  0x72   :  { %v390_v25 = vmax.f32 %v282_v36, 0.0  ;;  %v5651_v28 = vmul.f32 %v4955_v26, %v5361_v58  ;;  %v933_v39 = vrot.slane %v722_v22, 1  ;;  %v1205_v61 = vmul.f32 %v4962_v29, %v5359_v16 }
  0x73   :  { %v3800_v17 = vadd.f32 %v3603_v13, %v3318_v62  ;;  %v2695_v5 = vadd.f32 %v2482_v41, %v2213_v9  ;;  %v391_v48 = vmax.f32 %v283_v3, 0.0  ;;  %v5663_v32 = vmul.f32 %v4962_v29, %v5361_v58 }
  0x74   :  { %v5658_v4 = vmul.f32 %v498_v45, %v390_v25  ;;  %v10297_v8 = vrot.slane %v5651_v28, 1  ;;  %v1416_v13 = vrot.slane %v1205_v61, 2  ;;  %v1679_v41 = vmul.f32 %v4967_v30, %v5363_v35  ;;  %v5715_v61 = vld [vmem:[%s10280_s3] ss:$0 sm:$0xff] }
  0x75   :  { %4678 = vmatmul.msk.f32.gmra.mxu1 %vm3848_vm3, %v3800_v17  ;;  %v2825_v26 = vadd.f32 %v2761_v24, %v2695_v5  ;;  %v1818_v63 = vmul.f32 %v4972_v37, %v5363_v35  ;;  %v5670_v1 = vmul.f32 %v499_v53, %v391_v48  ;;  %v10295_v10 = vrot.slane %v5663_v32, 2 }
  0x76   :  { %10589 = vst [vmem:[#allocation10_spill] sm:$0xff] %v5658_v4  ;;  %v935_v54 = vsel %vm887_vm1, %v933_v39, %v10297_v8  ;;  %v5678_v29 = vmul.f32 %v4972_v37, %v5365_v56  ;;  %v2300_v30 = vmul.f32 %v4981_v42, %v5363_v35  ;;  %v5688_v45 = vmul.f32 %v4981_v42, %v5365_v56 }
  0x77   :  { %v3307_v24 = vadd.f32 %v3094_v52, %v2825_v26  ;;  %v1130_v27 = vadd.f32 %v935_v54, %v647_v19  ;;  %v2028_v36 = vrot.slane %v1818_v63, 1  ;;  %v1418_v62 = vsel %vm1370_vm2, %v1416_v13, %v10295_v10  ;;  %v42_v19 = vld [vmem:[%s10279_s0 + $0x88] sm:$0x3] }
  0x78   :  { %v10294_v9 = vrot.slane %v5678_v29, 1  ;;  %v2773_v37 = vmul.f32 %v4996_v49, %v5658_v4  ;;  %v2510_v3 = vrot.slane %v2300_v30, 2  ;;  %v2912_v25 = vmul.f32 %v5001_v50, %v5658_v4 }
  0x79   :  { %v3789_v52 = vadd.f32 %v3576_v7, %v3307_v24  ;;  %v1613_v22 = vadd.f32 %v1418_v62, %v1130_v27  ;;  %v10293_v42 = vrot.slane %v5688_v45, 2  ;;  %v5703_v5 = vmul.f32 %v5001_v50, %v5670_v1  ;;  %v5733_v24 = vld [vmem:[%s10281_s4] ss:$0 sm:$0xff]  ;;  %v482_v62 = vld [vmem:[%s10282_s5 + $0x88] sm:$0x3] }
  0x7a   :  { %v2030_v17 = vsel %vm887_vm1, %v2028_v36, %v10294_v9  ;;  %v3394_v49 = vmul.f32 %v5020_v59, %v5658_v4  ;;  %v3122_v53 = vrot.slane %v2912_v25, 1  ;;  %v5710_v39 = vmul.f32 %v5020_v59, %v5670_v1  ;;  %v5739_v36 = vld [vmem:[%s10283_s1 + $0x1] ss:$0 sm:$0xff]  ;;  %v5766_v25 = vld [vmem:[%s10283_s1 + $0x4] ss:$0 sm:$0xff] }
  0x7b   :  { %4667 = vmatmul.msk.f32.gmra.mxu0 %vm3848_vm3, %v3789_v52  ;;  %v1743_v7 = vadd.f32 %v1679_v41, %v1613_v22  ;;  %v155_v48 = vmul.f32 %v5715_v61, %v42_v19  ;;  %v2512_v50 = vsel %vm1370_vm2, %v2510_v3, %v10293_v42  ;;  %v10292_v26 = vrot.slane %v5703_v5, 1  ;;  %v5725_v41 = vld [vmem:[%s10283_s1] ss:$0 sm:$0xff]  ;;  %v5752_v19 = vld [vmem:[%s10283_s1 + $0x2] ss:$0 sm:$0xff] }
  0x7c   :  { %v3604_v13 = vrot.slane %v3394_v49, 2  ;;  %v636_v59 = vmul.f32 %v5725_v41, %v5145_v51  ;;  %v10296_v54 = vrot.slane %v5710_v39, 2  ;;  %v706_v30 = vmul.f32 %v5739_v36, %v5204_v40  ;;  %v5759_v22 = vld [vmem:[%s10283_s1 + $0x3] ss:$0 sm:$0xff]  ;;  %v5779_v9 = vld [vmem:[%s10283_s1 + $0x5] ss:$0 sm:$0xff] }
  0x7d   :  { %v2225_v63 = vadd.f32 %v2030_v17, %v1743_v7  ;;  %v266_v27 = vadd.f32 %v5733_v24, %v155_v48  ;;  %v3124_v51 = vsel %vm887_vm1, %v3122_v53, %v10292_v26  ;;  %v1189_v52 = vmul.f32 %v5752_v19, %v5204_v40  ;;  %v60_v40 = vld [vmem:[%s10279_s0 + $0x118] sm:$0x3] }
  0x7e   :  { %v1668_v3 = vmul.f32 %v5759_v22, %v5250_v11  ;;  %v1802_v17 = vmul.f32 %v5766_v25, %v5433_v2  ;;  %v3606_v7 = vsel %vm1370_vm2, %v3604_v13, %v10296_v54  ;;  %v906_v48 = vrot.slane %v706_v30, 1 }
  0x7f   :  { %v2707_v49 = vadd.f32 %v2512_v50, %v2225_v63  ;;  %v374_v53 = vmax.f32 %v266_v27, 0.0  ;;  %v1389_v26 = vrot.slane %v1189_v52, 2  ;;  %v2284_v10 = vmul.f32 %v5779_v9, %v5433_v2  ;;  %v5786_v50 = vld [vmem:[%s10283_s1 + $0x6] ss:$0 sm:$0xff] }
  0x80   :  { %v2001_v42 = vrot.slane %v1802_v17, 1  ;;  %v2762_v13 = vmul.f32 %v5786_v50, %v5566_v15  ;;  %v907_v30 = vsel %vm887_vm1, %v904_v57, %v906_v48  ;;  %v173_v52 = vmul.f32 %v5715_v61, %v60_v40 }
  0x81   :  { %v2837_v63 = vadd.f32 %v2773_v37, %v2707_v49  ;;  %v5790_v27 = vmul.f32 %v482_v62, %v374_v53  ;;  %v1119_v17 = vadd.f32 %v907_v30, %v636_v59  ;;  %v1390_v54 = vsel %vm1370_vm2, %v1387_v47, %v1389_v26  ;;  %v5805_v37 = vld [vmem:[%s10283_s1 + $0x7] ss:$0 sm:$0xff] }
  0x82   :  { %v2002_v8 = vsel %vm887_vm1, %v1999_v43, %v2001_v42  ;;  %v2483_v31 = vrot.slane %v2284_v10, 2  ;;  %v284_v14 = vadd.f32 %v5733_v24, %v173_v52  ;;  %v500_v10 = vld [vmem:[%s10282_s5 + $0x118] sm:$0x3]  ;;  %v648_v42 = vmul.f32 %v5725_v41, %v5361_v58 }
  0x83   :  { %v3319_v20 = vadd.f32 %v3124_v51, %v2837_v63  ;;  %v2896_v0 = vmul.f32 %v5805_v37, %v5790_v27  ;;  %v3378_v57 = vmul.f32 %v5812_v33, %v5790_v27  ;;  %v1602_v47 = vadd.f32 %v1390_v54, %v1119_v17 }
  0x84   :  { %v2484_v43 = vsel %vm1370_vm2, %v2481_v18, %v2483_v31  ;;  %v724_v26 = vmul.f32 %v5739_v36, %v5521_v44  ;;  %v392_v40 = vmax.f32 %v284_v14, 0.0  ;;  %v1207_v6 = vmul.f32 %v5752_v19, %v5521_v44 }
  0x85   :  { %v3801_v59 = vadd.f32 %v3606_v7, %v3319_v20  ;;  %v3095_v51 = vrot.slane %v2896_v0, 1  ;;  %v3577_v62 = vrot.slane %v3378_v57, 2  ;;  %v1732_v49 = vadd.f32 %v1668_v3, %v1602_v47 }
  0x86   :  { %v936_v54 = vrot.slane %v724_v26, 1  ;;  %v1680_v18 = vmul.f32 %v5759_v22, %v5365_v56  ;;  %v10590_v31 = vrot.slane %v5615_v34, 1  ;;  %v10591_v48 = vrot.slane %v5627_v21, 2  ;;  %v79_v21 = vld [vmem:[%s10279_s0 + $0x1b0] sm:$0xff] }
  0x87   :  { %4679 = vmatmul.msk.f32.gmra.mxu1 %vm3848_vm3, %v3801_v59  ;;  %v5838_v7 = vmul.f32 %v500_v10, %v392_v40  ;;  %v1820_v3 = vmul.f32 %v5766_v25, %v5526_v46  ;;  %v2214_v63 = vadd.f32 %v2002_v8, %v1732_v49  ;;  %v10592_v30 = vrot.slane %v5651_v28, 1  ;;  %v80_v28 = vld [vmem:[%s10279_s0 + $0x1b8] sm:$0xff] }
  0x88   :  { %v3096_v53 = vsel %vm887_vm1, %v10590_v31, %v3095_v51  ;;  %v3578_v20 = vsel %vm1370_vm2, %v10591_v48, %v3577_v62  ;;  %v1419_v17 = vrot.slane %v1207_v6, 2  ;;  %v2302_v34 = vmul.f32 %v5779_v9, %v5526_v46  ;;  %v82_v51 = vld [vmem:[%s10279_s0 + $0x1c8] sm:$0xff]  ;;  %v83_v62 = vld [vmem:[%s10279_s0 + $0x1d0] sm:$0xff] }
  0x89   :  { %v937_v52 = vsel %vm887_vm1, %v10592_v30, %v936_v54  ;;  %v2031_v57 = vrot.slane %v1820_v3, 1  ;;  %v2774_v14 = vmul.f32 %v5786_v50, %v5670_v1  ;;  %v2914_v8 = vmul.f32 %v5805_v37, %v5838_v7  ;;  %v85_v54 = vld [vmem:[%s10279_s0 + $0x1e0] sm:$0xff]  ;;  %v86_v6 = vld [vmem:[%s10279_s0 + $0x1e8] sm:$0xff] }
  0x8a   :  { %v1131_v0 = vadd.f32 %v937_v52, %v648_v42  ;;  %v2696_v47 = vadd.f32 %v2484_v43, %v2214_v63  ;;  %v10593_v10 = vrot.slane %v5663_v32, 2  ;;  %v2513_v59 = vrot.slane %v2302_v34, 2 }
  0x8b   :  { %v3396_v42 = vmul.f32 %v5812_v33, %v5838_v7  ;;  %v10594_v49 = vrot.slane %v5678_v29, 1  ;;  %v3125_v32 = vrot.slane %v2914_v8, 1  ;;  %v192_v31 = vmul.f32 %v5715_v61, %v79_v21 }
  0x8c   :  { %v1420_v26 = vsel %vm1370_vm2, %v10593_v10, %v1419_v17  ;;  %v2826_v48 = vadd.f32 %v2762_v13, %v2696_v47  ;;  %v10595_v3 = vrot.slane %v5688_v45, 2  ;;  %v193_v29 = vmul.f32 %v5715_v61, %v80_v28 }
  0x8d   :  { %v1614_v40 = vadd.f32 %v1420_v26, %v1131_v0  ;;  %v2032_v43 = vsel %vm887_vm1, %v10594_v49, %v2031_v57  ;;  %v3607_v30 = vrot.slane %v3396_v42, 2  ;;  %v10596_v17 = vrot.slane %v5703_v5, 1  ;;  %v43_v26 = vld [vmem:[%s10279_s0 + $0x90] sm:$0xff] }
  0x8e   :  { %v2514_v63 = vsel %vm1370_vm2, %v10595_v3, %v2513_v59  ;;  %v195_v0 = vmul.f32 %v5715_v61, %v82_v51  ;;  %v196_v57 = vmul.f32 %v5715_v61, %v83_v62  ;;  %v3308_v8 = vadd.f32 %v3096_v53, %v2826_v48  ;;  %v4750_v48 = vld [vmem:[%s10282_s5] sm:$0xff] }
  0x8f   :  { %v1744_v52 = vadd.f32 %v1680_v18, %v1614_v40  ;;  %v3126_v34 = vsel %vm887_vm1, %v10596_v17, %v3125_v32  ;;  %v10597_v21 = vrot.slane %v5710_v39, 2  ;;  %v198_v45 = vmul.f32 %v5715_v61, %v85_v54 }
  0x90   :  { %v199_v47 = vmul.f32 %v5715_v61, %v86_v6  ;;  %v303_v18 = vadd.f32 %v5733_v24, %v192_v31  ;;  %v304_v5 = vadd.f32 %v5733_v24, %v193_v29  ;;  %v306_v28 = vadd.f32 %v5733_v24, %v195_v0  ;;  %v4752_v29 = vld [vmem:[%s10282_s5 + $0x18] sm:$0xff]  ;;  %v4754_v0 = vld [vmem:[%s10282_s5 + $0x30] sm:$0xff] }
  0x91   :  { %v3608_v13 = vsel %vm1370_vm2, %v10597_v21, %v3607_v30  ;;  %v2226_v10 = vadd.f32 %v2032_v43, %v1744_v52  ;;  %v3790_v53 = vadd.f32 %v3578_v20, %v3308_v8  ;;  %v307_v39 = vadd.f32 %v5733_v24, %v196_v57  ;;  %v44_v43 = vld [vmem:[%s10279_s0 + $0x98] sm:$0xff] }
  0x92   :  { %v309_v59 = vadd.f32 %v5733_v24, %v198_v45  ;;  %v310_v42 = vadd.f32 %v5733_v24, %v199_v47  ;;  %v411_v62 = vmax.f32 %v303_v18, 0.0  ;;  %v412_v40 = vmax.f32 %v304_v5, 0.0  ;;  %v4755_v8 = vld [vmem:[%s10282_s5 + $0x38] sm:$0xff] }
  0x93   :  { %v2708_v51 = vadd.f32 %v2514_v63, %v2226_v10  ;;  %v414_v49 = vmax.f32 %v306_v28, 0.0  ;;  %4668 = vmatmul.msk.f32.gmra.mxu0 %vm3848_vm3, %v3790_v53  ;;  %v415_v32 = vmax.f32 %v307_v39, 0.0  ;;  %v156_v20 = vmul.f32 %v5715_v61, %v43_v26  ;;  %v4751_v63 = vld [vmem:[%s10282_s5 + $0x8] sm:$0xff] }
  0x94   :  { %v417_v54 = vmax.f32 %v309_v59, 0.0  ;;  %v418_v6 = vmax.f32 %v310_v42, 0.0  ;;  %v573_v3 = vmul.f32 %v4750_v48, %v411_v62  ;;  %v5912_v30 = vmul.f32 %v4751_v63, %v412_v40 }
  0x95   :  { %v2838_v31 = vadd.f32 %v2774_v14, %v2708_v51  ;;  %v5917_v52 = vmul.f32 %v4752_v29, %v414_v49  ;;  %v4753_v14 = vld [vmem:[%s10282_s5 + $0x20] sm:$0xff]  ;;  %v157_v45 = vmul.f32 %v5715_v61, %v44_v43 }
  0x96   :  { %v5922_v17 = vmul.f32 %v4753_v14, %v415_v32  ;;  %v5927_v57 = vmul.f32 %v4754_v0, %v417_v54  ;;  %v5932_v21 = vmul.f32 %v4755_v8, %v418_v6  ;;  %v661_v10 = vmul.f32 %v5725_v41, %v573_v3 }
  0x97   :  { %10598 = vst [vmem:[#allocation11_spill] sm:$0xff] %v5917_v52  ;;  %v3320_v47 = vadd.f32 %v3126_v34, %v2838_v31  ;;  %v743_v18 = vmul.f32 %v5739_v36, %v573_v3  ;;  %v5939_v5 = vmul.f32 %v5739_v36, %v5912_v30  ;;  %v1226_v28 = vmul.f32 %v5752_v19, %v573_v3 }
  0x98   :  { %10599 = vst [vmem:[#allocation12_spill] sm:$0xff] %v5922_v17  ;;  %v5944_v26 = vmul.f32 %v5752_v19, %v5912_v30  ;;  %v1693_v53 = vmul.f32 %v5759_v22, %v5917_v52  ;;  %v1839_v34 = vmul.f32 %v5766_v25, %v5917_v52  ;;  %v5953_v51 = vmul.f32 %v5766_v25, %v5922_v17 }
  0x99   :  { %10600 = vst [vmem:[#allocation13_spill] sm:$0xff] %v5927_v57  ;;  %v3802_v39 = vadd.f32 %v3608_v13, %v3320_v47  ;;  %v968_v59 = vrot.slane %v743_v18, 1  ;;  %v10305_v42 = vrot.slane %v5939_v5, 1  ;;  %v1451_v62 = vrot.slane %v1226_v28, 2 }
  0x9a   :  { %10601 = vst [vmem:[#allocation14_spill] sm:$0xff] %v5932_v21  ;;  %v10303_v40 = vrot.slane %v5944_v26, 2  ;;  %v2063_v49 = vrot.slane %v1839_v34, 1  ;;  %v2321_v43 = vmul.f32 %v5779_v9, %v5917_v52  ;;  %v10301_v32 = vrot.slane %v5953_v51, 1 }
  0x9b   :  { %4680 = vmatmul.msk.f32.gmra.mxu1 %vm3848_vm3, %v3802_v39  ;;  %v970_v13 = vsel %vm887_vm1, %v968_v59, %v10305_v42  ;;  %v5965_v54 = vmul.f32 %v5779_v9, %v5922_v17  ;;  %v2787_v6 = vmul.f32 %v5786_v50, %v5927_v57  ;;  %v2933_v63 = vmul.f32 %v5805_v37, %v5927_v57 }
  0x9c   :  { %v1144_v31 = vadd.f32 %v970_v13, %v661_v10  ;;  %v1453_v48 = vsel %vm1370_vm2, %v1451_v62, %v10303_v40  ;;  %v2545_v3 = vrot.slane %v2321_v43, 2  ;;  %v2065_v29 = vsel %vm887_vm1, %v2063_v49, %v10301_v32  ;;  %v483_v49 = vld [vmem:[%s10282_s5 + $0x90] sm:$0xff] }
  0x9d   :  { %v10300_v14 = vrot.slane %v5965_v54, 2  ;;  %v5980_v0 = vmul.f32 %v5805_v37, %v5932_v21  ;;  %v3415_v8 = vmul.f32 %v5812_v33, %v5927_v57  ;;  %v3157_v10 = vrot.slane %v2933_v63, 1 }
  0x9e   :  { %v1627_v47 = vadd.f32 %v1453_v48, %v1144_v31  ;;  %v5986_v18 = vmul.f32 %v5812_v33, %v5932_v21  ;;  %v267_v28 = vadd.f32 %v5733_v24, %v156_v20  ;;  %v268_v62 = vadd.f32 %v5733_v24, %v157_v45  ;;  %v484_v20 = vld [vmem:[%s10282_s5 + $0x98] sm:$0xff] }
  0x9f   :  { %v2547_v34 = vsel %vm1370_vm2, %v2545_v3, %v10300_v14  ;;  %v10302_v39 = vrot.slane %v5980_v0, 1  ;;  %v3639_v59 = vrot.slane %v3415_v8, 2  ;;  %v637_v48 = vmul.f32 %v5725_v41, %v5240_v60 }
  0xa0   :  { %v1757_v43 = vadd.f32 %v1693_v53, %v1627_v47  ;;  %v10304_v13 = vrot.slane %v5986_v18, 2  ;;  %v375_v31 = vmax.f32 %v267_v28, 0.0  ;;  %v376_v45 = vmax.f32 %v268_v62, 0.0 }
  0xa1   :  { %v3159_v3 = vsel %vm887_vm1, %v3157_v10, %v10302_v39  ;;  %v707_v63 = vmul.f32 %v5739_v36, %v5240_v60  ;;  %v6010_v53 = vmul.f32 %v5739_v36, %v5250_v11  ;;  %v1190_v14 = vmul.f32 %v5752_v19, %v5240_v60 }
  0xa2   :  { %v2239_v8 = vadd.f32 %v2065_v29, %v1757_v43  ;;  %v3641_v47 = vsel %vm1370_vm2, %v3639_v59, %v10304_v13  ;;  %v6015_v28 = vmul.f32 %v483_v49, %v375_v31  ;;  %v6019_v32 = vmul.f32 %v484_v20, %v376_v45 }
  0xa3   :  { %v908_v10 = vrot.slane %v707_v63, 1  ;;  %v10306_v62 = vrot.slane %v6010_v53, 1  ;;  %v6024_v39 = vmul.f32 %v5752_v19, %v5250_v11  ;;  %v1391_v29 = vrot.slane %v1190_v14, 2 }
  0xa4   :  { %10602 = vst [vmem:[#allocation15_spill] sm:$0xff] %v6015_v28  ;;  %v2721_v40 = vadd.f32 %v2547_v34, %v2239_v8  ;;  %v1669_v43 = vmul.f32 %v5759_v22, %v5546_v23  ;;  %v1803_v59 = vmul.f32 %v5766_v25, %v5546_v23  ;;  %v6036_v31 = vmul.f32 %v5766_v25, %v5566_v15 }
  0xa5   :  { %v910_v60 = vsel %vm887_vm1, %v908_v10, %v10306_v62  ;;  %v10310_v49 = vrot.slane %v6024_v39, 2  ;;  %v2285_v34 = vmul.f32 %v5779_v9, %v5546_v23  ;;  %v6042_v63 = vmul.f32 %v5779_v9, %v5566_v15 }
  0xa6   :  { %v2851_v14 = vadd.f32 %v2787_v6, %v2721_v40  ;;  %v1120_v20 = vadd.f32 %v910_v60, %v637_v48  ;;  %v2003_v45 = vrot.slane %v1803_v59, 1  ;;  %v10309_v10 = vrot.slane %v6036_v31, 1  ;;  %v61_v48 = vld [vmem:[%s10279_s0 + $0x120] sm:$0xff] }
  0xa7   :  { %v1393_v8 = vsel %vm1370_vm2, %v1391_v29, %v10310_v49  ;;  %v2485_v13 = vrot.slane %v2285_v34, 2  ;;  %v2763_v42 = vmul.f32 %v5786_v50, %v6015_v28  ;;  %v10321_v40 = vrot.slane %v6042_v63, 2  ;;  %v62_v34 = vld [vmem:[%s10279_s0 + $0x128] sm:$0xff] }
  0xa8   :  { %v3333_v62 = vadd.f32 %v3159_v3, %v2851_v14  ;;  %v1603_v44 = vadd.f32 %v1393_v8, %v1120_v20  ;;  %v2897_v6 = vmul.f32 %v5805_v37, %v6015_v28  ;;  %v2005_v29 = vsel %vm887_vm1, %v2003_v45, %v10309_v10 }
  0xa9   :  { %v6061_v59 = vmul.f32 %v5805_v37, %v6019_v32  ;;  %v3379_v3 = vmul.f32 %v5812_v33, %v6015_v28  ;;  %v6067_v60 = vmul.f32 %v5812_v33, %v6019_v32  ;;  %v2487_v45 = vsel %vm1370_vm2, %v2485_v13, %v10321_v40 }
  0xaa   :  { %v3815_v14 = vadd.f32 %v3641_v47, %v3333_v62  ;;  %v1733_v20 = vadd.f32 %v1669_v43, %v1603_v44  ;;  %v3097_v8 = vrot.slane %v2897_v6, 1  ;;  %v174_v16 = vmul.f32 %v5715_v61, %v61_v48 }
  0xab   :  { %v10320_v10 = vrot.slane %v6061_v59, 1  ;;  %v3579_v49 = vrot.slane %v3379_v3, 2  ;;  %v10319_v58 = vrot.slane %v6067_v60, 2  ;;  %v175_v55 = vmul.f32 %v5715_v61, %v62_v34  ;;  %v501_v3 = vld [vmem:[%s10282_s5 + $0x120] sm:$0xff] }
  0xac   :  { %4693 = vmatmul.msk.f32.vlgmr.msra.gmra.mxu2 %vm3848_vm3, %v3815_v14  ;;  %v2215_v12 = vadd.f32 %v2005_v29, %v1733_v20  ;;  %v649_v44 = vmul.f32 %v5725_v41, %v5363_v35  ;;  %v725_v47 = vmul.f32 %v5739_v36, %v5363_v35  ;;  %v285_v43 = vadd.f32 %v5733_v24, %v174_v16  ;;  %v502_v16 = vld [vmem:[%s10282_s5 + $0x128] sm:$0xff] }
  0xad   :  { %v3099_v13 = vsel %vm887_vm1, %v3097_v8, %v10320_v10  ;;  %v3581_v62 = vsel %vm1370_vm2, %v3579_v49, %v10319_v58  ;;  %v6093_v6 = vmul.f32 %v5739_v36, %v5365_v56  ;;  %v286_v29 = vadd.f32 %v5733_v24, %v175_v55 }
  0xae   :  { %v2697_v48 = vadd.f32 %v2487_v45, %v2215_v12  ;;  %v938_v34 = vrot.slane %v725_v47, 1  ;;  %v1208_v14 = vmul.f32 %v5752_v19, %v5363_v35  ;;  %v393_v20 = vmax.f32 %v285_v43, 0.0 }
  0xaf   :  { %v10326_v49 = vrot.slane %v6093_v6, 1  ;;  %v6107_v12 = vmul.f32 %v5752_v19, %v5365_v56  ;;  %v1681_v55 = vmul.f32 %v5759_v22, %v5658_v4  ;;  %v394_v8 = vmax.f32 %v286_v29, 0.0 }
  0xb0   :  { %v2827_v45 = vadd.f32 %v2763_v42, %v2697_v48  ;;  %v1421_v47 = vrot.slane %v1208_v14, 2  ;;  %v1821_v35 = vmul.f32 %v5766_v25, %v5658_v4  ;;  %v6113_v43 = vmul.f32 %v501_v3, %v393_v20 }
  0xb1   :  { %v940_v58 = vsel %vm887_vm1, %v938_v34, %v10326_v49  ;;  %v10328_v10 = vrot.slane %v6107_v12, 2  ;;  %v6121_v40 = vmul.f32 %v5766_v25, %v5670_v1  ;;  %v6123_v28 = vmul.f32 %v502_v16, %v394_v8  ;;  %v84_v16 = vld [vmem:[%s10279_s0 + $0x1d8] sm:$0x3] }
  0xb2   :  { %10603 = vst [vmem:[#allocation16_spill] sm:$0xff] %v6113_v43  ;;  %v3309_v38 = vadd.f32 %v3099_v13, %v2827_v45  ;;  %v1132_v42 = vadd.f32 %v940_v58, %v649_v44  ;;  %v2033_v48 = vrot.slane %v1821_v35, 1  ;;  %v2303_v34 = vmul.f32 %v5779_v9, %v5658_v4  ;;  %v81_v44 = vld [vmem:[%s10279_s0 + $0x1c0] sm:$0x3] }
  0xb3   :  { %v1423_v29 = vsel %vm1370_vm2, %v1421_v47, %v10328_v10  ;;  %v10327_v3 = vrot.slane %v6121_v40, 1  ;;  %v6133_v14 = vmul.f32 %v5779_v9, %v5670_v1  ;;  %v2775_v13 = vmul.f32 %v5786_v50, %v6113_v43  ;;  %v87_v47 = vld [vmem:[%s10279_s0 + $0x1f0] sm:$0x3] }
  0xb4   :  { %v3791_v20 = vadd.f32 %v3581_v62, %v3309_v38  ;;  %v1615_v49 = vadd.f32 %v1423_v29, %v1132_v42  ;;  %v2915_v58 = vmul.f32 %v5805_v37, %v6113_v43  ;;  %v2515_v38 = vrot.slane %v2303_v34, 2 }
  0xb5   :  { %v2035_v45 = vsel %vm887_vm1, %v2033_v48, %v10327_v3  ;;  %v10333_v62 = vrot.slane %v6133_v14, 2  ;;  %v6151_v8 = vmul.f32 %v5805_v37, %v6123_v28  ;;  %v3397_v29 = vmul.f32 %v5812_v33, %v6113_v43  ;;  %v45_v43 = vld [vmem:[%s10279_s0 + $0xa0] sm:$0x3] }
  0xb6   :  { %4669 = vmatmul.msk.f32.gmra.mxu0 %vm3848_vm3, %v3791_v20  ;;  %v1745_v35 = vadd.f32 %v1681_v55, %v1615_v49  ;;  %v3127_v42 = vrot.slane %v2915_v58, 1  ;;  %v6161_v48 = vmul.f32 %v5812_v33, %v6123_v28  ;;  %v194_v10 = vmul.f32 %v5715_v61, %v81_v44 }
  0xb7   :  { %v2517_v34 = vsel %vm1370_vm2, %v2515_v38, %v10333_v62  ;;  %v10339_v3 = vrot.slane %v6151_v8, 1  ;;  %v197_v4 = vmul.f32 %v5715_v61, %v84_v16  ;;  %v3609_v49 = vrot.slane %v3397_v29, 2 }
  0xb8   :  { %10604 = vst [vmem:[#allocation17_spill] sm:$0xff] %v6161_v48  ;;  %v2227_v20 = vadd.f32 %v2035_v45, %v1745_v35  ;;  %v10338_v55 = vrot.slane %v6161_v48, 2  ;;  %v200_v58 = vmul.f32 %v5715_v61, %v87_v47  ;;  %v305_v62 = vadd.f32 %v5733_v24, %v194_v10 }
  0xb9   :  { %v3129_v38 = vsel %vm887_vm1, %v3127_v42, %v10339_v3  ;;  %v308_v44 = vadd.f32 %v5733_v24, %v197_v4  ;;  %v662_v16 = vmul.f32 %v5725_v41, %v5912_v30  ;;  %v1694_v29 = vmul.f32 %v5759_v22, %v5922_v17 }
  0xba   :  { %v2709_v45 = vadd.f32 %v2517_v34, %v2227_v20  ;;  %v3611_v47 = vsel %vm1370_vm2, %v3609_v49, %v10338_v55  ;;  %v311_v35 = vadd.f32 %v5733_v24, %v200_v58  ;;  %v413_v23 = vmax.f32 %v305_v62, 0.0  ;;  %v4756_v49 = vld [vmem:[%s10282_s5 + $0x10] sm:$0x3]  ;;  %v4757_v58 = vld [vmem:[%s10282_s5 + $0x28] sm:$0x3] }
  0xbb   :  { %v416_v57 = vmax.f32 %v308_v44, 0.0  ;;  %v6189_v10 = vmul.f32 %v5786_v50, %v5932_v21  ;;  %v158_v4 = vmul.f32 %v5715_v61, %v45_v43  ;;  %v638_v34 = vmul.f32 %v5725_v41, %v5250_v11 }
  0xbc   :  { %v2839_v42 = vadd.f32 %v2775_v13, %v2709_v45  ;;  %v419_v30 = vmax.f32 %v311_v35, 0.0  ;;  %v709_v20 = vmul.f32 %v5739_v36, %v5433_v2  ;;  %v575_v62 = vmul.f32 %v4756_v49, %v413_v23  ;;  %v4758_v45 = vld [vmem:[%s10282_s5 + $0x40] sm:$0x3] }
  0xbd   :  { %v6202_v44 = vmul.f32 %v4757_v58, %v416_v57  ;;  %v269_v43 = vadd.f32 %v5733_v24, %v158_v4  ;;  %v1192_v13 = vmul.f32 %v5752_v19, %v5433_v2  ;;  %v1670_v23 = vmul.f32 %v5759_v22, %v5566_v15 }
  0xbe   :  { %v3321_v11 = vadd.f32 %v3129_v38, %v2839_v42  ;;  %v6210_v35 = vmul.f32 %v4758_v45, %v419_v30  ;;  %v911_v55 = vrot.slane %v709_v20, 1  ;;  %v745_v49 = vmul.f32 %v5739_v36, %v575_v62  ;;  %v485_v38 = vld [vmem:[%s10282_s5 + $0xa0] sm:$0x3] }
  0xbf   :  { %10605 = vst [vmem:[#allocation18_spill] sm:$0xff] %v6202_v44  ;;  %v1228_v57 = vmul.f32 %v5752_v19, %v575_v62  ;;  %v1841_v4 = vmul.f32 %v5766_v25, %v6202_v44  ;;  %v2323_v2 = vmul.f32 %v5779_v9, %v6202_v44  ;;  %v377_v58 = vmax.f32 %v269_v43, 0.0 }
  0xc0   :  { %10606 = vst [vmem:[#allocation19_spill] sm:$0xff] %v6210_v35  ;;  %v3803_v42 = vadd.f32 %v3611_v47, %v3321_v11  ;;  %v2935_v30 = vmul.f32 %v5805_v37, %v6210_v35  ;;  %v3417_v20 = vmul.f32 %v5812_v33, %v6210_v35  ;;  %v971_v45 = vrot.slane %v745_v49, 1 }
  0xc1   :  { %v1454_v62 = vrot.slane %v1228_v57, 2  ;;  %v2066_v3 = vrot.slane %v1841_v4, 1  ;;  %v2548_v15 = vrot.slane %v2323_v2, 2  ;;  %v6228_v17 = vmul.f32 %v485_v38, %v377_v58 }
  0xc2   :  { %4681 = vmatmul.msk.f32.gmra.mxu1 %vm3848_vm3, %v3803_v42  ;;  %v3160_v21 = vrot.slane %v2935_v30, 1  ;;  %v3642_v44 = vrot.slane %v3417_v20, 2  ;;  %v10607_v52 = vrot.slane %v6010_v53, 1  ;;  %v10608_v11 = vrot.slane %v5939_v5, 1 }
  0xc3   :  { %v10609_v43 = vrot.slane %v5944_v26, 2  ;;  %v10610_v57 = vrot.slane %v5953_v51, 1  ;;  %v10611_v2 = vrot.slane %v5965_v54, 2  ;;  %v10612_v5 = vrot.slane %v5980_v0, 1 }
  0xc4   :  { %v912_v47 = vsel %vm887_vm1, %v10607_v52, %v911_v55  ;;  %v972_v48 = vsel %vm887_vm1, %v10608_v11, %v971_v45  ;;  %v63_v52 = vld [vmem:[%s10279_s0 + $0x130] sm:$0x3]  ;;  %v10613_v26 = vrot.slane %v5986_v18, 2  ;;  %v1394_v30 = vrot.slane %v1192_v13, 2 }
  0xc5   :  { %v1455_v49 = vsel %vm1370_vm2, %v10609_v43, %v1454_v62  ;;  %v2067_v4 = vsel %vm887_vm1, %v10610_v57, %v2066_v3  ;;  %v2549_v38 = vsel %vm1370_vm2, %v10611_v2, %v2548_v15  ;;  %v1145_v53 = vadd.f32 %v972_v48, %v662_v16 }
  0xc6   :  { %v3161_v55 = vsel %vm887_vm1, %v10612_v5, %v3160_v21  ;;  %v3643_v42 = vsel %vm1370_vm2, %v10613_v26, %v3642_v44  ;;  %v1121_v51 = vadd.f32 %v912_v47, %v638_v34  ;;  %v1805_v54 = vmul.f32 %v5766_v25, %v5790_v27 }
  0xc7   :  { %v2287_v15 = vmul.f32 %v5779_v9, %v5790_v27  ;;  %v2764_v3 = vmul.f32 %v5786_v50, %v6019_v32  ;;  %v1628_v48 = vadd.f32 %v1455_v49, %v1145_v53  ;;  %v2899_v0 = vmul.f32 %v5805_v37, %v6228_v17 }
  0xc8   :  { %v3381_v21 = vmul.f32 %v5812_v33, %v6228_v17  ;;  %v176_v18 = vmul.f32 %v5715_v61, %v63_v52  ;;  %v10614_v16 = vrot.slane %v6024_v39, 2  ;;  %v2006_v44 = vrot.slane %v1805_v54, 1 }
  0xc9   :  { %v2488_v13 = vrot.slane %v2287_v15, 2  ;;  %v650_v20 = vmul.f32 %v5725_v41, %v5365_v56  ;;  %v1758_v58 = vadd.f32 %v1694_v29, %v1628_v48  ;;  %v3100_v62 = vrot.slane %v2899_v0, 1 }
  0xca   :  { %v1395_v34 = vsel %vm1370_vm2, %v10614_v16, %v1394_v30  ;;  %v3582_v47 = vrot.slane %v3381_v21, 2  ;;  %v10615_v11 = vrot.slane %v6036_v31, 1  ;;  %v10616_v49 = vrot.slane %v6042_v63, 2  ;;  %v503_v63 = vld [vmem:[%s10282_s5 + $0x130] sm:$0x3] }
  0xcb   :  { %v1604_v45 = vadd.f32 %v1395_v34, %v1121_v51  ;;  %v287_v39 = vadd.f32 %v5733_v24, %v176_v18  ;;  %v727_v2 = vmul.f32 %v5739_v36, %v5526_v46  ;;  %v2240_v52 = vadd.f32 %v2067_v4, %v1758_v58 }
  0xcc   :  { %v2007_v43 = vsel %vm887_vm1, %v10615_v11, %v2006_v44  ;;  %v2489_v57 = vsel %vm1370_vm2, %v10616_v49, %v2488_v13  ;;  %v10617_v56 = vrot.slane %v6061_v59, 1  ;;  %v10618_v5 = vrot.slane %v6067_v60, 2  ;;  %v88_v44 = vld [vmem:[%s10279_s0 + $0x1f8] sm:$0xff] }
  0xcd   :  { %v1734_v53 = vadd.f32 %v1670_v23, %v1604_v45  ;;  %v395_v26 = vmax.f32 %v287_v39, 0.0  ;;  %v941_v51 = vrot.slane %v727_v2, 1  ;;  %v1210_v30 = vmul.f32 %v5752_v19, %v5526_v46 }
  0xce   :  { %v3101_v29 = vsel %vm887_vm1, %v10617_v56, %v3100_v62  ;;  %v3583_v31 = vsel %vm1370_vm2, %v10618_v5, %v3582_v47  ;;  %v1682_v23 = vmul.f32 %v5759_v22, %v5670_v1  ;;  %v2722_v4 = vadd.f32 %v2549_v38, %v2240_v52 }
  0xcf   :  { %v2216_v59 = vadd.f32 %v2007_v43, %v1734_v53  ;;  %v1823_v54 = vmul.f32 %v5766_v25, %v5838_v7  ;;  %v2305_v60 = vmul.f32 %v5779_v9, %v5838_v7  ;;  %v6296_v15 = vmul.f32 %v503_v63, %v395_v26 }
  0xd0   :  { %v10620_v48 = vrot.slane %v6093_v6, 1  ;;  %v1424_v21 = vrot.slane %v1210_v30, 2  ;;  %v2776_v46 = vmul.f32 %v5786_v50, %v6123_v28  ;;  %v2852_v18 = vadd.f32 %v6189_v10, %v2722_v4  ;;  %v89_v10 = vld [vmem:[%s10279_s0 + $0x200] sm:$0xff]  ;;  %v10627_v30 = vld [vmem:[#allocation11_spill] sm:$0xff] }
  0xd1   :  { %10619 = vst [vmem:[#allocation20_spill] sm:$0xff] %v6296_v15  ;;  %v2698_v38 = vadd.f32 %v2489_v57, %v2216_v59  ;;  %v2036_v34 = vrot.slane %v1823_v54, 1  ;;  %v10621_v13 = vrot.slane %v6107_v12, 2  ;;  %v2518_v6 = vrot.slane %v2305_v60, 2  ;;  %v10628_v54 = vld [vmem:[#allocation12_spill] sm:$0xff] }
  0xd2   :  { %v942_v0 = vsel %vm887_vm1, %v10620_v48, %v941_v51  ;;  %v2917_v45 = vmul.f32 %v5805_v37, %v6296_v15  ;;  %v3399_v62 = vmul.f32 %v5812_v33, %v6296_v15  ;;  %v10622_v43 = vrot.slane %v6121_v40, 1  ;;  %v10625_v40 = vld [vmem:[#allocation17_spill] sm:$0xff] }
  0xd3   :  { %v1133_v16 = vadd.f32 %v942_v0, %v650_v20  ;;  %v1425_v58 = vsel %vm1370_vm2, %v10621_v13, %v1424_v21  ;;  %v3334_v20 = vadd.f32 %v3161_v55, %v2852_v18  ;;  %v2828_v47 = vadd.f32 %v2764_v3, %v2698_v38  ;;  %v10629_v38 = vld [vmem:[#allocation13_spill] sm:$0xff] }
  0xd4   :  { %v2037_v12 = vsel %vm887_vm1, %v10622_v43, %v2036_v34  ;;  %v10623_v49 = vrot.slane %v6133_v14, 2  ;;  %v3130_v39 = vrot.slane %v2917_v45, 1  ;;  %v3612_v2 = vrot.slane %v3399_v62, 2  ;;  %v4759_v34 = vld [vmem:[%s10282_s5 + $0x48] sm:$0xff]  ;;  %v4760_v62 = vld [vmem:[%s10282_s5 + $0x50] sm:$0xff] }
  0xd5   :  { %v1616_v11 = vadd.f32 %v1425_v58, %v1133_v16  ;;  %v201_v52 = vmul.f32 %v5715_v61, %v88_v44  ;;  %v3816_v53 = vadd.f32 %v3643_v42, %v3334_v20  ;;  %v3310_v56 = vadd.f32 %v3101_v29, %v2828_v47  ;;  %v10632_v47 = vld [vmem:[#allocation14_spill] sm:$0xff] }
  0xd6   :  { %v2519_v57 = vsel %vm1370_vm2, %v10623_v49, %v2518_v6  ;;  %v202_v63 = vmul.f32 %v5715_v61, %v89_v10  ;;  %v10624_v55 = vrot.slane %v6151_v8, 1  ;;  %v10626_v26 = vrot.slane %v10625_v40, 2 }
  0xd7   :  { %v1746_v5 = vadd.f32 %v1682_v23, %v1616_v11  ;;  %v312_v14 = vadd.f32 %v5733_v24, %v201_v52  ;;  %v663_v4 = vmul.f32 %v5725_v41, %v10627_v30  ;;  %4694 = vmatmul.msk.f32.gmra.mxu2 %vm3848_vm3, %v3816_v53  ;;  %v3792_v42 = vadd.f32 %v3583_v31, %v3310_v56 }
  0xd8   :  { %v3131_v3 = vsel %vm887_vm1, %v10624_v55, %v3130_v39  ;;  %v3613_v51 = vsel %vm1370_vm2, %v10626_v26, %v3612_v2  ;;  %v313_v23 = vadd.f32 %v5733_v24, %v202_v63  ;;  %v746_v8 = vmul.f32 %v5739_v36, %v10627_v30  ;;  %v46_v55 = vld [vmem:[%s10279_s0 + $0xa8] sm:$0xff] }
  0xd9   :  { %v2228_v29 = vadd.f32 %v2037_v12, %v1746_v5  ;;  %v420_v59 = vmax.f32 %v312_v14, 0.0  ;;  %v6340_v60 = vmul.f32 %v5739_v36, %v10628_v54  ;;  %v1229_v48 = vmul.f32 %v5752_v19, %v10627_v30  ;;  %4670 = vmatmul.msk.f32.gmra.mxu0 %vm3848_vm3, %v3792_v42 }
  0xda   :  { %v6346_v0 = vmul.f32 %v5752_v19, %v10628_v54  ;;  %v421_v21 = vmax.f32 %v313_v23, 0.0  ;;  %v973_v18 = vrot.slane %v746_v8, 1  ;;  %v1695_v16 = vmul.f32 %v5759_v22, %v10629_v38 }
  0xdb   :  { %v2710_v31 = vadd.f32 %v2519_v57, %v2228_v29  ;;  %v6354_v44 = vmul.f32 %v4759_v34, %v420_v59  ;;  %v10368_v13 = vrot.slane %v6340_v60, 1  ;;  %v1456_v58 = vrot.slane %v1229_v48, 2 }
  0xdc   :  { %v10367_v6 = vrot.slane %v6346_v0, 2  ;;  %v6361_v10 = vmul.f32 %v4760_v62, %v421_v21  ;;  %v1842_v20 = vmul.f32 %v5766_v25, %v10629_v38  ;;  %v6367_v11 = vmul.f32 %v5766_v25, %v10632_v47 }
  0xdd   :  { %10630 = vst [vmem:[#allocation17_spill] sm:$0xff] %v6354_v44  ;;  %v2840_v45 = vadd.f32 %v2776_v46, %v2710_v31  ;;  %v975_v43 = vsel %vm887_vm1, %v973_v18, %v10368_v13  ;;  %v2324_v12 = vmul.f32 %v5779_v9, %v10629_v38  ;;  %v6379_v49 = vmul.f32 %v5779_v9, %v10632_v47  ;;  %v10633_v18 = vld [vmem:[#allocation8_spill] sm:$0xff]  ;;  %v6649_v13 = vld [vmem:[%s10283_s1 + $0x6] ss:$0 sm:$0xff] }
  0xde   :  { %10631 = vst [vmem:[#allocation11_spill] sm:$0xff] %v6361_v10  ;;  %v1458_v46 = vsel %vm1370_vm2, %v1456_v58, %v10367_v6  ;;  %v1146_v39 = vadd.f32 %v975_v43, %v663_v4  ;;  %v2068_v2 = vrot.slane %v1842_v20, 1  ;;  %v10366_v52 = vrot.slane %v6367_v11, 1 }
  0xdf   :  { %v3322_v57 = vadd.f32 %v3131_v3, %v2840_v45  ;;  %v2550_v53 = vrot.slane %v2324_v12, 2  ;;  %v10356_v56 = vrot.slane %v6379_v49, 2  ;;  %v2789_v5 = vmul.f32 %v5786_v50, %v6354_v44  ;;  %v47_v3 = vld [vmem:[%s10279_s0 + $0xb0] sm:$0xff] }
  0xe0   :  { %v2936_v63 = vmul.f32 %v5805_v37, %v6354_v44  ;;  %v1629_v26 = vadd.f32 %v1458_v46, %v1146_v39  ;;  %v2070_v14 = vsel %vm887_vm1, %v2068_v2, %v10366_v52  ;;  %v6398_v30 = vmul.f32 %v5805_v37, %v6361_v10  ;;  %v486_v46 = vld [vmem:[%s10282_s5 + $0xa8] sm:$0xff]  ;;  %v487_v12 = vld [vmem:[%s10282_s5 + $0xb0] sm:$0xff] }
  0xe1   :  { %v3804_v40 = vadd.f32 %v3613_v51, %v3322_v57  ;;  %v2552_v4 = vsel %vm1370_vm2, %v2550_v53, %v10356_v56  ;;  %v3418_v29 = vmul.f32 %v5812_v33, %v6354_v44  ;;  %v6407_v51 = vmul.f32 %v5812_v33, %v6361_v10  ;;  %v10634_v57 = vld [vmem:[#allocation9_spill] sm:$0xff] }
  0xe2   :  { %v3162_v42 = vrot.slane %v2936_v63, 1  ;;  %v1759_v23 = vadd.f32 %v1695_v16, %v1629_v26  ;;  %v10355_v8 = vrot.slane %v6398_v30, 1  ;;  %v159_v59 = vmul.f32 %v5715_v61, %v46_v55 }
  0xe3   :  { %4682 = vmatmul.msk.f32.gmra.mxu1 %vm3848_vm3, %v3804_v40  ;;  %v160_v48 = vmul.f32 %v5715_v61, %v47_v3  ;;  %v3644_v31 = vrot.slane %v3418_v29, 2  ;;  %v10354_v21 = vrot.slane %v6407_v51, 2  ;;  %v639_v34 = vmul.f32 %v5725_v41, %v10633_v18 }
  0xe4   :  { %v710_v58 = vmul.f32 %v5739_v36, %v10633_v18  ;;  %v2241_v45 = vadd.f32 %v2070_v14, %v1759_v23  ;;  %v3164_v16 = vsel %vm887_vm1, %v3162_v42, %v10355_v8  ;;  %v270_v62 = vadd.f32 %v5733_v24, %v159_v59  ;;  %v10635_v42 = vld [vmem:[#allocation15_spill] sm:$0xff] }
  0xe5   :  { %v271_v20 = vadd.f32 %v5733_v24, %v160_v48  ;;  %v3646_v43 = vsel %vm1370_vm2, %v3644_v31, %v10354_v21  ;;  %v6434_v39 = vmul.f32 %v5739_v36, %v10634_v57  ;;  %v1193_v53 = vmul.f32 %v5752_v19, %v10633_v18  ;;  %v10637_v21 = vld [vmem:[#allocation10_spill] sm:$0xff] }
  0xe6   :  { %v913_v2 = vrot.slane %v710_v58, 1  ;;  %v2723_v63 = vadd.f32 %v2552_v4, %v2241_v45  ;;  %v378_v55 = vmax.f32 %v270_v62, 0.0  ;;  %v6440_v40 = vmul.f32 %v5752_v19, %v10634_v57 }
  0xe7   :  { %v379_v3 = vmax.f32 %v271_v20, 0.0  ;;  %v10352_v26 = vrot.slane %v6434_v39, 1  ;;  %v1396_v14 = vrot.slane %v1193_v53, 2  ;;  %v1671_v29 = vmul.f32 %v5759_v22, %v10635_v42 }
  0xe8   :  { %v1806_v23 = vmul.f32 %v5766_v25, %v10635_v42  ;;  %v2853_v59 = vadd.f32 %v2789_v5, %v2723_v63  ;;  %v6447_v48 = vmul.f32 %v486_v46, %v378_v55  ;;  %v10351_v4 = vrot.slane %v6440_v40, 2 }
  0xe9   :  { %v6449_v31 = vmul.f32 %v487_v12, %v379_v3  ;;  %v915_v18 = vsel %vm887_vm1, %v913_v2, %v10352_v26  ;;  %v6457_v58 = vmul.f32 %v5766_v25, %v6019_v32  ;;  %v2288_v62 = vmul.f32 %v5779_v9, %v10635_v42 }
  0xea   :  { %10636 = vst [vmem:[#allocation12_spill] sm:$0xff] %v6447_v48  ;;  %v2008_v45 = vrot.slane %v1806_v23, 1  ;;  %v3335_v20 = vadd.f32 %v3164_v16, %v2853_v59  ;;  %v1122_v5 = vadd.f32 %v915_v18, %v639_v34  ;;  %v1398_v46 = vsel %vm1370_vm2, %v1396_v14, %v10351_v4  ;;  %v64_v34 = vld [vmem:[%s10279_s0 + $0x138] sm:$0xff]  ;;  %v65_v59 = vld [vmem:[%s10279_s0 + $0x140] sm:$0xff] }
  0xeb   :  { %v6466_v12 = vmul.f32 %v5779_v9, %v6019_v32  ;;  %v10353_v2 = vrot.slane %v6457_v58, 1  ;;  %v2490_v53 = vrot.slane %v2288_v62, 2  ;;  %v2765_v63 = vmul.f32 %v5786_v50, %v6447_v48 }
  0xec   :  { %v2900_v55 = vmul.f32 %v5805_v37, %v6447_v48  ;;  %v3817_v16 = vadd.f32 %v3646_v43, %v3335_v20  ;;  %v1605_v3 = vadd.f32 %v1398_v46, %v1122_v5  ;;  %v6479_v23 = vmul.f32 %v5805_v37, %v6449_v31 }
  0xed   :  { %v10365_v14 = vrot.slane %v6466_v12, 2  ;;  %v2010_v18 = vsel %vm887_vm1, %v2008_v45, %v10353_v2  ;;  %v3382_v4 = vmul.f32 %v5812_v33, %v6447_v48  ;;  %v6491_v43 = vmul.f32 %v5812_v33, %v6449_v31 }
  0xee   :  { %v3102_v62 = vrot.slane %v2900_v55, 1  ;;  %4695 = vmatmul.msk.f32.gmra.mxu2 %vm3848_vm3, %v3817_v16  ;;  %v1735_v20 = vadd.f32 %v1671_v29, %v1605_v3  ;;  %v10358_v46 = vrot.slane %v6479_v23, 1  ;;  %v177_v26 = vmul.f32 %v5715_v61, %v64_v34 }
  0xef   :  { %v2492_v5 = vsel %vm1370_vm2, %v2490_v53, %v10365_v14  ;;  %v3584_v45 = vrot.slane %v3382_v4, 2  ;;  %v10357_v55 = vrot.slane %v6491_v43, 2  ;;  %v178_v2 = vmul.f32 %v5715_v61, %v65_v59  ;;  %v504_v61 = vld [vmem:[%s10282_s5 + $0x138] sm:$0xff] }
  0xf0   :  { %v651_v8 = vmul.f32 %v5725_v41, %v10637_v21  ;;  %v2217_v56 = vadd.f32 %v2010_v18, %v1735_v20  ;;  %v3104_v29 = vsel %vm887_vm1, %v3102_v62, %v10358_v46  ;;  %v288_v16 = vadd.f32 %v5733_v24, %v177_v26  ;;  %v505_v18 = vld [vmem:[%s10282_s5 + $0x140] sm:$0xff] }
  0xf1   :  { %v728_v53 = vmul.f32 %v5739_v36, %v10637_v21  ;;  %v3586_v4 = vsel %vm1370_vm2, %v3584_v45, %v10357_v55  ;;  %v289_v34 = vadd.f32 %v5733_v24, %v178_v2  ;;  %v6518_v41 = vmul.f32 %v5739_v36, %v5670_v1  ;;  %v10638_v36 = vld [vmem:[#allocation16_spill] sm:$0xff] }
  0xf2   :  { %v1211_v26 = vmul.f32 %v5752_v19, %v10637_v21  ;;  %v2699_v3 = vadd.f32 %v2492_v5, %v2217_v56  ;;  %v396_v59 = vmax.f32 %v288_v16, 0.0  ;;  %v6527_v24 = vmul.f32 %v5752_v19, %v5670_v1 }
  0xf3   :  { %v943_v62 = vrot.slane %v728_v53, 1  ;;  %v397_v2 = vmax.f32 %v289_v34, 0.0  ;;  %v10364_v20 = vrot.slane %v6518_v41, 1  ;;  %v1683_v55 = vmul.f32 %v5759_v22, %v10638_v36 }
  0xf4   :  { %v1426_v45 = vrot.slane %v1211_v26, 2  ;;  %v2829_v46 = vadd.f32 %v2765_v63, %v2699_v3  ;;  %v6532_v21 = vmul.f32 %v504_v61, %v396_v59  ;;  %v10363_v56 = vrot.slane %v6527_v24, 2 }
  0xf5   :  { %v1824_v5 = vmul.f32 %v5766_v25, %v10638_v36  ;;  %v6537_v16 = vmul.f32 %v505_v18, %v397_v2  ;;  %v945_v19 = vsel %vm887_vm1, %v943_v62, %v10364_v20  ;;  %v6544_v53 = vmul.f32 %v5766_v25, %v6123_v28 }
  0xf6   :  { %10639 = vst [vmem:[#allocation13_spill] sm:$0xff] %v6532_v21  ;;  %v2306_v22 = vmul.f32 %v5779_v9, %v10638_v36  ;;  %v3311_v63 = vadd.f32 %v3104_v29, %v2829_v46  ;;  %v1134_v34 = vadd.f32 %v945_v19, %v651_v8  ;;  %v1428_v61 = vsel %vm1370_vm2, %v1426_v45, %v10363_v56  ;;  %v90_v46 = vld [vmem:[%s10279_s0 + $0x208] sm:$0x3] }
  0xf7   :  { %10640 = vst [vmem:[#allocation14_spill] sm:$0xff] %v6537_v16  ;;  %v2038_v26 = vrot.slane %v1824_v5, 1  ;;  %v10362_v3 = vrot.slane %v6544_v53, 1  ;;  %v6554_v59 = vmul.f32 %v5779_v9, %v6123_v28  ;;  %v2777_v25 = vmul.f32 %v5786_v50, %v6532_v21 }
  0xf8   :  { %v2520_v18 = vrot.slane %v2306_v22, 2  ;;  %v3793_v8 = vadd.f32 %v3586_v4, %v3311_v63  ;;  %v1617_v29 = vadd.f32 %v1428_v61, %v1134_v34  ;;  %v2918_v62 = vmul.f32 %v5805_v37, %v6532_v21  ;;  %v6582_v22 = vld [vmem:[%s10280_s3] ss:$0 sm:$0xff] }
  0xf9   :  { %v6565_v2 = vmul.f32 %v5805_v37, %v6537_v16  ;;  %v2040_v9 = vsel %vm887_vm1, %v2038_v26, %v10362_v3  ;;  %v10360_v45 = vrot.slane %v6554_v59, 2  ;;  %v3400_v50 = vmul.f32 %v5812_v33, %v6532_v21 }
  0xfa   :  { %v6575_v4 = vmul.f32 %v5812_v33, %v6537_v16  ;;  %4671 = vmatmul.msk.f32.gmra.mxu0 %vm3848_vm3, %v3793_v8  ;;  %v1747_v5 = vadd.f32 %v1683_v55, %v1617_v29  ;;  %v3132_v19 = vrot.slane %v2918_v62, 1  ;;  %v203_v63 = vmul.f32 %v6582_v22, %v90_v46  ;;  %v6592_v55 = vld [vmem:[%s10283_s1] ss:$0 sm:$0xff]  ;;  %v6608_v62 = vld [vmem:[%s10283_s1 + $0x1] ss:$0 sm:$0xff] }
  0xfb   :  { %v10359_v37 = vrot.slane %v6565_v2, 1  ;;  %v2522_v34 = vsel %vm1370_vm2, %v2520_v18, %v10360_v45  ;;  %v3614_v61 = vrot.slane %v3400_v50, 2  ;;  %v664_v26 = vmul.f32 %v6592_v55, %v10628_v54  ;;  %v6602_v18 = vld [vmem:[%s10281_s4] ss:$0 sm:$0xff] }
  0xfc   :  { %v10361_v33 = vrot.slane %v6575_v4, 2  ;;  %v2229_v8 = vadd.f32 %v2040_v9, %v1747_v5  ;;  %v314_v29 = vadd.f32 %v6602_v18, %v203_v63  ;;  %v10641_v50 = vld [vmem:[#allocation18_spill] sm:$0xff]  ;;  %v48_v9 = vld [vmem:[%s10279_s0 + $0xb8] sm:$0x3]  ;;  %v10644_v48 = vrot.slane %v6346_v0, 2 }
  0xfd   :  { %v3134_v46 = vsel %vm887_vm1, %v3132_v19, %v10359_v37  ;;  %v748_v54 = vmul.f32 %v6608_v62, %v10641_v50  ;;  %v6621_v19 = vld [vmem:[%s10283_s1 + $0x2] ss:$0 sm:$0xff]  ;;  %v6628_v37 = vld [vmem:[%s10283_s1 + $0x3] ss:$0 sm:$0xff] }
  0xfe   :  { %v3616_v5 = vsel %vm1370_vm2, %v3614_v61, %v10361_v33  ;;  %v1231_v63 = vmul.f32 %v6621_v19, %v10641_v50  ;;  %v1696_v45 = vmul.f32 %v6628_v37, %v10632_v47  ;;  %v6635_v61 = vld [vmem:[%s10283_s1 + $0x4] ss:$0 sm:$0xff]  ;;  %v2711_v3 = vadd.f32 %v2522_v34, %v2229_v8  ;;  %v6642_v50 = vld [vmem:[%s10283_s1 + $0x5] ss:$0 sm:$0xff] }
  0xff   :  { %v1844_v33 = vmul.f32 %v6635_v61, %v6210_v35  ;;  %v422_v56 = vmax.f32 %v314_v29, 0.0  ;;  %v976_v20 = vrot.slane %v748_v54, 1  ;;  %v2326_v14 = vmul.f32 %v6642_v50, %v6210_v35  ;;  %v4770_v54 = vld [vmem:[%s10282_s5 + $0x58] sm:$0x3] }
 0x100   :  { %v1459_v52 = vrot.slane %v1231_v63, 2  ;;  %v2790_v34 = vmul.f32 %v6649_v13, %v6361_v10  ;;  %v161_v8 = vmul.f32 %v6582_v22, %v48_v9  ;;  %v2841_v29 = vadd.f32 %v2777_v25, %v2711_v3 }
 0x101   :  { %v2071_v6 = vrot.slane %v1844_v33, 1  ;;  %v6657_v21 = vmul.f32 %v4770_v54, %v422_v56  ;;  %v10643_v63 = vrot.slane %v6340_v60, 1  ;;  %v2553_v35 = vrot.slane %v2326_v14, 2  ;;  %v6675_v60 = vld [vmem:[%s10283_s1 + $0x7] ss:$0 sm:$0xff] }
 0x102   :  { %v1460_v42 = vsel %vm1370_vm2, %v10644_v48, %v1459_v52  ;;  %v10645_v10 = vrot.slane %v6367_v11, 1  ;;  %v272_v25 = vadd.f32 %v6602_v18, %v161_v8  ;;  %v3323_v9 = vadd.f32 %v3134_v46, %v2841_v29  ;;  %v6682_v11 = vld [vmem:[%s10283_s1 + $0x8] ss:$0 sm:$0xff] }
 0x103   :  { %10642 = vst [vmem:[#allocation8_spill] sm:$0xff] %v6657_v21  ;;  %v977_v33 = vsel %vm887_vm1, %v10643_v63, %v976_v20  ;;  %v10646_v56 = vrot.slane %v6379_v49, 2  ;;  %v2938_v0 = vmul.f32 %v6675_v60, %v6657_v21  ;;  %v640_v52 = vmul.f32 %v6592_v55, %v10634_v57 }
 0x104   :  { %v1147_v36 = vadd.f32 %v977_v33, %v664_v26  ;;  %v2072_v3 = vsel %vm887_vm1, %v10645_v10, %v2071_v6  ;;  %v3420_v6 = vmul.f32 %v6682_v11, %v6657_v21  ;;  %v380_v49 = vmax.f32 %v272_v25, 0.0 }
 0x105   :  { %v2554_v54 = vsel %vm1370_vm2, %v10646_v56, %v2553_v35  ;;  %v488_v35 = vld [vmem:[%s10282_s5 + $0xb8] sm:$0x3]  ;;  %v712_v48 = vmul.f32 %v6608_v62, %v5790_v27  ;;  %v3805_v14 = vadd.f32 %v3616_v5, %v3323_v9  ;;  %v3165_v20 = vrot.slane %v2938_v0, 1 }
 0x106   :  { %v1630_v10 = vadd.f32 %v1460_v42, %v1147_v36  ;;  %v3647_v26 = vrot.slane %v3420_v6, 2  ;;  %v1195_v46 = vmul.f32 %v6621_v19, %v5790_v27  ;;  %v6695_v29 = vmul.f32 %v488_v35, %v380_v49 }
 0x107   :  { %v916_v63 = vrot.slane %v712_v48, 1  ;;  %v1672_v42 = vmul.f32 %v6628_v37, %v6019_v32  ;;  %4683 = vmatmul.msk.f32.gmra.mxu1 %vm3848_vm3, %v3805_v14  ;;  %v10647_v57 = vrot.slane %v6398_v30, 1  ;;  %v10648_v5 = vrot.slane %v6407_v51, 2 }
 0x108   :  { %v1760_v8 = vadd.f32 %v1696_v45, %v1630_v10  ;;  %v1399_v25 = vrot.slane %v1195_v46, 2  ;;  %v1808_v27 = vmul.f32 %v6635_v61, %v6228_v17  ;;  %v66_v45 = vld [vmem:[%s10279_s0 + $0x148] sm:$0x3]  ;;  %v10649_v56 = vrot.slane %v6434_v39, 1 }
 0x109   :  { %v3166_v36 = vsel %vm887_vm1, %v10647_v57, %v3165_v20  ;;  %v3648_v33 = vsel %vm1370_vm2, %v10648_v5, %v3647_v26  ;;  %v2290_v30 = vmul.f32 %v6642_v50, %v6228_v17  ;;  %v2766_v51 = vmul.f32 %v6649_v13, %v6449_v31 }
 0x10a   :  { %v2242_v9 = vadd.f32 %v2072_v3, %v1760_v8  ;;  %v917_v0 = vsel %vm887_vm1, %v10649_v56, %v916_v63  ;;  %v10650_v35 = vrot.slane %v6440_v40, 2  ;;  %v2011_v49 = vrot.slane %v1808_v27, 1 }
 0x10b   :  { %v1123_v6 = vadd.f32 %v917_v0, %v640_v52  ;;  %v2902_v48 = vmul.f32 %v6675_v60, %v6695_v29  ;;  %v2493_v14 = vrot.slane %v2290_v30, 2  ;;  %v3384_v39 = vmul.f32 %v6682_v11, %v6695_v29 }
 0x10c   :  { %v1400_v10 = vsel %vm1370_vm2, %v10650_v35, %v1399_v25  ;;  %v2724_v3 = vadd.f32 %v2554_v54, %v2242_v9  ;;  %v179_v20 = vmul.f32 %v6582_v22, %v66_v45  ;;  %v10651_v46 = vrot.slane %v6457_v58, 1  ;;  %v506_v58 = vld [vmem:[%s10282_s5 + $0x148] sm:$0x3] }
 0x10d   :  { %v1606_v26 = vadd.f32 %v1400_v10, %v1123_v6  ;;  %v3105_v8 = vrot.slane %v2902_v48, 1  ;;  %v652_v40 = vmul.f32 %v6592_v55, %v5670_v1  ;;  %v10652_v57 = vrot.slane %v6466_v12, 2 }
 0x10e   :  { %v2012_v52 = vsel %vm887_vm1, %v10651_v46, %v2011_v49  ;;  %v2854_v63 = vadd.f32 %v2790_v34, %v2724_v3  ;;  %v3587_v5 = vrot.slane %v3384_v39, 2  ;;  %v290_v25 = vadd.f32 %v6602_v18, %v179_v20  ;;  %v92_v3 = vld [vmem:[%s10279_s0 + $0x218] sm:$0xff] }
 0x10f   :  { %v2494_v54 = vsel %vm1370_vm2, %v10652_v57, %v2493_v14  ;;  %v1736_v27 = vadd.f32 %v1672_v42, %v1606_v26  ;;  %v10653_v45 = vrot.slane %v6479_v23, 1  ;;  %v730_v1 = vmul.f32 %v6608_v62, %v5838_v7 }
 0x110   :  { %v1213_v12 = vmul.f32 %v6621_v19, %v5838_v7  ;;  %v3336_v34 = vadd.f32 %v3166_v36, %v2854_v63  ;;  %v10654_v56 = vrot.slane %v6491_v43, 2  ;;  %v398_v42 = vmax.f32 %v290_v25, 0.0  ;;  %v91_v36 = vld [vmem:[%s10279_s0 + $0x210] sm:$0xff] }
 0x111   :  { %v3106_v9 = vsel %vm887_vm1, %v10653_v45, %v3105_v8  ;;  %v1684_v23 = vmul.f32 %v6628_v37, %v6123_v28  ;;  %v2218_v30 = vadd.f32 %v2012_v52, %v1736_v27  ;;  %v946_v6 = vrot.slane %v730_v1, 1 }
 0x112   :  { %v3588_v0 = vsel %vm1370_vm2, %v10654_v56, %v3587_v5  ;;  %v1429_v35 = vrot.slane %v1213_v12, 2  ;;  %v1826_v10 = vmul.f32 %v6635_v61, %v6296_v15  ;;  %v3818_v49 = vadd.f32 %v3648_v33, %v3336_v34 }
 0x113   :  { %v6752_v48 = vmul.f32 %v506_v58, %v398_v42  ;;  %v2308_v7 = vmul.f32 %v6642_v50, %v6296_v15  ;;  %v2778_v43 = vmul.f32 %v6649_v13, %v6537_v16  ;;  %v2700_v14 = vadd.f32 %v2494_v54, %v2218_v30 }
 0x114   :  { %v10656_v39 = vrot.slane %v6518_v41, 1  ;;  %v10657_v20 = vrot.slane %v6527_v24, 2  ;;  %v2041_v46 = vrot.slane %v1826_v10, 1  ;;  %4696 = vmatmul.msk.f32.gmra.mxu2 %vm3848_vm3, %v3818_v49  ;;  %v10658_v41 = vrot.slane %v6544_v53, 1 }
 0x115   :  { %10655 = vst [vmem:[#allocation9_spill] sm:$0xff] %v6752_v48  ;;  %v2523_v8 = vrot.slane %v2308_v7, 2  ;;  %v2920_v63 = vmul.f32 %v6675_v60, %v6752_v48  ;;  %v3402_v57 = vmul.f32 %v6682_v11, %v6752_v48  ;;  %v2830_v54 = vadd.f32 %v2766_v51, %v2700_v14  ;;  %v4774_v14 = vld [vmem:[%s10282_s5 + $0x68] sm:$0xff] }
 0x116   :  { %v947_v33 = vsel %vm887_vm1, %v10656_v39, %v946_v6  ;;  %v1430_v26 = vsel %vm1370_vm2, %v10657_v20, %v1429_v35  ;;  %v2042_v5 = vsel %vm887_vm1, %v10658_v41, %v2041_v46  ;;  %v204_v24 = vmul.f32 %v6582_v22, %v91_v36 }
 0x117   :  { %v1135_v52 = vadd.f32 %v947_v33, %v652_v40  ;;  %v205_v25 = vmul.f32 %v6582_v22, %v92_v3  ;;  %v10659_v45 = vrot.slane %v6554_v59, 2  ;;  %v3135_v58 = vrot.slane %v2920_v63, 1  ;;  %v10664_v63 = vld [vmem:[#allocation11_spill] sm:$0xff] }
 0x118   :  { %v3617_v1 = vrot.slane %v3402_v57, 2  ;;  %v3312_v12 = vadd.f32 %v3106_v9, %v2830_v54  ;;  %v315_v34 = vadd.f32 %v6602_v18, %v204_v24  ;;  %v665_v53 = vmul.f32 %v6592_v55, %v10629_v38 }
 0x119   :  { %v1618_v27 = vadd.f32 %v1430_v26, %v1135_v52  ;;  %v2524_v40 = vsel %vm1370_vm2, %v10659_v45, %v2523_v8  ;;  %v316_v51 = vadd.f32 %v6602_v18, %v205_v25  ;;  %v10660_v42 = vrot.slane %v6565_v2, 1 }
 0x11a   :  { %v10661_v6 = vrot.slane %v6575_v4, 2  ;;  %v749_v35 = vmul.f32 %v6608_v62, %v10629_v38  ;;  %v3794_v9 = vadd.f32 %v3588_v0, %v3312_v12  ;;  %v423_v10 = vmax.f32 %v315_v34, 0.0  ;;  %v4773_v0 = vld [vmem:[%s10282_s5 + $0x60] sm:$0xff] }
 0x11b   :  { %v1748_v56 = vadd.f32 %v1684_v23, %v1618_v27  ;;  %v3136_v30 = vsel %vm887_vm1, %v10660_v42, %v3135_v58  ;;  %v424_v49 = vmax.f32 %v316_v51, 0.0  ;;  %v6797_v7 = vmul.f32 %v6608_v62, %v10632_v47 }
 0x11c   :  { %v3618_v59 = vsel %vm1370_vm2, %v10661_v6, %v3617_v1  ;;  %v978_v23 = vrot.slane %v749_v35, 1  ;;  %v1232_v2 = vmul.f32 %v6621_v19, %v10629_v38  ;;  %v6803_v4 = vmul.f32 %v6621_v19, %v10632_v47  ;;  %4672 = vmatmul.msk.f32.gmra.mxu0 %vm3848_vm3, %v3794_v9  ;;  %v106_v9 = vld [vmem:[%s10279_s0 + $0x288] sm:$0xff] }
 0x11d   :  { %v2230_v36 = vadd.f32 %v2042_v5, %v1748_v56  ;;  %v6809_v3 = vmul.f32 %v4773_v0, %v423_v10  ;;  %v6814_v39 = vmul.f32 %v4774_v14, %v424_v49  ;;  %v10387_v38 = vrot.slane %v6797_v7, 1  ;;  %v104_v56 = vld [vmem:[%s10279_s0 + $0x278] sm:$0xff]  ;;  %v107_v10 = vld [vmem:[%s10279_s0 + $0x290] sm:$0xff]  ;;  %v109_v0 = vld [vmem:[%s10279_s0 + $0x2a0] sm:$0xff] }
 0x11e   :  { %v1697_v33 = vmul.f32 %v6628_v37, %v6354_v44  ;;  %v1461_v26 = vrot.slane %v1232_v2, 2  ;;  %v10386_v46 = vrot.slane %v6803_v4, 2  ;;  %v1845_v52 = vmul.f32 %v6635_v61, %v6354_v44  ;;  %v110_v14 = vld [vmem:[%s10279_s0 + $0x2a8] sm:$0xff] }
 0x11f   :  { %10662 = vst [vmem:[#allocation10_spill] sm:$0xff] %v6809_v3  ;;  %v2712_v20 = vadd.f32 %v2524_v40, %v2230_v36  ;;  %v980_v8 = vsel %vm887_vm1, %v978_v23, %v10387_v38  ;;  %v6827_v57 = vmul.f32 %v6635_v61, %v10664_v63  ;;  %v2327_v54 = vmul.f32 %v6642_v50, %v6354_v44 }
 0x120   :  { %10663 = vst [vmem:[#allocation18_spill] sm:$0xff] %v6814_v39  ;;  %v6833_v41 = vmul.f32 %v6642_v50, %v10664_v63  ;;  %v1148_v24 = vadd.f32 %v980_v8, %v665_v53  ;;  %v1463_v25 = vsel %vm1370_vm2, %v1461_v26, %v10386_v46  ;;  %v2073_v27 = vrot.slane %v1845_v52, 1  ;;  %v103_v53 = vld [vmem:[%s10279_s0 + $0x270] sm:$0xff] }
 0x121   :  { %v2842_v5 = vadd.f32 %v2778_v43, %v2712_v20  ;;  %v10382_v45 = vrot.slane %v6827_v57, 1  ;;  %v2555_v40 = vrot.slane %v2327_v54, 2  ;;  %v2791_v1 = vmul.f32 %v6649_v13, %v6809_v3 }
 0x122   :  { %v10381_v58 = vrot.slane %v6833_v41, 2  ;;  %v1631_v34 = vadd.f32 %v1463_v25, %v1148_v24  ;;  %v2939_v51 = vmul.f32 %v6675_v60, %v6809_v3  ;;  %v6846_v43 = vmul.f32 %v6675_v60, %v6814_v39 }
 0x123   :  { %v3324_v12 = vadd.f32 %v3136_v30, %v2842_v5  ;;  %v2075_v42 = vsel %vm887_vm1, %v2073_v27, %v10382_v45  ;;  %v3421_v6 = vmul.f32 %v6682_v11, %v6809_v3  ;;  %v6864_v35 = vmul.f32 %v6682_v11, %v6814_v39  ;;  %v10675_v3 = vld [vmem:[#allocation3_spill] sm:$0xff] }
 0x124   :  { %v2557_v30 = vsel %vm1370_vm2, %v2555_v40, %v10381_v58  ;;  %v1761_v36 = vadd.f32 %v1697_v33, %v1631_v34  ;;  %v3167_v23 = vrot.slane %v2939_v51, 1  ;;  %v10380_v2 = vrot.slane %v6846_v43, 1 }
 0x125   :  { %v3806_v49 = vadd.f32 %v3618_v59, %v3324_v12  ;;  %v3649_v20 = vrot.slane %v3421_v6, 2  ;;  %v10379_v26 = vrot.slane %v6864_v35, 2  ;;  %v216_v52 = vmul.f32 %v6582_v22, %v103_v53 }
 0x126   :  { %v217_v8 = vmul.f32 %v6582_v22, %v104_v56  ;;  %v2243_v59 = vadd.f32 %v2075_v42, %v1761_v36  ;;  %v3169_v33 = vsel %vm887_vm1, %v3167_v23, %v10380_v2  ;;  %v219_v54 = vmul.f32 %v6582_v22, %v106_v9  ;;  %v10665_v9 = vld [vmem:[#allocation15_spill] sm:$0xff] }
 0x127   :  { %4684 = vmatmul.msk.f32.gmra.mxu1 %vm3848_vm3, %v3806_v49  ;;  %v220_v5 = vmul.f32 %v6582_v22, %v107_v10  ;;  %v3651_v24 = vsel %vm1370_vm2, %v3649_v20, %v10379_v26  ;;  %v222_v25 = vmul.f32 %v6582_v22, %v109_v0  ;;  %v223_v27 = vmul.f32 %v6582_v22, %v110_v14  ;;  %v4775_v20 = vld [vmem:[%s10282_s5 + $0xc0] sm:$0xff] }
 0x128   :  { %v327_v40 = vadd.f32 %v6602_v18, %v216_v52  ;;  %v2725_v12 = vadd.f32 %v2557_v30, %v2243_v59  ;;  %v328_v34 = vadd.f32 %v6602_v18, %v217_v8  ;;  %v330_v51 = vadd.f32 %v6602_v18, %v219_v54  ;;  %v4776_v54 = vld [vmem:[%s10282_s5 + $0xc8] sm:$0xff] }
 0x129   :  { %v331_v53 = vadd.f32 %v6602_v18, %v220_v5  ;;  %v333_v56 = vadd.f32 %v6602_v18, %v222_v25  ;;  %v334_v42 = vadd.f32 %v6602_v18, %v223_v27  ;;  %v6901_v10 = vmul.f32 %v6592_v55, %v10665_v9  ;;  %v4777_v5 = vld [vmem:[%s10282_s5 + $0xd8] sm:$0xff]  ;;  %v4778_v27 = vld [vmem:[%s10282_s5 + $0xe0] sm:$0xff] }
 0x12a   :  { %v435_v6 = vmax.f32 %v327_v40, 0.0  ;;  %v2855_v49 = vadd.f32 %v2791_v1, %v2725_v12  ;;  %v436_v36 = vmax.f32 %v328_v34, 0.0  ;;  %v438_v23 = vmax.f32 %v330_v51, 0.0  ;;  %v4780_v34 = vld [vmem:[%s10282_s5 + $0xf8] sm:$0xff] }
 0x12b   :  { %v439_v0 = vmax.f32 %v331_v53, 0.0  ;;  %v441_v30 = vmax.f32 %v333_v56, 0.0  ;;  %v442_v14 = vmax.f32 %v334_v42, 0.0  ;;  %v713_v8 = vmul.f32 %v6608_v62, %v10665_v9 }
 0x12c   :  { %v6906_v52 = vmul.f32 %v4775_v20, %v435_v6  ;;  %v3337_v59 = vadd.f32 %v3169_v33, %v2855_v49  ;;  %v6913_v1 = vmul.f32 %v4776_v54, %v436_v36  ;;  %v6918_v25 = vmul.f32 %v4777_v5, %v438_v23  ;;  %v4779_v33 = vld [vmem:[%s10282_s5 + $0xf0] sm:$0xff] }
 0x12d   :  { %v6923_v40 = vmul.f32 %v4778_v27, %v439_v0  ;;  %v6928_v12 = vmul.f32 %v4779_v33, %v441_v30  ;;  %v6933_v51 = vmul.f32 %v4780_v34, %v442_v14  ;;  %v1196_v38 = vmul.f32 %v6621_v19, %v10665_v9 }
 0x12e   :  { %10666 = vst [vmem:[#allocation15_spill] sm:$0xff] %v6906_v52  ;;  %v677_v53 = vmul.f32 %v6592_v55, %v6906_v52  ;;  %v767_v56 = vmul.f32 %v6608_v62, %v6906_v52  ;;  %v3819_v42 = vadd.f32 %v3651_v24, %v3337_v59  ;;  %v6941_v6 = vmul.f32 %v6608_v62, %v6913_v1 }
 0x12f   :  { %10667 = vst [vmem:[#allocation21_spill] sm:$0xff] %v6913_v1  ;;  %v1250_v49 = vmul.f32 %v6621_v19, %v6906_v52  ;;  %v6947_v36 = vmul.f32 %v6621_v19, %v6913_v1  ;;  %v1709_v0 = vmul.f32 %v6628_v37, %v6918_v25  ;;  %v1863_v30 = vmul.f32 %v6635_v61, %v6918_v25 }
 0x130   :  { %10668 = vst [vmem:[#allocation22_spill] sm:$0xff] %v6918_v25  ;;  %v1008_v23 = vrot.slane %v767_v56, 1  ;;  %v6955_v24 = vmul.f32 %v6635_v61, %v6923_v40  ;;  %4697 = vmatmul.msk.f32.gmra.mxu2 %vm3848_vm3, %v3819_v42  ;;  %v10383_v14 = vrot.slane %v6941_v6, 1  ;;  %v2345_v54 = vmul.f32 %v6642_v50, %v6918_v25 }
 0x131   :  { %10669 = vst [vmem:[#allocation23_spill] sm:$0xff] %v6923_v40  ;;  %v1491_v20 = vrot.slane %v1250_v49, 2  ;;  %v10385_v59 = vrot.slane %v6947_v36, 2  ;;  %v2103_v5 = vrot.slane %v1863_v30, 1  ;;  %v6965_v33 = vmul.f32 %v6642_v50, %v6923_v40 }
 0x132   :  { %10670 = vst [vmem:[#allocation24_spill] sm:$0xff] %v6928_v12  ;;  %v10384_v27 = vrot.slane %v6955_v24, 1  ;;  %v2803_v34 = vmul.f32 %v6649_v13, %v6928_v12  ;;  %v1010_v56 = vsel %vm887_vm1, %v1008_v23, %v10383_v14  ;;  %v2585_v49 = vrot.slane %v2345_v54, 2 }
 0x133   :  { %v1493_v42 = vsel %vm1370_vm2, %v1491_v20, %v10385_v59  ;;  %v2957_v30 = vmul.f32 %v6675_v60, %v6928_v12  ;;  %v1160_v26 = vadd.f32 %v1010_v56, %v677_v53  ;;  %v10391_v58 = vrot.slane %v6965_v33, 2 }
 0x134   :  { %v2105_v2 = vsel %vm887_vm1, %v2103_v5, %v10384_v27  ;;  %v6983_v45 = vmul.f32 %v6675_v60, %v6933_v51  ;;  %v3439_v14 = vmul.f32 %v6682_v11, %v6928_v12  ;;  %v6989_v20 = vmul.f32 %v6682_v11, %v6933_v51 }
 0x135   :  { %v3197_v23 = vrot.slane %v2957_v30, 1  ;;  %v6993_v53 = vmul.f32 %v6608_v62, %v6019_v32  ;;  %v1643_v54 = vadd.f32 %v1493_v42, %v1160_v26  ;;  %v2587_v5 = vsel %vm1370_vm2, %v2585_v49, %v10391_v58  ;;  %v10672_v49 = vld [vmem:[#allocation12_spill] sm:$0xff] }
 0x136   :  { %v10390_v56 = vrot.slane %v6983_v45, 1  ;;  %v918_v27 = vrot.slane %v713_v8, 1  ;;  %v3679_v30 = vrot.slane %v3439_v14, 2  ;;  %v10396_v59 = vrot.slane %v6989_v20, 2 }
 0x137   :  { %v10397_v46 = vrot.slane %v6993_v53, 1  ;;  %v1773_v52 = vadd.f32 %v1709_v0, %v1643_v54  ;;  %v7008_v42 = vmul.f32 %v6621_v19, %v6019_v32  ;;  %v1673_v8 = vmul.f32 %v6628_v37, %v10672_v49 }
 0x138   :  { %v3199_v26 = vsel %vm887_vm1, %v3197_v23, %v10390_v56  ;;  %v3681_v14 = vsel %vm1370_vm2, %v3679_v30, %v10396_v59  ;;  %v1401_v0 = vrot.slane %v1196_v38, 2  ;;  %v1809_v54 = vmul.f32 %v6635_v61, %v10672_v49  ;;  %v10674_v38 = vld [vmem:[#allocation2_spill] sm:$0xff] }
 0x139   :  { %10671 = vst [vmem:[#allocation25_spill] sm:$0xff] %v7008_v42  ;;  %v920_v9 = vsel %vm887_vm1, %v918_v27, %v10397_v46  ;;  %v2255_v23 = vadd.f32 %v2105_v2, %v1773_v52  ;;  %v10403_v58 = vrot.slane %v7008_v42, 2  ;;  %v7024_v12 = vmul.f32 %v6635_v61, %v6449_v31 }
 0x13a   :  { %v1124_v56 = vadd.f32 %v920_v9, %v6901_v10  ;;  %v2013_v25 = vrot.slane %v1809_v54, 1  ;;  %v2291_v30 = vmul.f32 %v6642_v50, %v10672_v49  ;;  %v7030_v27 = vmul.f32 %v6642_v50, %v6449_v31 }
 0x13b   :  { %10673 = vst [vmem:[#allocation26_spill] sm:$0xff] %v7024_v12  ;;  %v2767_v59 = vmul.f32 %v6649_v13, %v10674_v38  ;;  %v2737_v2 = vadd.f32 %v2587_v5, %v2255_v23  ;;  %v1403_v10 = vsel %vm1370_vm2, %v1401_v0, %v10403_v58  ;;  %v10411_v52 = vrot.slane %v7024_v12, 1  ;;  %v67_v5 = vld [vmem:[%s10279_s0 + $0x150] sm:$0xff]  ;;  %v68_v0 = vld [vmem:[%s10279_s0 + $0x158] sm:$0xff] }
 0x13c   :  { %v2903_v9 = vmul.f32 %v6675_v60, %v10674_v38  ;;  %v1607_v54 = vadd.f32 %v1403_v10, %v1124_v56  ;;  %v2495_v46 = vrot.slane %v2291_v30, 2  ;;  %v10410_v49 = vrot.slane %v7030_v27, 2 }
 0x13d   :  { %v7043_v44 = vmul.f32 %v6675_v60, %v10675_v3  ;;  %v2867_v23 = vadd.f32 %v2803_v34, %v2737_v2  ;;  %v2015_v56 = vsel %vm887_vm1, %v2013_v25, %v10411_v52  ;;  %v3385_v10 = vmul.f32 %v6682_v11, %v10674_v38 }
 0x13e   :  { %v3107_v30 = vrot.slane %v2903_v9, 1  ;;  %v1737_v58 = vadd.f32 %v1673_v8, %v1607_v54  ;;  %v2497_v48 = vsel %vm1370_vm2, %v2495_v46, %v10410_v49  ;;  %v7062_v42 = vmul.f32 %v6682_v11, %v10675_v3  ;;  %v10678_v46 = vld [vmem:[#allocation16_spill] sm:$0xff] }
 0x13f   :  { %10676 = vst [vmem:[#allocation3_spill] sm:$0xff] %v7043_v44  ;;  %v10414_v15 = vrot.slane %v7043_v44, 1  ;;  %v3349_v34 = vadd.f32 %v3199_v26, %v2867_v23  ;;  %v3589_v2 = vrot.slane %v3385_v10, 2  ;;  %v180_v12 = vmul.f32 %v6582_v22, %v67_v5 }
 0x140   :  { %10677 = vst [vmem:[#allocation27_spill] sm:$0xff] %v7062_v42  ;;  %v181_v25 = vmul.f32 %v6582_v22, %v68_v0  ;;  %v2219_v9 = vadd.f32 %v2015_v56, %v1737_v58  ;;  %v10413_v54 = vrot.slane %v7062_v42, 2  ;;  %v653_v49 = vmul.f32 %v6592_v55, %v10678_v46  ;;  %v507_v0 = vld [vmem:[%s10282_s5 + $0x150] sm:$0xff] }
 0x141   :  { %v3109_v8 = vsel %vm887_vm1, %v3107_v30, %v10414_v15  ;;  %v3831_v52 = vadd.f32 %v3681_v14, %v3349_v34  ;;  %v291_v38 = vadd.f32 %v6602_v18, %v180_v12  ;;  %v731_v5 = vmul.f32 %v6608_v62, %v10678_v46  ;;  %v508_v14 = vld [vmem:[%s10282_s5 + $0x158] sm:$0xff] }
 0x142   :  { %v292_v26 = vadd.f32 %v6602_v18, %v181_v25  ;;  %v2701_v23 = vadd.f32 %v2497_v48, %v2219_v9  ;;  %v3591_v58 = vsel %vm1370_vm2, %v3589_v2, %v10413_v54  ;;  %v7087_v12 = vmul.f32 %v6608_v62, %v6123_v28  ;;  %v10679_v54 = vld [vmem:[#allocation13_spill] sm:$0xff] }
 0x143   :  { %v1214_v56 = vmul.f32 %v6621_v19, %v10678_v46  ;;  %4709 = vmatmul.msk.f32.vlgmr.msra.gmra.mxu3 %vm3848_vm3, %v3831_v52  ;;  %v399_v48 = vmax.f32 %v291_v38, 0.0  ;;  %v948_v10 = vrot.slane %v731_v5, 1  ;;  %v7094_v34 = vmul.f32 %v6621_v19, %v6123_v28 }
 0x144   :  { %v400_v30 = vmax.f32 %v292_v26, 0.0  ;;  %v2831_v2 = vadd.f32 %v2767_v59, %v2701_v23  ;;  %v10418_v25 = vrot.slane %v7087_v12, 1  ;;  %v1685_v15 = vmul.f32 %v6628_v37, %v10679_v54 }
 0x145   :  { %v1431_v9 = vrot.slane %v1214_v56, 2  ;;  %v7099_v42 = vmul.f32 %v507_v0, %v399_v48  ;;  %v10417_v52 = vrot.slane %v7094_v34, 2  ;;  %v1827_v38 = vmul.f32 %v6635_v61, %v10679_v54  ;;  %v93_v56 = vld [vmem:[%s10279_s0 + $0x220] sm:$0x3] }
 0x146   :  { %v7101_v44 = vmul.f32 %v508_v14, %v400_v30  ;;  %v3313_v46 = vadd.f32 %v3109_v8, %v2831_v2  ;;  %v950_v59 = vsel %vm887_vm1, %v948_v10, %v10418_v25  ;;  %v7111_v26 = vmul.f32 %v6635_v61, %v6537_v16 }
 0x147   :  { %10680 = vst [vmem:[#allocation16_spill] sm:$0xff] %v7099_v42  ;;  %v2309_v5 = vmul.f32 %v6642_v50, %v10679_v54  ;;  %v1136_v23 = vadd.f32 %v950_v59, %v653_v49  ;;  %v1433_v0 = vsel %vm1370_vm2, %v1431_v9, %v10417_v52  ;;  %v2043_v14 = vrot.slane %v1827_v38, 1 }
 0x148   :  { %10681 = vst [vmem:[#allocation28_spill] sm:$0xff] %v7111_v26  ;;  %v7120_v8 = vmul.f32 %v6642_v50, %v6537_v16  ;;  %v3795_v48 = vadd.f32 %v3591_v58, %v3313_v46  ;;  %v10420_v30 = vrot.slane %v7111_v26, 1  ;;  %v2779_v49 = vmul.f32 %v6649_v13, %v7099_v42 }
 0x149   :  { %v2525_v10 = vrot.slane %v2309_v5, 2  ;;  %v1619_v2 = vadd.f32 %v1433_v0, %v1136_v23  ;;  %v2921_v9 = vmul.f32 %v6675_v60, %v7099_v42  ;;  %v7133_v38 = vmul.f32 %v6675_v60, %v7101_v44 }
 0x14a   :  { %10682 = vst [vmem:[#allocation29_spill] sm:$0xff] %v7120_v8  ;;  %v10425_v59 = vrot.slane %v7120_v8, 2  ;;  %4673 = vmatmul.msk.f32.gmra.mxu0 %vm3848_vm3, %v3795_v48  ;;  %v2045_v58 = vsel %vm887_vm1, %v2043_v14, %v10420_v30  ;;  %v3403_v46 = vmul.f32 %v6682_v11, %v7099_v42  ;;  %v7143_v5 = vmul.f32 %v6682_v11, %v7101_v44 }
 0x14b   :  { %10683 = vst [vmem:[#allocation30_spill] sm:$0xff] %v7133_v38  ;;  %v206_v23 = vmul.f32 %v6582_v22, %v93_v56  ;;  %v1749_v0 = vadd.f32 %v1685_v15, %v1619_v2  ;;  %v3137_v25 = vrot.slane %v2921_v9, 1  ;;  %v10424_v48 = vrot.slane %v7133_v38, 1  ;;  %v10685_v56 = vld [vmem:[#allocation19_spill] sm:$0xff]  ;;  %v105_v9 = vld [vmem:[%s10279_s0 + $0x280] sm:$0x3] }
 0x14c   :  { %10684 = vst [vmem:[#allocation31_spill] sm:$0xff] %v7143_v5  ;;  %v2527_v52 = vsel %vm1370_vm2, %v2525_v10, %v10425_v59  ;;  %v3619_v54 = vrot.slane %v3403_v46, 2  ;;  %v10427_v14 = vrot.slane %v7143_v5, 2  ;;  %v666_v42 = vmul.f32 %v6592_v55, %v10632_v47  ;;  %v4781_v59 = vld [vmem:[%s10282_s5 + $0x70] sm:$0x3] }
 0x14d   :  { %v317_v30 = vadd.f32 %v6602_v18, %v206_v23  ;;  %v2231_v26 = vadd.f32 %v2045_v58, %v1749_v0  ;;  %v3139_v15 = vsel %vm887_vm1, %v3137_v25, %v10424_v48  ;;  %v751_v2 = vmul.f32 %v6608_v62, %v10685_v56 }
 0x14e   :  { %v1234_v10 = vmul.f32 %v6621_v19, %v10685_v56  ;;  %v3621_v46 = vsel %vm1370_vm2, %v3619_v54, %v10427_v14  ;;  %v1698_v58 = vmul.f32 %v6628_v37, %v10664_v63  ;;  %v1847_v25 = vmul.f32 %v6635_v61, %v6657_v21  ;;  %v108_v14 = vld [vmem:[%s10279_s0 + $0x298] sm:$0x3] }
 0x14f   :  { %v425_v47 = vmax.f32 %v317_v30, 0.0  ;;  %v2713_v23 = vadd.f32 %v2527_v52, %v2231_v26  ;;  %v981_v0 = vrot.slane %v751_v2, 1  ;;  %v2329_v56 = vmul.f32 %v6642_v50, %v6657_v21  ;;  %v111_v52 = vld [vmem:[%s10279_s0 + $0x2b0] sm:$0x3] }
 0x150   :  { %v1464_v48 = vrot.slane %v1234_v10, 2  ;;  %v2076_v54 = vrot.slane %v1847_v25, 1  ;;  %v2792_v30 = vmul.f32 %v6649_v13, %v6814_v39  ;;  %v218_v26 = vmul.f32 %v6582_v22, %v105_v9 }
 0x151   :  { %v7176_v5 = vmul.f32 %v4781_v59, %v425_v47  ;;  %v2843_v2 = vadd.f32 %v2779_v49, %v2713_v23  ;;  %v10687_v10 = vrot.slane %v6797_v7, 1  ;;  %v10688_v47 = vrot.slane %v6803_v4, 2 }
 0x152   :  { %v2558_v21 = vrot.slane %v2329_v56, 2  ;;  %v10689_v63 = vrot.slane %v6827_v57, 1  ;;  %v10690_v7 = vrot.slane %v6833_v41, 2  ;;  %v221_v4 = vmul.f32 %v6582_v22, %v108_v14 }
 0x153   :  { %10686 = vst [vmem:[#allocation19_spill] sm:$0xff] %v7176_v5  ;;  %v982_v59 = vsel %vm887_vm1, %v10687_v10, %v981_v0  ;;  %v1465_v25 = vsel %vm1370_vm2, %v10688_v47, %v1464_v48  ;;  %v2941_v8 = vmul.f32 %v6675_v60, %v7176_v5  ;;  %v3423_v49 = vmul.f32 %v6682_v11, %v7176_v5 }
 0x154   :  { %v1149_v39 = vadd.f32 %v982_v59, %v666_v42  ;;  %v2077_v38 = vsel %vm887_vm1, %v10689_v63, %v2076_v54  ;;  %v3325_v9 = vadd.f32 %v3139_v15, %v2843_v2  ;;  %v2559_v23 = vsel %vm1370_vm2, %v10690_v7, %v2558_v21 }
 0x155   :  { %v224_v48 = vmul.f32 %v6582_v22, %v111_v52  ;;  %v3170_v0 = vrot.slane %v2941_v8, 1  ;;  %v3652_v57 = vrot.slane %v3423_v49, 2  ;;  %v329_v63 = vadd.f32 %v6602_v18, %v218_v26  ;;  %v4783_v49 = vld [vmem:[%s10282_s5 + $0xe8] sm:$0x3] }
 0x156   :  { %v1632_v42 = vadd.f32 %v1465_v25, %v1149_v39  ;;  %v3807_v56 = vadd.f32 %v3621_v46, %v3325_v9  ;;  %v332_v54 = vadd.f32 %v6602_v18, %v221_v4  ;;  %v678_v15 = vmul.f32 %v6592_v55, %v6913_v1 }
 0x157   :  { %v335_v10 = vadd.f32 %v6602_v18, %v224_v48  ;;  %v10691_v21 = vrot.slane %v6846_v43, 1  ;;  %v10692_v52 = vrot.slane %v6864_v35, 2  ;;  %v437_v8 = vmax.f32 %v329_v63, 0.0  ;;  %v4782_v43 = vld [vmem:[%s10282_s5 + $0xd0] sm:$0x3] }
 0x158   :  { %v1762_v41 = vadd.f32 %v1698_v58, %v1632_v42  ;;  %4685 = vmatmul.msk.f32.gmra.mxu1 %vm3848_vm3, %v3807_v56  ;;  %v440_v46 = vmax.f32 %v332_v54, 0.0  ;;  %v1710_v2 = vmul.f32 %v6628_v37, %v6923_v40  ;;  %v7221_v59 = vmul.f32 %v6649_v13, %v6933_v51 }
 0x159   :  { %v3171_v14 = vsel %vm887_vm1, %v10691_v21, %v3170_v0  ;;  %v3653_v39 = vsel %vm1370_vm2, %v10692_v52, %v3652_v57  ;;  %v443_v26 = vmax.f32 %v335_v10, 0.0  ;;  %v7226_v35 = vmul.f32 %v4782_v43, %v437_v8 }
 0x15a   :  { %v2244_v58 = vadd.f32 %v2077_v38, %v1762_v41  ;;  %v642_v47 = vmul.f32 %v6592_v55, %v6019_v32  ;;  %v715_v25 = vmul.f32 %v6608_v62, %v6228_v17  ;;  %v7235_v9 = vmul.f32 %v4783_v49, %v440_v46  ;;  %v4784_v38 = vld [vmem:[%s10282_s5 + $0x100] sm:$0x3] }
 0x15b   :  { %10693 = vst [vmem:[#allocation32_spill] sm:$0xff] %v7226_v35  ;;  %v7240_v7 = vmul.f32 %v4784_v38, %v443_v26  ;;  %v1198_v4 = vmul.f32 %v6621_v19, %v6228_v17  ;;  %v1674_v32 = vmul.f32 %v6628_v37, %v6449_v31  ;;  %v769_v42 = vmul.f32 %v6608_v62, %v7226_v35 }
 0x15c   :  { %10694 = vst [vmem:[#allocation33_spill] sm:$0xff] %v7235_v9  ;;  %v2726_v48 = vadd.f32 %v2559_v23, %v2244_v58  ;;  %v1252_v0 = vmul.f32 %v6621_v19, %v7226_v35  ;;  %v921_v57 = vrot.slane %v715_v25, 1  ;;  %v1865_v63 = vmul.f32 %v6635_v61, %v7235_v9 }
 0x15d   :  { %v2347_v56 = vmul.f32 %v6642_v50, %v7235_v9  ;;  %v2959_v17 = vmul.f32 %v6675_v60, %v7240_v7  ;;  %v3441_v54 = vmul.f32 %v6682_v11, %v7240_v7  ;;  %v1011_v10 = vrot.slane %v769_v42, 1 }
 0x15e   :  { %v2856_v23 = vadd.f32 %v2792_v30, %v2726_v48  ;;  %v1494_v41 = vrot.slane %v1252_v0, 2  ;;  %v10695_v21 = vrot.slane %v6993_v53, 1  ;;  %v2106_v8 = vrot.slane %v1865_v63, 1 }
 0x15f   :  { %v2588_v46 = vrot.slane %v2347_v56, 2  ;;  %v3200_v26 = vrot.slane %v2959_v17, 1  ;;  %v3682_v58 = vrot.slane %v3441_v54, 2  ;;  %v10696_v25 = vrot.slane %v6941_v6, 1  ;;  %v10702_v54 = vld [vmem:[#allocation6_spill] sm:$0xff] }
 0x160   :  { %v922_v52 = vsel %vm887_vm1, %v10695_v21, %v921_v57  ;;  %v3338_v43 = vadd.f32 %v3171_v14, %v2856_v23  ;;  %v10697_v38 = vrot.slane %v6947_v36, 2  ;;  %v10698_v42 = vrot.slane %v6955_v24, 1  ;;  %v69_v36 = vld [vmem:[%s10279_s0 + $0x160] sm:$0x3] }
 0x161   :  { %v1012_v49 = vsel %vm887_vm1, %v10696_v25, %v1011_v10  ;;  %v1125_v30 = vadd.f32 %v922_v52, %v642_v47  ;;  %v10699_v0 = vrot.slane %v6965_v33, 2  ;;  %v10700_v14 = vrot.slane %v6983_v45, 1 }
 0x162   :  { %v1495_v35 = vsel %vm1370_vm2, %v10697_v38, %v1494_v41  ;;  %v1161_v48 = vadd.f32 %v1012_v49, %v678_v15  ;;  %v2107_v53 = vsel %vm887_vm1, %v10698_v42, %v2106_v8  ;;  %v3820_v63 = vadd.f32 %v3653_v39, %v3338_v43  ;;  %v10703_v39 = vld [vmem:[#allocation25_spill] sm:$0xff] }
 0x163   :  { %v2589_v57 = vsel %vm1370_vm2, %v10699_v0, %v2588_v46  ;;  %v3201_v6 = vsel %vm887_vm1, %v10700_v14, %v3200_v26  ;;  %v10701_v47 = vrot.slane %v6989_v20, 2  ;;  %v1404_v24 = vrot.slane %v1198_v4, 2  ;;  %v10705_v26 = vld [vmem:[#allocation26_spill] sm:$0xff] }
 0x164   :  { %v1811_v56 = vmul.f32 %v6635_v61, %v6695_v29  ;;  %v1644_v33 = vadd.f32 %v1495_v35, %v1161_v48  ;;  %v2293_v17 = vmul.f32 %v6642_v50, %v6695_v29  ;;  %v2768_v45 = vmul.f32 %v6649_v13, %v10675_v3  ;;  %4698 = vmatmul.msk.f32.gmra.mxu2 %vm3848_vm3, %v3820_v63  ;;  %v509_v63 = vld [vmem:[%s10282_s5 + $0x160] sm:$0x3] }
 0x165   :  { %v3683_v15 = vsel %vm1370_vm2, %v10701_v47, %v3682_v58  ;;  %v2905_v23 = vmul.f32 %v6675_v60, %v10702_v54  ;;  %v10704_v20 = vrot.slane %v10703_v39, 2  ;;  %v3387_v41 = vmul.f32 %v6682_v11, %v10702_v54  ;;  %v10710_v47 = vld [vmem:[#allocation27_spill] sm:$0xff]  ;;  %v10713_v39 = vld [vmem:[#allocation9_spill] sm:$0xff] }
 0x166   :  { %v2016_v4 = vrot.slane %v1811_v56, 1  ;;  %v182_v35 = vmul.f32 %v6582_v22, %v69_v36  ;;  %v1774_v21 = vadd.f32 %v1710_v2, %v1644_v33  ;;  %v2498_v8 = vrot.slane %v2293_v17, 2  ;;  %v10708_v2 = vld [vmem:[#allocation3_spill] sm:$0xff] }
 0x167   :  { %v1405_v10 = vsel %vm1370_vm2, %v10704_v20, %v1404_v24  ;;  %v3110_v46 = vrot.slane %v2905_v23, 1  ;;  %v10706_v58 = vrot.slane %v10705_v26, 1  ;;  %v3592_v25 = vrot.slane %v3387_v41, 2 }
 0x168   :  { %v1608_v52 = vadd.f32 %v1405_v10, %v1125_v30  ;;  %v293_v49 = vadd.f32 %v6602_v18, %v182_v35  ;;  %v654_v38 = vmul.f32 %v6592_v55, %v6123_v28  ;;  %v2256_v48 = vadd.f32 %v2107_v53, %v1774_v21  ;;  %v10712_v28 = vld [vmem:[#allocation20_spill] sm:$0xff] }
 0x169   :  { %v2017_v43 = vsel %vm887_vm1, %v10706_v58, %v2016_v4  ;;  %v10707_v0 = vrot.slane %v7030_v27, 2  ;;  %v10709_v30 = vrot.slane %v10708_v2, 1  ;;  %v10711_v24 = vrot.slane %v10710_v47, 2  ;;  %v10717_v2 = vld [vmem:[#allocation28_spill] sm:$0xff] }
 0x16a   :  { %v1738_v42 = vadd.f32 %v1674_v32, %v1608_v52  ;;  %v401_v33 = vmax.f32 %v293_v49, 0.0  ;;  %v733_v32 = vmul.f32 %v6608_v62, %v10712_v28  ;;  %v1216_v27 = vmul.f32 %v6621_v19, %v10712_v28 }
 0x16b   :  { %v2499_v14 = vsel %vm1370_vm2, %v10707_v0, %v2498_v8  ;;  %v3111_v36 = vsel %vm887_vm1, %v10709_v30, %v3110_v46  ;;  %v3593_v56 = vsel %vm1370_vm2, %v10711_v24, %v3592_v25  ;;  %v2738_v53 = vadd.f32 %v2589_v57, %v2256_v48  ;;  %v94_v46 = vld [vmem:[%s10279_s0 + $0x228] sm:$0xff]  ;;  %v95_v48 = vld [vmem:[%s10279_s0 + $0x230] sm:$0xff] }
 0x16c   :  { %v2220_v17 = vadd.f32 %v2017_v43, %v1738_v42  ;;  %v1686_v23 = vmul.f32 %v6628_v37, %v6537_v16  ;;  %v1829_v20 = vmul.f32 %v6635_v61, %v10713_v39  ;;  %v7323_v10 = vmul.f32 %v509_v63, %v401_v33  ;;  %v10719_v63 = vld [vmem:[#allocation29_spill] sm:$0xff] }
 0x16d   :  { %v951_v4 = vrot.slane %v733_v32, 1  ;;  %v1434_v41 = vrot.slane %v1216_v27, 2  ;;  %v2311_v35 = vmul.f32 %v6642_v50, %v10713_v39  ;;  %v2868_v21 = vadd.f32 %v7221_v59, %v2738_v53 }
 0x16e   :  { %10714 = vst [vmem:[#allocation6_spill] sm:$0xff] %v7323_v10  ;;  %v2702_v52 = vadd.f32 %v2499_v14, %v2220_v17  ;;  %v2046_v8 = vrot.slane %v1829_v20, 1  ;;  %v2780_v57 = vmul.f32 %v6649_v13, %v7101_v44  ;;  %v10715_v26 = vrot.slane %v7087_v12, 1 }
 0x16f   :  { %v10716_v43 = vrot.slane %v7094_v34, 2  ;;  %v2528_v49 = vrot.slane %v2311_v35, 2  ;;  %v2923_v59 = vmul.f32 %v6675_v60, %v7323_v10  ;;  %v3350_v42 = vadd.f32 %v3201_v6, %v2868_v21 }
 0x170   :  { %v952_v58 = vsel %vm887_vm1, %v10715_v26, %v951_v4  ;;  %v2832_v0 = vadd.f32 %v2768_v45, %v2702_v52  ;;  %v10718_v30 = vrot.slane %v10717_v2, 1  ;;  %v10720_v47 = vrot.slane %v10719_v63, 2  ;;  %v10721_v45 = vld [vmem:[#allocation30_spill] sm:$0xff] }
 0x171   :  { %v1435_v25 = vsel %vm1370_vm2, %v10716_v43, %v1434_v41  ;;  %v1137_v14 = vadd.f32 %v952_v58, %v654_v38  ;;  %v3140_v24 = vrot.slane %v2923_v59, 1  ;;  %v3405_v33 = vmul.f32 %v6682_v11, %v7323_v10  ;;  %v10723_v41 = vld [vmem:[#allocation17_spill] sm:$0xff]  ;;  %v10726_v58 = vld [vmem:[#allocation11_spill] sm:$0xff]  ;;  %v4786_v2 = vld [vmem:[%s10282_s5 + $0x80] sm:$0xff] }
 0x172   :  { %v2047_v12 = vsel %vm887_vm1, %v10718_v30, %v2046_v8  ;;  %v2529_v34 = vsel %vm1370_vm2, %v10720_v47, %v2528_v49  ;;  %v207_v28 = vmul.f32 %v6582_v22, %v94_v46  ;;  %v3832_v32 = vadd.f32 %v3683_v15, %v3350_v42  ;;  %v4785_v49 = vld [vmem:[%s10282_s5 + $0x78] sm:$0xff]  ;;  %v10728_v42 = vld [vmem:[#allocation10_spill] sm:$0xff] }
 0x173   :  { %v3314_v27 = vadd.f32 %v3111_v36, %v2832_v0  ;;  %v1620_v53 = vadd.f32 %v1435_v25, %v1137_v14  ;;  %v208_v6 = vmul.f32 %v6582_v22, %v95_v48  ;;  %v10722_v38 = vrot.slane %v10721_v45, 1  ;;  %v10724_v22 = vld [vmem:[#allocation31_spill] sm:$0xff]  ;;  %v10730_v47 = vld [vmem:[#allocation18_spill] sm:$0xff] }
 0x174   :  { %v3622_v20 = vrot.slane %v3405_v33, 2  ;;  %v318_v4 = vadd.f32 %v6602_v18, %v207_v28  ;;  %v667_v35 = vmul.f32 %v6592_v55, %v10723_v41  ;;  %4710 = vmatmul.msk.f32.gmra.mxu3 %vm3848_vm3, %v3832_v32  ;;  %v752_v36 = vmul.f32 %v6608_v62, %v10723_v41 }
 0x175   :  { %v3141_v17 = vsel %vm887_vm1, %v10722_v38, %v3140_v24  ;;  %v3796_v21 = vadd.f32 %v3593_v56, %v3314_v27  ;;  %v1750_v52 = vadd.f32 %v1686_v23, %v1620_v53  ;;  %v319_v15 = vadd.f32 %v6602_v18, %v208_v6 }
 0x176   :  { %v10725_v8 = vrot.slane %v10724_v22, 2  ;;  %v426_v26 = vmax.f32 %v318_v4, 0.0  ;;  %v7369_v43 = vmul.f32 %v6608_v62, %v10726_v58  ;;  %v1235_v55 = vmul.f32 %v6621_v19, %v10723_v41  ;;  %v112_v4 = vld [vmem:[%s10279_s0 + $0x2b8] sm:$0xff]  ;;  %v113_v41 = vld [vmem:[%s10279_s0 + $0x2c0] sm:$0xff] }
 0x177   :  { %4674 = vmatmul.msk.f32.gmra.mxu0 %vm3848_vm3, %v3796_v21  ;;  %v2232_v56 = vadd.f32 %v2047_v12, %v1750_v52  ;;  %v427_v23 = vmax.f32 %v319_v15, 0.0  ;;  %v983_v18 = vrot.slane %v752_v36, 1  ;;  %v7376_v25 = vmul.f32 %v6621_v19, %v10726_v58 }
 0x178   :  { %v3623_v46 = vsel %vm1370_vm2, %v10725_v8, %v3622_v20  ;;  %v7381_v59 = vmul.f32 %v4785_v49, %v426_v26  ;;  %v10445_v62 = vrot.slane %v7369_v43, 1  ;;  %v1466_v48 = vrot.slane %v1235_v55, 2  ;;  %v7443_v26 = vld [vmem:[%s10280_s3] ss:$0 sm:$0xff] }
 0x179   :  { %v1699_v0 = vmul.f32 %v6628_v37, %v10728_v42  ;;  %v2714_v14 = vadd.f32 %v2529_v34, %v2232_v56  ;;  %v7389_v30 = vmul.f32 %v4786_v2, %v427_v23  ;;  %v10444_v19 = vrot.slane %v7376_v25, 2  ;;  %v7454_v23 = vld [vmem:[%s10283_s1] ss:$0 sm:$0xff] }
 0x17a   :  { %10727 = vst [vmem:[#allocation25_spill] sm:$0xff] %v7381_v59  ;;  %v1848_v12 = vmul.f32 %v6635_v61, %v10728_v42  ;;  %v985_v63 = vsel %vm887_vm1, %v983_v18, %v10445_v62  ;;  %v7399_v24 = vmul.f32 %v6635_v61, %v10730_v47  ;;  %v2330_v37 = vmul.f32 %v6642_v50, %v10728_v42  ;;  %v10731_v18 = vld [vmem:[#allocation22_spill] sm:$0xff] }
 0x17b   :  { %10729 = vst [vmem:[#allocation26_spill] sm:$0xff] %v7389_v30  ;;  %v7405_v34 = vmul.f32 %v6642_v50, %v10730_v47  ;;  %v2844_v33 = vadd.f32 %v2780_v57, %v2714_v14  ;;  %v1150_v28 = vadd.f32 %v985_v63, %v667_v35  ;;  %v1468_v32 = vsel %vm1370_vm2, %v1466_v48, %v10444_v19  ;;  %v7461_v48 = vld [vmem:[%s10283_s1 + $0x1] ss:$0 sm:$0xff]  ;;  %v7471_v2 = vld [vmem:[%s10281_s4] ss:$0 sm:$0xff] }
 0x17c   :  { %v2078_v27 = vrot.slane %v1848_v12, 1  ;;  %v10443_v53 = vrot.slane %v7399_v24, 1  ;;  %v2560_v6 = vrot.slane %v2330_v37, 2  ;;  %v2793_v45 = vmul.f32 %v6649_v13, %v7381_v59 }
 0x17d   :  { %v10442_v61 = vrot.slane %v7405_v34, 2  ;;  %v3326_v38 = vadd.f32 %v3141_v17, %v2844_v33  ;;  %v1633_v20 = vadd.f32 %v1468_v32, %v1150_v28  ;;  %v2942_v50 = vmul.f32 %v6675_v60, %v7381_v59  ;;  %v7482_v32 = vld [vmem:[%s10283_s1 + $0x2] ss:$0 sm:$0xff] }
 0x17e   :  { %v7418_v57 = vmul.f32 %v6675_v60, %v7389_v30  ;;  %v2080_v13 = vsel %vm887_vm1, %v2078_v27, %v10443_v53  ;;  %v3424_v60 = vmul.f32 %v6682_v11, %v7381_v59  ;;  %v7436_v35 = vmul.f32 %v6682_v11, %v7389_v30 }
 0x17f   :  { %v2562_v17 = vsel %vm1370_vm2, %v2560_v6, %v10442_v61  ;;  %v3808_v21 = vadd.f32 %v3623_v46, %v3326_v38  ;;  %v1763_v52 = vadd.f32 %v1699_v0, %v1633_v20  ;;  %v3172_v15 = vrot.slane %v2942_v50, 1  ;;  %v10734_v61 = vld [vmem:[#allocation12_spill] sm:$0xff] }
 0x180   :  { %v10440_v36 = vrot.slane %v7418_v57, 1  ;;  %v3654_v22 = vrot.slane %v3424_v60, 2  ;;  %v10439_v8 = vrot.slane %v7436_v35, 2  ;;  %v225_v55 = vmul.f32 %v7443_v26, %v112_v4  ;;  %v7494_v4 = vld [vmem:[%s10283_s1 + $0x3] ss:$0 sm:$0xff] }
 0x181   :  { %v226_v56 = vmul.f32 %v7443_v26, %v113_v41  ;;  %4686 = vmatmul.msk.f32.gmra.mxu1 %vm3848_vm3, %v3808_v21  ;;  %v2245_v11 = vadd.f32 %v2080_v13, %v1763_v52  ;;  %v679_v49 = vmul.f32 %v7454_v23, %v10731_v18  ;;  %v770_v0 = vmul.f32 %v7461_v48, %v10731_v18  ;;  %v10732_v41 = vld [vmem:[#allocation24_spill] sm:$0xff]  ;;  %v7502_v52 = vld [vmem:[%s10283_s1 + $0x4] ss:$0 sm:$0xff] }
 0x182   :  { %v3174_v46 = vsel %vm887_vm1, %v3172_v15, %v10440_v36  ;;  %v3656_v14 = vsel %vm1370_vm2, %v3654_v22, %v10439_v8  ;;  %v336_v12 = vadd.f32 %v7471_v2, %v225_v55  ;;  %v7477_v37 = vmul.f32 %v7461_v48, %v6923_v40  ;;  %v4794_v22 = vld [vmem:[%s10282_s5 + $0x108] sm:$0xff] }
 0x183   :  { %v337_v63 = vadd.f32 %v7471_v2, %v226_v56  ;;  %v2727_v33 = vadd.f32 %v2562_v17, %v2245_v11  ;;  %v1013_v28 = vrot.slane %v770_v0, 1  ;;  %v1253_v27 = vmul.f32 %v7482_v32, %v10731_v18 }
 0x184   :  { %v7488_v6 = vmul.f32 %v7482_v32, %v6923_v40  ;;  %v444_v38 = vmax.f32 %v336_v12, 0.0  ;;  %v10438_v50 = vrot.slane %v7477_v37, 1  ;;  %v1711_v13 = vmul.f32 %v7494_v4, %v10732_v41 }
 0x185   :  { %v445_v20 = vmax.f32 %v337_v63, 0.0  ;;  %v2857_v17 = vadd.f32 %v2793_v45, %v2727_v33  ;;  %v1496_v60 = vrot.slane %v1253_v27, 2  ;;  %v1866_v15 = vmul.f32 %v7502_v52, %v10732_v41  ;;  %v4795_v45 = vld [vmem:[%s10282_s5 + $0x110] sm:$0xff] }
 0x186   :  { %v10437_v21 = vrot.slane %v7488_v6, 2  ;;  %v7509_v55 = vmul.f32 %v4794_v22, %v444_v38  ;;  %v1015_v11 = vsel %vm887_vm1, %v1013_v28, %v10438_v50  ;;  %v7521_v0 = vmul.f32 %v7502_v52, %v6933_v51 }
 0x187   :  { %v7514_v56 = vmul.f32 %v4795_v45, %v445_v20  ;;  %v3339_v12 = vadd.f32 %v3174_v46, %v2857_v17  ;;  %v1162_v63 = vadd.f32 %v1015_v11, %v679_v49  ;;  %v2108_v27 = vrot.slane %v1866_v15, 1  ;;  %v7530_v20 = vld [vmem:[%s10283_s1 + $0x5] ss:$0 sm:$0xff]  ;;  %v7541_v46 = vld [vmem:[%s10283_s1 + $0x6] ss:$0 sm:$0xff] }
 0x188   :  { %10733 = vst [vmem:[#allocation3_spill] sm:$0xff] %v7509_v55  ;;  %v1498_v33 = vsel %vm1370_vm2, %v1496_v60, %v10437_v21  ;;  %v10441_v38 = vrot.slane %v7521_v0, 1  ;;  %v2348_v28 = vmul.f32 %v7530_v20, %v10732_v41  ;;  %v7536_v22 = vmul.f32 %v7530_v20, %v6933_v51  ;;  %v7548_v15 = vld [vmem:[%s10283_s1 + $0x7] ss:$0 sm:$0xff] }
 0x189   :  { %v2805_v49 = vmul.f32 %v7541_v46, %v7509_v55  ;;  %v3821_v17 = vadd.f32 %v3656_v14, %v3339_v12  ;;  %v1645_v60 = vadd.f32 %v1498_v33, %v1162_v63  ;;  %v2960_v45 = vmul.f32 %v7548_v15, %v7509_v55  ;;  %v7563_v12 = vld [vmem:[%s10283_s1 + $0x8] ss:$0 sm:$0xff] }
 0x18a   :  { %v7554_v11 = vmul.f32 %v7548_v15, %v7514_v56  ;;  %v2110_v21 = vsel %vm887_vm1, %v2108_v27, %v10441_v38  ;;  %v2590_v50 = vrot.slane %v2348_v28, 2  ;;  %v10446_v14 = vrot.slane %v7536_v22, 2 }
 0x18b   :  { %v3442_v63 = vmul.f32 %v7563_v12, %v7509_v55  ;;  %4699 = vmatmul.msk.f32.gmra.mxu2 %vm3848_vm3, %v3821_v17  ;;  %v1775_v33 = vadd.f32 %v1711_v13, %v1645_v60  ;;  %v3202_v8 = vrot.slane %v2960_v45, 1  ;;  %v7571_v27 = vmul.f32 %v7563_v12, %v7514_v56 }
 0x18c   :  { %v10447_v36 = vrot.slane %v7554_v11, 1  ;;  %v2592_v28 = vsel %vm1370_vm2, %v2590_v50, %v10446_v14  ;;  %v643_v53 = vmul.f32 %v7454_v23, %v10734_v61  ;;  %v716_v19 = vmul.f32 %v7461_v48, %v10734_v61  ;;  %v10736_v14 = vld [vmem:[#allocation2_spill] sm:$0xff] }
 0x18d   :  { %v3684_v38 = vrot.slane %v3442_v63, 2  ;;  %v2257_v17 = vadd.f32 %v2110_v21, %v1775_v33  ;;  %v10453_v60 = vrot.slane %v7571_v27, 2  ;;  %v7586_v45 = vmul.f32 %v7461_v48, %v6449_v31 }
 0x18e   :  { %v3204_v13 = vsel %vm887_vm1, %v3202_v8, %v10447_v36  ;;  %v923_v62 = vrot.slane %v716_v19, 1  ;;  %v1199_v50 = vmul.f32 %v7482_v32, %v10734_v61  ;;  %v7592_v63 = vmul.f32 %v7482_v32, %v6449_v31 }
 0x18f   :  { %v1675_v21 = vmul.f32 %v7494_v4, %v10736_v14  ;;  %v2739_v33 = vadd.f32 %v2592_v28, %v2257_v17  ;;  %v3686_v8 = vsel %vm1370_vm2, %v3684_v38, %v10453_v60  ;;  %v10462_v36 = vrot.slane %v7586_v45, 1 }
 0x190   :  { %10735 = vst [vmem:[#allocation27_spill] sm:$0xff] %v7592_v63  ;;  %v1812_v19 = vmul.f32 %v7502_v52, %v10736_v14  ;;  %v1406_v18 = vrot.slane %v1199_v50, 2  ;;  %v10460_v61 = vrot.slane %v7592_v63, 2  ;;  %v7605_v1 = vmul.f32 %v7502_v52, %v10675_v3 }
 0x191   :  { %v2294_v55 = vmul.f32 %v7530_v20, %v10736_v14  ;;  %v2869_v28 = vadd.f32 %v2805_v49, %v2739_v33  ;;  %v925_v38 = vsel %vm887_vm1, %v923_v62, %v10462_v36  ;;  %v7614_v60 = vmul.f32 %v7530_v20, %v10675_v3  ;;  %v10739_v14 = vld [vmem:[#allocation4_spill] sm:$0xff] }
 0x192   :  { %10737 = vst [vmem:[#allocation20_spill] sm:$0xff] %v7605_v1  ;;  %v2018_v17 = vrot.slane %v1812_v19, 1  ;;  %v1126_v50 = vadd.f32 %v925_v38, %v643_v53  ;;  %v1408_v41 = vsel %vm1370_vm2, %v1406_v18, %v10460_v61  ;;  %v10461_v59 = vrot.slane %v7605_v1, 1  ;;  %v70_v53 = vld [vmem:[%s10279_s0 + $0x168] sm:$0xff]  ;;  %v10740_v38 = vld [vmem:[#allocation5_spill] sm:$0xff] }
 0x193   :  { %10738 = vst [vmem:[#allocation28_spill] sm:$0xff] %v7614_v60  ;;  %v2500_v42 = vrot.slane %v2294_v55, 2  ;;  %v3351_v10 = vadd.f32 %v3204_v13, %v2869_v28  ;;  %v10465_v49 = vrot.slane %v7614_v60, 2  ;;  %v2769_v33 = vmul.f32 %v7541_v46, %v10739_v14  ;;  %v71_v28 = vld [vmem:[%s10279_s0 + $0x170] sm:$0xff] }
 0x194   :  { %v2906_v62 = vmul.f32 %v7548_v15, %v10739_v14  ;;  %v1609_v19 = vadd.f32 %v1408_v41, %v1126_v50  ;;  %v2020_v18 = vsel %vm887_vm1, %v2018_v17, %v10461_v59  ;;  %v7633_v55 = vmul.f32 %v7548_v15, %v10740_v38 }
 0x195   :  { %v3388_v13 = vmul.f32 %v7563_v12, %v10739_v14  ;;  %v3833_v61 = vadd.f32 %v3686_v8, %v3351_v10  ;;  %v2502_v41 = vsel %vm1370_vm2, %v2500_v42, %v10465_v49  ;;  %v7645_v17 = vmul.f32 %v7563_v12, %v10740_v38  ;;  %v10743_v8 = vld [vmem:[#allocation13_spill] sm:$0xff] }
 0x196   :  { %10741 = vst [vmem:[#allocation29_spill] sm:$0xff] %v7633_v55  ;;  %v3112_v50 = vrot.slane %v2906_v62, 1  ;;  %v1739_v59 = vadd.f32 %v1675_v21, %v1609_v19  ;;  %v10466_v36 = vrot.slane %v7633_v55, 1  ;;  %v183_v14 = vmul.f32 %v7443_v26, %v70_v53  ;;  %v10744_v55 = vld [vmem:[#allocation16_spill] sm:$0xff] }
 0x197   :  { %10742 = vst [vmem:[#allocation30_spill] sm:$0xff] %v7645_v17  ;;  %v3594_v39 = vrot.slane %v3388_v13, 2  ;;  %4711 = vmatmul.msk.f32.gmra.mxu3 %vm3848_vm3, %v3833_v61  ;;  %v10468_v1 = vrot.slane %v7645_v17, 2  ;;  %v184_v10 = vmul.f32 %v7443_v26, %v71_v28  ;;  %v655_v42 = vmul.f32 %v7454_v23, %v10743_v8 }
 0x198   :  { %v734_v62 = vmul.f32 %v7461_v48, %v10743_v8  ;;  %v2221_v49 = vadd.f32 %v2020_v18, %v1739_v59  ;;  %v3114_v21 = vsel %vm887_vm1, %v3112_v50, %v10466_v36  ;;  %v294_v19 = vadd.f32 %v7471_v2, %v183_v14  ;;  %v510_v59 = vld [vmem:[%s10282_s5 + $0x168] sm:$0xff]  ;;  %v511_v36 = vld [vmem:[%s10282_s5 + $0x170] sm:$0xff] }
 0x199   :  { %v7662_v61 = vmul.f32 %v7461_v48, %v6537_v16  ;;  %v3596_v53 = vsel %vm1370_vm2, %v3594_v39, %v10468_v1  ;;  %v295_v13 = vadd.f32 %v7471_v2, %v184_v10  ;;  %v1217_v28 = vmul.f32 %v7482_v32, %v10743_v8 }
 0x19a   :  { %v953_v18 = vrot.slane %v734_v62, 1  ;;  %v2703_v50 = vadd.f32 %v2502_v41, %v2221_v49  ;;  %v402_v14 = vmax.f32 %v294_v19, 0.0  ;;  %v7679_v39 = vmul.f32 %v7482_v32, %v6537_v16 }
 0x19b   :  { %v10477_v17 = vrot.slane %v7662_v61, 1  ;;  %v403_v10 = vmax.f32 %v295_v13, 0.0  ;;  %v1436_v1 = vrot.slane %v1217_v28, 2  ;;  %v1687_v62 = vmul.f32 %v7494_v4, %v10744_v55 }
 0x19c   :  { %v1830_v8 = vmul.f32 %v7502_v52, %v10744_v55  ;;  %v2833_v49 = vadd.f32 %v2769_v33, %v2703_v50  ;;  %v7685_v41 = vmul.f32 %v510_v59, %v402_v14  ;;  %v10474_v60 = vrot.slane %v7679_v39, 2 }
 0x19d   :  { %v955_v19 = vsel %vm887_vm1, %v953_v18, %v10477_v17  ;;  %v7691_v38 = vmul.f32 %v511_v36, %v403_v10  ;;  %v7695_v13 = vmul.f32 %v7502_v52, %v7101_v44  ;;  %v2312_v59 = vmul.f32 %v7530_v20, %v10744_v55 }
 0x19e   :  { %10745 = vst [vmem:[#allocation17_spill] sm:$0xff] %v7685_v41  ;;  %v1138_v16 = vadd.f32 %v955_v19, %v655_v42  ;;  %v2048_v28 = vrot.slane %v1830_v8, 1  ;;  %v3315_v63 = vadd.f32 %v3114_v21, %v2833_v49  ;;  %v1438_v33 = vsel %vm1370_vm2, %v1436_v1, %v10474_v60  ;;  %v96_v1 = vld [vmem:[%s10279_s0 + $0x238] sm:$0x3] }
 0x19f   :  { %v7704_v18 = vmul.f32 %v7530_v20, %v7101_v44  ;;  %v10475_v42 = vrot.slane %v7695_v13, 1  ;;  %v2781_v50 = vmul.f32 %v7541_v46, %v7685_v41  ;;  %v2924_v21 = vmul.f32 %v7548_v15, %v7685_v41 }
 0x1a0   :  { %v1621_v36 = vadd.f32 %v1438_v33, %v1138_v16  ;;  %v3797_v14 = vadd.f32 %v3596_v53, %v3315_v63  ;;  %v2530_v10 = vrot.slane %v2312_v59, 2  ;;  %v7717_v49 = vmul.f32 %v7548_v15, %v7691_v38 }
 0x1a1   :  { %v10476_v8 = vrot.slane %v7704_v18, 2  ;;  %v2050_v19 = vsel %vm887_vm1, %v2048_v28, %v10475_v42  ;;  %v3142_v33 = vrot.slane %v2924_v21, 1  ;;  %v3406_v60 = vmul.f32 %v7563_v12, %v7685_v41  ;;  %v10746_v42 = vld [vmem:[#allocation8_spill] sm:$0xff] }
 0x1a2   :  { %v1751_v16 = vadd.f32 %v1687_v62, %v1621_v36  ;;  %4675 = vmatmul.msk.f32.gmra.mxu0 %vm3848_vm3, %v3797_v14  ;;  %v10480_v53 = vrot.slane %v7717_v49, 1  ;;  %v7731_v59 = vmul.f32 %v7563_v12, %v7691_v38  ;;  %v209_v62 = vmul.f32 %v7443_v26, %v96_v1 }
 0x1a3   :  { %v2532_v63 = vsel %vm1370_vm2, %v2530_v10, %v10476_v8  ;;  %v3624_v28 = vrot.slane %v3406_v60, 2  ;;  %v668_v21 = vmul.f32 %v7454_v23, %v10726_v58  ;;  %v754_v14 = vmul.f32 %v7461_v48, %v10746_v42 }
 0x1a4   :  { %v2233_v36 = vadd.f32 %v2050_v19, %v1751_v16  ;;  %v3144_v10 = vsel %vm887_vm1, %v3142_v33, %v10480_v53  ;;  %v10483_v8 = vrot.slane %v7731_v59, 2  ;;  %v320_v17 = vadd.f32 %v7471_v2, %v209_v62 }
 0x1a5   :  { %v1237_v41 = vmul.f32 %v7482_v32, %v10746_v42  ;;  %v986_v16 = vrot.slane %v754_v14, 1  ;;  %v1700_v60 = vmul.f32 %v7494_v4, %v10730_v47  ;;  %v1850_v58 = vmul.f32 %v7502_v52, %v7176_v5  ;;  %v114_v42 = vld [vmem:[%s10279_s0 + $0x2c8] sm:$0x3] }
 0x1a6   :  { %v2715_v1 = vadd.f32 %v2532_v63, %v2233_v36  ;;  %v3626_v19 = vsel %vm1370_vm2, %v3624_v28, %v10483_v8  ;;  %v428_v33 = vmax.f32 %v320_v17, 0.0  ;;  %v2332_v62 = vmul.f32 %v7530_v20, %v7176_v5  ;;  %v4800_v17 = vld [vmem:[%s10282_s5 + $0x88] sm:$0x3] }
 0x1a7   :  { %v1469_v53 = vrot.slane %v1237_v41, 2  ;;  %v10747_v36 = vrot.slane %v7369_v43, 1  ;;  %v2081_v55 = vrot.slane %v1850_v58, 1  ;;  %v2794_v47 = vmul.f32 %v7541_v46, %v7389_v30 }
 0x1a8   :  { %v2845_v63 = vadd.f32 %v2781_v50, %v2715_v1  ;;  %v7765_v41 = vmul.f32 %v4800_v17, %v428_v33  ;;  %v10749_v8 = vrot.slane %v7376_v25, 2  ;;  %v2563_v50 = vrot.slane %v2332_v62, 2 }
 0x1a9   :  { %v987_v14 = vsel %vm887_vm1, %v10747_v36, %v986_v16  ;;  %v10750_v43 = vrot.slane %v7399_v24, 1  ;;  %v227_v58 = vmul.f32 %v7443_v26, %v114_v42  ;;  %v680_v36 = vmul.f32 %v7454_v23, %v6923_v40 }
 0x1aa   :  { %10748 = vst [vmem:[#allocation31_spill] sm:$0xff] %v7765_v41  ;;  %v1151_v28 = vadd.f32 %v987_v14, %v668_v21  ;;  %v1470_v5 = vsel %vm1370_vm2, %v10749_v8, %v1469_v53  ;;  %v3327_v1 = vadd.f32 %v3144_v10, %v2845_v63  ;;  %v10751_v33 = vrot.slane %v7405_v34, 2 }
 0x1ab   :  { %v2082_v16 = vsel %vm887_vm1, %v10750_v43, %v2081_v55  ;;  %v2944_v25 = vmul.f32 %v7548_v15, %v7765_v41  ;;  %v3426_v8 = vmul.f32 %v7563_v12, %v7765_v41  ;;  %v338_v24 = vadd.f32 %v7471_v2, %v227_v58  ;;  %v4801_v58 = vld [vmem:[%s10282_s5 + $0x118] sm:$0x3] }
 0x1ac   :  { %v1634_v30 = vadd.f32 %v1470_v5, %v1151_v28  ;;  %v2564_v21 = vsel %vm1370_vm2, %v10751_v33, %v2563_v50  ;;  %v3809_v53 = vadd.f32 %v3626_v19, %v3327_v1  ;;  %v772_v55 = vmul.f32 %v7461_v48, %v7235_v9 }
 0x1ad   :  { %v1255_v10 = vmul.f32 %v7482_v32, %v7235_v9  ;;  %v3175_v62 = vrot.slane %v2944_v25, 1  ;;  %v3657_v34 = vrot.slane %v3426_v8, 2  ;;  %v1712_v42 = vmul.f32 %v7494_v4, %v6933_v51 }
 0x1ae   :  { %v1764_v5 = vadd.f32 %v1700_v60, %v1634_v30  ;;  %4687 = vmatmul.msk.f32.gmra.mxu1 %vm3848_vm3, %v3809_v53  ;;  %v446_v63 = vmax.f32 %v338_v24, 0.0  ;;  %v1016_v14 = vrot.slane %v772_v55, 1  ;;  %v1868_v19 = vmul.f32 %v7502_v52, %v7240_v7 }
 0x1af   :  { %v1499_v17 = vrot.slane %v1255_v10, 2  ;;  %v10752_v50 = vrot.slane %v7418_v57, 1  ;;  %v10753_v30 = vrot.slane %v7436_v35, 2  ;;  %v2350_v43 = vmul.f32 %v7530_v20, %v7240_v7 }
 0x1b0   :  { %v2246_v28 = vadd.f32 %v2082_v16, %v1764_v5  ;;  %v7804_v33 = vmul.f32 %v4801_v58, %v446_v63  ;;  %v10754_v25 = vrot.slane %v7477_v37, 1  ;;  %v10755_v57 = vrot.slane %v7488_v6, 2 }
 0x1b1   :  { %v3176_v1 = vsel %vm887_vm1, %v10752_v50, %v3175_v62  ;;  %v3658_v60 = vsel %vm1370_vm2, %v10753_v30, %v3657_v34  ;;  %v2111_v35 = vrot.slane %v1868_v19, 1  ;;  %v2593_v55 = vrot.slane %v2350_v43, 2 }
 0x1b2   :  { %v1017_v16 = vsel %vm887_vm1, %v10754_v25, %v1016_v14  ;;  %v1500_v8 = vsel %vm1370_vm2, %v10755_v57, %v1499_v17  ;;  %v2728_v53 = vadd.f32 %v2564_v21, %v2246_v28  ;;  %v2806_v10 = vmul.f32 %v7541_v46, %v7514_v56 }
 0x1b3   :  { %v1163_v24 = vadd.f32 %v1017_v16, %v680_v36  ;;  %v10756_v5 = vrot.slane %v7521_v0, 1  ;;  %v2962_v37 = vmul.f32 %v7548_v15, %v7804_v33  ;;  %v3444_v34 = vmul.f32 %v7563_v12, %v7804_v33 }
 0x1b4   :  { %v644_v6 = vmul.f32 %v7454_v23, %v6449_v31  ;;  %v2858_v63 = vadd.f32 %v2794_v47, %v2728_v53  ;;  %v10757_v36 = vrot.slane %v7536_v22, 2  ;;  %v718_v0 = vmul.f32 %v7461_v48, %v6695_v29 }
 0x1b5   :  { %v2112_v62 = vsel %vm887_vm1, %v10756_v5, %v2111_v35  ;;  %v1646_v21 = vadd.f32 %v1500_v8, %v1163_v24  ;;  %v3205_v17 = vrot.slane %v2962_v37, 1  ;;  %v3687_v19 = vrot.slane %v3444_v34, 2  ;;  %v10761_v24 = vld [vmem:[#allocation27_spill] sm:$0xff]  ;;  %v10763_v37 = vld [vmem:[#allocation5_spill] sm:$0xff] }
 0x1b6   :  { %v2594_v14 = vsel %vm1370_vm2, %v10757_v36, %v2593_v55  ;;  %v1201_v28 = vmul.f32 %v7482_v32, %v6695_v29  ;;  %v1676_v50 = vmul.f32 %v7494_v4, %v10675_v3  ;;  %v3340_v30 = vadd.f32 %v3176_v1, %v2858_v63  ;;  %v10766_v63 = vld [vmem:[#allocation7_spill] sm:$0xff] }
 0x1b7   :  { %v1776_v43 = vadd.f32 %v1712_v42, %v1646_v21  ;;  %v926_v31 = vrot.slane %v718_v0, 1  ;;  %v1814_v47 = vmul.f32 %v7502_v52, %v10702_v54  ;;  %v10758_v22 = vrot.slane %v7554_v11, 1  ;;  %v72_v11 = vld [vmem:[%s10279_s0 + $0x178] sm:$0x3]  ;;  %v10767_v0 = vld [vmem:[#allocation28_spill] sm:$0xff] }
 0x1b8   :  { %v10759_v25 = vrot.slane %v7571_v27, 2  ;;  %v1409_v57 = vrot.slane %v1201_v28, 2  ;;  %v2296_v29 = vmul.f32 %v7530_v20, %v10702_v54  ;;  %v3822_v8 = vadd.f32 %v3658_v60, %v3340_v30  ;;  %v10769_v30 = vld [vmem:[#allocation14_spill] sm:$0xff] }
 0x1b9   :  { %v3206_v58 = vsel %vm887_vm1, %v10758_v22, %v3205_v17  ;;  %v2258_v3 = vadd.f32 %v2112_v62, %v1776_v43  ;;  %v10760_v42 = vrot.slane %v7586_v45, 1  ;;  %v2021_v35 = vrot.slane %v1814_v47, 1  ;;  %v10764_v45 = vld [vmem:[#allocation20_spill] sm:$0xff]  ;;  %v10770_v22 = vld [vmem:[#allocation9_spill] sm:$0xff] }
 0x1ba   :  { %v3688_v16 = vsel %vm1370_vm2, %v10759_v25, %v3687_v19  ;;  %v10762_v27 = vrot.slane %v10761_v24, 2  ;;  %v2503_v5 = vrot.slane %v2296_v29, 2  ;;  %v2770_v54 = vmul.f32 %v7541_v46, %v10763_v37  ;;  %4700 = vmatmul.msk.f32.gmra.mxu2 %vm3848_vm3, %v3822_v8 }
 0x1bb   :  { %v927_v1 = vsel %vm887_vm1, %v10760_v42, %v926_v31  ;;  %v2740_v60 = vadd.f32 %v2594_v14, %v2258_v3  ;;  %v10765_v62 = vrot.slane %v10764_v45, 1  ;;  %v2908_v21 = vmul.f32 %v7548_v15, %v10766_v63 }
 0x1bc   :  { %v1127_v53 = vadd.f32 %v927_v1, %v644_v6  ;;  %v1410_v55 = vsel %vm1370_vm2, %v10762_v27, %v1409_v57  ;;  %v3390_v6 = vmul.f32 %v7563_v12, %v10766_v63  ;;  %v10768_v17 = vrot.slane %v10767_v0, 2  ;;  %v10771_v1 = vld [vmem:[#allocation29_spill] sm:$0xff] }
 0x1bd   :  { %v2022_v34 = vsel %vm887_vm1, %v10765_v62, %v2021_v35  ;;  %v185_v28 = vmul.f32 %v7443_v26, %v72_v11  ;;  %v656_v14 = vmul.f32 %v7454_v23, %v10769_v30  ;;  %v2870_v43 = vadd.f32 %v2806_v10, %v2740_v60  ;;  %v10773_v10 = vld [vmem:[#allocation30_spill] sm:$0xff]  ;;  %v98_v62 = vld [vmem:[%s10279_s0 + $0x248] sm:$0xff] }
 0x1be   :  { %v1610_v36 = vadd.f32 %v1410_v55, %v1127_v53  ;;  %v2504_v19 = vsel %vm1370_vm2, %v10768_v17, %v2503_v5  ;;  %v3115_v31 = vrot.slane %v2908_v21, 1  ;;  %v3597_v47 = vrot.slane %v3390_v6, 2  ;;  %v10775_v60 = vld [vmem:[#allocation6_spill] sm:$0xff] }
 0x1bf   :  { %v736_v25 = vmul.f32 %v7461_v48, %v10770_v22  ;;  %v296_v29 = vadd.f32 %v7471_v2, %v185_v28  ;;  %v1219_v8 = vmul.f32 %v7482_v32, %v10770_v22  ;;  %v1688_v3 = vmul.f32 %v7494_v4, %v7101_v44 }
 0x1c0   :  { %v1740_v57 = vadd.f32 %v1676_v50, %v1610_v36  ;;  %v3352_v42 = vadd.f32 %v3206_v58, %v2870_v43  ;;  %v10772_v35 = vrot.slane %v10771_v1, 1  ;;  %v10774_v53 = vrot.slane %v10773_v10, 2  ;;  %v512_v50 = vld [vmem:[%s10282_s5 + $0x178] sm:$0x3]  ;;  %v97_v58 = vld [vmem:[%s10279_s0 + $0x240] sm:$0xff] }
 0x1c1   :  { %v956_v27 = vrot.slane %v736_v25, 1  ;;  %v404_v5 = vmax.f32 %v296_v29, 0.0  ;;  %v1439_v37 = vrot.slane %v1219_v8, 2  ;;  %v1832_v45 = vmul.f32 %v7502_v52, %v10775_v60 }
 0x1c2   :  { %v3116_v11 = vsel %vm887_vm1, %v10772_v35, %v3115_v31  ;;  %v3598_v24 = vsel %vm1370_vm2, %v10774_v53, %v3597_v47  ;;  %v2222_v55 = vadd.f32 %v2022_v34, %v1740_v57  ;;  %v3834_v63 = vadd.f32 %v3688_v16, %v3352_v42 }
 0x1c3   :  { %v10776_v21 = vrot.slane %v7662_v61, 1  ;;  %v2314_v34 = vmul.f32 %v7530_v20, %v10775_v60  ;;  %v2782_v36 = vmul.f32 %v7541_v46, %v7691_v38  ;;  %v7898_v17 = vmul.f32 %v512_v50, %v404_v5 }
 0x1c4   :  { %v2704_v0 = vadd.f32 %v2504_v19, %v2222_v55  ;;  %v10777_v30 = vrot.slane %v7679_v39, 2  ;;  %4712 = vmatmul.msk.f32.gmra.mxu3 %vm3848_vm3, %v3834_v63  ;;  %v2051_v16 = vrot.slane %v1832_v45, 1  ;;  %v210_v31 = vmul.f32 %v7443_v26, %v97_v58  ;;  %v10780_v55 = vld [vmem:[#allocation10_spill] sm:$0xff] }
 0x1c5   :  { %v957_v6 = vsel %vm887_vm1, %v10776_v21, %v956_v27  ;;  %v2533_v61 = vrot.slane %v2314_v34, 2  ;;  %v211_v47 = vmul.f32 %v7443_v26, %v98_v62  ;;  %v2926_v19 = vmul.f32 %v7548_v15, %v7898_v17  ;;  %v4803_v21 = vld [vmem:[%s10282_s5 + $0x98] sm:$0xff] }
 0x1c6   :  { %v1139_v28 = vadd.f32 %v957_v6, %v656_v14  ;;  %v1440_v43 = vsel %vm1370_vm2, %v10777_v30, %v1439_v37  ;;  %v2834_v22 = vadd.f32 %v2770_v54, %v2704_v0  ;;  %v3408_v14 = vmul.f32 %v7563_v12, %v7898_v17  ;;  %v10785_v6 = vld [vmem:[#allocation18_spill] sm:$0xff]  ;;  %v10786_v30 = vld [vmem:[#allocation25_spill] sm:$0xff] }
 0x1c7   :  { %v10778_v39 = vrot.slane %v7695_v13, 1  ;;  %v10779_v29 = vrot.slane %v7704_v18, 2  ;;  %v321_v42 = vadd.f32 %v7471_v2, %v210_v31  ;;  %v322_v1 = vadd.f32 %v7471_v2, %v211_v47  ;;  %v10787_v31 = vld [vmem:[#allocation26_spill] sm:$0xff] }
 0x1c8   :  { %v1622_v25 = vadd.f32 %v1440_v43, %v1139_v28  ;;  %v3316_v54 = vadd.f32 %v3116_v11, %v2834_v22  ;;  %v3145_v10 = vrot.slane %v2926_v19, 1  ;;  %v3627_v53 = vrot.slane %v3408_v14, 2  ;;  %v4802_v11 = vld [vmem:[%s10282_s5 + $0x90] sm:$0xff] }
 0x1c9   :  { %v2052_v57 = vsel %vm887_vm1, %v10778_v39, %v2051_v16  ;;  %v2534_v8 = vsel %vm1370_vm2, %v10779_v29, %v2533_v61  ;;  %v429_v50 = vmax.f32 %v321_v42, 0.0  ;;  %v430_v27 = vmax.f32 %v322_v1, 0.0 }
 0x1ca   :  { %v1752_v35 = vadd.f32 %v1688_v3, %v1622_v25  ;;  %v669_v5 = vmul.f32 %v7454_v23, %v10780_v55  ;;  %v755_v13 = vmul.f32 %v7461_v48, %v10780_v55  ;;  %v3798_v37 = vadd.f32 %v3598_v24, %v3316_v54 }
 0x1cb   :  { %v10781_v45 = vrot.slane %v7717_v49, 1  ;;  %v10782_v62 = vrot.slane %v7731_v59, 2  ;;  %v7931_v63 = vmul.f32 %v4802_v11, %v429_v50  ;;  %v7936_v24 = vmul.f32 %v4803_v21, %v430_v27 }
 0x1cc   :  { %v2234_v18 = vadd.f32 %v2052_v57, %v1752_v35  ;;  %v7940_v49 = vmul.f32 %v7461_v48, %v10785_v6  ;;  %v988_v34 = vrot.slane %v755_v13, 1  ;;  %4676 = vmatmul.msk.f32.gmra.mxu0 %vm3848_vm3, %v3798_v37  ;;  %v1238_v0 = vmul.f32 %v7482_v32, %v10780_v55 }
 0x1cd   :  { %v3146_v58 = vsel %vm887_vm1, %v10781_v45, %v3145_v10  ;;  %v3628_v3 = vsel %vm1370_vm2, %v10782_v62, %v3627_v53  ;;  %10783 = vst [vmem:[#allocation11_spill] sm:$0xff] %v7931_v63  ;;  %v7947_v28 = vmul.f32 %v7482_v32, %v10785_v6  ;;  %v1701_v43 = vmul.f32 %v7494_v4, %v10786_v30  ;;  %v115_v10 = vld [vmem:[%s10279_s0 + $0x2d0] sm:$0xff] }
 0x1ce   :  { %10784 = vst [vmem:[#allocation12_spill] sm:$0xff] %v7936_v24  ;;  %v2716_v59 = vadd.f32 %v2534_v8, %v2234_v18  ;;  %v10499_v16 = vrot.slane %v7940_v49, 1  ;;  %v1851_v61 = vmul.f32 %v7502_v52, %v10786_v30  ;;  %v7956_v47 = vmul.f32 %v7502_v52, %v10787_v31 }
 0x1cf   :  { %v2333_v22 = vmul.f32 %v7530_v20, %v10786_v30  ;;  %v1471_v19 = vrot.slane %v1238_v0, 2  ;;  %v10498_v14 = vrot.slane %v7947_v28, 2  ;;  %v7963_v39 = vmul.f32 %v7530_v20, %v10787_v31  ;;  %v10788_v0 = vld [vmem:[#allocation24_spill] sm:$0xff] }
 0x1d0   :  { %v2846_v25 = vadd.f32 %v2782_v36, %v2716_v59  ;;  %v990_v57 = vsel %vm887_vm1, %v988_v34, %v10499_v16  ;;  %v2083_v29 = vrot.slane %v1851_v61, 1  ;;  %v10497_v8 = vrot.slane %v7956_v47, 1 }
 0x1d1   :  { %v2565_v42 = vrot.slane %v2333_v22, 2  ;;  %v1152_v54 = vadd.f32 %v990_v57, %v669_v5  ;;  %v1473_v36 = vsel %vm1370_vm2, %v1471_v19, %v10498_v14  ;;  %v10495_v35 = vrot.slane %v7963_v39, 2  ;;  %v116_v5 = vld [vmem:[%s10279_s0 + $0x2d8] sm:$0xff] }
 0x1d2   :  { %v3328_v1 = vadd.f32 %v3146_v58, %v2846_v25  ;;  %v2085_v53 = vsel %vm887_vm1, %v2083_v29, %v10497_v8  ;;  %v2795_v50 = vmul.f32 %v7541_v46, %v7931_v63  ;;  %v2945_v27 = vmul.f32 %v7548_v15, %v7931_v63 }
 0x1d3   :  { %v7985_v55 = vmul.f32 %v7548_v15, %v7936_v24  ;;  %v1635_v37 = vadd.f32 %v1473_v36, %v1152_v54  ;;  %v2567_v18 = vsel %vm1370_vm2, %v2565_v42, %v10495_v35  ;;  %v3427_v45 = vmul.f32 %v7563_v12, %v7931_v63 }
 0x1d4   :  { %v3810_v13 = vadd.f32 %v3628_v3, %v3328_v1  ;;  %v3177_v58 = vrot.slane %v2945_v27, 1  ;;  %v7998_v11 = vmul.f32 %v7563_v12, %v7936_v24  ;;  %v228_v21 = vmul.f32 %v7443_v26, %v115_v10 }
 0x1d5   :  { %v10492_v62 = vrot.slane %v7985_v55, 1  ;;  %v1765_v3 = vadd.f32 %v1701_v43, %v1635_v37  ;;  %v3659_v34 = vrot.slane %v3427_v45, 2  ;;  %v229_v59 = vmul.f32 %v7443_v26, %v116_v5  ;;  %v4804_v45 = vld [vmem:[%s10282_s5 + $0x120] sm:$0xff] }
 0x1d6   :  { %4688 = vmatmul.msk.f32.gmra.mxu1 %vm3848_vm3, %v3810_v13  ;;  %v681_v61 = vmul.f32 %v7454_v23, %v10788_v0  ;;  %v10490_v25 = vrot.slane %v7998_v11, 2  ;;  %v339_v19 = vadd.f32 %v7471_v2, %v228_v21  ;;  %v773_v57 = vmul.f32 %v7461_v48, %v10788_v0 }
 0x1d7   :  { %v3179_v22 = vsel %vm887_vm1, %v3177_v58, %v10492_v62  ;;  %v2247_v29 = vadd.f32 %v2085_v53, %v1765_v3  ;;  %v340_v43 = vadd.f32 %v7471_v2, %v229_v59  ;;  %v8015_v42 = vmul.f32 %v7461_v48, %v6933_v51  ;;  %v10790_v3 = vld [vmem:[#allocation3_spill] sm:$0xff] }
 0x1d8   :  { %v1256_v1 = vmul.f32 %v7482_v32, %v10788_v0  ;;  %v3661_v54 = vsel %vm1370_vm2, %v3659_v34, %v10490_v25  ;;  %v447_v36 = vmax.f32 %v339_v19, 0.0  ;;  %v1018_v10 = vrot.slane %v773_v57, 1 }
 0x1d9   :  { %v8024_v27 = vmul.f32 %v7482_v32, %v6933_v51  ;;  %v2729_v53 = vadd.f32 %v2567_v18, %v2247_v29  ;;  %v448_v5 = vmax.f32 %v340_v43, 0.0  ;;  %v10489_v13 = vrot.slane %v8015_v42, 1  ;;  %v4805_v18 = vld [vmem:[%s10282_s5 + $0x128] sm:$0xff] }
 0x1da   :  { %v1501_v37 = vrot.slane %v1256_v1, 2  ;;  %v8030_v58 = vmul.f32 %v4804_v45, %v447_v36  ;;  %v1713_v34 = vmul.f32 %v7494_v4, %v10790_v3  ;;  %v1869_v59 = vmul.f32 %v7502_v52, %v10790_v3 }
 0x1db   :  { %v10488_v21 = vrot.slane %v8024_v27, 2  ;;  %v2859_v0 = vadd.f32 %v2795_v50, %v2729_v53  ;;  %v8040_v19 = vmul.f32 %v4805_v18, %v448_v5  ;;  %v1020_v57 = vsel %vm887_vm1, %v1018_v10, %v10489_v13 }
 0x1dc   :  { %10789 = vst [vmem:[#allocation2_spill] sm:$0xff] %v8030_v58  ;;  %v8047_v29 = vmul.f32 %v7502_v52, %v7514_v56  ;;  %v1164_v43 = vadd.f32 %v1020_v57, %v681_v61  ;;  %v2113_v50 = vrot.slane %v1869_v59, 1  ;;  %v2351_v36 = vmul.f32 %v7530_v20, %v10790_v3  ;;  %v4062_v59 = vpop.f32.mrf.mxu0 }
 0x1dd   :  { %v1503_v1 = vsel %vm1370_vm2, %v1501_v37, %v10488_v21  ;;  %v3341_v53 = vadd.f32 %v3179_v22, %v2859_v0  ;;  %v8057_v45 = vmul.f32 %v7530_v20, %v7514_v56  ;;  %v2807_v10 = vmul.f32 %v7541_v46, %v8030_v58  ;;  %4255 = vst.msk [vmem:[%s10284_s6] sm:$0xff] %vm4254_vm4, %v4062_v59 }
 0x1de   :  { %v10491_v5 = vrot.slane %v8047_v29, 1  ;;  %v1647_v18 = vadd.f32 %v1503_v1, %v1164_v43  ;;  %v2595_v61 = vrot.slane %v2351_v36, 2  ;;  %v2963_v57 = vmul.f32 %v7548_v15, %v8030_v58 }
 0x1df   :  { %v8065_v37 = vmul.f32 %v7548_v15, %v8040_v19  ;;  %v3823_v22 = vadd.f32 %v3661_v54, %v3341_v53  ;;  %v10494_v21 = vrot.slane %v8057_v45, 2  ;;  %v3445_v13 = vmul.f32 %v7563_v12, %v8030_v58  ;;  %v73_v54 = vld [vmem:[%s10279_s0 + $0x180] sm:$0xff] }
 0x1e0   :  { %v2115_v0 = vsel %vm887_vm1, %v2113_v50, %v10491_v5  ;;  %v1777_v43 = vadd.f32 %v1713_v34, %v1647_v18  ;;  %v3207_v1 = vrot.slane %v2963_v57, 1  ;;  %v8076_v25 = vmul.f32 %v7563_v12, %v8040_v19  ;;  %v74_v50 = vld [vmem:[%s10279_s0 + $0x188] sm:$0xff] }
 0x1e1   :  { %v10493_v36 = vrot.slane %v8065_v37, 1  ;;  %4701 = vmatmul.msk.f32.gmra.mxu2 %vm3848_vm3, %v3823_v22  ;;  %v2597_v34 = vsel %vm1370_vm2, %v2595_v61, %v10494_v21  ;;  %v3689_v53 = vrot.slane %v3445_v13, 2  ;;  %v4454_v18 = vmul.f32 %v4062_v59, %v4062_v59 }
 0x1e2   :  { %v2259_v57 = vadd.f32 %v2115_v0, %v1777_v43  ;;  %v10496_v62 = vrot.slane %v8076_v25, 2  ;;  %v8097_v22 = vsel %vm4254_vm4, %v4062_v59, 0.0  ;;  %v186_v13 = vmul.f32 %v7443_v26, %v73_v54  ;;  %v10791_v43 = vld [vmem:[#allocation16_spill] sm:$0xff] }
 0x1e3   :  { %v3209_v5 = vsel %vm887_vm1, %v3207_v1, %v10493_v36  ;;  %v8100_v61 = vsel %vm4254_vm4, %v4454_v18, 0.0  ;;  %v187_v0 = vmul.f32 %v7443_v26, %v74_v50  ;;  %v657_v1 = vmul.f32 %v7454_v23, %v10791_v43 }
 0x1e4   :  { %v2741_v36 = vadd.f32 %v2597_v34, %v2259_v57  ;;  %v3691_v21 = vsel %vm1370_vm2, %v3689_v53, %v10496_v62  ;;  %v737_v35 = vmul.f32 %v7461_v48, %v10791_v43  ;;  %v8113_v59 = vmul.f32 %v7461_v48, %v7101_v44  ;;  %v513_v53 = vld [vmem:[%s10282_s5 + $0x180] sm:$0xff]  ;;  %v514_v62 = vld [vmem:[%s10282_s5 + $0x188] sm:$0xff] }
 0x1e5   :  { %v297_v18 = vadd.f32 %v7471_v2, %v186_v13  ;;  %v298_v54 = vadd.f32 %v7471_v2, %v187_v0  ;;  %v1220_v50 = vmul.f32 %v7482_v32, %v10791_v43  ;;  %v8121_v34 = vmul.f32 %v7482_v32, %v7101_v44  ;;  %v10792_v0 = vld [vmem:[#allocation17_spill] sm:$0xff] }
 0x1e6   :  { %v2871_v57 = vadd.f32 %v2807_v10, %v2741_v36  ;;  %v958_v8 = vrot.slane %v737_v35, 1  ;;  %v10509_v13 = vrot.slane %v8113_v59, 1  ;;  %v1689_v14 = vmul.f32 %v7494_v4, %v10792_v0 }
 0x1e7   :  { %v405_v43 = vmax.f32 %v297_v18, 0.0  ;;  %v406_v16 = vmax.f32 %v298_v54, 0.0  ;;  %v1441_v9 = vrot.slane %v1220_v50, 2  ;;  %v10512_v40 = vrot.slane %v8121_v34, 2 }
 0x1e8   :  { %v3353_v10 = vadd.f32 %v3209_v5, %v2871_v57  ;;  %v960_v36 = vsel %vm887_vm1, %v958_v8, %v10509_v13  ;;  %v1833_v58 = vmul.f32 %v7502_v52, %v10792_v0  ;;  %v8140_v35 = vmul.f32 %v7502_v52, %v7691_v38 }
 0x1e9   :  { %v8142_v3 = vmul.f32 %v513_v53, %v405_v43  ;;  %v8144_v63 = vmul.f32 %v514_v62, %v406_v16  ;;  %v1140_v18 = vadd.f32 %v960_v36, %v657_v1  ;;  %v1443_v5 = vsel %vm1370_vm2, %v1441_v9, %v10512_v40  ;;  %v99_v9 = vld [vmem:[%s10279_s0 + $0x250] sm:$0x3]  ;;  %v8173_v43 = vpop.f32.mrf.mxu0  ;;  %v10796_v40 = vld [vmem:[#allocation19_spill] sm:$0xff] }
 0x1ea   :  { %v3835_v54 = vadd.f32 %v3691_v21, %v3353_v10  ;;  %v2053_v50 = vrot.slane %v1833_v58, 1  ;;  %v10511_v8 = vrot.slane %v8140_v35, 1  ;;  %v2315_v57 = vmul.f32 %v7530_v20, %v10792_v0  ;;  %4256 = vst.msk [vmem:[%s10284_s6 + $0x8] sm:$0xff] %vm4254_vm4, %v8173_v43 }
 0x1eb   :  { %10793 = vst [vmem:[#allocation4_spill] sm:$0xff] %v8142_v3  ;;  %v1623_v13 = vadd.f32 %v1443_v5, %v1140_v18  ;;  %v8154_v30 = vmul.f32 %v7530_v20, %v7691_v38  ;;  %v2783_v16 = vmul.f32 %v7541_v46, %v8142_v3  ;;  %v2927_v62 = vmul.f32 %v7548_v15, %v8142_v3 }
 0x1ec   :  { %4713 = vmatmul.msk.f32.gmra.mxu3 %vm3848_vm3, %v3835_v54  ;;  %v2055_v58 = vsel %vm887_vm1, %v2053_v50, %v10511_v8  ;;  %v2535_v21 = vrot.slane %v2315_v57, 2  ;;  %v8169_v1 = vmul.f32 %v7548_v15, %v8144_v63  ;;  %v3409_v53 = vmul.f32 %v7563_v12, %v8142_v3 }
 0x1ed   :  { %10794 = vst [vmem:[#allocation13_spill] sm:$0xff] %v8154_v30  ;;  %v1753_v10 = vadd.f32 %v1689_v14, %v1623_v13  ;;  %v10516_v36 = vrot.slane %v8154_v30, 2  ;;  %v3147_v18 = vrot.slane %v2927_v62, 1  ;;  %v8178_v5 = vmul.f32 %v7563_v12, %v8144_v63 }
 0x1ee   :  { %10795 = vst [vmem:[#allocation8_spill] sm:$0xff] %v8169_v1  ;;  %v10517_v54 = vrot.slane %v8169_v1, 1  ;;  %v3629_v50 = vrot.slane %v3409_v53, 2  ;;  %v212_v57 = vmul.f32 %v7443_v26, %v99_v9  ;;  %v670_v14 = vmul.f32 %v7454_v23, %v10785_v6 }
 0x1ef   :  { %v2235_v13 = vadd.f32 %v2055_v58, %v1753_v10  ;;  %v2537_v62 = vsel %vm1370_vm2, %v2535_v21, %v10516_v36  ;;  %v10521_v8 = vrot.slane %v8178_v5, 2  ;;  %v757_v3 = vmul.f32 %v7461_v48, %v10796_v40  ;;  %v117_v58 = vld [vmem:[%s10279_s0 + $0x2e0] sm:$0x3] }
 0x1f0   :  { %v3149_v0 = vsel %vm887_vm1, %v3147_v18, %v10517_v54  ;;  %v323_v53 = vadd.f32 %v7471_v2, %v212_v57  ;;  %v1240_v9 = vmul.f32 %v7482_v32, %v10796_v40  ;;  %v1702_v6 = vmul.f32 %v7494_v4, %v10787_v31 }
 0x1f1   :  { %v2717_v21 = vadd.f32 %v2537_v62, %v2235_v13  ;;  %v3631_v10 = vsel %vm1370_vm2, %v3629_v50, %v10521_v8  ;;  %v991_v36 = vrot.slane %v757_v3, 1  ;;  %v1853_v18 = vmul.f32 %v7502_v52, %v7765_v41  ;;  %v4806_v3 = vld [vmem:[%s10282_s5 + $0xa0] sm:$0x3] }
 0x1f2   :  { %v431_v57 = vmax.f32 %v323_v53, 0.0  ;;  %v1474_v54 = vrot.slane %v1240_v9, 2  ;;  %v2335_v40 = vmul.f32 %v7530_v20, %v7765_v41  ;;  %v2796_v31 = vmul.f32 %v7541_v46, %v7936_v24 }
 0x1f3   :  { %v2847_v1 = vadd.f32 %v2783_v16, %v2717_v21  ;;  %v10797_v30 = vrot.slane %v7940_v49, 1  ;;  %v2086_v62 = vrot.slane %v1853_v18, 1  ;;  %v230_v50 = vmul.f32 %v7443_v26, %v117_v58 }
 0x1f4   :  { %v8222_v53 = vmul.f32 %v4806_v3, %v431_v57  ;;  %v10799_v8 = vrot.slane %v7947_v28, 2  ;;  %v2568_v24 = vrot.slane %v2335_v40, 2  ;;  %v10800_v49 = vrot.slane %v7956_v47, 1 }
 0x1f5   :  { %v992_v13 = vsel %vm887_vm1, %v10797_v30, %v991_v36  ;;  %v3329_v16 = vadd.f32 %v3149_v0, %v2847_v1  ;;  %v341_v36 = vadd.f32 %v7471_v2, %v230_v50  ;;  %v682_v26 = vmul.f32 %v7454_v23, %v6933_v51 }
 0x1f6   :  { %10798 = vst [vmem:[#allocation27_spill] sm:$0xff] %v8222_v53  ;;  %v1153_v9 = vadd.f32 %v992_v13, %v670_v14  ;;  %v1475_v41 = vsel %vm1370_vm2, %v10799_v8, %v1474_v54  ;;  %v2087_v30 = vsel %vm887_vm1, %v10800_v49, %v2086_v62  ;;  %v10801_v21 = vrot.slane %v7963_v39, 2  ;;  %v4807_v39 = vld [vmem:[%s10282_s5 + $0x130] sm:$0x3] }
 0x1f7   :  { %v2947_v28 = vmul.f32 %v7548_v15, %v8222_v53  ;;  %v3429_v0 = vmul.f32 %v7563_v12, %v8222_v53  ;;  %v3811_v8 = vadd.f32 %v3631_v10, %v3329_v16  ;;  %v449_v47 = vmax.f32 %v341_v36, 0.0 }
 0x1f8   :  { %v1636_v58 = vadd.f32 %v1475_v41, %v1153_v9  ;;  %v2569_v14 = vsel %vm1370_vm2, %v10801_v21, %v2568_v24  ;;  %v775_v1 = vmul.f32 %v7461_v48, %v7240_v7  ;;  %v1258_v2 = vmul.f32 %v7482_v32, %v7240_v7 }
 0x1f9   :  { %v3180_v23 = vrot.slane %v2947_v28, 1  ;;  %v3662_v41 = vrot.slane %v3429_v0, 2  ;;  %v1714_v24 = vmul.f32 %v7494_v4, %v7514_v56  ;;  %4689 = vmatmul.msk.f32.gmra.mxu1 %vm3848_vm3, %v3811_v8  ;;  %v8250_v54 = vmul.f32 %v4807_v39, %v449_v47 }
 0x1fa   :  { %v1766_v51 = vadd.f32 %v1702_v6, %v1636_v58  ;;  %v1021_v10 = vrot.slane %v775_v1, 1  ;;  %v1504_v18 = vrot.slane %v1258_v2, 2  ;;  %v1871_v48 = vmul.f32 %v7502_v52, %v7804_v33 }
 0x1fb   :  { %v10802_v32 = vrot.slane %v7985_v55, 1  ;;  %v10803_v4 = vrot.slane %v7998_v11, 2  ;;  %v2353_v40 = vmul.f32 %v7530_v20, %v7804_v33  ;;  %v10804_v13 = vrot.slane %v8015_v42, 1  ;;  %v75_v42 = vld [vmem:[%s10279_s0 + $0x190] sm:$0x3] }
 0x1fc   :  { %v2248_v7 = vadd.f32 %v2087_v30, %v1766_v51  ;;  %v10805_v50 = vrot.slane %v8024_v27, 2  ;;  %v2116_v3 = vrot.slane %v1871_v48, 1  ;;  %v2808_v55 = vmul.f32 %v7541_v46, %v8040_v19 }
 0x1fd   :  { %v3181_v6 = vsel %vm887_vm1, %v10802_v32, %v3180_v23  ;;  %v3663_v57 = vsel %vm1370_vm2, %v10803_v4, %v3662_v41  ;;  %v1022_v62 = vsel %vm887_vm1, %v10804_v13, %v1021_v10  ;;  %v2598_v11 = vrot.slane %v2353_v40, 2  ;;  %v8309_v41 = vld [vmem:[%s10281_s4] ss:$0 sm:$0xff]  ;;  %v100_v10 = vld [vmem:[%s10279_s0 + $0x258] sm:$0xff]  ;;  %v8349_v13 = vld [vmem:[%s10283_s1 + $0x4] ss:$0 sm:$0xff] }
 0x1fe   :  { %v1505_v52 = vsel %vm1370_vm2, %v10805_v50, %v1504_v18  ;;  %v2730_v9 = vadd.f32 %v2569_v14, %v2248_v7  ;;  %v1165_v16 = vadd.f32 %v1022_v62, %v682_v26  ;;  %v2965_v49 = vmul.f32 %v7548_v15, %v8250_v54  ;;  %v515_v7 = vld [vmem:[%s10282_s5 + $0x190] sm:$0x3]  ;;  %v101_v50 = vld [vmem:[%s10279_s0 + $0x260] sm:$0xff] }
 0x1ff   :  { %v10806_v30 = vrot.slane %v8047_v29, 1  ;;  %v3447_v36 = vmul.f32 %v7563_v12, %v8250_v54  ;;  %v4320_v58 = vsel %vm4254_vm4, %v8173_v43, 0.0  ;;  %v4455_v26 = vmul.f32 %v8173_v43, %v8173_v43  ;;  %v8294_v12 = vld [vmem:[%s10280_s3] ss:$0 sm:$0xff] }
 0x200   :  { %v2860_v21 = vadd.f32 %v2796_v31, %v2730_v9  ;;  %v1648_v14 = vadd.f32 %v1505_v52, %v1165_v16  ;;  %v10807_v15 = vrot.slane %v8057_v45, 2  ;;  %v3210_v0 = vrot.slane %v2965_v49, 1 }
 0x201   :  { %v2117_v27 = vsel %vm887_vm1, %v10806_v30, %v2116_v3  ;;  %v3692_v8 = vrot.slane %v3447_v36, 2  ;;  %v8288_v29 = vadd.f32 %v4320_v58, %v8097_v22  ;;  %v4519_v47 = vsel %vm4254_vm4, %v4455_v26, 0.0 }
 0x202   :  { %v2599_v28 = vsel %vm1370_vm2, %v10807_v15, %v2598_v11  ;;  %v188_v43 = vmul.f32 %v8294_v12, %v75_v42  ;;  %v3342_v31 = vadd.f32 %v3181_v6, %v2860_v21  ;;  %v1778_v1 = vadd.f32 %v1714_v24, %v1648_v14  ;;  %v8342_v6 = vld [vmem:[%s10283_s1 + $0x3] ss:$0 sm:$0xff]  ;;  %v10813_v15 = vld [vmem:[#allocation13_spill] sm:$0xff] }
 0x203   :  { %v10808_v45 = vrot.slane %v8065_v37, 1  ;;  %v8301_v51 = vadd.f32 %v4519_v47, %v8100_v61  ;;  %v10809_v22 = vrot.slane %v8076_v25, 2  ;;  %v8315_v37 = vld [vmem:[%s10283_s1] ss:$0 sm:$0xff]  ;;  %v8322_v25 = vld [vmem:[%s10283_s1 + $0x1] ss:$0 sm:$0xff]  ;;  %v1690_v4 = vmul.f32 %v8342_v6, %v7691_v38 }
 0x204   :  { %v299_v39 = vadd.f32 %v8309_v41, %v188_v43  ;;  %v658_v61 = vmul.f32 %v8315_v37, %v7101_v44  ;;  %v739_v24 = vmul.f32 %v8322_v25, %v10775_v60  ;;  %v3824_v18 = vadd.f32 %v3663_v57, %v3342_v31  ;;  %v8335_v44 = vld [vmem:[%s10283_s1 + $0x2] ss:$0 sm:$0xff] }
 0x205   :  { %v3211_v2 = vsel %vm887_vm1, %v10808_v45, %v3210_v0  ;;  %v3693_v23 = vsel %vm1370_vm2, %v10809_v22, %v3692_v8  ;;  %v2260_v48 = vadd.f32 %v2117_v27, %v1778_v1  ;;  %v1222_v32 = vmul.f32 %v8335_v44, %v10775_v60  ;;  %v8380_v0 = vld [vmem:[%s10283_s1 + $0x7] ss:$0 sm:$0xff]  ;;  %v10815_v22 = vld [vmem:[#allocation25_spill] sm:$0xff] }
 0x206   :  { %v407_v57 = vmax.f32 %v299_v39, 0.0  ;;  %v961_v40 = vrot.slane %v739_v24, 1  ;;  %v1835_v62 = vmul.f32 %v8349_v13, %v7898_v17  ;;  %v2317_v60 = vmul.f32 %v7530_v20, %v7898_v17  ;;  %4702 = vmatmul.msk.f32.gmra.mxu2 %vm3848_vm3, %v3824_v18 }
 0x207   :  { %v2742_v52 = vadd.f32 %v2599_v28, %v2260_v48  ;;  %v1444_v3 = vrot.slane %v1222_v32, 2  ;;  %v2784_v9 = vmul.f32 %v7541_v46, %v8144_v63  ;;  %v213_v16 = vmul.f32 %v8294_v12, %v100_v10 }
 0x208   :  { %v8362_v11 = vmul.f32 %v515_v7, %v407_v57  ;;  %v10810_v49 = vrot.slane %v8113_v59, 1  ;;  %v2056_v20 = vrot.slane %v1835_v62, 1  ;;  %v2538_v30 = vrot.slane %v2317_v60, 2  ;;  %v10816_v7 = vld [vmem:[#allocation8_spill] sm:$0xff]  ;;  %v10819_v62 = vld [vmem:[#allocation26_spill] sm:$0xff] }
 0x209   :  { %v2872_v27 = vadd.f32 %v2808_v55, %v2742_v52  ;;  %v10811_v58 = vrot.slane %v8121_v34, 2  ;;  %v214_v21 = vmul.f32 %v8294_v12, %v101_v50  ;;  %v10812_v46 = vrot.slane %v8140_v35, 1  ;;  %v8387_v55 = vld [vmem:[%s10283_s1 + $0x8] ss:$0 sm:$0xff] }
 0x20a   :  { %v962_v42 = vsel %vm887_vm1, %v10810_v49, %v961_v40  ;;  %v10814_v28 = vrot.slane %v10813_v15, 2  ;;  %v2929_v34 = vmul.f32 %v8380_v0, %v8362_v11  ;;  %v3411_v35 = vmul.f32 %v8387_v55, %v8362_v11  ;;  %v8420_v49 = vpop.f32.mrf.mxu0 }
 0x20b   :  { %v1141_v36 = vadd.f32 %v962_v42, %v658_v61  ;;  %v1445_v26 = vsel %vm1370_vm2, %v10811_v58, %v1444_v3  ;;  %v2057_v14 = vsel %vm887_vm1, %v10812_v46, %v2056_v20  ;;  %v3354_v8 = vadd.f32 %v3211_v2, %v2872_v27  ;;  %4257 = vst.msk [vmem:[%s10284_s6 + $0x10] sm:$0xff] %vm4254_vm4, %v8420_v49 }
 0x20c   :  { %v2539_v59 = vsel %vm1370_vm2, %v10814_v28, %v2538_v30  ;;  %v324_v43 = vadd.f32 %v8309_v41, %v213_v16  ;;  %v325_v31 = vadd.f32 %v8309_v41, %v214_v21  ;;  %v3150_v1 = vrot.slane %v2929_v34, 1  ;;  %v10822_v30 = vld [vmem:[#allocation11_spill] sm:$0xff]  ;;  %v10823_v21 = vld [vmem:[#allocation12_spill] sm:$0xff] }
 0x20d   :  { %v1624_v47 = vadd.f32 %v1445_v26, %v1141_v36  ;;  %v3632_v45 = vrot.slane %v3411_v35, 2  ;;  %v671_v39 = vmul.f32 %v8315_v37, %v10815_v22  ;;  %v758_v61 = vmul.f32 %v8322_v25, %v10815_v22 }
 0x20e   :  { %v3836_v24 = vadd.f32 %v3693_v23, %v3354_v8  ;;  %v432_v18 = vmax.f32 %v324_v43, 0.0  ;;  %v433_v48 = vmax.f32 %v325_v31, 0.0  ;;  %v10817_v32 = vrot.slane %v10816_v7, 1  ;;  %v4817_v23 = vld [vmem:[%s10282_s5 + $0xa8] sm:$0xff]  ;;  %v119_v7 = vld [vmem:[%s10279_s0 + $0x2f0] sm:$0xff] }
 0x20f   :  { %v1754_v10 = vadd.f32 %v1690_v4, %v1624_v47  ;;  %v10818_v57 = vrot.slane %v8178_v5, 2  ;;  %v8405_v60 = vmul.f32 %v8322_v25, %v10819_v62  ;;  %v993_v50 = vrot.slane %v758_v61, 1  ;;  %v4818_v5 = vld [vmem:[%s10282_s5 + $0xb0] sm:$0xff] }
 0x210   :  { %v3151_v2 = vsel %vm887_vm1, %v10817_v32, %v3150_v1  ;;  %4714 = vmatmul.msk.f32.gmra.mxu3 %vm3848_vm3, %v3836_v24  ;;  %v8411_v4 = vmul.f32 %v4817_v23, %v432_v18  ;;  %v8416_v3 = vmul.f32 %v4818_v5, %v433_v48  ;;  %v1241_v16 = vmul.f32 %v8335_v44, %v10815_v22  ;;  %v8463_v22 = vld [vmem:[%s10283_s1 + $0x6] ss:$0 sm:$0xff] }
 0x211   :  { %v3633_v40 = vsel %vm1370_vm2, %v10818_v57, %v3632_v45  ;;  %v2236_v52 = vadd.f32 %v2057_v14, %v1754_v10  ;;  %v10537_v42 = vrot.slane %v8405_v60, 1  ;;  %v8425_v20 = vmul.f32 %v8335_v44, %v10819_v62  ;;  %v8443_v14 = vld [vmem:[%s10283_s1 + $0x5] ss:$0 sm:$0xff] }
 0x212   :  { %10820 = vst [vmem:[#allocation5_spill] sm:$0xff] %v8411_v4  ;;  %v1703_v27 = vmul.f32 %v8342_v6, %v10822_v30  ;;  %v1854_v36 = vmul.f32 %v8349_v13, %v10822_v30  ;;  %v1476_v26 = vrot.slane %v1241_v16, 2  ;;  %v8438_v46 = vmul.f32 %v8349_v13, %v10823_v21 }
 0x213   :  { %10821 = vst [vmem:[#allocation20_spill] sm:$0xff] %v8416_v3  ;;  %v2718_v58 = vadd.f32 %v2539_v59, %v2236_v52  ;;  %v2336_v15 = vmul.f32 %v8443_v14, %v10822_v30  ;;  %v995_v28 = vsel %vm887_vm1, %v993_v50, %v10537_v42  ;;  %v10536_v34 = vrot.slane %v8425_v20, 2 }
 0x214   :  { %v2088_v59 = vrot.slane %v1854_v36, 1  ;;  %v8453_v35 = vmul.f32 %v8443_v14, %v10823_v21  ;;  %v1154_v47 = vadd.f32 %v995_v28, %v671_v39  ;;  %v10532_v43 = vrot.slane %v8438_v46, 1  ;;  %v118_v39 = vld [vmem:[%s10279_s0 + $0x2e8] sm:$0xff] }
 0x215   :  { %v2848_v8 = vadd.f32 %v2784_v9, %v2718_v58  ;;  %v2570_v31 = vrot.slane %v2336_v15, 2  ;;  %v1478_v1 = vsel %vm1370_vm2, %v1476_v26, %v10536_v34  ;;  %v2797_v61 = vmul.f32 %v8463_v22, %v8411_v4  ;;  %v10824_v15 = vld [vmem:[#allocation3_spill] sm:$0xff]  ;;  %v10828_v34 = vld [vmem:[#allocation4_spill] sm:$0xff] }
 0x216   :  { %v10531_v45 = vrot.slane %v8453_v35, 2  ;;  %v2948_v9 = vmul.f32 %v8380_v0, %v8411_v4  ;;  %v1637_v10 = vadd.f32 %v1478_v1, %v1154_v47  ;;  %v2090_v18 = vsel %vm887_vm1, %v2088_v59, %v10532_v43 }
 0x217   :  { %v3330_v24 = vadd.f32 %v3151_v2, %v2848_v8  ;;  %v8477_v48 = vmul.f32 %v8380_v0, %v8416_v3  ;;  %v3430_v2 = vmul.f32 %v8387_v55, %v8411_v4  ;;  %v8489_v50 = vmul.f32 %v8387_v55, %v8416_v3 }
 0x218   :  { %v2572_v32 = vsel %vm1370_vm2, %v2570_v31, %v10531_v45  ;;  %v3182_v57 = vrot.slane %v2948_v9, 1  ;;  %v1767_v23 = vadd.f32 %v1703_v27, %v1637_v10  ;;  %v231_v16 = vmul.f32 %v8294_v12, %v118_v39 }
 0x219   :  { %v3812_v52 = vadd.f32 %v3633_v40, %v3330_v24  ;;  %v10528_v5 = vrot.slane %v8477_v48, 1  ;;  %v3664_v36 = vrot.slane %v3430_v2, 2  ;;  %v10527_v58 = vrot.slane %v8489_v50, 2 }
 0x21a   :  { %v232_v26 = vmul.f32 %v8294_v12, %v119_v7  ;;  %v683_v28 = vmul.f32 %v8315_v37, %v10824_v15  ;;  %v2249_v59 = vadd.f32 %v2090_v18, %v1767_v23  ;;  %v342_v27 = vadd.f32 %v8309_v41, %v231_v16 }
 0x21b   :  { %4690 = vmatmul.msk.f32.gmra.mxu1 %vm3848_vm3, %v3812_v52  ;;  %v3184_v40 = vsel %vm887_vm1, %v3182_v57, %v10528_v5  ;;  %v776_v8 = vmul.f32 %v8322_v25, %v10824_v15  ;;  %v3666_v47 = vsel %vm1370_vm2, %v3664_v36, %v10527_v58  ;;  %v8510_v1 = vmul.f32 %v8322_v25, %v7514_v56  ;;  %v10825_v52 = vld [vmem:[#allocation2_spill] sm:$0xff]  ;;  %v4821_v36 = vld [vmem:[%s10282_s5 + $0x138] sm:$0xff] }
 0x21c   :  { %v343_v31 = vadd.f32 %v8309_v41, %v232_v26  ;;  %v1259_v9 = vmul.f32 %v8335_v44, %v10824_v15  ;;  %v2731_v39 = vadd.f32 %v2572_v32, %v2249_v59  ;;  %v450_v24 = vmax.f32 %v342_v27, 0.0  ;;  %v4822_v59 = vld [vmem:[%s10282_s5 + $0x140] sm:$0xff] }
 0x21d   :  { %v1023_v10 = vrot.slane %v776_v8, 1  ;;  %v8516_v18 = vmul.f32 %v8335_v44, %v7514_v56  ;;  %v10526_v57 = vrot.slane %v8510_v1, 1  ;;  %v1715_v23 = vmul.f32 %v8342_v6, %v10825_v52 }
 0x21e   :  { %v451_v7 = vmax.f32 %v343_v31, 0.0  ;;  %v1506_v2 = vrot.slane %v1259_v9, 2  ;;  %v2861_v16 = vadd.f32 %v2797_v61, %v2731_v39  ;;  %v8524_v26 = vmul.f32 %v4821_v36, %v450_v24 }
 0x21f   :  { %v10530_v32 = vrot.slane %v8516_v18, 2  ;;  %v1872_v15 = vmul.f32 %v8349_v13, %v10825_v52  ;;  %v1025_v61 = vsel %vm887_vm1, %v1023_v10, %v10526_v57  ;;  %v8539_v8 = vmul.f32 %v8349_v13, %v8040_v19 }
 0x220   :  { %10826 = vst [vmem:[#allocation7_spill] sm:$0xff] %v8524_v26  ;;  %v8532_v27 = vmul.f32 %v4822_v59, %v451_v7  ;;  %v2354_v31 = vmul.f32 %v8443_v14, %v10825_v52  ;;  %v3343_v9 = vadd.f32 %v3184_v40, %v2861_v16  ;;  %v1166_v39 = vadd.f32 %v1025_v61, %v683_v28  ;;  %v76_v61 = vld [vmem:[%s10279_s0 + $0x198] sm:$0xff] }
 0x221   :  { %v1508_v24 = vsel %vm1370_vm2, %v1506_v2, %v10530_v32  ;;  %v2118_v36 = vrot.slane %v1872_v15, 1  ;;  %v10529_v7 = vrot.slane %v8539_v8, 1  ;;  %v8549_v59 = vmul.f32 %v8443_v14, %v8040_v19 }
 0x222   :  { %v2600_v10 = vrot.slane %v2354_v31, 2  ;;  %v2809_v57 = vmul.f32 %v8463_v22, %v8524_v26  ;;  %v3825_v58 = vadd.f32 %v3666_v47, %v3343_v9  ;;  %v1649_v5 = vadd.f32 %v1508_v24, %v1166_v39 }
 0x223   :  { %v2966_v28 = vmul.f32 %v8380_v0, %v8524_v26  ;;  %v8557_v40 = vmul.f32 %v8380_v0, %v8532_v27  ;;  %v2120_v2 = vsel %vm887_vm1, %v2118_v36, %v10529_v7  ;;  %v10533_v16 = vrot.slane %v8549_v59, 2  ;;  %v77_v36 = vld [vmem:[%s10279_s0 + $0x1a0] sm:$0xff] }
 0x224   :  { %v3448_v15 = vmul.f32 %v8387_v55, %v8524_v26  ;;  %v8567_v47 = vmul.f32 %v8387_v55, %v8532_v27  ;;  %4703 = vmatmul.msk.f32.gmra.mxu2 %vm3848_vm3, %v3825_v58  ;;  %v1779_v31 = vadd.f32 %v1715_v23, %v1649_v5  ;;  %v4322_v24 = vsel %vm4254_vm4, %v8420_v49, 0.0 }
 0x225   :  { %v3212_v9 = vrot.slane %v2966_v28, 1  ;;  %v10535_v39 = vrot.slane %v8557_v40, 1  ;;  %v2602_v7 = vsel %vm1370_vm2, %v2600_v10, %v10533_v16  ;;  %v8584_v58 = vadd.f32 %v4322_v24, %v8288_v29  ;;  %v10827_v16 = vld [vmem:[#allocation17_spill] sm:$0xff] }
 0x226   :  { %v3694_v32 = vrot.slane %v3448_v15, 2  ;;  %v10534_v45 = vrot.slane %v8567_v47, 2  ;;  %v2261_v5 = vadd.f32 %v2120_v2, %v1779_v31  ;;  %v4456_v28 = vmul.f32 %v8420_v49, %v8420_v49 }
 0x227   :  { %v3214_v23 = vsel %vm887_vm1, %v3212_v9, %v10535_v39  ;;  %v189_v43 = vmul.f32 %v8294_v12, %v76_v61  ;;  %v190_v15 = vmul.f32 %v8294_v12, %v77_v36  ;;  %v659_v29 = vmul.f32 %v8315_v37, %v10827_v16  ;;  %v516_v36 = vld [vmem:[%s10282_s5 + $0x198] sm:$0xff] }
 0x228   :  { %v3696_v10 = vsel %vm1370_vm2, %v3694_v32, %v10534_v45  ;;  %v740_v2 = vmul.f32 %v8322_v25, %v10827_v16  ;;  %v2743_v31 = vadd.f32 %v2602_v7, %v2261_v5  ;;  %v4521_v9 = vsel %vm4254_vm4, %v4456_v28, 0.0 }
 0x229   :  { %v300_v24 = vadd.f32 %v8309_v41, %v189_v43  ;;  %v8604_v49 = vmul.f32 %v8322_v25, %v7691_v38  ;;  %v8607_v61 = vadd.f32 %v4521_v9, %v8301_v51  ;;  %v301_v32 = vadd.f32 %v8309_v41, %v190_v15  ;;  %v517_v43 = vld [vmem:[%s10282_s5 + $0x1a0] sm:$0xff] }
 0x22a   :  { %v963_v45 = vrot.slane %v740_v2, 1  ;;  %v1223_v7 = vmul.f32 %v8335_v44, %v10827_v16  ;;  %v2873_v5 = vadd.f32 %v2809_v57, %v2743_v31  ;;  %v8621_v51 = vmul.f32 %v8335_v44, %v7691_v38 }
 0x22b   :  { %v408_v28 = vmax.f32 %v300_v24, 0.0  ;;  %v10545_v39 = vrot.slane %v8604_v49, 1  ;;  %v409_v15 = vmax.f32 %v301_v32, 0.0  ;;  %v1691_v2 = vmul.f32 %v8342_v6, %v10828_v34 }
 0x22c   :  { %v1446_v9 = vrot.slane %v1223_v7, 2  ;;  %v1836_v16 = vmul.f32 %v8349_v13, %v10828_v34  ;;  %v3355_v57 = vadd.f32 %v3214_v23, %v2873_v5  ;;  %v10544_v42 = vrot.slane %v8621_v51, 2 }
 0x22d   :  { %v570_v31 = vmul.f32 %v516_v36, %v408_v28  ;;  %v965_v24 = vsel %vm887_vm1, %v963_v45, %v10545_v39  ;;  %v8631_v26 = vmul.f32 %v517_v43, %v409_v15  ;;  %v8635_v32 = vmul.f32 %v8349_v13, %v8144_v63 }
 0x22e   :  { %v1142_v52 = vadd.f32 %v965_v24, %v659_v29  ;;  %v2058_v7 = vrot.slane %v1836_v16, 1  ;;  %v3837_v4 = vadd.f32 %v3696_v10, %v3355_v57  ;;  %v1448_v23 = vsel %vm1370_vm2, %v1446_v9, %v10544_v42  ;;  %v102_v10 = vld [vmem:[%s10279_s0 + $0x268] sm:$0x3]  ;;  %v8659_v16 = vpop.f32.mrf.mxu0 }
 0x22f   :  { %10829 = vst [vmem:[#allocation28_spill] sm:$0xff] %v8635_v32  ;;  %v2318_v36 = vmul.f32 %v8443_v14, %v10828_v34  ;;  %v8644_v45 = vmul.f32 %v8443_v14, %v8144_v63  ;;  %v10543_v29 = vrot.slane %v8635_v32, 1  ;;  %v2785_v28 = vmul.f32 %v8463_v22, %v570_v31  ;;  %v10832_v42 = vld [vmem:[#allocation31_spill] sm:$0xff] }
 0x230   :  { %v1625_v5 = vadd.f32 %v1448_v23, %v1142_v52  ;;  %v2930_v43 = vmul.f32 %v8380_v0, %v570_v31  ;;  %4715 = vmatmul.msk.f32.gmra.mxu3 %vm3848_vm3, %v3837_v4  ;;  %v8656_v9 = vmul.f32 %v8380_v0, %v8631_v26  ;;  %v3412_v52 = vmul.f32 %v8387_v55, %v570_v31 }
 0x231   :  { %10830 = vst [vmem:[#allocation14_spill] sm:$0xff] %v8644_v45  ;;  %v2540_v15 = vrot.slane %v2318_v36, 2  ;;  %v10547_v34 = vrot.slane %v8644_v45, 2  ;;  %v2060_v24 = vsel %vm887_vm1, %v2058_v7, %v10543_v29  ;;  %v8666_v4 = vmul.f32 %v8387_v55, %v8631_v26 }
 0x232   :  { %10831 = vst [vmem:[#allocation9_spill] sm:$0xff] %v8656_v9  ;;  %v1755_v57 = vadd.f32 %v1691_v2, %v1625_v5  ;;  %v3152_v23 = vrot.slane %v2930_v43, 1  ;;  %v10548_v2 = vrot.slane %v8656_v9, 1  ;;  %v3634_v36 = vrot.slane %v3412_v52, 2 }
 0x233   :  { %4258 = vst.msk [vmem:[%s10284_s6 + $0x18] sm:$0xff] %vm4254_vm4, %v8659_v16  ;;  %v2542_v31 = vsel %vm1370_vm2, %v2540_v15, %v10547_v34  ;;  %v215_v7 = vmul.f32 %v8294_v12, %v102_v10  ;;  %v10552_v43 = vrot.slane %v8666_v4, 2  ;;  %v672_v29 = vmul.f32 %v8315_v37, %v10819_v62 }
 0x234   :  { %v2237_v5 = vadd.f32 %v2060_v24, %v1755_v57  ;;  %v760_v39 = vmul.f32 %v8322_v25, %v10832_v42  ;;  %v3154_v45 = vsel %vm887_vm1, %v3152_v23, %v10548_v2  ;;  %v1243_v52 = vmul.f32 %v8335_v44, %v10832_v42  ;;  %v120_v57 = vld [vmem:[%s10279_s0 + $0x2f8] sm:$0x3] }
 0x235   :  { %v326_v15 = vadd.f32 %v8309_v41, %v215_v7  ;;  %v1704_v10 = vmul.f32 %v8342_v6, %v10823_v21  ;;  %v3636_v24 = vsel %vm1370_vm2, %v3634_v36, %v10552_v43  ;;  %v1856_v23 = vmul.f32 %v8349_v13, %v8222_v53 }
 0x236   :  { %v2719_v62 = vadd.f32 %v2542_v31, %v2237_v5  ;;  %v996_v34 = vrot.slane %v760_v39, 1  ;;  %v1479_v2 = vrot.slane %v1243_v52, 2  ;;  %v2338_v42 = vmul.f32 %v8443_v14, %v8222_v53  ;;  %v4823_v39 = vld [vmem:[%s10282_s5 + $0xb8] sm:$0x3] }
 0x237   :  { %v434_v7 = vmax.f32 %v326_v15, 0.0  ;;  %v2798_v9 = vmul.f32 %v8463_v22, %v8416_v3  ;;  %v10833_v32 = vrot.slane %v8405_v60, 1  ;;  %v2091_v5 = vrot.slane %v1856_v23, 1 }
 0x238   :  { %v2849_v21 = vadd.f32 %v2785_v28, %v2719_v62  ;;  %v233_v36 = vmul.f32 %v8294_v12, %v120_v57  ;;  %v10834_v43 = vrot.slane %v8425_v20, 2  ;;  %v2573_v3 = vrot.slane %v2338_v42, 2 }
 0x239   :  { %v997_v31 = vsel %vm887_vm1, %v10833_v32, %v996_v34  ;;  %v8710_v15 = vmul.f32 %v4823_v39, %v434_v7  ;;  %v10835_v60 = vrot.slane %v8438_v46, 1  ;;  %v684_v57 = vmul.f32 %v8315_v37, %v7514_v56 }
 0x23a   :  { %v1155_v52 = vadd.f32 %v997_v31, %v672_v29  ;;  %v1480_v53 = vsel %vm1370_vm2, %v10834_v43, %v1479_v2  ;;  %v3331_v28 = vadd.f32 %v3154_v45, %v2849_v21  ;;  %v344_v34 = vadd.f32 %v8309_v41, %v233_v36 }
 0x23b   :  { %v2092_v32 = vsel %vm887_vm1, %v10835_v60, %v2091_v5  ;;  %v10836_v23 = vrot.slane %v8453_v35, 2  ;;  %v2950_v20 = vmul.f32 %v8380_v0, %v8710_v15  ;;  %v3432_v21 = vmul.f32 %v8387_v55, %v8710_v15  ;;  %v4824_v35 = vld [vmem:[%s10282_s5 + $0x148] sm:$0x3] }
 0x23c   :  { %v1638_v62 = vadd.f32 %v1480_v53, %v1155_v52  ;;  %v3813_v45 = vadd.f32 %v3636_v24, %v3331_v28  ;;  %v452_v46 = vmax.f32 %v344_v34, 0.0  ;;  %v778_v2 = vmul.f32 %v8322_v25, %v7804_v33 }
 0x23d   :  { %v2574_v29 = vsel %vm1370_vm2, %v10836_v23, %v2573_v3  ;;  %v1261_v43 = vmul.f32 %v8335_v44, %v7804_v33  ;;  %v3185_v53 = vrot.slane %v2950_v20, 1  ;;  %v3667_v7 = vrot.slane %v3432_v21, 2 }
 0x23e   :  { %v1768_v56 = vadd.f32 %v1704_v10, %v1638_v62  ;;  %v1716_v3 = vmul.f32 %v8342_v6, %v8040_v19  ;;  %4691 = vmatmul.msk.f32.gmra.mxu1 %vm3848_vm3, %v3813_v45  ;;  %v8738_v24 = vmul.f32 %v4824_v35, %v452_v46  ;;  %v1026_v42 = vrot.slane %v778_v2, 1 }
 0x23f   :  { %v1509_v31 = vrot.slane %v1261_v43, 2  ;;  %v1874_v5 = vmul.f32 %v8349_v13, %v8250_v54  ;;  %v10837_v10 = vrot.slane %v8477_v48, 1  ;;  %v10838_v39 = vrot.slane %v8489_v50, 2 }
 0x240   :  { %v2250_v33 = vadd.f32 %v2092_v32, %v1768_v56  ;;  %v2356_v28 = vmul.f32 %v8443_v14, %v8250_v54  ;;  %v10839_v60 = vrot.slane %v8510_v1, 1  ;;  %v10840_v62 = vrot.slane %v8516_v18, 2  ;;  %v78_v1 = vld [vmem:[%s10279_s0 + $0x1a8] sm:$0x3] }
 0x241   :  { %v3186_v36 = vsel %vm887_vm1, %v10837_v10, %v3185_v53  ;;  %v3668_v52 = vsel %vm1370_vm2, %v10838_v39, %v3667_v7  ;;  %v2121_v32 = vrot.slane %v1874_v5, 1  ;;  %v2810_v48 = vmul.f32 %v8463_v22, %v8532_v27 }
 0x242   :  { %v1027_v34 = vsel %vm887_vm1, %v10839_v60, %v1026_v42  ;;  %v1510_v23 = vsel %vm1370_vm2, %v10840_v62, %v1509_v31  ;;  %v2732_v20 = vadd.f32 %v2574_v29, %v2250_v33  ;;  %v2603_v50 = vrot.slane %v2356_v28, 2 }
 0x243   :  { %v1167_v21 = vadd.f32 %v1027_v34, %v684_v57  ;;  %v2968_v45 = vmul.f32 %v8380_v0, %v8738_v24  ;;  %v10841_v46 = vrot.slane %v8539_v8, 1  ;;  %v3450_v2 = vmul.f32 %v8387_v55, %v8738_v24 }
 0x244   :  { %v4324_v43 = vsel %vm4254_vm4, %v8659_v16, 0.0  ;;  %v4457_v57 = vmul.f32 %v8659_v16, %v8659_v16  ;;  %v2862_v29 = vadd.f32 %v2798_v9, %v2732_v20  ;;  %v10842_v53 = vrot.slane %v8549_v59, 2 }
 0x245   :  { %v2122_v18 = vsel %vm887_vm1, %v10841_v46, %v2121_v32  ;;  %v1650_v56 = vadd.f32 %v1510_v23, %v1167_v21  ;;  %v3215_v35 = vrot.slane %v2968_v45, 1  ;;  %v3697_v42 = vrot.slane %v3450_v2, 2 }
 0x246   :  { %v2604_v7 = vsel %vm1370_vm2, %v10842_v53, %v2603_v50  ;;  %v8776_v8 = vadd.f32 %v4324_v43, %v8584_v58  ;;  %v4523_v31 = vsel %vm4254_vm4, %v4457_v57, 0.0  ;;  %v191_v5 = vmul.f32 %v8294_v12, %v78_v1  ;;  %v10849_v53 = vld [vmem:[#allocation14_spill] sm:$0xff] }
 0x247   :  { %v3344_v33 = vadd.f32 %v3186_v36, %v2862_v29  ;;  %v1780_v10 = vadd.f32 %v1716_v3, %v1650_v56  ;;  %v10843_v39 = vrot.slane %v8557_v40, 1  ;;  %v8784_v16 = vadd.f32 %v4523_v31, %v8607_v61  ;;  %v518_v40 = vld [vmem:[%s10282_s5 + $0x1a8] sm:$0x3] }
 0x248   :  { %v10844_v59 = vrot.slane %v8567_v47, 2  ;;  %v302_v58 = vadd.f32 %v8309_v41, %v191_v5  ;;  %v660_v60 = vmul.f32 %v8315_v37, %v7691_v38  ;;  %v742_v36 = vmul.f32 %v8322_v25, %v7898_v17 }
 0x249   :  { %v3216_v9 = vsel %vm887_vm1, %v10843_v39, %v3215_v35  ;;  %v3826_v3 = vadd.f32 %v3668_v52, %v3344_v33  ;;  %v2262_v34 = vadd.f32 %v2122_v18, %v1780_v10  ;;  %v1225_v61 = vmul.f32 %v8335_v44, %v7898_v17 }
 0x24a   :  { %v3698_v28 = vsel %vm1370_vm2, %v10844_v59, %v3697_v42  ;;  %v1692_v47 = vmul.f32 %v8342_v6, %v8144_v63  ;;  %v410_v62 = vmax.f32 %v302_v58, 0.0  ;;  %v966_v23 = vrot.slane %v742_v36, 1 }
 0x24b   :  { %v1838_v38 = vmul.f32 %v8349_v13, %v8362_v11  ;;  %v2320_v32 = vmul.f32 %v8443_v14, %v8362_v11  ;;  %4704 = vmatmul.msk.f32.gmra.mxu2 %vm3848_vm3, %v3826_v3  ;;  %v2744_v52 = vadd.f32 %v2604_v7, %v2262_v34  ;;  %v1449_v20 = vrot.slane %v1225_v61, 2  ;;  %v8841_v61 = vpop.f32.mrf.mxu1 }
 0x24c   :  { %v2786_v21 = vmul.f32 %v8463_v22, %v8631_v26  ;;  %v673_v17 = vmul.f32 %v8315_v37, %v10822_v30  ;;  %v572_v50 = vmul.f32 %v518_v40, %v410_v62  ;;  %v10845_v63 = vrot.slane %v8604_v49, 1  ;;  %v10847_v26 = vld [vmem:[#allocation28_spill] sm:$0xff]  ;;  %v8839_v40 = vpop.f32.mrf.mxu0  ;;  %v10853_v62 = vld [vmem:[#allocation9_spill] sm:$0xff]  ;;  %4271 = vst.msk [vmem:[%s10284_s6 + $0x80] sm:$0xff] %vm4254_vm4, %v8841_v61 }
 0x24d   :  { %v2061_v1 = vrot.slane %v1838_v38, 1  ;;  %v2543_v46 = vrot.slane %v2320_v32, 2  ;;  %v2874_v18 = vadd.f32 %v2810_v48, %v2744_v52  ;;  %v10846_v11 = vrot.slane %v8621_v51, 2  ;;  %v10851_v51 = vld [vmem:[#allocation12_spill] sm:$0xff]  ;;  %4259 = vst.msk [vmem:[%s10284_s6 + $0x20] sm:$0xff] %vm4254_vm4, %v8839_v40 }
 0x24e   :  { %v967_v45 = vsel %vm887_vm1, %v10845_v63, %v966_v23  ;;  %v761_v57 = vmul.f32 %v8322_v25, %v10822_v30  ;;  %v10848_v29 = vrot.slane %v10847_v26, 1  ;;  %v10850_v7 = vrot.slane %v10849_v53, 2 }
 0x24f   :  { %v1143_v2 = vadd.f32 %v967_v45, %v660_v60  ;;  %v1450_v43 = vsel %vm1370_vm2, %v10846_v11, %v1449_v20  ;;  %v2932_v35 = vmul.f32 %v8380_v0, %v572_v50  ;;  %v3414_v48 = vmul.f32 %v8387_v55, %v572_v50  ;;  %v10856_v50 = vld [vmem:[#allocation20_spill] sm:$0xff] }
 0x250   :  { %v2062_v56 = vsel %vm887_vm1, %v10848_v29, %v2061_v1  ;;  %v2544_v49 = vsel %vm1370_vm2, %v10850_v7, %v2543_v46  ;;  %v3356_v42 = vadd.f32 %v3216_v9, %v2874_v18  ;;  %v8828_v5 = vmul.f32 %v8322_v25, %v10851_v51  ;;  %v10852_v9 = vld [vmem:[#allocation5_spill] sm:$0xff]  ;;  %v121_v7 = vld [vmem:[%s10279_s0 + $0x300] sm:$0xff] }
 0x251   :  { %v1626_v31 = vadd.f32 %v1450_v43, %v1143_v2  ;;  %v998_v33 = vrot.slane %v761_v57, 1  ;;  %v3155_v10 = vrot.slane %v2932_v35, 1  ;;  %v3637_v39 = vrot.slane %v3414_v48, 2  ;;  %v10857_v43 = vld [vmem:[#allocation15_spill] sm:$0xff]  ;;  %v10858_v48 = vld [vmem:[#allocation21_spill] sm:$0xff] }
 0x252   :  { %v1244_v59 = vmul.f32 %v8335_v44, %v10822_v30  ;;  %v8834_v58 = vmul.f32 %v8335_v44, %v10851_v51  ;;  %v3838_v60 = vadd.f32 %v3698_v28, %v3356_v42  ;;  %v999_v3 = vrot.slane %v8828_v5, 1 }
 0x253   :  { %v1756_v36 = vadd.f32 %v1692_v47, %v1626_v31  ;;  %v1705_v34 = vmul.f32 %v8342_v6, %v10852_v9  ;;  %v10854_v23 = vrot.slane %v10853_v62, 1  ;;  %v10855_v30 = vrot.slane %v8666_v4, 2 }
 0x254   :  { %v1481_v52 = vrot.slane %v1244_v59, 2  ;;  %v1482_v28 = vrot.slane %v8834_v58, 2  ;;  %4716 = vmatmul.msk.f32.gmra.mxu3 %vm3848_vm3, %v3838_v60  ;;  %v1000_v20 = vsel %vm887_vm1, %v998_v33, %v999_v3  ;;  %v1857_v4 = vmul.f32 %v8349_v13, %v10852_v9  ;;  %v122_v33 = vld [vmem:[%s10279_s0 + $0x308] sm:$0xff] }
 0x255   :  { %v3156_v38 = vsel %vm887_vm1, %v10854_v23, %v3155_v10  ;;  %v3638_v32 = vsel %vm1370_vm2, %v10855_v30, %v3637_v39  ;;  %v2238_v47 = vadd.f32 %v2062_v56, %v1756_v36  ;;  %v8863_v63 = vmul.f32 %v8349_v13, %v10856_v50 }
 0x256   :  { %v1156_v45 = vadd.f32 %v1000_v20, %v673_v17  ;;  %v1483_v1 = vsel %vm1370_vm2, %v1481_v52, %v1482_v28  ;;  %v2339_v46 = vmul.f32 %v8443_v14, %v10852_v9  ;;  %v8872_v18 = vmul.f32 %v8443_v14, %v10856_v50 }
 0x257   :  { %v2720_v2 = vadd.f32 %v2544_v49, %v2238_v47  ;;  %v2093_v11 = vrot.slane %v1857_v4, 1  ;;  %v10566_v17 = vrot.slane %v8863_v63, 1  ;;  %v2799_v57 = vmul.f32 %v8463_v22, %v10857_v43  ;;  %v10859_v47 = vld [vmem:[#allocation2_spill] sm:$0xff] }
 0x258   :  { %v1639_v26 = vadd.f32 %v1483_v1, %v1156_v45  ;;  %v2575_v29 = vrot.slane %v2339_v46, 2  ;;  %v10565_v56 = vrot.slane %v8872_v18, 2  ;;  %v2951_v53 = vmul.f32 %v8380_v0, %v10857_v43 }
 0x259   :  { %v2850_v35 = vadd.f32 %v2786_v21, %v2720_v2  ;;  %v2095_v49 = vsel %vm887_vm1, %v2093_v11, %v10566_v17  ;;  %v8893_v42 = vmul.f32 %v8380_v0, %v10858_v48  ;;  %v3433_v31 = vmul.f32 %v8387_v55, %v10857_v43 }
 0x25a   :  { %v1769_v10 = vadd.f32 %v1705_v34, %v1639_v26  ;;  %v2577_v21 = vsel %vm1370_vm2, %v2575_v29, %v10565_v56  ;;  %v3187_v39 = vrot.slane %v2951_v53, 1  ;;  %v8905_v59 = vmul.f32 %v8387_v55, %v10858_v48 }
 0x25b   :  { %v3332_v60 = vadd.f32 %v3156_v38, %v2850_v35  ;;  %v10564_v36 = vrot.slane %v8893_v42, 1  ;;  %v3669_v62 = vrot.slane %v3433_v31, 2  ;;  %v234_v23 = vmul.f32 %v8294_v12, %v121_v7 }
 0x25c   :  { %v2251_v30 = vadd.f32 %v2095_v49, %v1769_v10  ;;  %v10558_v52 = vrot.slane %v8905_v59, 2  ;;  %v235_v34 = vmul.f32 %v8294_v12, %v122_v33  ;;  %v685_v20 = vmul.f32 %v8315_v37, %v10859_v47  ;;  %v10860_v33 = vld [vmem:[#allocation7_spill] sm:$0xff] }
 0x25d   :  { %v3814_v4 = vadd.f32 %v3638_v32, %v3332_v60  ;;  %v3189_v45 = vsel %vm887_vm1, %v3187_v39, %v10564_v36  ;;  %v345_v38 = vadd.f32 %v8309_v41, %v234_v23  ;;  %v779_v1 = vmul.f32 %v8322_v25, %v10859_v47 }
 0x25e   :  { %v2733_v46 = vadd.f32 %v2577_v21, %v2251_v30  ;;  %v3671_v2 = vsel %vm1370_vm2, %v3669_v62, %v10558_v52  ;;  %v346_v11 = vadd.f32 %v8309_v41, %v235_v34  ;;  %v8925_v26 = vmul.f32 %v8322_v25, %v8040_v19  ;;  %v4825_v21 = vld [vmem:[%s10282_s5 + $0x150] sm:$0xff] }
 0x25f   :  { %4692 = vmatmul.msk.f32.gmra.mxu1 %vm3848_vm3, %v3814_v4  ;;  %v453_v32 = vmax.f32 %v345_v38, 0.0  ;;  %v1028_v29 = vrot.slane %v779_v1, 1  ;;  %v1262_v53 = vmul.f32 %v8335_v44, %v10859_v47  ;;  %v8932_v7 = vmul.f32 %v8335_v44, %v8040_v19 }
 0x260   :  { %v2863_v35 = vadd.f32 %v2799_v57, %v2733_v46  ;;  %v454_v49 = vmax.f32 %v346_v11, 0.0  ;;  %v10561_v31 = vrot.slane %v8925_v26, 1  ;;  %v1717_v10 = vmul.f32 %v8342_v6, %v10860_v33  ;;  %v4826_v57 = vld [vmem:[%s10282_s5 + $0x158] sm:$0xff] }
 0x261   :  { %v8940_v39 = vmul.f32 %v4825_v21, %v453_v32  ;;  %v1511_v60 = vrot.slane %v1262_v53, 2  ;;  %v10560_v62 = vrot.slane %v8932_v7, 2  ;;  %v1875_v23 = vmul.f32 %v8349_v13, %v10860_v33 }
 0x262   :  { %v3345_v30 = vadd.f32 %v3189_v45, %v2863_v35  ;;  %v8948_v34 = vmul.f32 %v4826_v57, %v454_v49  ;;  %v1030_v47 = vsel %vm887_vm1, %v1028_v29, %v10561_v31  ;;  %v8955_v4 = vmul.f32 %v8349_v13, %v8532_v27 }
 0x263   :  { %v1168_v38 = vadd.f32 %v1030_v47, %v685_v20  ;;  %v1513_v1 = vsel %vm1370_vm2, %v1511_v60, %v10560_v62  ;;  %v2123_v45 = vrot.slane %v1875_v23, 1  ;;  %v2357_v46 = vmul.f32 %v8443_v14, %v10860_v33 }
 0x264   :  { %v3827_v11 = vadd.f32 %v3671_v2, %v3345_v30  ;;  %v10557_v32 = vrot.slane %v8955_v4, 1  ;;  %v8965_v53 = vmul.f32 %v8443_v14, %v8532_v27  ;;  %v2969_v20 = vmul.f32 %v8380_v0, %v8940_v39 }
 0x265   :  { %v1651_v29 = vadd.f32 %v1513_v1, %v1168_v38  ;;  %v2605_v35 = vrot.slane %v2357_v46, 2  ;;  %v8971_v49 = vmul.f32 %v8380_v0, %v8948_v34  ;;  %v3451_v60 = vmul.f32 %v8387_v55, %v8940_v39  ;;  %v8987_v1 = vpop.f32.mrf.mxu0  ;;  %v8989_v46 = vpop.f32.mrf.mxu1 }
 0x266   :  { %4705 = vmatmul.msk.f32.gmra.mxu2 %vm3848_vm3, %v3827_v11  ;;  %v2125_v2 = vsel %vm887_vm1, %v2123_v45, %v10557_v32  ;;  %v10559_v21 = vrot.slane %v8965_v53, 2  ;;  %v8982_v23 = vmul.f32 %v8387_v55, %v8948_v34  ;;  %v3217_v57 = vrot.slane %v2969_v20, 1  ;;  %4260 = vst.msk [vmem:[%s10284_s6 + $0x28] sm:$0xff] %vm4254_vm4, %v8987_v1 }
 0x267   :  { %v1781_v30 = vadd.f32 %v1717_v10, %v1651_v29  ;;  %v10562_v47 = vrot.slane %v8971_v49, 1  ;;  %v4326_v38 = vsel %vm4254_vm4, %v8839_v40, 0.0  ;;  %v3699_v11 = vrot.slane %v3451_v60, 2  ;;  %4272 = vst.msk [vmem:[%s10284_s6 + $0x88] sm:$0xff] %vm4254_vm4, %v8989_v46 }
 0x268   :  { %v2607_v45 = vsel %vm1370_vm2, %v2605_v35, %v10559_v21  ;;  %v10563_v32 = vrot.slane %v8982_v23, 2  ;;  %v4327_v52 = vadd.f32 %v4326_v38, %v8776_v8  ;;  %v2811_v29 = vmul.f32 %v8463_v22, %v8940_v39  ;;  %v10861_v35 = vld [vmem:[#allocation27_spill] sm:$0xff] }
 0x269   :  { %v2263_v10 = vadd.f32 %v2125_v2, %v1781_v30  ;;  %v4458_v20 = vmul.f32 %v8839_v40, %v8839_v40  ;;  %v3219_v8 = vsel %vm887_vm1, %v3217_v57, %v10562_v47  ;;  %v763_v60 = vmul.f32 %v8322_v25, %v10861_v35 }
 0x26a   :  { %v674_v38 = vmul.f32 %v8315_v37, %v10851_v51  ;;  %v1246_v40 = vmul.f32 %v8335_v44, %v10861_v35  ;;  %v3701_v21 = vsel %vm1370_vm2, %v3699_v11, %v10563_v32  ;;  %v1859_v57 = vmul.f32 %v8349_v13, %v8710_v15  ;;  %v10862_v35 = vld [vmem:[#allocation32_spill] sm:$0xff] }
 0x26b   :  { %v2745_v2 = vadd.f32 %v2607_v45, %v2263_v10  ;;  %v4525_v30 = vsel %vm4254_vm4, %v4458_v20, 0.0  ;;  %v1001_v31 = vrot.slane %v763_v60, 1  ;;  %v1706_v10 = vmul.f32 %v8342_v6, %v10856_v50  ;;  %v123_v20 = vld [vmem:[%s10279_s0 + $0x310] sm:$0x3] }
 0x26c   :  { %v4526_v62 = vadd.f32 %v4525_v30, %v8784_v16  ;;  %v1484_v45 = vrot.slane %v1246_v40, 2  ;;  %v2341_v51 = vmul.f32 %v8443_v14, %v8710_v15  ;;  %v2096_v11 = vrot.slane %v1859_v57, 1 }
 0x26d   :  { %v2875_v47 = vadd.f32 %v2811_v29, %v2745_v2  ;;  %v1002_v16 = vsel %vm887_vm1, %v999_v3, %v1001_v31  ;;  %v2953_v60 = vmul.f32 %v8380_v0, %v10862_v35  ;;  %v3435_v29 = vmul.f32 %v8387_v55, %v10862_v35 }
 0x26e   :  { %v1157_v30 = vadd.f32 %v1002_v16, %v674_v38  ;;  %v1485_v40 = vsel %vm1370_vm2, %v1482_v28, %v1484_v45  ;;  %v2578_v32 = vrot.slane %v2341_v51, 2  ;;  %v236_v56 = vmul.f32 %v8294_v12, %v123_v20 }
 0x26f   :  { %v3357_v2 = vadd.f32 %v3219_v8, %v2875_v47  ;;  %v3190_v36 = vrot.slane %v2953_v60, 1  ;;  %v10863_v3 = vrot.slane %v8863_v63, 1  ;;  %v2800_v57 = vmul.f32 %v8463_v22, %v10858_v48 }
 0x270   :  { %v1640_v17 = vadd.f32 %v1485_v40, %v1157_v30  ;;  %v10864_v47 = vrot.slane %v8872_v18, 2  ;;  %v3672_v58 = vrot.slane %v3435_v29, 2  ;;  %v347_v28 = vadd.f32 %v8309_v41, %v236_v56 }
 0x271   :  { %v3839_v5 = vadd.f32 %v3701_v21, %v3357_v2  ;;  %v2097_v31 = vsel %vm887_vm1, %v10863_v3, %v2096_v11  ;;  %v781_v38 = vmul.f32 %v8322_v25, %v8250_v54  ;;  %v686_v63 = vmul.f32 %v8315_v37, %v8040_v19 }
 0x272   :  { %v2579_v8 = vsel %vm1370_vm2, %v10864_v47, %v2578_v32  ;;  %v1770_v12 = vadd.f32 %v1706_v10, %v1640_v17  ;;  %v1264_v21 = vmul.f32 %v8335_v44, %v8250_v54  ;;  %v1877_v18 = vmul.f32 %v8349_v13, %v8738_v24  ;;  %v4827_v54 = vld [vmem:[%s10282_s5 + $0x160] sm:$0x3] }
 0x273   :  { %4717 = vmatmul.msk.f32.gmra.mxu3 %vm3848_vm3, %v3839_v5  ;;  %v10865_v32 = vrot.slane %v8893_v42, 1  ;;  %v455_v41 = vmax.f32 %v347_v28, 0.0  ;;  %v1031_v56 = vrot.slane %v781_v38, 1  ;;  %v2359_v51 = vmul.f32 %v8443_v14, %v8738_v24 }
 0x274   :  { %v2252_v20 = vadd.f32 %v2097_v31, %v1770_v12  ;;  %v1514_v17 = vrot.slane %v1264_v21, 2  ;;  %v2126_v10 = vrot.slane %v1877_v18, 1  ;;  %v4328_v19 = vsel %vm4254_vm4, %v8987_v1, 0.0 }
 0x275   :  { %v3191_v45 = vsel %vm887_vm1, %v10865_v32, %v3190_v36  ;;  %v9072_v16 = vmul.f32 %v4827_v54, %v455_v41  ;;  %v10866_v42 = vrot.slane %v8925_v26, 1  ;;  %v2608_v11 = vrot.slane %v2359_v51, 2 }
 0x276   :  { %v9077_v60 = vadd.f32 %v4328_v19, %v4327_v52  ;;  %v2734_v29 = vadd.f32 %v2579_v8, %v2252_v20  ;;  %v10867_v30 = vrot.slane %v8932_v7, 2  ;;  %v1718_v5 = vmul.f32 %v8342_v6, %v8532_v27 }
 0x277   :  { %v1032_v36 = vsel %vm887_vm1, %v10866_v42, %v1031_v56  ;;  %v10868_v3 = vrot.slane %v8905_v59, 2  ;;  %v2971_v26 = vmul.f32 %v8380_v0, %v9072_v16  ;;  %v3453_v52 = vmul.f32 %v8387_v55, %v9072_v16 }
 0x278   :  { %v1169_v2 = vadd.f32 %v1032_v36, %v686_v63  ;;  %v1515_v40 = vsel %vm1370_vm2, %v10867_v30, %v1514_v17  ;;  %v4459_v47 = vmul.f32 %v8987_v1, %v8987_v1  ;;  %v2864_v8 = vadd.f32 %v2800_v57, %v2734_v29 }
 0x279   :  { %v3673_v31 = vsel %vm1370_vm2, %v10868_v3, %v3672_v58  ;;  %v10869_v28 = vrot.slane %v8955_v4, 1  ;;  %v2812_v59 = vmul.f32 %v8463_v22, %v8948_v34  ;;  %v10870_v58 = vrot.slane %v8965_v53, 2 }
 0x27a   :  { %v1652_v7 = vadd.f32 %v1515_v40, %v1169_v2  ;;  %v3220_v63 = vrot.slane %v2971_v26, 1  ;;  %v3702_v21 = vrot.slane %v3453_v52, 2  ;;  %v4527_v18 = vsel %vm4254_vm4, %v4459_v47, 0.0  ;;  %v10873_v52 = vld [vmem:[#allocation22_spill] sm:$0xff] }
 0x27b   :  { %v2127_v38 = vsel %vm887_vm1, %v10869_v28, %v2126_v10  ;;  %v2609_v12 = vsel %vm1370_vm2, %v10870_v58, %v2608_v11  ;;  %v3346_v32 = vadd.f32 %v3191_v45, %v2864_v8  ;;  %v9102_v1 = vadd.f32 %v4527_v18, %v4526_v62  ;;  %v9124_v10 = vpop.f32.mrf.mxu0  ;;  %v124_v8 = vld [vmem:[%s10279_s0 + $0x318] sm:$0xff] }
 0x27c   :  { %v1782_v41 = vadd.f32 %v1718_v5, %v1652_v7  ;;  %v675_v4 = vmul.f32 %v8315_v37, %v10852_v9  ;;  %v10871_v57 = vrot.slane %v8971_v49, 1  ;;  %v10872_v51 = vrot.slane %v8982_v23, 2  ;;  %v9126_v23 = vpop.f32.mrf.mxu1  ;;  %4261 = vst.msk [vmem:[%s10284_s6 + $0x30] sm:$0xff] %vm4254_vm4, %v9124_v10 }
 0x27d   :  { %v764_v20 = vmul.f32 %v8322_v25, %v10852_v9  ;;  %v9116_v45 = vmul.f32 %v8322_v25, %v10856_v50  ;;  %v3828_v62 = vadd.f32 %v3673_v31, %v3346_v32  ;;  %v1247_v37 = vmul.f32 %v8335_v44, %v10852_v9  ;;  %4273 = vst.msk [vmem:[%s10284_s6 + $0x90] sm:$0xff] %vm4254_vm4, %v9126_v23 }
 0x27e   :  { %v3221_v56 = vsel %vm887_vm1, %v10871_v57, %v3220_v63  ;;  %v3703_v53 = vsel %vm1370_vm2, %v10872_v51, %v3702_v21  ;;  %v2264_v17 = vadd.f32 %v2127_v38, %v1782_v41  ;;  %v9122_v49 = vmul.f32 %v8335_v44, %v10856_v50 }
 0x27f   :  { %v1003_v19 = vrot.slane %v764_v20, 1  ;;  %v1004_v54 = vrot.slane %v9116_v45, 1  ;;  %v1707_v25 = vmul.f32 %v8342_v6, %v10857_v43  ;;  %v1860_v42 = vmul.f32 %v8349_v13, %v10857_v43  ;;  %4706 = vmatmul.msk.f32.gmra.mxu2 %vm3848_vm3, %v3828_v62 }
 0x280   :  { %v2746_v44 = vadd.f32 %v2609_v12, %v2264_v17  ;;  %v1486_v9 = vrot.slane %v1247_v37, 2  ;;  %v1487_v36 = vrot.slane %v9122_v49, 2  ;;  %v9142_v11 = vmul.f32 %v8349_v13, %v10858_v48  ;;  %v9212_v37 = vld [vmem:[%s10281_s4] ss:$0 sm:$0xff] }
 0x281   :  { %v1005_v6 = vsel %vm887_vm1, %v1003_v19, %v1004_v54  ;;  %v2098_v29 = vrot.slane %v1860_v42, 1  ;;  %v2342_v2 = vmul.f32 %v8443_v14, %v10857_v43  ;;  %v9156_v30 = vmul.f32 %v8443_v14, %v10858_v48 }
 0x282   :  { %v2876_v13 = vadd.f32 %v2812_v59, %v2746_v44  ;;  %v1158_v40 = vadd.f32 %v1005_v6, %v675_v4  ;;  %v1488_v5 = vsel %vm1370_vm2, %v1486_v9, %v1487_v36  ;;  %v2099_v3 = vrot.slane %v9142_v11, 1  ;;  %v10874_v59 = vld [vmem:[#allocation23_spill] sm:$0xff]  ;;  %v9193_v4 = vld [vmem:[%s10280_s3] ss:$0 sm:$0xff] }
 0x283   :  { %v2580_v31 = vrot.slane %v2342_v2, 2  ;;  %v2581_v26 = vrot.slane %v9156_v30, 2  ;;  %v2801_v47 = vmul.f32 %v8463_v22, %v10873_v52  ;;  %v2954_v43 = vmul.f32 %v8380_v0, %v10873_v52  ;;  %v125_v22 = vld [vmem:[%s10279_s0 + $0x320] sm:$0xff] }
 0x284   :  { %v3358_v7 = vadd.f32 %v3221_v56, %v2876_v13  ;;  %v1641_v28 = vadd.f32 %v1488_v5, %v1158_v40  ;;  %v2100_v38 = vsel %vm887_vm1, %v2098_v29, %v2099_v3  ;;  %v9175_v58 = vmul.f32 %v8380_v0, %v10874_v59  ;;  %v9233_v29 = vld [vmem:[%s10283_s1 + $0x2] ss:$0 sm:$0xff] }
 0x285   :  { %v2582_v12 = vsel %vm1370_vm2, %v2580_v31, %v2581_v26  ;;  %v3192_v63 = vrot.slane %v2954_v43, 1  ;;  %v3436_v21 = vmul.f32 %v8387_v55, %v10873_v52  ;;  %v9187_v18 = vmul.f32 %v8387_v55, %v10874_v59  ;;  %v9201_v55 = vld [vmem:[%s10283_s1] ss:$0 sm:$0xff] }
 0x286   :  { %v3840_v32 = vadd.f32 %v3703_v53, %v3358_v7  ;;  %v1771_v41 = vadd.f32 %v1707_v25, %v1641_v28  ;;  %v10574_v0 = vrot.slane %v9175_v58, 1  ;;  %v237_v57 = vmul.f32 %v9193_v4, %v124_v8  ;;  %v9218_v25 = vld [vmem:[%s10283_s1 + $0x1] ss:$0 sm:$0xff]  ;;  %v9245_v7 = vld [vmem:[%s10283_s1 + $0x3] ss:$0 sm:$0xff] }
 0x287   :  { %v3674_v56 = vrot.slane %v3436_v21, 2  ;;  %v10569_v51 = vrot.slane %v9187_v18, 2  ;;  %v238_v20 = vmul.f32 %v9193_v4, %v125_v22  ;;  %v687_v53 = vmul.f32 %v9201_v55, %v10860_v33 }
 0x288   :  { %4718 = vmatmul.msk.f32.gmra.mxu3 %vm3848_vm3, %v3840_v32  ;;  %v2253_v62 = vadd.f32 %v2100_v38, %v1771_v41  ;;  %v3194_v17 = vsel %vm887_vm1, %v3192_v63, %v10574_v0  ;;  %v348_v19 = vadd.f32 %v9212_v37, %v237_v57  ;;  %v782_v42 = vmul.f32 %v9218_v25, %v10860_v33  ;;  %v4834_v38 = vld [vmem:[%s10282_s5 + $0x168] sm:$0xff]  ;;  %v9258_v63 = vld [vmem:[%s10283_s1 + $0x4] ss:$0 sm:$0xff] }
 0x289   :  { %v3676_v44 = vsel %vm1370_vm2, %v3674_v56, %v10569_v51  ;;  %v349_v9 = vadd.f32 %v9212_v37, %v238_v20  ;;  %v9228_v6 = vmul.f32 %v9218_v25, %v8532_v27  ;;  %v1265_v2 = vmul.f32 %v9233_v29, %v10860_v33 }
 0x28a   :  { %v2735_v13 = vadd.f32 %v2582_v12, %v2253_v62  ;;  %v456_v40 = vmax.f32 %v348_v19, 0.0  ;;  %v1033_v5 = vrot.slane %v782_v42, 1  ;;  %v9239_v31 = vmul.f32 %v9233_v29, %v8532_v27 }
 0x28b   :  { %v457_v52 = vmax.f32 %v349_v9, 0.0  ;;  %v10573_v43 = vrot.slane %v9228_v6, 1  ;;  %v1516_v8 = vrot.slane %v1265_v2, 2  ;;  %v1719_v28 = vmul.f32 %v9245_v7, %v8940_v39 }
 0x28c   :  { %v2865_v33 = vadd.f32 %v2801_v47, %v2735_v13  ;;  %v9252_v22 = vmul.f32 %v4834_v38, %v456_v40  ;;  %v10572_v12 = vrot.slane %v9239_v31, 2  ;;  %v1878_v21 = vmul.f32 %v9258_v63, %v8940_v39  ;;  %v4836_v47 = vld [vmem:[%s10282_s5 + $0x170] sm:$0xff] }
 0x28d   :  { %v9265_v32 = vmul.f32 %v4836_v47, %v457_v52  ;;  %v1035_v41 = vsel %vm887_vm1, %v1033_v5, %v10573_v43  ;;  %v9272_v57 = vmul.f32 %v9258_v63, %v8948_v34  ;;  %v2360_v56 = vmul.f32 %v8443_v14, %v8940_v39  ;;  %v9287_v52 = vld [vmem:[%s10283_s1 + $0x7] ss:$0 sm:$0xff] }
 0x28e   :  { %v3347_v20 = vadd.f32 %v3194_v17, %v2865_v33  ;;  %v1170_v62 = vadd.f32 %v1035_v41, %v687_v53  ;;  %v1518_v19 = vsel %vm1370_vm2, %v1516_v8, %v10572_v12  ;;  %v2128_v42 = vrot.slane %v1878_v21, 1 }
 0x28f   :  { %v10567_v9 = vrot.slane %v9272_v57, 1  ;;  %v9282_v2 = vmul.f32 %v8443_v14, %v8948_v34  ;;  %v2610_v13 = vrot.slane %v2360_v56, 2  ;;  %v2972_v53 = vmul.f32 %v9287_v52, %v9252_v22 }
 0x290   :  { %v3829_v40 = vadd.f32 %v3676_v44, %v3347_v20  ;;  %v1653_v5 = vadd.f32 %v1518_v19, %v1170_v62  ;;  %v9293_v17 = vmul.f32 %v9287_v52, %v9265_v32  ;;  %v9302_v44 = vld [vmem:[%s10283_s1 + $0x8] ss:$0 sm:$0xff]  ;;  %v4330_v56 = vsel %vm4254_vm4, %v9124_v10, 0.0  ;;  %v9314_v20 = vpop.f32.mrf.mxu0  ;;  %v9316_v62 = vpop.f32.mrf.mxu1 }
 0x291   :  { %v2130_v14 = vsel %vm887_vm1, %v2128_v42, %v10567_v9  ;;  %v10568_v8 = vrot.slane %v9282_v2, 2  ;;  %v3454_v33 = vmul.f32 %v9302_v44, %v9252_v22  ;;  %v9308_v38 = vmul.f32 %v9302_v44, %v9265_v32  ;;  %4262 = vst.msk [vmem:[%s10284_s6 + $0x38] sm:$0xff] %vm4254_vm4, %v9314_v20 }
 0x292   :  { %4707 = vmatmul.msk.f32.gmra.mxu2 %vm3848_vm3, %v3829_v40  ;;  %v1783_v21 = vadd.f32 %v1719_v28, %v1653_v5  ;;  %v3222_v47 = vrot.slane %v2972_v53, 1  ;;  %v10570_v41 = vrot.slane %v9293_v17, 1  ;;  %v9323_v40 = vadd.f32 %v4330_v56, %v9077_v60  ;;  %v9333_v5 = vld [vmem:[%s10283_s1 + $0x6] ss:$0 sm:$0xff]  ;;  %4274 = vst.msk [vmem:[%s10284_s6 + $0x98] sm:$0xff] %vm4254_vm4, %v9316_v62 }
 0x293   :  { %v2612_v19 = vsel %vm1370_vm2, %v2610_v13, %v10568_v8  ;;  %v3704_v42 = vrot.slane %v3454_v33, 2  ;;  %v10571_v9 = vrot.slane %v9308_v38, 2  ;;  %v2813_v13 = vmul.f32 %v9333_v5, %v9252_v22 }
 0x294   :  { %v2265_v28 = vadd.f32 %v2130_v14, %v1783_v21  ;;  %v4460_v53 = vmul.f32 %v9124_v10, %v9124_v10  ;;  %v3224_v60 = vsel %vm887_vm1, %v3222_v47, %v10570_v41  ;;  %v766_v14 = vmul.f32 %v9218_v25, %v8710_v15 }
 0x295   :  { %v676_v56 = vmul.f32 %v9201_v55, %v10856_v50  ;;  %v1249_v10 = vmul.f32 %v9233_v29, %v8710_v15  ;;  %v3706_v8 = vsel %vm1370_vm2, %v3704_v42, %v10571_v9  ;;  %v1862_v41 = vmul.f32 %v9258_v63, %v10862_v35  ;;  %v9367_v15 = vld [vmem:[%s10283_s1 + $0x5] ss:$0 sm:$0xff] }
 0x296   :  { %v2747_v33 = vadd.f32 %v2612_v19, %v2265_v28  ;;  %v4529_v21 = vsel %vm4254_vm4, %v4460_v53, 0.0  ;;  %v1006_v47 = vrot.slane %v766_v14, 1  ;;  %v1708_v53 = vmul.f32 %v9245_v7, %v10858_v48  ;;  %v10875_v14 = vld [vmem:[#allocation33_spill] sm:$0xff] }
 0x297   :  { %v9358_v51 = vadd.f32 %v4529_v21, %v9102_v1  ;;  %v1489_v28 = vrot.slane %v1249_v10, 2  ;;  %v2344_v50 = vmul.f32 %v9367_v15, %v10862_v35  ;;  %v126_v1 = vld [vmem:[%s10279_s0 + $0x328] sm:$0x3]  ;;  %v2956_v48 = vmul.f32 %v9287_v52, %v10875_v14 }
 0x298   :  { %v2877_v19 = vadd.f32 %v2813_v13, %v2747_v33  ;;  %v1007_v42 = vsel %vm887_vm1, %v1004_v54, %v1006_v47  ;;  %v2101_v13 = vrot.slane %v1862_v41, 1  ;;  %v3438_v33 = vmul.f32 %v9302_v44, %v10875_v14 }
 0x299   :  { %v1159_v10 = vadd.f32 %v1007_v42, %v676_v56  ;;  %v1490_v35 = vsel %vm1370_vm2, %v1487_v36, %v1489_v28  ;;  %v2583_v9 = vrot.slane %v2344_v50, 2  ;;  %v3195_v12 = vrot.slane %v2956_v48, 1 }
 0x29a   :  { %v3359_v21 = vadd.f32 %v3224_v60, %v2877_v19  ;;  %v239_v43 = vmul.f32 %v9193_v4, %v126_v1  ;;  %v2102_v54 = vsel %vm887_vm1, %v2099_v3, %v2101_v13  ;;  %v2802_v41 = vmul.f32 %v9333_v5, %v10874_v59  ;;  %v9403_v59 = vpop.f32.mrf.mxu0 }
 0x29b   :  { %v1642_v0 = vadd.f32 %v1490_v35, %v1159_v10  ;;  %v2584_v60 = vsel %vm1370_vm2, %v2581_v26, %v2583_v9  ;;  %v3677_v49 = vrot.slane %v3438_v33, 2  ;;  %v784_v56 = vmul.f32 %v9218_v25, %v8738_v24  ;;  %v9405_v26 = vpop.f32.mrf.mxu1  ;;  %4263 = vst.msk [vmem:[%s10284_s6 + $0x40] sm:$0xff] %vm4254_vm4, %v9403_v59  ;;  %v127_v35 = vld [vmem:[%s10279_s0 + $0x330] sm:$0xff] }
 0x29c   :  { %v3841_v45 = vadd.f32 %v3706_v8, %v3359_v21  ;;  %v350_v36 = vadd.f32 %v9212_v37, %v239_v43  ;;  %v688_v11 = vmul.f32 %v9201_v55, %v8532_v27  ;;  %v1267_v3 = vmul.f32 %v9233_v29, %v8738_v24  ;;  %v9417_v27 = vpop.f32.mrf.mxu2  ;;  %4275 = vst.msk [vmem:[%s10284_s6 + $0xa0] sm:$0xff] %vm4254_vm4, %v9405_v26 }
 0x29d   :  { %v1772_v8 = vadd.f32 %v1708_v53, %v1642_v0  ;;  %v1880_v30 = vmul.f32 %v9258_v63, %v9072_v16  ;;  %v10876_v43 = vrot.slane %v9175_v58, 1  ;;  %v1036_v19 = vrot.slane %v784_v56, 1  ;;  %4287 = vst.msk [vmem:[%s10284_s6 + $0x100] sm:$0xff] %vm4254_vm4, %v9417_v27 }
 0x29e   :  { %4719 = vmatmul.msk.f32.gmra.mxu3 %vm3848_vm3, %v3841_v45  ;;  %v458_v47 = vmax.f32 %v350_v36, 0.0  ;;  %v2362_v0 = vmul.f32 %v9367_v15, %v9072_v16  ;;  %v1519_v28 = vrot.slane %v1267_v3, 2  ;;  %v4332_v58 = vsel %vm4254_vm4, %v9314_v20, 0.0 }
 0x29f   :  { %v3196_v9 = vsel %vm887_vm1, %v10876_v43, %v3195_v12  ;;  %v2254_v24 = vadd.f32 %v2102_v54, %v1772_v8  ;;  %v2131_v53 = vrot.slane %v1880_v30, 1  ;;  %v4841_v12 = vld [vmem:[%s10282_s5 + $0x178] sm:$0x3]  ;;  %v10877_v1 = vrot.slane %v9228_v6, 1 }
 0x2a0   :  { %v9429_v50 = vmul.f32 %v4841_v12, %v458_v47  ;;  %v1720_v13 = vmul.f32 %v9245_v7, %v8948_v34  ;;  %v9437_v14 = vadd.f32 %v4332_v58, %v9323_v40  ;;  %v10878_v21 = vrot.slane %v9239_v31, 2 }
 0x2a1   :  { %v1037_v42 = vsel %vm887_vm1, %v10877_v1, %v1036_v19  ;;  %v2736_v48 = vadd.f32 %v2584_v60, %v2254_v24  ;;  %v2613_v10 = vrot.slane %v2362_v0, 2  ;;  %v10879_v40 = vrot.slane %v9187_v18, 2 }
 0x2a2   :  { %v1171_v33 = vadd.f32 %v1037_v42, %v688_v11  ;;  %v1520_v6 = vsel %vm1370_vm2, %v10878_v21, %v1519_v28  ;;  %v2974_v54 = vmul.f32 %v9287_v52, %v9429_v50  ;;  %v3456_v60 = vmul.f32 %v9302_v44, %v9429_v50 }
 0x2a3   :  { %v3678_v45 = vsel %vm1370_vm2, %v10879_v40, %v3677_v49  ;;  %v4461_v31 = vmul.f32 %v9314_v20, %v9314_v20  ;;  %v2866_v36 = vadd.f32 %v2802_v41, %v2736_v48  ;;  %v10880_v8 = vrot.slane %v9272_v57, 1  ;;  %v128_v49 = vld [vmem:[%s10279_s0 + $0x338] sm:$0xff]  ;;  %v4842_v40 = vld [vmem:[%s10282_s5 + $0x180] sm:$0xff] }
 0x2a4   :  { %v1654_v56 = vadd.f32 %v1520_v6, %v1171_v33  ;;  %v2814_v18 = vmul.f32 %v9333_v5, %v9265_v32  ;;  %v3225_v3 = vrot.slane %v2974_v54, 1  ;;  %v3707_v30 = vrot.slane %v3456_v60, 2 }
 0x2a5   :  { %v2132_v11 = vsel %vm887_vm1, %v10880_v8, %v2131_v53  ;;  %v4531_v43 = vsel %vm4254_vm4, %v4461_v31, 0.0  ;;  %v240_v47 = vmul.f32 %v9193_v4, %v127_v35  ;;  %v3348_v20 = vadd.f32 %v3196_v9, %v2866_v36  ;;  %v9514_v8 = vpop.f32.mrf.mxu0 }
 0x2a6   :  { %v1784_v41 = vadd.f32 %v1720_v13, %v1654_v56  ;;  %v10881_v19 = vrot.slane %v9282_v2, 2  ;;  %v9473_v0 = vadd.f32 %v4531_v43, %v9358_v51  ;;  %v10882_v24 = vrot.slane %v9293_v17, 1  ;;  %4264 = vst.msk [vmem:[%s10284_s6 + $0x48] sm:$0xff] %vm4254_vm4, %v9514_v8 }
 0x2a7   :  { %v10883_v53 = vrot.slane %v9308_v38, 2  ;;  %v241_v12 = vmul.f32 %v9193_v4, %v128_v49  ;;  %v351_v9 = vadd.f32 %v9212_v37, %v240_v47  ;;  %v3830_v1 = vadd.f32 %v3678_v45, %v3348_v20  ;;  %v4843_v49 = vld [vmem:[%s10282_s5 + $0x188] sm:$0xff]  ;;  %v9537_v47 = vpop.f32.mrf.mxu2 }
 0x2a8   :  { %v2614_v57 = vsel %vm1370_vm2, %v10881_v19, %v2613_v10  ;;  %v3226_v28 = vsel %vm887_vm1, %v10882_v24, %v3225_v3  ;;  %v2266_v42 = vadd.f32 %v2132_v11, %v1784_v41  ;;  %v689_v2 = vmul.f32 %v9201_v55, %v8940_v39  ;;  %v9516_v11 = vpop.f32.mrf.mxu1  ;;  %4288 = vst.msk [vmem:[%s10284_s6 + $0x108] sm:$0xff] %vm4254_vm4, %v9537_v47 }
 0x2a9   :  { %v3708_v58 = vsel %vm1370_vm2, %v10883_v53, %v3707_v30  ;;  %v785_v51 = vmul.f32 %v9218_v25, %v8940_v39  ;;  %v352_v17 = vadd.f32 %v9212_v37, %v241_v12  ;;  %v459_v13 = vmax.f32 %v351_v9, 0.0  ;;  %4708 = vmatmul.msk.f32.gmra.mxu2 %vm3848_vm3, %v3830_v1  ;;  %4276 = vst.msk [vmem:[%s10284_s6 + $0xa8] sm:$0xff] %vm4254_vm4, %v9516_v11 }
 0x2aa   :  { %v9490_v38 = vmul.f32 %v9218_v25, %v8948_v34  ;;  %v1268_v48 = vmul.f32 %v9233_v29, %v8940_v39  ;;  %v2748_v33 = vadd.f32 %v2614_v57, %v2266_v42  ;;  %v9497_v6 = vmul.f32 %v9233_v29, %v8948_v34 }
 0x2ab   :  { %v1038_v21 = vrot.slane %v785_v51, 1  ;;  %v1721_v10 = vmul.f32 %v9245_v7, %v9252_v22  ;;  %v460_v35 = vmax.f32 %v352_v17, 0.0  ;;  %v9504_v45 = vmul.f32 %v4842_v40, %v459_v13 }
 0x2ac   :  { %v1039_v39 = vrot.slane %v9490_v38, 1  ;;  %v1521_v54 = vrot.slane %v1268_v48, 2  ;;  %v2878_v60 = vadd.f32 %v2814_v18, %v2748_v33  ;;  %v1522_v31 = vrot.slane %v9497_v6, 2  ;;  %v4844_v38 = vld [vmem:[%s10282_s5 + $0x190] sm:$0x3] }
 0x2ad   :  { %v1881_v36 = vmul.f32 %v9258_v63, %v9252_v22  ;;  %v9512_v56 = vmul.f32 %v9258_v63, %v9265_v32  ;;  %v9521_v3 = vmul.f32 %v4843_v49, %v460_v35  ;;  %v2363_v30 = vmul.f32 %v9367_v15, %v9252_v22 }
 0x2ae   :  { %v1040_v18 = vsel %vm887_vm1, %v1038_v21, %v1039_v39  ;;  %v9530_v43 = vmul.f32 %v9367_v15, %v9265_v32  ;;  %v3360_v20 = vadd.f32 %v3226_v28, %v2878_v60  ;;  %v1523_v19 = vsel %vm1370_vm2, %v1521_v54, %v1522_v31  ;;  %v129_v54 = vld [vmem:[%s10279_s0 + $0x340] sm:$0x3] }
 0x2af   :  { %v1172_v41 = vadd.f32 %v1040_v18, %v689_v2  ;;  %v2133_v57 = vrot.slane %v1881_v36, 1  ;;  %v2134_v24 = vrot.slane %v9512_v56, 1  ;;  %v2615_v53 = vrot.slane %v2363_v30, 2 }
 0x2b0   :  { %v2616_v12 = vrot.slane %v9530_v43, 2  ;;  %v3842_v28 = vadd.f32 %v3708_v58, %v3360_v20  ;;  %v2975_v1 = vmul.f32 %v9287_v52, %v9504_v45  ;;  %v9558_v42 = vmul.f32 %v9287_v52, %v9521_v3 }
 0x2b1   :  { %v1655_v9 = vadd.f32 %v1523_v19, %v1172_v41  ;;  %v2135_v2 = vsel %vm887_vm1, %v2133_v57, %v2134_v24  ;;  %v3457_v51 = vmul.f32 %v9302_v44, %v9504_v45  ;;  %v9567_v17 = vmul.f32 %v9302_v44, %v9521_v3 }
 0x2b2   :  { %4720 = vmatmul.msk.f32.gmra.mxu3 %vm3848_vm3, %v3842_v28  ;;  %v2617_v13 = vsel %vm1370_vm2, %v2615_v53, %v2616_v12  ;;  %v4334_v48 = vsel %vm4254_vm4, %v9403_v59, 0.0  ;;  %v3227_v33 = vrot.slane %v2975_v1, 1  ;;  %v3228_v21 = vrot.slane %v9558_v42, 1  ;;  %v9602_v1 = vpop.f32.mrf.mxu1 }
 0x2b3   :  { %v1785_v58 = vadd.f32 %v1721_v10, %v1655_v9  ;;  %v4335_v35 = vadd.f32 %v4334_v48, %v9437_v14  ;;  %v4462_v40 = vmul.f32 %v9403_v59, %v9403_v59  ;;  %v2815_v60 = vmul.f32 %v9333_v5, %v9504_v45  ;;  %v9600_v9 = vpop.f32.mrf.mxu0  ;;  %4277 = vst.msk [vmem:[%s10284_s6 + $0xb0] sm:$0xff] %vm4254_vm4, %v9602_v1 }
 0x2b4   :  { %v3709_v36 = vrot.slane %v3457_v51, 2  ;;  %v3710_v49 = vrot.slane %v9567_v17, 2  ;;  %v242_v14 = vmul.f32 %v9193_v4, %v129_v54  ;;  %v3229_v59 = vsel %vm887_vm1, %v3227_v33, %v3228_v21  ;;  %4265 = vst.msk [vmem:[%s10284_s6 + $0x50] sm:$0xff] %vm4254_vm4, %v9600_v9 }
 0x2b5   :  { %v2267_v10 = vadd.f32 %v2135_v2, %v1785_v58  ;;  %v4533_v18 = vsel %vm4254_vm4, %v4462_v40, 0.0  ;;  %v787_v41 = vmul.f32 %v9218_v25, %v9072_v16  ;;  %v1270_v19 = vmul.f32 %v9233_v29, %v9072_v16 }
 0x2b6   :  { %v4534_v20 = vadd.f32 %v4533_v18, %v9473_v0  ;;  %v353_v53 = vadd.f32 %v9212_v37, %v242_v14  ;;  %v690_v28 = vmul.f32 %v9201_v55, %v8948_v34  ;;  %v1883_v0 = vmul.f32 %v9258_v63, %v9429_v50  ;;  %v9612_v34 = vpop.f32.mrf.mxu2 }
 0x2b7   :  { %v2749_v30 = vadd.f32 %v2617_v13, %v2267_v10  ;;  %v3711_v2 = vsel %vm1370_vm2, %v3709_v36, %v3710_v49  ;;  %v1041_v51 = vrot.slane %v787_v41, 1  ;;  %v1524_v17 = vrot.slane %v1270_v19, 2  ;;  %4289 = vst.msk [vmem:[%s10284_s6 + $0x110] sm:$0xff] %vm4254_vm4, %v9612_v34  ;;  %v131_v41 = vld [vmem:[%s10279_s0 + $0x350] sm:$0xff] }
 0x2b8   :  { %v2365_v16 = vmul.f32 %v9367_v15, %v9429_v50  ;;  %v461_v13 = vmax.f32 %v353_v53, 0.0  ;;  %v4336_v48 = vsel %vm4254_vm4, %v9514_v8, 0.0  ;;  %v2136_v54 = vrot.slane %v1883_v0, 1 }
 0x2b9   :  { %v2879_v57 = vadd.f32 %v2815_v60, %v2749_v30  ;;  %v1042_v33 = vsel %vm887_vm1, %v1039_v39, %v1041_v51  ;;  %v1525_v40 = vsel %vm1370_vm2, %v1522_v31, %v1524_v17  ;;  %v9627_v10 = vadd.f32 %v4336_v48, %v4335_v35  ;;  %v130_v31 = vld [vmem:[%s10279_s0 + $0x348] sm:$0xff] }
 0x2ba   :  { %v9637_v36 = vmul.f32 %v4844_v38, %v461_v13  ;;  %v1173_v39 = vadd.f32 %v1042_v33, %v690_v28  ;;  %v1722_v6 = vmul.f32 %v9245_v7, %v9265_v32  ;;  %v2618_v35 = vrot.slane %v2365_v16, 2  ;;  %v4845_v38 = vld [vmem:[%s10282_s5 + $0x198] sm:$0xff] }
 0x2bb   :  { %v3361_v58 = vadd.f32 %v3229_v59, %v2879_v57  ;;  %v4463_v18 = vmul.f32 %v9514_v8, %v9514_v8  ;;  %v2137_v19 = vsel %vm887_vm1, %v2134_v24, %v2136_v54  ;;  %v2816_v8 = vmul.f32 %v9333_v5, %v9521_v3 }
 0x2bc   :  { %v1656_v30 = vadd.f32 %v1525_v40, %v1173_v39  ;;  %v2977_v14 = vmul.f32 %v9287_v52, %v9637_v36  ;;  %v3459_v59 = vmul.f32 %v9302_v44, %v9637_v36  ;;  %v243_v53 = vmul.f32 %v9193_v4, %v130_v31 }
 0x2bd   :  { %v3843_v60 = vadd.f32 %v3711_v2, %v3361_v58  ;;  %v4535_v57 = vsel %vm4254_vm4, %v4463_v18, 0.0  ;;  %v2619_v17 = vsel %vm1370_vm2, %v2616_v12, %v2618_v35  ;;  %v244_v56 = vmul.f32 %v9193_v4, %v131_v41  ;;  %v4846_v41 = vld [vmem:[%s10282_s5 + $0x1a0] sm:$0xff] }
 0x2be   :  { %v1786_v28 = vadd.f32 %v1722_v6, %v1656_v30  ;;  %v3230_v0 = vrot.slane %v2977_v14, 1  ;;  %v3712_v2 = vrot.slane %v3459_v59, 2  ;;  %v9661_v51 = vadd.f32 %v4535_v57, %v4534_v20  ;;  %v9700_v14 = vpop.f32.mrf.mxu0  ;;  %v9702_v59 = vpop.f32.mrf.mxu1 }
 0x2bf   :  { %4721 = vmatmul.msk.f32.gmra.mxu3 %vm3848_vm3, %v3843_v60  ;;  %v354_v24 = vadd.f32 %v9212_v37, %v243_v53  ;;  %v691_v16 = vmul.f32 %v9201_v55, %v9252_v22  ;;  %v788_v20 = vmul.f32 %v9218_v25, %v9252_v22  ;;  %v355_v43 = vadd.f32 %v9212_v37, %v244_v56 }
 0x2c0   :  { %v2268_v58 = vadd.f32 %v2137_v19, %v1786_v28  ;;  %v3231_v13 = vsel %vm887_vm1, %v3228_v21, %v3230_v0  ;;  %v3713_v48 = vsel %vm1370_vm2, %v3710_v49, %v3712_v2  ;;  %v9679_v33 = vmul.f32 %v9218_v25, %v9265_v32  ;;  %4266 = vst.msk [vmem:[%s10284_s6 + $0x58] sm:$0xff] %vm4254_vm4, %v9700_v14  ;;  %v9723_v28 = vpop.f32.mrf.mxu2  ;;  %v9725_v0 = vpop.f32.mrf.mxu3 }
 0x2c1   :  { %v462_v12 = vmax.f32 %v354_v24, 0.0  ;;  %v1271_v40 = vmul.f32 %v9233_v29, %v9252_v22  ;;  %v1043_v60 = vrot.slane %v788_v20, 1  ;;  %v9685_v42 = vmul.f32 %v9233_v29, %v9265_v32  ;;  %4278 = vst.msk [vmem:[%s10284_s6 + $0xb8] sm:$0xff] %vm4254_vm4, %v9702_v59 }
 0x2c2   :  { %v2750_v54 = vadd.f32 %v2619_v17, %v2268_v58  ;;  %v1723_v21 = vmul.f32 %v9245_v7, %v9504_v45  ;;  %v463_v49 = vmax.f32 %v355_v43, 0.0  ;;  %v1044_v6 = vrot.slane %v9679_v33, 1  ;;  %4290 = vst.msk [vmem:[%s10284_s6 + $0x118] sm:$0xff] %vm4254_vm4, %v9723_v28 }
 0x2c3   :  { %v624_v39 = vmul.f32 %v4845_v38, %v462_v12  ;;  %v1526_v31 = vrot.slane %v1271_v40, 2  ;;  %v1527_v22 = vrot.slane %v9685_v42, 2  ;;  %v1884_v18 = vmul.f32 %v9258_v63, %v9504_v45  ;;  %4303 = vst.msk [vmem:[%s10284_s6 + $0x180] sm:$0xff] %vm4254_vm4, %v9725_v0 }
 0x2c4   :  { %v2880_v35 = vadd.f32 %v2816_v8, %v2750_v54  ;;  %v9698_v30 = vmul.f32 %v9258_v63, %v9521_v3  ;;  %v9707_v19 = vmul.f32 %v4846_v41, %v463_v49  ;;  %v1045_v8 = vsel %vm887_vm1, %v1043_v60, %v1044_v6 }
 0x2c5   :  { %v2366_v57 = vmul.f32 %v9367_v15, %v9504_v45  ;;  %v9716_v53 = vmul.f32 %v9367_v15, %v9521_v3  ;;  %v1174_v17 = vadd.f32 %v1045_v8, %v691_v16  ;;  %v1528_v45 = vsel %vm1370_vm2, %v1526_v31, %v1527_v22 }
 0x2c6   :  { %v3362_v2 = vadd.f32 %v3231_v13, %v2880_v35  ;;  %v2138_v56 = vrot.slane %v1884_v18, 1  ;;  %v2139_v24 = vrot.slane %v9698_v30, 1  ;;  %v2978_v43 = vmul.f32 %v9287_v52, %v624_v39 }
 0x2c7   :  { %v2620_v58 = vrot.slane %v2366_v57, 2  ;;  %v2621_v20 = vrot.slane %v9716_v53, 2  ;;  %v1657_v13 = vadd.f32 %v1528_v45, %v1174_v17  ;;  %v9745_v12 = vmul.f32 %v9287_v52, %v9707_v19  ;;  %v9778_v17 = vpop.f32.mrf.mxu1 }
 0x2c8   :  { %v3844_v16 = vadd.f32 %v3713_v48, %v3362_v2  ;;  %v2140_v40 = vsel %vm887_vm1, %v2138_v56, %v2139_v24  ;;  %v3460_v54 = vmul.f32 %v9302_v44, %v624_v39  ;;  %v9758_v48 = vmul.f32 %v9302_v44, %v9707_v19  ;;  %v9776_v2 = vpop.f32.mrf.mxu0  ;;  %4279 = vst.msk [vmem:[%s10284_s6 + $0xc0] sm:$0xff] %vm4254_vm4, %v9778_v17 }
 0x2c9   :  { %v1787_v60 = vadd.f32 %v1723_v21, %v1657_v13  ;;  %v2622_v49 = vsel %vm1370_vm2, %v2620_v58, %v2621_v20  ;;  %v4338_v38 = vsel %vm4254_vm4, %v9600_v9, 0.0  ;;  %v3232_v31 = vrot.slane %v2978_v43, 1  ;;  %v132_v21 = vld [vmem:[%s10279_s0 + $0x358] sm:$0x3]  ;;  %4267 = vst.msk [vmem:[%s10284_s6 + $0x60] sm:$0xff] %vm4254_vm4, %v9776_v2  ;;  %v9789_v58 = vpop.f32.mrf.mxu3 }
 0x2ca   :  { %4722 = vmatmul.msk.f32.gmra.mxu3 %vm3848_vm3, %v3844_v16  ;;  %v3233_v35 = vrot.slane %v9745_v12, 1  ;;  %v9768_v18 = vadd.f32 %v4338_v38, %v9627_v10  ;;  %v4464_v41 = vmul.f32 %v9600_v9, %v9600_v9  ;;  %v2817_v57 = vmul.f32 %v9333_v5, %v624_v39  ;;  %v9787_v9 = vpop.f32.mrf.mxu2  ;;  %4304 = vst.msk [vmem:[%s10284_s6 + $0x188] sm:$0xff] %vm4254_vm4, %v9789_v58 }
 0x2cb   :  { %v2269_v8 = vadd.f32 %v2140_v40, %v1787_v60  ;;  %v3714_v45 = vrot.slane %v3460_v54, 2  ;;  %v3715_v56 = vrot.slane %v9758_v48, 2  ;;  %v245_v13 = vmul.f32 %v9193_v4, %v132_v21  ;;  %4291 = vst.msk [vmem:[%s10284_s6 + $0x120] sm:$0xff] %vm4254_vm4, %v9787_v9  ;;  %v4847_v21 = vld [vmem:[%s10282_s5 + $0x1a8] sm:$0x3] }
 0x2cc   :  { %v4537_v10 = vsel %vm4254_vm4, %v4464_v41, 0.0  ;;  %v3234_v43 = vsel %vm887_vm1, %v3232_v31, %v3233_v35  ;;  %v790_v40 = vmul.f32 %v9218_v25, %v9429_v50  ;;  %v1273_v54 = vmul.f32 %v9233_v29, %v9429_v50 }
 0x2cd   :  { %v2751_v39 = vadd.f32 %v2622_v49, %v2269_v8  ;;  %v9792_v16 = vadd.f32 %v4537_v10, %v9661_v51  ;;  %v356_v51 = vadd.f32 %v9212_v37, %v245_v13  ;;  %v692_v60 = vmul.f32 %v9201_v55, %v9265_v32 }
 0x2ce   :  { %v1886_v49 = vmul.f32 %v9258_v63, %v9637_v36  ;;  %v3716_v25 = vsel %vm1370_vm2, %v3714_v45, %v3715_v56  ;;  %v1046_v29 = vrot.slane %v790_v40, 1  ;;  %v1529_v50 = vrot.slane %v1273_v54, 2 }
 0x2cf   :  { %v2881_v4 = vadd.f32 %v2817_v57, %v2751_v39  ;;  %v2368_v37 = vmul.f32 %v9367_v15, %v9637_v36  ;;  %v464_v55 = vmax.f32 %v356_v51, 0.0  ;;  %v1724_v15 = vmul.f32 %v9245_v7, %v9521_v3  ;;  %v9838_v45 = vpop.f32.mrf.mxu1 }
 0x2d0   :  { %v1047_v63 = vsel %vm887_vm1, %v1044_v6, %v1046_v29  ;;  %v1530_v32 = vsel %vm1370_vm2, %v1527_v22, %v1529_v50  ;;  %v2141_v31 = vrot.slane %v1886_v49, 1  ;;  %v4101_v36 = vpop.f32.mrf.mxu0  ;;  %4280 = vst.msk [vmem:[%s10284_s6 + $0xc8] sm:$0xff] %vm4254_vm4, %v9838_v45  ;;  %v2818_v13 = vmul.f32 %v9333_v5, %v9707_v19 }
 0x2d1   :  { %v3363_v38 = vadd.f32 %v3234_v43, %v2881_v4  ;;  %v626_v8 = vmul.f32 %v4847_v21, %v464_v55  ;;  %v1175_v57 = vadd.f32 %v1047_v63, %v692_v60  ;;  %v2623_v33 = vrot.slane %v2368_v37, 2  ;;  %4268 = vst.msk [vmem:[%s10284_s6 + $0x68] sm:$0xff] %vm4254_vm4, %v4101_v36  ;;  %v9846_v6 = vpop.f32.mrf.mxu3 }
 0x2d2   :  { %v9844_v42 = vpop.f32.mrf.mxu2  ;;  %v2142_v7 = vsel %vm887_vm1, %v2139_v24, %v2141_v31  ;;  %4305 = vst.msk [vmem:[%s10284_s6 + $0x190] sm:$0xff] %vm4254_vm4, %v9846_v6  ;;  %v4340_v40 = vsel %vm4254_vm4, %v9700_v14, 0.0  ;;  %v4466_v54 = vmul.f32 %v9776_v2, %v9776_v2  ;;  %v4342_v5 = vsel %vm4254_vm4, %v9776_v2, 0.0 }
 0x2d3   :  { %v3845_v41 = vadd.f32 %v3716_v25, %v3363_v38  ;;  %v1658_v22 = vadd.f32 %v1530_v32, %v1175_v57  ;;  %v2980_v10 = vmul.f32 %v9287_v52, %v626_v8  ;;  %v3462_v3 = vmul.f32 %v9302_v44, %v626_v8  ;;  %4292 = vst.msk [vmem:[%s10284_s6 + $0x128] sm:$0xff] %vm4254_vm4, %v9844_v42 }
 0x2d4   :  { %v2624_v52 = vsel %vm1370_vm2, %v2621_v20, %v2623_v33  ;;  %v4465_v44 = vmul.f32 %v9700_v14, %v9700_v14  ;;  %v4467_v19 = vmul.f32 %v4101_v36, %v4101_v36  ;;  %v4341_v25 = vadd.f32 %v4340_v40, %v9768_v18 }
 0x2d5   :  { %4723 = vmatmul.msk.f32.gmra.mxu3 %vm3848_vm3, %v3845_v41  ;;  %v1788_v39 = vadd.f32 %v1724_v15, %v1658_v22  ;;  %v3235_v30 = vrot.slane %v2980_v10, 1  ;;  %v3717_v43 = vrot.slane %v3462_v3, 2  ;;  %v4344_v2 = vsel %vm4254_vm4, %v4101_v36, 0.0 }
 0x2d6   :  { %v4539_v60 = vsel %vm4254_vm4, %v4465_v44, 0.0  ;;  %v4343_v50 = vadd.f32 %v4342_v5, %v4341_v25  ;;  %v4543_v48 = vsel %vm4254_vm4, %v4467_v19, 0.0  ;;  %v4470_v57 = vmul.f32 %v8841_v61, %v8841_v61 }
 0x2d7   :  { %v2270_v24 = vadd.f32 %v2142_v7, %v1788_v39  ;;  %v9880_v53 = vpop.f32.mrf.mxu1  ;;  %v3236_v20 = vsel %vm887_vm1, %v3233_v35, %v3235_v30  ;;  %v3718_v12 = vsel %vm1370_vm2, %v3715_v56, %v3717_v43  ;;  %v4541_v35 = vsel %vm4254_vm4, %v4466_v54, 0.0 }
 0x2d8   :  { %v4104_v51 = vpop.f32.mrf.mxu0  ;;  %4281 = vst.msk [vmem:[%s10284_s6 + $0xd0] sm:$0xff] %vm4254_vm4, %v9880_v53  ;;  %v4540_v29 = vadd.f32 %v4539_v60, %v9792_v16  ;;  %v4345_v32 = vadd.f32 %v4344_v2, %v4343_v50  ;;  %v4350_v7 = vsel %vm4254_vm4, %v8841_v61, 0.0  ;;  %v4471_v3 = vmul.f32 %v8989_v46, %v8989_v46 }
 0x2d9   :  { %v2752_v4 = vadd.f32 %v2624_v52, %v2270_v24  ;;  %4269 = vst.msk [vmem:[%s10284_s6 + $0x70] sm:$0xff] %vm4254_vm4, %v4104_v51  ;;  %v9911_v37 = vpop.f32.mrf.mxu3  ;;  %v4346_v56 = vsel %vm4254_vm4, %v4104_v51, 0.0  ;;  %v4468_v38 = vmul.f32 %v4104_v51, %v4104_v51  ;;  %v4549_v24 = vsel %vm4254_vm4, %v4470_v57, 0.0 }
 0x2da   :  { %v9892_v14 = vpop.f32.mrf.mxu2  ;;  %4306 = vst.msk [vmem:[%s10284_s6 + $0x198] sm:$0xff] %vm4254_vm4, %v9911_v37  ;;  %v4542_v63 = vadd.f32 %v4541_v35, %v4540_v29  ;;  %v4347_v41 = vadd.f32 %v4346_v56, %v4345_v32  ;;  %v4352_v61 = vsel %vm4254_vm4, %v8989_v46, 0.0  ;;  %v4551_v54 = vsel %vm4254_vm4, %v4471_v3, 0.0 }
 0x2db   :  { %v2882_v49 = vadd.f32 %v2818_v13, %v2752_v4  ;;  %4293 = vst.msk [vmem:[%s10284_s6 + $0x130] sm:$0xff] %vm4254_vm4, %v9892_v14  ;;  %v4545_v31 = vsel %vm4254_vm4, %v4468_v38, 0.0  ;;  %v4472_v13 = vmul.f32 %v9126_v23, %v9126_v23  ;;  %v4354_v4 = vsel %vm4254_vm4, %v9126_v23, 0.0 }
 0x2dc   :  { %v4544_v16 = vadd.f32 %v4543_v48, %v4542_v63  ;;  %v4473_v51 = vmul.f32 %v9316_v62, %v9316_v62  ;;  %v4356_v19 = vsel %vm4254_vm4, %v9316_v62, 0.0  ;;  %v4358_v35 = vsel %vm4254_vm4, %v9405_v26, 0.0 }
 0x2dd   :  { %v3364_v18 = vadd.f32 %v3236_v20, %v2882_v49  ;;  %v4553_v5 = vsel %vm4254_vm4, %v4472_v13, 0.0  ;;  %v4474_v49 = vmul.f32 %v9405_v26, %v9405_v26  ;;  %v4475_v2 = vmul.f32 %v9516_v11, %v9516_v11 }
 0x2de   :  { %v4546_v22 = vadd.f32 %v4545_v31, %v4544_v16  ;;  %v4555_v62 = vsel %vm4254_vm4, %v4473_v51, 0.0  ;;  %v4360_v56 = vsel %vm4254_vm4, %v9516_v11, 0.0  ;;  %v4476_v38 = vmul.f32 %v9602_v1, %v9602_v1 }
 0x2df   :  { %v3846_v55 = vadd.f32 %v3718_v12, %v3364_v18  ;;  %v9922_v8 = vpop.f32.mrf.mxu1  ;;  %v4557_v48 = vsel %vm4254_vm4, %v4474_v49, 0.0  ;;  %v4559_v63 = vsel %vm4254_vm4, %v4475_v2, 0.0  ;;  %v4362_v32 = vsel %vm4254_vm4, %v9602_v1, 0.0 }
 0x2e0   :  { %v4107_v21 = vpop.f32.mrf.mxu0  ;;  %4282 = vst.msk [vmem:[%s10284_s6 + $0xd8] sm:$0xff] %vm4254_vm4, %v9922_v8  ;;  %v4477_v31 = vmul.f32 %v9702_v59, %v9702_v59  ;;  %v4364_v57 = vsel %vm4254_vm4, %v9702_v59, 0.0 }
 0x2e1   :  { %4724 = vmatmul.msk.f32.gmra.mxu3 %vm3848_vm3, %v3846_v55  ;;  %4270 = vst.msk [vmem:[%s10284_s6 + $0x78] sm:$0xff] %vm4254_vm4, %v4107_v21  ;;  %v4348_v15 = vsel %vm4254_vm4, %v4107_v21, 0.0  ;;  %v4469_v36 = vmul.f32 %v4107_v21, %v4107_v21  ;;  %v9948_v44 = vpop.f32.mrf.mxu3  ;;  %v4561_v21 = vsel %vm4254_vm4, %v4476_v38, 0.0 }
 0x2e2   :  { %v9931_v33 = vpop.f32.mrf.mxu2  ;;  %v4349_v10 = vadd.f32 %v4348_v15, %v4347_v41  ;;  %4307 = vst.msk [vmem:[%s10284_s6 + $0x1a0] sm:$0xff] %vm4254_vm4, %v9948_v44  ;;  %v4478_v15 = vmul.f32 %v9778_v17, %v9778_v17  ;;  %v4563_v59 = vsel %vm4254_vm4, %v4477_v31, 0.0  ;;  %v4486_v31 = vmul.f32 %v9417_v27, %v9417_v27 }
 0x2e3   :  { %v4547_v39 = vsel %vm4254_vm4, %v4469_v36, 0.0  ;;  %4294 = vst.msk [vmem:[%s10284_s6 + $0x138] sm:$0xff] %vm4254_vm4, %v9931_v33 }
 0x2e4   :  { %v4351_v52 = vadd.f32 %v4350_v7, %v4349_v10  ;;  %v4548_v30 = vadd.f32 %v4547_v39, %v4546_v22  ;;  %v4366_v10 = vsel %vm4254_vm4, %v9778_v17, 0.0  ;;  %v4479_v7 = vmul.f32 %v9838_v45, %v9838_v45 }
 0x2e6   :  { %v4353_v43 = vadd.f32 %v4352_v61, %v4351_v52  ;;  %v4550_v40 = vadd.f32 %v4549_v24, %v4548_v30  ;;  %v4565_v30 = vsel %vm4254_vm4, %v4478_v15, 0.0  ;;  %v4368_v24 = vsel %vm4254_vm4, %v9838_v45, 0.0 }
 0x2e7   :  { %v4146_v60 = vpop.f32.mrf.mxu1  ;;  %v4480_v61 = vmul.f32 %v9880_v53, %v9880_v53 }
 0x2e8   :  { %v4355_v46 = vadd.f32 %v4354_v4, %v4353_v43  ;;  %v4552_v20 = vadd.f32 %v4551_v54, %v4550_v40  ;;  %4283 = vst.msk [vmem:[%s10284_s6 + $0xe0] sm:$0xff] %vm4254_vm4, %v4146_v60  ;;  %v4567_v43 = vsel %vm4254_vm4, %v4479_v7, 0.0  ;;  %v4370_v40 = vsel %vm4254_vm4, %v9880_v53, 0.0 }
 0x2e9   :  { %v9986_v50 = vpop.f32.mrf.mxu3  ;;  %v4481_v54 = vmul.f32 %v9922_v8, %v9922_v8 }
 0x2ea   :  { %v9974_v23 = vpop.f32.mrf.mxu2  ;;  %v4357_v25 = vadd.f32 %v4356_v19, %v4355_v46  ;;  %v4554_v12 = vadd.f32 %v4553_v5, %v4552_v20  ;;  %4308 = vst.msk [vmem:[%s10284_s6 + $0x1a8] sm:$0xff] %vm4254_vm4, %v9986_v50  ;;  %v4569_v46 = vsel %vm4254_vm4, %v4480_v61, 0.0  ;;  %v4372_v20 = vsel %vm4254_vm4, %v9922_v8, 0.0 }
 0x2eb   :  { %4295 = vst.msk [vmem:[%s10284_s6 + $0x140] sm:$0xff] %vm4254_vm4, %v9974_v23  ;;  %v4482_v5 = vmul.f32 %v4146_v60, %v4146_v60  ;;  %v4374_v8 = vsel %vm4254_vm4, %v4146_v60, 0.0 }
 0x2ec   :  { %v4359_v18 = vadd.f32 %v4358_v35, %v4357_v25  ;;  %v4556_v29 = vadd.f32 %v4555_v62, %v4554_v12  ;;  %v4571_v25 = vsel %vm4254_vm4, %v4481_v54, 0.0 }
 0x2ee   :  { %v4361_v26 = vadd.f32 %v4360_v56, %v4359_v18  ;;  %v4558_v55 = vadd.f32 %v4557_v48, %v4556_v29  ;;  %v4573_v18 = vsel %vm4254_vm4, %v4482_v5, 0.0  ;;  %v4390_v5 = vsel %vm4254_vm4, %v9787_v9, 0.0 }
 0x2ef   :  { %v4149_v41 = vpop.f32.mrf.mxu1 }
 0x2f0   :  { %v4560_v11 = vadd.f32 %v4559_v63, %v4558_v55  ;;  %v4363_v16 = vadd.f32 %v4362_v32, %v4361_v26  ;;  %4284 = vst.msk [vmem:[%s10284_s6 + $0xe8] sm:$0xff] %vm4254_vm4, %v4149_v41  ;;  %v4483_v12 = vmul.f32 %v4149_v41, %v4149_v41  ;;  %v4376_v29 = vsel %vm4254_vm4, %v4149_v41, 0.0 }
 0x2f1   :  { %v10024_v52 = vpop.f32.mrf.mxu3 }
 0x2f2   :  { %v10012_v1 = vpop.f32.mrf.mxu2  ;;  %v4365_v36 = vadd.f32 %v4364_v57, %v4363_v16  ;;  %v4562_v22 = vadd.f32 %v4561_v21, %v4560_v11  ;;  %4309 = vst.msk [vmem:[%s10284_s6 + $0x1b0] sm:$0xff] %vm4254_vm4, %v10024_v52  ;;  %v4575_v60 = vsel %vm4254_vm4, %v4483_v12, 0.0  ;;  %v4392_v12 = vsel %vm4254_vm4, %v9844_v42, 0.0 }
 0x2f3   :  { %4296 = vst.msk [vmem:[%s10284_s6 + $0x148] sm:$0xff] %vm4254_vm4, %v10012_v1 }
 0x2f4   :  { %v4367_v3 = vadd.f32 %v4366_v10, %v4365_v36  ;;  %v4564_v39 = vadd.f32 %v4563_v59, %v4562_v22  ;;  %v4382_v36 = vsel %vm4254_vm4, %v9417_v27, 0.0  ;;  %v4487_v22 = vmul.f32 %v9537_v47, %v9537_v47 }
 0x2f6   :  { %v4369_v17 = vadd.f32 %v4368_v24, %v4367_v3  ;;  %v4566_v13 = vadd.f32 %v4565_v30, %v4564_v39  ;;  %v4581_v39 = vsel %vm4254_vm4, %v4486_v31, 0.0  ;;  %v4384_v30 = vsel %vm4254_vm4, %v9537_v47, 0.0 }
 0x2f7   :  { %v4152_v51 = vpop.f32.mrf.mxu1  ;;  %v4488_v24 = vmul.f32 %v9612_v34, %v9612_v34  ;;  %v4398_v31 = vsel %vm4254_vm4, %v9974_v23, 0.0 }
 0x2f8   :  { %v4371_v45 = vadd.f32 %v4370_v40, %v4369_v17  ;;  %v4568_v4 = vadd.f32 %v4567_v43, %v4566_v13  ;;  %4285 = vst.msk [vmem:[%s10284_s6 + $0xf0] sm:$0xff] %vm4254_vm4, %v4152_v51  ;;  %v4484_v48 = vmul.f32 %v4152_v51, %v4152_v51  ;;  %v4378_v26 = vsel %vm4254_vm4, %v4152_v51, 0.0 }
 0x2f9   :  { %v10057_v2 = vpop.f32.mrf.mxu3  ;;  %v4583_v17 = vsel %vm4254_vm4, %v4487_v22, 0.0  ;;  %v4386_v13 = vsel %vm4254_vm4, %v9612_v34, 0.0  ;;  %v4489_v43 = vmul.f32 %v9723_v28, %v9723_v28  ;;  %v4585_v54 = vsel %vm4254_vm4, %v4488_v24, 0.0 }
 0x2fa   :  { %v10048_v19 = vpop.f32.mrf.mxu2  ;;  %v4373_v53 = vadd.f32 %v4372_v20, %v4371_v45  ;;  %v4570_v49 = vadd.f32 %v4569_v46, %v4568_v4  ;;  %4310 = vst.msk [vmem:[%s10284_s6 + $0x1b8] sm:$0xff] %vm4254_vm4, %v10057_v2  ;;  %v4577_v11 = vsel %vm4254_vm4, %v4484_v48, 0.0  ;;  %v4388_v45 = vsel %vm4254_vm4, %v9723_v28, 0.0 }
 0x2fb   :  { %4297 = vst.msk [vmem:[%s10284_s6 + $0x150] sm:$0xff] %vm4254_vm4, %v10048_v19  ;;  %v4490_v4 = vmul.f32 %v9787_v9, %v9787_v9  ;;  %v4587_v34 = vsel %vm4254_vm4, %v4489_v43, 0.0  ;;  %v4493_v48 = vmul.f32 %v9931_v33, %v9931_v33 }
 0x2fc   :  { %v4572_v62 = vadd.f32 %v4571_v25, %v4570_v49  ;;  %v4375_v35 = vadd.f32 %v4374_v8, %v4373_v53  ;;  %v4491_v53 = vmul.f32 %v9844_v42, %v9844_v42 }
 0x2fd   :  { %v4589_v8 = vsel %vm4254_vm4, %v4490_v4, 0.0 }
 0x2fe   :  { %v4574_v56 = vadd.f32 %v4573_v18, %v4572_v62  ;;  %v4377_v38 = vadd.f32 %v4376_v29, %v4375_v35  ;;  %v4492_v62 = vmul.f32 %v9892_v14, %v9892_v14  ;;  %v4591_v18 = vsel %vm4254_vm4, %v4491_v53, 0.0 }
 0x2ff   :  { %v4155_v32 = vpop.f32.mrf.mxu1  ;;  %v4394_v29 = vsel %vm4254_vm4, %v9892_v14, 0.0  ;;  %v4595_v14 = vsel %vm4254_vm4, %v4493_v48, 0.0 }
 0x300   :  { %v4576_v55 = vadd.f32 %v4575_v60, %v4574_v56  ;;  %v4379_v63 = vadd.f32 %v4378_v26, %v4377_v38  ;;  %4286 = vst.msk [vmem:[%s10284_s6 + $0xf8] sm:$0xff] %vm4254_vm4, %v4155_v32  ;;  %v4380_v16 = vsel %vm4254_vm4, %v4155_v32, 0.0  ;;  %v4485_v41 = vmul.f32 %v4155_v32, %v4155_v32 }
 0x301   :  { %v10088_v3 = vpop.f32.mrf.mxu3  ;;  %v4593_v38 = vsel %vm4254_vm4, %v4492_v62, 0.0  ;;  %v4396_v60 = vsel %vm4254_vm4, %v9931_v33, 0.0  ;;  %v4494_v26 = vmul.f32 %v9974_v23, %v9974_v23  ;;  %v4402_v23 = vsel %vm4254_vm4, %v10048_v19, 0.0 }
 0x302   :  { %v10076_v21 = vpop.f32.mrf.mxu2  ;;  %v4578_v57 = vadd.f32 %v4577_v11, %v4576_v55  ;;  %v4381_v15 = vadd.f32 %v4380_v16, %v4379_v63  ;;  %v4579_v59 = vsel %vm4254_vm4, %v4485_v41, 0.0  ;;  %4311 = vst.msk [vmem:[%s10284_s6 + $0x1c0] sm:$0xff] %vm4254_vm4, %v10088_v3  ;;  %v4495_v11 = vmul.f32 %v10012_v1, %v10012_v1 }
 0x303   :  { %4298 = vst.msk [vmem:[%s10284_s6 + $0x158] sm:$0xff] %vm4254_vm4, %v10076_v21  ;;  %v4597_v41 = vsel %vm4254_vm4, %v4494_v26, 0.0  ;;  %v4504_v26 = vmul.f32 %v9846_v6, %v9846_v6 }
 0x304   :  { %v4383_v10 = vadd.f32 %v4382_v36, %v4381_v15  ;;  %v4580_v7 = vadd.f32 %v4579_v59, %v4578_v57  ;;  %v4400_v57 = vsel %vm4254_vm4, %v10012_v1, 0.0  ;;  %v4496_v15 = vmul.f32 %v10048_v19, %v10048_v19 }
 0x305   :  { %v4599_v59 = vsel %vm4254_vm4, %v4495_v11, 0.0  ;;  %v4404_v1 = vsel %vm4254_vm4, %v10076_v21, 0.0 }
 0x306   :  { %v4385_v27 = vadd.f32 %v4384_v30, %v4383_v10  ;;  %v4582_v61 = vadd.f32 %v4581_v39, %v4580_v7  ;;  %v4497_v10 = vmul.f32 %v10076_v21, %v10076_v21  ;;  %v4601_v30 = vsel %vm4254_vm4, %v4496_v15, 0.0 }
 0x308   :  { %v4387_v47 = vadd.f32 %v4386_v13, %v4385_v27  ;;  %v4584_v40 = vadd.f32 %v4583_v17, %v4582_v61  ;;  %v4603_v19 = vsel %vm4254_vm4, %v4497_v10, 0.0  ;;  %v4424_v10 = vsel %vm4254_vm4, %v9986_v50, 0.0 }
 0x30a   :  { %v4194_v51 = vpop.f32.mrf.mxu2  ;;  %v4389_v46 = vadd.f32 %v4388_v45, %v4387_v47  ;;  %v4586_v20 = vadd.f32 %v4585_v54, %v4584_v40 }
 0x30b   :  { %4299 = vst.msk [vmem:[%s10284_s6 + $0x160] sm:$0xff] %vm4254_vm4, %v4194_v51  ;;  %v10119_v25 = vpop.f32.mrf.mxu3  ;;  %v4498_v17 = vmul.f32 %v4194_v51, %v4194_v51  ;;  %v4406_v47 = vsel %vm4254_vm4, %v4194_v51, 0.0 }
 0x30c   :  { %v4391_v28 = vadd.f32 %v4390_v5, %v4389_v46  ;;  %v4588_v49 = vadd.f32 %v4587_v34, %v4586_v20  ;;  %4312 = vst.msk [vmem:[%s10284_s6 + $0x1c8] sm:$0xff] %vm4254_vm4, %v10119_v25 }
 0x30d   :  { %v4605_v40 = vsel %vm4254_vm4, %v4498_v17, 0.0 }
 0x30e   :  { %v4393_v9 = vadd.f32 %v4392_v12, %v4391_v28  ;;  %v4590_v35 = vadd.f32 %v4589_v8, %v4588_v49  ;;  %v4502_v12 = vmul.f32 %v9725_v0, %v9725_v0 }
 0x310   :  { %v4592_v42 = vadd.f32 %v4591_v18, %v4590_v35  ;;  %v4395_v56 = vadd.f32 %v4394_v29, %v4393_v9  ;;  %v4414_v18 = vsel %vm4254_vm4, %v9725_v0, 0.0  ;;  %v4503_v29 = vmul.f32 %v9789_v58, %v9789_v58 }
 0x311   :  { %v4418_v0 = vsel %vm4254_vm4, %v9846_v6, 0.0 }
 0x312   :  { %v4197_v55 = vpop.f32.mrf.mxu2  ;;  %v4397_v63 = vadd.f32 %v4396_v60, %v4395_v56  ;;  %v4594_v32 = vadd.f32 %v4593_v38, %v4592_v42  ;;  %v4613_v38 = vsel %vm4254_vm4, %v4502_v12, 0.0  ;;  %v4416_v60 = vsel %vm4254_vm4, %v9789_v58, 0.0 }
 0x313   :  { %4300 = vst.msk [vmem:[%s10284_s6 + $0x168] sm:$0xff] %vm4254_vm4, %v4197_v55  ;;  %v4499_v54 = vmul.f32 %v4197_v55, %v4197_v55  ;;  %v4408_v4 = vsel %vm4254_vm4, %v4197_v55, 0.0  ;;  %v4420_v58 = vsel %vm4254_vm4, %v9911_v37, 0.0 }
 0x314   :  { %v4399_v33 = vadd.f32 %v4398_v31, %v4397_v63  ;;  %v4596_v16 = vadd.f32 %v4595_v14, %v4594_v32  ;;  %v4615_v32 = vsel %vm4254_vm4, %v4503_v29, 0.0  ;;  %v4505_v14 = vmul.f32 %v9911_v37, %v9911_v37 }
 0x315   :  { %v4607_v20 = vsel %vm4254_vm4, %v4499_v54, 0.0 }
 0x316   :  { %v4401_v36 = vadd.f32 %v4400_v57, %v4399_v33  ;;  %v4598_v22 = vadd.f32 %v4597_v41, %v4596_v16  ;;  %v4617_v16 = vsel %vm4254_vm4, %v4504_v26, 0.0  ;;  %v4506_v41 = vmul.f32 %v9948_v44, %v9948_v44 }
 0x317   :  { %v4619_v15 = vsel %vm4254_vm4, %v4505_v14, 0.0 }
 0x318   :  { %v4403_v7 = vadd.f32 %v4402_v23, %v4401_v36  ;;  %v4600_v39 = vadd.f32 %v4599_v59, %v4598_v22  ;;  %v4422_v36 = vsel %vm4254_vm4, %v9948_v44, 0.0  ;;  %v4507_v22 = vmul.f32 %v9986_v50, %v9986_v50 }
 0x319   :  { %v4621_v23 = vsel %vm4254_vm4, %v4506_v41, 0.0  ;;  %v4426_v44 = vsel %vm4254_vm4, %v10024_v52, 0.0  ;;  %v4428_v50 = vsel %vm4254_vm4, %v10057_v2, 0.0 }
 0x31a   :  { %v4200_v24 = vpop.f32.mrf.mxu2  ;;  %v4405_v27 = vadd.f32 %v4404_v1, %v4403_v7  ;;  %v4602_v61 = vadd.f32 %v4601_v30, %v4600_v39  ;;  %v4508_v7 = vmul.f32 %v10024_v52, %v10024_v52  ;;  %v4623_v1 = vsel %vm4254_vm4, %v4507_v22, 0.0 }
 0x31b   :  { %4301 = vst.msk [vmem:[%s10284_s6 + $0x170] sm:$0xff] %vm4254_vm4, %v4200_v24  ;;  %v4500_v34 = vmul.f32 %v4200_v24, %v4200_v24  ;;  %v4410_v51 = vsel %vm4254_vm4, %v4200_v24, 0.0  ;;  %v4509_v24 = vmul.f32 %v10057_v2, %v10057_v2  ;;  %v4430_v52 = vsel %vm4254_vm4, %v10088_v3, 0.0 }
 0x31c   :  { %v4604_v43 = vadd.f32 %v4603_v19, %v4602_v61  ;;  %v4407_v21 = vadd.f32 %v4406_v47, %v4405_v27  ;;  %v4625_v17 = vsel %vm4254_vm4, %v4508_v7, 0.0  ;;  %v4510_v19 = vmul.f32 %v10088_v3, %v10088_v3 }
 0x31d   :  { %v4609_v28 = vsel %vm4254_vm4, %v4500_v34, 0.0  ;;  %v4432_v2 = vsel %vm4254_vm4, %v10119_v25, 0.0 }
 0x31e   :  { %v4606_v45 = vadd.f32 %v4605_v40, %v4604_v43  ;;  %v4409_v46 = vadd.f32 %v4408_v4, %v4407_v21  ;;  %v4627_v21 = vsel %vm4254_vm4, %v4509_v24, 0.0  ;;  %v4511_v40 = vmul.f32 %v10119_v25, %v10119_v25 }
 0x320   :  { %v4608_v5 = vadd.f32 %v4607_v20, %v4606_v45  ;;  %v4411_v53 = vadd.f32 %v4410_v51, %v4409_v46  ;;  %v4629_v46 = vsel %vm4254_vm4, %v4510_v19, 0.0  ;;  %v4631_v3 = vsel %vm4254_vm4, %v4511_v40, 0.0 }
 0x321   :  { %v10168_v13 = vpop.f32.mrf.mxu3 }
 0x322   :  { %4313 = vst.msk [vmem:[%s10284_s6 + $0x1d0] sm:$0xff] %vm4254_vm4, %v10168_v13  ;;  %v4610_v49 = vadd.f32 %v4609_v28, %v4608_v5  ;;  %v4434_v25 = vsel %vm4254_vm4, %v10168_v13, 0.0 }
 0x32c   :  { %v4203_v8 = vpop.f32.mrf.mxu2 }
 0x32d   :  { %4302 = vst.msk [vmem:[%s10284_s6 + $0x178] sm:$0xff] %vm4254_vm4, %v4203_v8  ;;  %v4412_v62 = vsel %vm4254_vm4, %v4203_v8, 0.0  ;;  %v4501_v9 = vmul.f32 %v4203_v8, %v4203_v8 }
 0x32e   :  { %v4413_v35 = vadd.f32 %v4412_v62, %v4411_v53  ;;  %v4512_v53 = vmul.f32 %v10168_v13, %v10168_v13 }
 0x32f   :  { %v4611_v48 = vsel %vm4254_vm4, %v4501_v9, 0.0 }
 0x330   :  { %v4415_v42 = vadd.f32 %v4414_v18, %v4413_v35  ;;  %v4612_v56 = vadd.f32 %v4611_v48, %v4610_v49  ;;  %v4633_v49 = vsel %vm4254_vm4, %v4512_v53, 0.0 }
 0x332   :  { %v4417_v55 = vadd.f32 %v4416_v60, %v4415_v42  ;;  %v4614_v63 = vadd.f32 %v4613_v38, %v4612_v56 }
 0x334   :  { %v4419_v31 = vadd.f32 %v4418_v0, %v4417_v55  ;;  %v4616_v11 = vadd.f32 %v4615_v32, %v4614_v63 }
 0x335   :  { %v4239_v33 = vpop.f32.mrf.mxu3 }
 0x336   :  { %4314 = vst.msk [vmem:[%s10284_s6 + $0x1d8] sm:$0xff] %vm4254_vm4, %v4239_v33  ;;  %v4421_v6 = vadd.f32 %v4420_v58, %v4419_v31  ;;  %v4618_v57 = vadd.f32 %v4617_v16, %v4616_v11  ;;  %v4513_v8 = vmul.f32 %v4239_v33, %v4239_v33  ;;  %v4436_v62 = vsel %vm4254_vm4, %v4239_v33, 0.0 }
 0x338   :  { %v4423_v59 = vadd.f32 %v4422_v36, %v4421_v6  ;;  %v4620_v37 = vadd.f32 %v4619_v15, %v4618_v57  ;;  %v4635_v18 = vsel %vm4254_vm4, %v4513_v8, 0.0 }
 0x33a   :  { %v4425_v39 = vadd.f32 %v4424_v10, %v4423_v59  ;;  %v4622_v30 = vadd.f32 %v4621_v23, %v4620_v37 }
 0x33c   :  { %v4624_v27 = vadd.f32 %v4623_v1, %v4622_v30  ;;  %v4427_v61 = vadd.f32 %v4426_v44, %v4425_v39 }
 0x33e   :  { %v4429_v43 = vadd.f32 %v4428_v50, %v4427_v61  ;;  %v4626_v47 = vadd.f32 %v4625_v17, %v4624_v27 }
 0x340   :  { %v4431_v54 = vadd.f32 %v4430_v52, %v4429_v43  ;;  %v4628_v45 = vadd.f32 %v4627_v21, %v4626_v47 }
 0x342   :  { %v4242_v4 = vpop.f32.mrf.mxu3  ;;  %v4433_v20 = vadd.f32 %v4432_v2, %v4431_v54  ;;  %v4630_v34 = vadd.f32 %v4629_v46, %v4628_v45 }
 0x343   :  { %4315 = vst.msk [vmem:[%s10284_s6 + $0x1e0] sm:$0xff] %vm4254_vm4, %v4242_v4  ;;  %v4514_v29 = vmul.f32 %v4242_v4, %v4242_v4  ;;  %v4438_v13 = vsel %vm4254_vm4, %v4242_v4, 0.0 }
 0x344   :  { %v4632_v5 = vadd.f32 %v4631_v3, %v4630_v34  ;;  %v4435_v28 = vadd.f32 %v4434_v25, %v4433_v20 }
 0x345   :  { %v4637_v56 = vsel %vm4254_vm4, %v4514_v29, 0.0 }
 0x346   :  { %v4634_v12 = vadd.f32 %v4633_v49, %v4632_v5  ;;  %v4437_v9 = vadd.f32 %v4436_v62, %v4435_v28 }
 0x348   :  { %v4636_v48 = vadd.f32 %v4635_v18, %v4634_v12  ;;  %v4439_v42 = vadd.f32 %v4438_v13, %v4437_v9 }
 0x34a   :  { %v4638_v60 = vadd.f32 %v4637_v56, %v4636_v48 }
 0x34d   :  { %v4245_v51 = vpop.f32.mrf.mxu3 }
 0x34e   :  { %4316 = vst.msk [vmem:[%s10284_s6 + $0x1e8] sm:$0xff] %vm4254_vm4, %v4245_v51  ;;  %v4515_v38 = vmul.f32 %v4245_v51, %v4245_v51  ;;  %v4440_v26 = vsel %vm4254_vm4, %v4245_v51, 0.0 }
 0x34f   :  { %v4441_v55 = vadd.f32 %v4440_v26, %v4439_v42 }
 0x350   :  { %v4639_v63 = vsel %vm4254_vm4, %v4515_v38, 0.0 }
 0x351   :  { %v4640_v0 = vadd.f32 %v4639_v63, %v4638_v60 }
 0x358   :  { %v4248_v35 = vpop.f32.mrf.mxu3 }
 0x359   :  { %4317 = vst.msk [vmem:[%s10284_s6 + $0x1f0] sm:$0xff] %vm4254_vm4, %v4248_v35  ;;  %v4516_v32 = vmul.f32 %v4248_v35, %v4248_v35  ;;  %v4442_v14 = vsel %vm4254_vm4, %v4248_v35, 0.0 }
 0x35a   :  { %v4443_v31 = vadd.f32 %v4442_v14, %v4441_v55 }
 0x35b   :  { %v4641_v11 = vsel %vm4254_vm4, %v4516_v32, 0.0 }
 0x35c   :  { %v4642_v33 = vadd.f32 %v4641_v11, %v4640_v0 }
 0x364   :  { %v4251_v16 = vpop.f32.mrf.mxu3 }
 0x365   :  { %4318 = vst.msk [vmem:[%s10284_s6 + $0x1f8] sm:$0xff] %vm4254_vm4, %v4251_v16  ;;  %v4444_v58 = vsel %vm4254_vm4, %v4251_v16, 0.0  ;;  %v4517_v41 = vmul.f32 %v4251_v16, %v4251_v16 }
 0x366   :  { %v4445_v6 = vadd.f32 %v4444_v58, %v4443_v31 }
 0x367   :  { %v4643_v57 = vsel %vm4254_vm4, %v4517_v41, 0.0 }
 0x368   :  { %v4446_v15 = vrot.slane %v4445_v6, 4  ;;  %v4644_v36 = vadd.f32 %v4643_v57, %v4642_v33 }
 0x36a   :  { %v4447_v22 = vadd.f32 %v4446_v15, %v4445_v6  ;;  %v4645_v59 = vrot.slane %v4644_v36, 4 }
 0x36c   :  { %v4448_v37 = vrot.slane %v4447_v22, 2  ;;  %v4646_v23 = vadd.f32 %v4645_v59, %v4644_v36 }
 0x36e   :  { %v4449_v10 = vadd.f32 %v4448_v37, %v4447_v22  ;;  %v4647_v7 = vrot.slane %v4646_v23, 2 }
 0x370   :  { %v4450_v39 = vrot.slane %v4449_v10, 1  ;;  %v4648_v30 = vadd.f32 %v4647_v7, %v4646_v23 }
 0x372   :  { %v4451_v1 = vadd.f32 %v4450_v39, %v4449_v10  ;;  %v4649_v44 = vrot.slane %v4648_v30, 1 }
 0x374   :  { %4453 = vst.msk [vmem:[%s10285_s7] sm:$0x1] %vm4452_vm5, %v4451_v1  ;;  %v4650_v24 = vadd.f32 %v4649_v44, %v4648_v30 }
 0x376   :  { %4651 = vst.msk [vmem:[%s10285_s7 + $0x1] sm:$0x1] %vm4452_vm5, %v4650_v24 }

</bundles_post_ra>
